<compile_context>
chip_gen: v6e
topology: v6e:2x2x1
jax: 0.10.0
libtpu: 0.0.40
codegen_flags: <defaults>
</compile_context>

<pallas_src>
import functools

import jax
import jax.numpy as jnp
from jax import lax
from jax.experimental import pallas as pl
from jax.experimental.pallas import tpu as pltpu

LANES = 128
KH = KW = 3
STRIDE = 2
PATCH_LANES = 16          # 9 conv1 taps (cin=1), padded to 16 lanes


def _rup8(n):
    return ((n + 7) // 8) * 8


# ----------------------------------------------------------------------------
# Fused kernel: conv1 -> conv2 -> conv3 -> fc1 -> fc2 for one batch block.
#
# Row layout of every activation: row = p * bb + b  (p = spatial position,
# b = image within the block).  The stride-2 3x3 gather for conv{2,3} is then
# a static contiguous row slice per (output position, tap).
# ----------------------------------------------------------------------------
def _fused_forward_kernel(p1_ref, w1_ref, w2_ref, w3_ref, fc1w_ref, fc2w_ref,
                          bias_ref, o_ref, *, bb, h1, h2):
    f32 = jnp.float32

    def rows(a, p):                       # all images of the block at position p
        return a[p * bb:(p + 1) * bb, :]

    # conv1: relu(patches @ W1 + b1)                        (h1*h1*bb, 128)
    a1 = jnp.dot(p1_ref[...], w1_ref[...], preferred_element_type=f32)
    a1 = jnp.maximum(a1 + bias_ref[0:1, :], 0.0)
    # TODO(synk): dropout1 is identity (eval mode); training-mode dropout would
    # use pltpu.prng_seed + pltpu.stateful_bernoulli here.

    # conv2: static im2col (9 tile-aligned row slices -> lane concat), then
    # one K = 9*128 MXU matmul against the tap-concatenated weight.
    blocks = []
    for oy in range(h2):
        for ox in range(h2):
            taps = [rows(a1, (STRIDE * oy + ky) * h1 + (STRIDE * ox + kx))
                    for ky in range(KH) for kx in range(KW)]
            blocks.append(jnp.concatenate(taps, axis=1))    # (bb, 9*128)
    g2 = jnp.concatenate(blocks, axis=0)                    # (h2*h2*bb, 9*128)
    a2 = jnp.dot(g2, w2_ref[...], preferred_element_type=f32)
    a2 = jnp.maximum(a2 + bias_ref[1:2, :], 0.0)
    # TODO(synk): dropout2 identity (eval mode).

    # conv3: output is 1x1, its 9 taps are exactly the 9 positions of a2.
    g3 = jnp.concatenate([rows(a2, j) for j in range(KH * KW)], axis=1)
    a3 = jnp.dot(g3, w3_ref[...], preferred_element_type=f32)
    a3 = jnp.maximum(a3 + bias_ref[2:3, :], 0.0)            # (bb, 128); flatten == identity

    # fc1 (tanh -> EUP) + fc2
    h = jnp.tanh(jnp.dot(a3, fc1w_ref[...], preferred_element_type=f32)
                 + bias_ref[3:4, :])
    o = jnp.dot(h, fc2w_ref[...], preferred_element_type=f32) + bias_ref[4:5, :]
    o_ref[...] = o.astype(o_ref.dtype)


# ----------------------------------------------------------------------------
# Host-side packing: lane-padded weights, tap-concatenated conv weights,
# packed biases, (position, image)-ordered conv1 patches.
# ----------------------------------------------------------------------------
def _pack_weights(params):
    f32 = jnp.float32

    def pad_mat(m, rows, cols):
        out = jnp.zeros((rows, cols), f32)
        return out.at[:m.shape[0], :m.shape[1]].set(m.astype(f32))

    def cat_taps(w):
        # (Cout, Cin, KH, KW) -> (KH*KW*128, 128); row = tap*128 + cin
        cout, cin, kh, kw = w.shape
        taps = jnp.transpose(w, (2, 3, 1, 0)).reshape(kh * kw, cin, cout)
        out = jnp.zeros((kh * kw, LANES, LANES), f32)
        out = out.at[:, :cin, :cout].set(taps.astype(f32))
        return out.reshape(kh * kw * LANES, LANES)

    w1 = params["w1"]                                        # (32, 1, 3, 3)
    w1mat = jnp.transpose(w1, (2, 3, 1, 0)).reshape(
        KH * KW * w1.shape[1], w1.shape[0])                  # (9, 32)

    bias = jnp.zeros((8, LANES), f32)
    bias = bias.at[0, :params["b1"].shape[0]].set(params["b1"])
    bias = bias.at[1, :params["b2"].shape[0]].set(params["b2"])
    bias = bias.at[2, :params["b3"].shape[0]].set(params["b3"])
    bias = bias.at[3, :params["fc1_b"].shape[0]].set(params["fc1_b"])
    bias = bias.at[4, :params["fc2_b"].shape[0]].set(params["fc2_b"])

    return (pad_mat(w1mat, PATCH_LANES, LANES),
            cat_taps(params["w2"]),
            cat_taps(params["w3"]),
            pad_mat(params["fc1_w"], LANES, LANES),
            pad_mat(params["fc2_w"], LANES, LANES),
            bias)


def _build_patches(x_nchw, g, bb, bbp, h1):
    """conv1 im2col, rows ordered (block, position, image), 16 lanes."""
    x = x_nchw[:, 0]                                         # (batch, H, W), cin=1
    end = (h1 - 1) * STRIDE + 1
    taps = [x[:, ky:ky + end:STRIDE, kx:kx + end:STRIDE]
            for ky in range(KH) for kx in range(KW)]         # each (batch, h1, h1)
    p = jnp.stack(taps, axis=-1)                             # (batch, h1, h1, 9)
    p = p.reshape(g, bb, h1 * h1, KH * KW)
    p = jnp.transpose(p, (0, 2, 1, 3))                       # (g, h1*h1, bb, 9)
    p = jnp.pad(p, ((0, 0), (0, 0), (0, bbp - bb), (0, PATCH_LANES - KH * KW)))
    return p.reshape(g * h1 * h1 * bbp, PATCH_LANES)


# ----------------------------------------------------------------------------
# Build the fused forward function.
# ----------------------------------------------------------------------------
def build_forward(params, batch, hw=16, batch_block=None, single_buffer=True):
    bb = batch if batch_block is None else batch_block
    assert batch % bb == 0, "batch must be divisible by batch_block"
    g = batch // bb
    bbp = max(8, _rup8(bb))           # image rows per block, sublane aligned

    h1 = (hw - KH) // STRIDE + 1      # 7
    h2 = (h1 - KH) // STRIDE + 1      # 3
    h3 = (h2 - KH) // STRIDE + 1      # 1
    assert h3 == 1, "fc1 expects 128*1*1 features"

    weights = _pack_weights(params)
    n_rows1 = h1 * h1 * bbp

    def inv_spec(shape):
        idx = lambda i, n=len(shape): (0,) * n
        if single_buffer:
            # Grid-invariant operands: fetch once, don't double-buffer.
            return pl.BlockSpec(shape, idx, pipeline_mode=pl.Buffered(1))
        return pl.BlockSpec(shape, idx)

    kernel = functools.partial(_fused_forward_kernel, bb=bbp, h1=h1, h2=h2)

    fused = pl.pallas_call(
        kernel,
        out_shape=jax.ShapeDtypeStruct((g * bbp, LANES), jnp.float32),
        grid=(g,),
        in_specs=[
            pl.BlockSpec((n_rows1, PATCH_LANES), lambda i: (i, 0)),   # patches
            inv_spec((PATCH_LANES, LANES)),                           # W1
            inv_spec((KH * KW * LANES, LANES)),                       # W2 taps cat
            inv_spec((KH * KW * LANES, LANES)),                       # W3 taps cat
            inv_spec((LANES, LANES)),                                 # fc1 W
            inv_spec((LANES, LANES)),                                 # fc2 W
            inv_spec((8, LANES)),                                     # all biases
        ],
        out_specs=pl.BlockSpec((bbp, LANES), lambda i: (i, 0)),
        compiler_params=pltpu.CompilerParams(
            dimension_semantics=("parallel",),
            vmem_limit_bytes=32 * 1024 * 1024),
    )

    @jax.jit
    def forward(x_nchw):
        p1 = _build_patches(x_nchw, g, bb, bbp, h1)
        out = fused(p1, *weights)
        out = out.reshape(g, bbp, LANES)[:, :bb, :10]
        return out.reshape(batch, 10)

    return forward


# ----------------------------------------------------------------------------
# Parameters (deterministic, synthetic)
# ----------------------------------------------------------------------------
def init_params(key):
    ks = jax.random.split(key, 10)

    def conv_w(k, cout, cin, kh, kw):
        fan_in = cin * kh * kw
        return jax.random.normal(k, (cout, cin, kh, kw), jnp.float32) / jnp.sqrt(fan_in)

    def lin_w(k, fin, fout):
        return jax.random.normal(k, (fin, fout), jnp.float32) / jnp.sqrt(fin)

    return {
        "w1": conv_w(ks[0], 32, 1, 3, 3),
        "b1": 0.01 * jax.random.normal(ks[1], (32,), jnp.float32),
        "w2": conv_w(ks[2], 64, 32, 3, 3),
        "b2": 0.01 * jax.random.normal(ks[3], (64,), jnp.float32),
        "w3": conv_w(ks[4], 128, 64, 3, 3),
        "b3": 0.01 * jax.random.normal(ks[5], (128,), jnp.float32),
        "fc1_w": lin_w(ks[6], 128, 64),
        "fc1_b": 0.01 * jax.random.normal(ks[7], (64,), jnp.float32),
        "fc2_w": lin_w(ks[8], 64, 10),
        "fc2_b": 0.01 * jax.random.normal(ks[9], (10,), jnp.float32),
    }


# ----------------------------------------------------------------------------
# Pure-JAX reference (matches PyTorch LocallyConnectedNN.forward, eval mode)
# ----------------------------------------------------------------------------
def forward_ref(params, x_nchw):
    def conv(x, w, b, s):
        y = lax.conv_general_dilated(
            x, w, window_strides=(s, s), padding="VALID",
            dimension_numbers=("NCHW", "OIHW", "NCHW"))
        return jax.nn.relu(y + b[None, :, None, None])

    x = conv(x_nchw, params["w1"], params["b1"], 2)
    x = conv(x, params["w2"], params["b2"], 2)
    x = conv(x, params["w3"], params["b3"], 2)
    x = x.reshape(x.shape[0], -1)
    x = jnp.tanh(x @ params["fc1_w"] + params["fc1_b"])
    return x @ params["fc2_w"] + params["fc2_b"]


if __name__ == "__main__":
    key = jax.random.PRNGKey(0)
    k_param, k_x = jax.random.split(key)
    params = init_params(k_param)

    # (B, C, H, W) = (64, 1, 16, 16): 16 -k3s2-> 7 -k3s2-> 3 -k3s2-> 1.
    # batch_block=32 -> conv2 matmul M = 288 rows (fills a 256-row MXU),
    # grid g = 2 "parallel" steps (both v7x TensorCores / pipelined DMA).
    B, BB = 64, 32
    x = jax.random.normal(k_x, (B, 1, 16, 16), jnp.float32)

    try:
        fwd = build_forward(params, B, batch_block=BB, single_buffer=True)
        out = jax.block_until_ready(fwd(x))
    except Exception:
        # Fallback if this JAX build rejects pipeline_mode=pl.Buffered(1).
        fwd = build_forward(params, B, batch_block=BB, single_buffer=False)
        out = jax.block_until_ready(fwd(x))

    ref = jax.block_until_ready(forward_ref(params, x))
    assert out.shape == (B, 10), out.shape
    assert jnp.allclose(out, ref, atol=5e-4, rtol=5e-4), \
        f"max abs err {jnp.max(jnp.abs(out - ref))}"

    print("KERNEL_OK")
</pallas_src>

<mosaic_0001>
module attributes {stable_mosaic.version = 11 : i64} {
  func.func @_fused_forward_kernel(%arg0: i32, %arg1: memref<1568x16xf32, #tpu.memory_space<vmem>>, %arg2: memref<16x128xf32, #tpu.memory_space<vmem>>, %arg3: memref<1152x128xf32, #tpu.memory_space<vmem>>, %arg4: memref<1152x128xf32, #tpu.memory_space<vmem>>, %arg5: memref<128x128xf32, #tpu.memory_space<vmem>>, %arg6: memref<128x128xf32, #tpu.memory_space<vmem>>, %arg7: memref<8x128xf32, #tpu.memory_space<vmem>>, %arg8: memref<32x128xf32, #tpu.memory_space<vmem>>) attributes {dimension_semantics = [#tpu.dimension_semantics<parallel>], iteration_bounds = array<i64: 2>, scalar_prefetch = 0 : i64, scratch_operands = 0 : i64, tpu.core_type = #tpu.core_type<tc>, window_params = [{transform_indices = @transform_0, window_bounds = array<i64: 1568, 16>}, {pipeline_mode = #tpu.pipeline_mode<synchronous>, transform_indices = @transform_1, window_bounds = array<i64: 16, 128>}, {pipeline_mode = #tpu.pipeline_mode<synchronous>, transform_indices = @transform_2, window_bounds = array<i64: 1152, 128>}, {pipeline_mode = #tpu.pipeline_mode<synchronous>, transform_indices = @transform_3, window_bounds = array<i64: 1152, 128>}, {pipeline_mode = #tpu.pipeline_mode<synchronous>, transform_indices = @transform_4, window_bounds = array<i64: 128, 128>}, {pipeline_mode = #tpu.pipeline_mode<synchronous>, transform_indices = @transform_5, window_bounds = array<i64: 128, 128>}, {pipeline_mode = #tpu.pipeline_mode<synchronous>, transform_indices = @transform_6, window_bounds = array<i64: 8, 128>}, {transform_indices = @transform_7, window_bounds = array<i64: 32, 128>}]} {
    %c0 = arith.constant 0 : index
    %c0_0 = arith.constant 0 : index
    %0 = vector.load %arg1[%c0, %c0_0] : memref<1568x16xf32, #tpu.memory_space<vmem>>, vector<1568x16xf32>
    %c0_1 = arith.constant 0 : index
    %c0_2 = arith.constant 0 : index
    %1 = vector.load %arg2[%c0_1, %c0_2] : memref<16x128xf32, #tpu.memory_space<vmem>>, vector<16x128xf32>
    %cst = arith.constant dense<0.000000e+00> : vector<1568x128xf32>
    %2 = tpu.matmul %0, %1, %cst {dimension_numbers = #tpu.dot_dimension_numbers<[1], [0], [0], [1], [0, 0, 1, 1], [], []>} : vector<1568x16xf32>, vector<16x128xf32>, vector<1568x128xf32> -> vector<1568x128xf32>
    %c0_3 = arith.constant 0 : index
    %c0_4 = arith.constant 0 : index
    %3 = vector.load %arg7[%c0_3, %c0_4] : memref<8x128xf32, #tpu.memory_space<vmem>>, vector<1x128xf32>
    %4 = vector.broadcast %3 : vector<1x128xf32> to vector<1568x128xf32>
    %5 = arith.addf %2, %4 : vector<1568x128xf32>
    %cst_5 = arith.constant 0.000000e+00 : f32
    %6 = vector.broadcast %cst_5 : f32 to vector<1568x128xf32>
    %7 = arith.maximumf %5, %6 : vector<1568x128xf32>
    %8 = vector.extract_strided_slice %7 {offsets = [0, 0], sizes = [32, 128], strides = [1, 1]} : vector<1568x128xf32> to vector<32x128xf32>
    %9 = vector.extract_strided_slice %7 {offsets = [32, 0], sizes = [32, 128], strides = [1, 1]} : vector<1568x128xf32> to vector<32x128xf32>
    %10 = vector.extract_strided_slice %7 {offsets = [64, 0], sizes = [32, 128], strides = [1, 1]} : vector<1568x128xf32> to vector<32x128xf32>
    %11 = vector.extract_strided_slice %7 {offsets = [224, 0], sizes = [32, 128], strides = [1, 1]} : vector<1568x128xf32> to vector<32x128xf32>
    %12 = vector.extract_strided_slice %7 {offsets = [256, 0], sizes = [32, 128], strides = [1, 1]} : vector<1568x128xf32> to vector<32x128xf32>
    %13 = vector.extract_strided_slice %7 {offsets = [288, 0], sizes = [32, 128], strides = [1, 1]} : vector<1568x128xf32> to vector<32x128xf32>
    %14 = vector.extract_strided_slice %7 {offsets = [448, 0], sizes = [32, 128], strides = [1, 1]} : vector<1568x128xf32> to vector<32x128xf32>
    %15 = vector.extract_strided_slice %7 {offsets = [480, 0], sizes = [32, 128], strides = [1, 1]} : vector<1568x128xf32> to vector<32x128xf32>
    %16 = vector.extract_strided_slice %7 {offsets = [512, 0], sizes = [32, 128], strides = [1, 1]} : vector<1568x128xf32> to vector<32x128xf32>
    %17 = tpu.concatenate %8, %9, %10, %11, %12, %13, %14, %15, %16 in 1 : vector<32x128xf32>, vector<32x128xf32>, vector<32x128xf32>, vector<32x128xf32>, vector<32x128xf32>, vector<32x128xf32>, vector<32x128xf32>, vector<32x128xf32>, vector<32x128xf32> -> vector<32x1152xf32>
    %18 = vector.extract_strided_slice %7 {offsets = [64, 0], sizes = [32, 128], strides = [1, 1]} : vector<1568x128xf32> to vector<32x128xf32>
    %19 = vector.extract_strided_slice %7 {offsets = [96, 0], sizes = [32, 128], strides = [1, 1]} : vector<1568x128xf32> to vector<32x128xf32>
    %20 = vector.extract_strided_slice %7 {offsets = [128, 0], sizes = [32, 128], strides = [1, 1]} : vector<1568x128xf32> to vector<32x128xf32>
    %21 = vector.extract_strided_slice %7 {offsets = [288, 0], sizes = [32, 128], strides = [1, 1]} : vector<1568x128xf32> to vector<32x128xf32>
    %22 = vector.extract_strided_slice %7 {offsets = [320, 0], sizes = [32, 128], strides = [1, 1]} : vector<1568x128xf32> to vector<32x128xf32>
    %23 = vector.extract_strided_slice %7 {offsets = [352, 0], sizes = [32, 128], strides = [1, 1]} : vector<1568x128xf32> to vector<32x128xf32>
    %24 = vector.extract_strided_slice %7 {offsets = [512, 0], sizes = [32, 128], strides = [1, 1]} : vector<1568x128xf32> to vector<32x128xf32>
    %25 = vector.extract_strided_slice %7 {offsets = [544, 0], sizes = [32, 128], strides = [1, 1]} : vector<1568x128xf32> to vector<32x128xf32>
    %26 = vector.extract_strided_slice %7 {offsets = [576, 0], sizes = [32, 128], strides = [1, 1]} : vector<1568x128xf32> to vector<32x128xf32>
    %27 = tpu.concatenate %18, %19, %20, %21, %22, %23, %24, %25, %26 in 1 : vector<32x128xf32>, vector<32x128xf32>, vector<32x128xf32>, vector<32x128xf32>, vector<32x128xf32>, vector<32x128xf32>, vector<32x128xf32>, vector<32x128xf32>, vector<32x128xf32> -> vector<32x1152xf32>
    %28 = vector.extract_strided_slice %7 {offsets = [128, 0], sizes = [32, 128], strides = [1, 1]} : vector<1568x128xf32> to vector<32x128xf32>
    %29 = vector.extract_strided_slice %7 {offsets = [160, 0], sizes = [32, 128], strides = [1, 1]} : vector<1568x128xf32> to vector<32x128xf32>
    %30 = vector.extract_strided_slice %7 {offsets = [192, 0], sizes = [32, 128], strides = [1, 1]} : vector<1568x128xf32> to vector<32x128xf32>
    %31 = vector.extract_strided_slice %7 {offsets = [352, 0], sizes = [32, 128], strides = [1, 1]} : vector<1568x128xf32> to vector<32x128xf32>
    %32 = vector.extract_strided_slice %7 {offsets = [384, 0], sizes = [32, 128], strides = [1, 1]} : vector<1568x128xf32> to vector<32x128xf32>
    %33 = vector.extract_strided_slice %7 {offsets = [416, 0], sizes = [32, 128], strides = [1, 1]} : vector<1568x128xf32> to vector<32x128xf32>
    %34 = vector.extract_strided_slice %7 {offsets = [576, 0], sizes = [32, 128], strides = [1, 1]} : vector<1568x128xf32> to vector<32x128xf32>
    %35 = vector.extract_strided_slice %7 {offsets = [608, 0], sizes = [32, 128], strides = [1, 1]} : vector<1568x128xf32> to vector<32x128xf32>
    %36 = vector.extract_strided_slice %7 {offsets = [640, 0], sizes = [32, 128], strides = [1, 1]} : vector<1568x128xf32> to vector<32x128xf32>
    %37 = tpu.concatenate %28, %29, %30, %31, %32, %33, %34, %35, %36 in 1 : vector<32x128xf32>, vector<32x128xf32>, vector<32x128xf32>, vector<32x128xf32>, vector<32x128xf32>, vector<32x128xf32>, vector<32x128xf32>, vector<32x128xf32>, vector<32x128xf32> -> vector<32x1152xf32>
    %38 = vector.extract_strided_slice %7 {offsets = [448, 0], sizes = [32, 128], strides = [1, 1]} : vector<1568x128xf32> to vector<32x128xf32>
    %39 = vector.extract_strided_slice %7 {offsets = [480, 0], sizes = [32, 128], strides = [1, 1]} : vector<1568x128xf32> to vector<32x128xf32>
    %40 = vector.extract_strided_slice %7 {offsets = [512, 0], sizes = [32, 128], strides = [1, 1]} : vector<1568x128xf32> to vector<32x128xf32>
    %41 = vector.extract_strided_slice %7 {offsets = [672, 0], sizes = [32, 128], strides = [1, 1]} : vector<1568x128xf32> to vector<32x128xf32>
    %42 = vector.extract_strided_slice %7 {offsets = [704, 0], sizes = [32, 128], strides = [1, 1]} : vector<1568x128xf32> to vector<32x128xf32>
    %43 = vector.extract_strided_slice %7 {offsets = [736, 0], sizes = [32, 128], strides = [1, 1]} : vector<1568x128xf32> to vector<32x128xf32>
    %44 = vector.extract_strided_slice %7 {offsets = [896, 0], sizes = [32, 128], strides = [1, 1]} : vector<1568x128xf32> to vector<32x128xf32>
    %45 = vector.extract_strided_slice %7 {offsets = [928, 0], sizes = [32, 128], strides = [1, 1]} : vector<1568x128xf32> to vector<32x128xf32>
    %46 = vector.extract_strided_slice %7 {offsets = [960, 0], sizes = [32, 128], strides = [1, 1]} : vector<1568x128xf32> to vector<32x128xf32>
    %47 = tpu.concatenate %38, %39, %40, %41, %42, %43, %44, %45, %46 in 1 : vector<32x128xf32>, vector<32x128xf32>, vector<32x128xf32>, vector<32x128xf32>, vector<32x128xf32>, vector<32x128xf32>, vector<32x128xf32>, vector<32x128xf32>, vector<32x128xf32> -> vector<32x1152xf32>
    %48 = vector.extract_strided_slice %7 {offsets = [512, 0], sizes = [32, 128], strides = [1, 1]} : vector<1568x128xf32> to vector<32x128xf32>
    %49 = vector.extract_strided_slice %7 {offsets = [544, 0], sizes = [32, 128], strides = [1, 1]} : vector<1568x128xf32> to vector<32x128xf32>
    %50 = vector.extract_strided_slice %7 {offsets = [576, 0], sizes = [32, 128], strides = [1, 1]} : vector<1568x128xf32> to vector<32x128xf32>
    %51 = vector.extract_strided_slice %7 {offsets = [736, 0], sizes = [32, 128], strides = [1, 1]} : vector<1568x128xf32> to vector<32x128xf32>
    %52 = vector.extract_strided_slice %7 {offsets = [768, 0], sizes = [32, 128], strides = [1, 1]} : vector<1568x128xf32> to vector<32x128xf32>
    %53 = vector.extract_strided_slice %7 {offsets = [800, 0], sizes = [32, 128], strides = [1, 1]} : vector<1568x128xf32> to vector<32x128xf32>
    %54 = vector.extract_strided_slice %7 {offsets = [960, 0], sizes = [32, 128], strides = [1, 1]} : vector<1568x128xf32> to vector<32x128xf32>
    %55 = vector.extract_strided_slice %7 {offsets = [992, 0], sizes = [32, 128], strides = [1, 1]} : vector<1568x128xf32> to vector<32x128xf32>
    %56 = vector.extract_strided_slice %7 {offsets = [1024, 0], sizes = [32, 128], strides = [1, 1]} : vector<1568x128xf32> to vector<32x128xf32>
    %57 = tpu.concatenate %48, %49, %50, %51, %52, %53, %54, %55, %56 in 1 : vector<32x128xf32>, vector<32x128xf32>, vector<32x128xf32>, vector<32x128xf32>, vector<32x128xf32>, vector<32x128xf32>, vector<32x128xf32>, vector<32x128xf32>, vector<32x128xf32> -> vector<32x1152xf32>
    %58 = vector.extract_strided_slice %7 {offsets = [576, 0], sizes = [32, 128], strides = [1, 1]} : vector<1568x128xf32> to vector<32x128xf32>
    %59 = vector.extract_strided_slice %7 {offsets = [608, 0], sizes = [32, 128], strides = [1, 1]} : vector<1568x128xf32> to vector<32x128xf32>
    %60 = vector.extract_strided_slice %7 {offsets = [640, 0], sizes = [32, 128], strides = [1, 1]} : vector<1568x128xf32> to vector<32x128xf32>
    %61 = vector.extract_strided_slice %7 {offsets = [800, 0], sizes = [32, 128], strides = [1, 1]} : vector<1568x128xf32> to vector<32x128xf32>
    %62 = vector.extract_strided_slice %7 {offsets = [832, 0], sizes = [32, 128], strides = [1, 1]} : vector<1568x128xf32> to vector<32x128xf32>
    %63 = vector.extract_strided_slice %7 {offsets = [864, 0], sizes = [32, 128], strides = [1, 1]} : vector<1568x128xf32> to vector<32x128xf32>
    %64 = vector.extract_strided_slice %7 {offsets = [1024, 0], sizes = [32, 128], strides = [1, 1]} : vector<1568x128xf32> to vector<32x128xf32>
    %65 = vector.extract_strided_slice %7 {offsets = [1056, 0], sizes = [32, 128], strides = [1, 1]} : vector<1568x128xf32> to vector<32x128xf32>
    %66 = vector.extract_strided_slice %7 {offsets = [1088, 0], sizes = [32, 128], strides = [1, 1]} : vector<1568x128xf32> to vector<32x128xf32>
    %67 = tpu.concatenate %58, %59, %60, %61, %62, %63, %64, %65, %66 in 1 : vector<32x128xf32>, vector<32x128xf32>, vector<32x128xf32>, vector<32x128xf32>, vector<32x128xf32>, vector<32x128xf32>, vector<32x128xf32>, vector<32x128xf32>, vector<32x128xf32> -> vector<32x1152xf32>
    %68 = vector.extract_strided_slice %7 {offsets = [896, 0], sizes = [32, 128], strides = [1, 1]} : vector<1568x128xf32> to vector<32x128xf32>
    %69 = vector.extract_strided_slice %7 {offsets = [928, 0], sizes = [32, 128], strides = [1, 1]} : vector<1568x128xf32> to vector<32x128xf32>
    %70 = vector.extract_strided_slice %7 {offsets = [960, 0], sizes = [32, 128], strides = [1, 1]} : vector<1568x128xf32> to vector<32x128xf32>
    %71 = vector.extract_strided_slice %7 {offsets = [1120, 0], sizes = [32, 128], strides = [1, 1]} : vector<1568x128xf32> to vector<32x128xf32>
    %72 = vector.extract_strided_slice %7 {offsets = [1152, 0], sizes = [32, 128], strides = [1, 1]} : vector<1568x128xf32> to vector<32x128xf32>
    %73 = vector.extract_strided_slice %7 {offsets = [1184, 0], sizes = [32, 128], strides = [1, 1]} : vector<1568x128xf32> to vector<32x128xf32>
    %74 = vector.extract_strided_slice %7 {offsets = [1344, 0], sizes = [32, 128], strides = [1, 1]} : vector<1568x128xf32> to vector<32x128xf32>
    %75 = vector.extract_strided_slice %7 {offsets = [1376, 0], sizes = [32, 128], strides = [1, 1]} : vector<1568x128xf32> to vector<32x128xf32>
    %76 = vector.extract_strided_slice %7 {offsets = [1408, 0], sizes = [32, 128], strides = [1, 1]} : vector<1568x128xf32> to vector<32x128xf32>
    %77 = tpu.concatenate %68, %69, %70, %71, %72, %73, %74, %75, %76 in 1 : vector<32x128xf32>, vector<32x128xf32>, vector<32x128xf32>, vector<32x128xf32>, vector<32x128xf32>, vector<32x128xf32>, vector<32x128xf32>, vector<32x128xf32>, vector<32x128xf32> -> vector<32x1152xf32>
    %78 = vector.extract_strided_slice %7 {offsets = [960, 0], sizes = [32, 128], strides = [1, 1]} : vector<1568x128xf32> to vector<32x128xf32>
    %79 = vector.extract_strided_slice %7 {offsets = [992, 0], sizes = [32, 128], strides = [1, 1]} : vector<1568x128xf32> to vector<32x128xf32>
    %80 = vector.extract_strided_slice %7 {offsets = [1024, 0], sizes = [32, 128], strides = [1, 1]} : vector<1568x128xf32> to vector<32x128xf32>
    %81 = vector.extract_strided_slice %7 {offsets = [1184, 0], sizes = [32, 128], strides = [1, 1]} : vector<1568x128xf32> to vector<32x128xf32>
    %82 = vector.extract_strided_slice %7 {offsets = [1216, 0], sizes = [32, 128], strides = [1, 1]} : vector<1568x128xf32> to vector<32x128xf32>
    %83 = vector.extract_strided_slice %7 {offsets = [1248, 0], sizes = [32, 128], strides = [1, 1]} : vector<1568x128xf32> to vector<32x128xf32>
    %84 = vector.extract_strided_slice %7 {offsets = [1408, 0], sizes = [32, 128], strides = [1, 1]} : vector<1568x128xf32> to vector<32x128xf32>
    %85 = vector.extract_strided_slice %7 {offsets = [1440, 0], sizes = [32, 128], strides = [1, 1]} : vector<1568x128xf32> to vector<32x128xf32>
    %86 = vector.extract_strided_slice %7 {offsets = [1472, 0], sizes = [32, 128], strides = [1, 1]} : vector<1568x128xf32> to vector<32x128xf32>
    %87 = tpu.concatenate %78, %79, %80, %81, %82, %83, %84, %85, %86 in 1 : vector<32x128xf32>, vector<32x128xf32>, vector<32x128xf32>, vector<32x128xf32>, vector<32x128xf32>, vector<32x128xf32>, vector<32x128xf32>, vector<32x128xf32>, vector<32x128xf32> -> vector<32x1152xf32>
    %88 = vector.extract_strided_slice %7 {offsets = [1024, 0], sizes = [32, 128], strides = [1, 1]} : vector<1568x128xf32> to vector<32x128xf32>
    %89 = vector.extract_strided_slice %7 {offsets = [1056, 0], sizes = [32, 128], strides = [1, 1]} : vector<1568x128xf32> to vector<32x128xf32>
    %90 = vector.extract_strided_slice %7 {offsets = [1088, 0], sizes = [32, 128], strides = [1, 1]} : vector<1568x128xf32> to vector<32x128xf32>
    %91 = vector.extract_strided_slice %7 {offsets = [1248, 0], sizes = [32, 128], strides = [1, 1]} : vector<1568x128xf32> to vector<32x128xf32>
    %92 = vector.extract_strided_slice %7 {offsets = [1280, 0], sizes = [32, 128], strides = [1, 1]} : vector<1568x128xf32> to vector<32x128xf32>
    %93 = vector.extract_strided_slice %7 {offsets = [1312, 0], sizes = [32, 128], strides = [1, 1]} : vector<1568x128xf32> to vector<32x128xf32>
    %94 = vector.extract_strided_slice %7 {offsets = [1472, 0], sizes = [32, 128], strides = [1, 1]} : vector<1568x128xf32> to vector<32x128xf32>
    %95 = vector.extract_strided_slice %7 {offsets = [1504, 0], sizes = [32, 128], strides = [1, 1]} : vector<1568x128xf32> to vector<32x128xf32>
    %96 = vector.extract_strided_slice %7 {offsets = [1536, 0], sizes = [32, 128], strides = [1, 1]} : vector<1568x128xf32> to vector<32x128xf32>
    %97 = tpu.concatenate %88, %89, %90, %91, %92, %93, %94, %95, %96 in 1 : vector<32x128xf32>, vector<32x128xf32>, vector<32x128xf32>, vector<32x128xf32>, vector<32x128xf32>, vector<32x128xf32>, vector<32x128xf32>, vector<32x128xf32>, vector<32x128xf32> -> vector<32x1152xf32>
    %98 = tpu.concatenate %17, %27, %37, %47, %57, %67, %77, %87, %97 in 0 : vector<32x1152xf32>, vector<32x1152xf32>, vector<32x1152xf32>, vector<32x1152xf32>, vector<32x1152xf32>, vector<32x1152xf32>, vector<32x1152xf32>, vector<32x1152xf32>, vector<32x1152xf32> -> vector<288x1152xf32>
    %c0_6 = arith.constant 0 : index
    %c0_7 = arith.constant 0 : index
    %99 = vector.load %arg3[%c0_6, %c0_7] : memref<1152x128xf32, #tpu.memory_space<vmem>>, vector<1152x128xf32>
    %cst_8 = arith.constant dense<0.000000e+00> : vector<288x128xf32>
    %100 = tpu.matmul %98, %99, %cst_8 {dimension_numbers = #tpu.dot_dimension_numbers<[1], [0], [0], [1], [0, 0, 1, 1], [], []>} : vector<288x1152xf32>, vector<1152x128xf32>, vector<288x128xf32> -> vector<288x128xf32>
    %c1 = arith.constant 1 : index
    %c0_9 = arith.constant 0 : index
    %101 = vector.load %arg7[%c1, %c0_9] : memref<8x128xf32, #tpu.memory_space<vmem>>, vector<1x128xf32>
    %102 = vector.broadcast %101 : vector<1x128xf32> to vector<288x128xf32>
    %103 = arith.addf %100, %102 : vector<288x128xf32>
    %cst_10 = arith.constant 0.000000e+00 : f32
    %104 = vector.broadcast %cst_10 : f32 to vector<288x128xf32>
    %105 = arith.maximumf %103, %104 : vector<288x128xf32>
    %106 = vector.extract_strided_slice %105 {offsets = [0, 0], sizes = [32, 128], strides = [1, 1]} : vector<288x128xf32> to vector<32x128xf32>
    %107 = vector.extract_strided_slice %105 {offsets = [32, 0], sizes = [32, 128], strides = [1, 1]} : vector<288x128xf32> to vector<32x128xf32>
    %108 = vector.extract_strided_slice %105 {offsets = [64, 0], sizes = [32, 128], strides = [1, 1]} : vector<288x128xf32> to vector<32x128xf32>
    %109 = vector.extract_strided_slice %105 {offsets = [96, 0], sizes = [32, 128], strides = [1, 1]} : vector<288x128xf32> to vector<32x128xf32>
    %110 = vector.extract_strided_slice %105 {offsets = [128, 0], sizes = [32, 128], strides = [1, 1]} : vector<288x128xf32> to vector<32x128xf32>
    %111 = vector.extract_strided_slice %105 {offsets = [160, 0], sizes = [32, 128], strides = [1, 1]} : vector<288x128xf32> to vector<32x128xf32>
    %112 = vector.extract_strided_slice %105 {offsets = [192, 0], sizes = [32, 128], strides = [1, 1]} : vector<288x128xf32> to vector<32x128xf32>
    %113 = vector.extract_strided_slice %105 {offsets = [224, 0], sizes = [32, 128], strides = [1, 1]} : vector<288x128xf32> to vector<32x128xf32>
    %114 = vector.extract_strided_slice %105 {offsets = [256, 0], sizes = [32, 128], strides = [1, 1]} : vector<288x128xf32> to vector<32x128xf32>
    %115 = tpu.concatenate %106, %107, %108, %109, %110, %111, %112, %113, %114 in 1 : vector<32x128xf32>, vector<32x128xf32>, vector<32x128xf32>, vector<32x128xf32>, vector<32x128xf32>, vector<32x128xf32>, vector<32x128xf32>, vector<32x128xf32>, vector<32x128xf32> -> vector<32x1152xf32>
    %c0_11 = arith.constant 0 : index
    %c0_12 = arith.constant 0 : index
    %116 = vector.load %arg4[%c0_11, %c0_12] : memref<1152x128xf32, #tpu.memory_space<vmem>>, vector<1152x128xf32>
    %cst_13 = arith.constant dense<0.000000e+00> : vector<32x128xf32>
    %117 = tpu.matmul %115, %116, %cst_13 {dimension_numbers = #tpu.dot_dimension_numbers<[1], [0], [0], [1], [0, 0, 1, 1], [], []>} : vector<32x1152xf32>, vector<1152x128xf32>, vector<32x128xf32> -> vector<32x128xf32>
    %c2 = arith.constant 2 : index
    %c0_14 = arith.constant 0 : index
    %118 = vector.load %arg7[%c2, %c0_14] : memref<8x128xf32, #tpu.memory_space<vmem>>, vector<1x128xf32>
    %119 = vector.broadcast %118 : vector<1x128xf32> to vector<32x128xf32>
    %120 = arith.addf %117, %119 : vector<32x128xf32>
    %cst_15 = arith.constant 0.000000e+00 : f32
    %121 = vector.broadcast %cst_15 : f32 to vector<32x128xf32>
    %122 = arith.maximumf %120, %121 : vector<32x128xf32>
    %c0_16 = arith.constant 0 : index
    %c0_17 = arith.constant 0 : index
    %123 = vector.load %arg5[%c0_16, %c0_17] : memref<128x128xf32, #tpu.memory_space<vmem>>, vector<128x128xf32>
    %cst_18 = arith.constant dense<0.000000e+00> : vector<32x128xf32>
    %124 = tpu.matmul %122, %123, %cst_18 {dimension_numbers = #tpu.dot_dimension_numbers<[1], [0], [0], [1], [0, 0, 1, 1], [], []>} : vector<32x128xf32>, vector<128x128xf32>, vector<32x128xf32> -> vector<32x128xf32>
    %c3 = arith.constant 3 : index
    %c0_19 = arith.constant 0 : index
    %125 = vector.load %arg7[%c3, %c0_19] : memref<8x128xf32, #tpu.memory_space<vmem>>, vector<1x128xf32>
    %126 = vector.broadcast %125 : vector<1x128xf32> to vector<32x128xf32>
    %127 = arith.addf %124, %126 : vector<32x128xf32>
    %128 = math.tanh %127 : vector<32x128xf32>
    %c0_20 = arith.constant 0 : index
    %c0_21 = arith.constant 0 : index
    %129 = vector.load %arg6[%c0_20, %c0_21] : memref<128x128xf32, #tpu.memory_space<vmem>>, vector<128x128xf32>
    %cst_22 = arith.constant dense<0.000000e+00> : vector<32x128xf32>
    %130 = tpu.matmul %128, %129, %cst_22 {dimension_numbers = #tpu.dot_dimension_numbers<[1], [0], [0], [1], [0, 0, 1, 1], [], []>} : vector<32x128xf32>, vector<128x128xf32>, vector<32x128xf32> -> vector<32x128xf32>
    %c4 = arith.constant 4 : index
    %c0_23 = arith.constant 0 : index
    %131 = vector.load %arg7[%c4, %c0_23] : memref<8x128xf32, #tpu.memory_space<vmem>>, vector<1x128xf32>
    %132 = vector.broadcast %131 : vector<1x128xf32> to vector<32x128xf32>
    %133 = arith.addf %130, %132 : vector<32x128xf32>
    %c0_24 = arith.constant 0 : index
    %c0_25 = arith.constant 0 : index
    %134 = vector.load %arg8[%c0_24, %c0_25] : memref<32x128xf32, #tpu.memory_space<vmem>>, vector<32x128xf32>
    tpu.vector_store %arg8[%c0_24, %c0_25], %133 {strides = array<i32>} : memref<32x128xf32, #tpu.memory_space<vmem>>, vector<32x128xf32>,
    return
  }
  func.func @transform_0(%arg0: i32) -> (i32, i32) {
    %c0_i32 = arith.constant 0 : i32
    %c0_i32_0 = arith.constant 0 : i32
    return %arg0, %c0_i32 : i32, i32
  }
  func.func @transform_1(%arg0: i32) -> (i32, i32) {
    %c0_i32 = arith.constant 0 : i32
    %c0_i32_0 = arith.constant 0 : i32
    %c0_i32_1 = arith.constant 0 : i32
    return %c0_i32, %c0_i32_0 : i32, i32
  }
  func.func @transform_2(%arg0: i32) -> (i32, i32) {
    %c0_i32 = arith.constant 0 : i32
    %c0_i32_0 = arith.constant 0 : i32
    %c0_i32_1 = arith.constant 0 : i32
    return %c0_i32, %c0_i32_0 : i32, i32
  }
  func.func @transform_3(%arg0: i32) -> (i32, i32) {
    %c0_i32 = arith.constant 0 : i32
    %c0_i32_0 = arith.constant 0 : i32
    %c0_i32_1 = arith.constant 0 : i32
    return %c0_i32, %c0_i32_0 : i32, i32
  }
  func.func @transform_4(%arg0: i32) -> (i32, i32) {
    %c0_i32 = arith.constant 0 : i32
    %c0_i32_0 = arith.constant 0 : i32
    %c0_i32_1 = arith.constant 0 : i32
    return %c0_i32, %c0_i32_0 : i32, i32
  }
  func.func @transform_5(%arg0: i32) -> (i32, i32) {
    %c0_i32 = arith.constant 0 : i32
    %c0_i32_0 = arith.constant 0 : i32
    %c0_i32_1 = arith.constant 0 : i32
    return %c0_i32, %c0_i32_0 : i32, i32
  }
  func.func @transform_6(%arg0: i32) -> (i32, i32) {
    %c0_i32 = arith.constant 0 : i32
    %c0_i32_0 = arith.constant 0 : i32
    %c0_i32_1 = arith.constant 0 : i32
    return %c0_i32, %c0_i32_0 : i32, i32
  }
  func.func @transform_7(%arg0: i32) -> (i32, i32) {
    %c0_i32 = arith.constant 0 : i32
    %c0_i32_0 = arith.constant 0 : i32
    return %arg0, %c0_i32 : i32, i32
  }
}

module attributes {stable_mosaic.version = 11 : i64} {
  func.func @_fused_forward_kernel(%arg0: i32, %arg1: memref<1568x16xf32, #tpu.memory_space<vmem>>, %arg2: memref<16x128xf32, #tpu.memory_space<vmem>>, %arg3: memref<1152x128xf32, #tpu.memory_space<vmem>>, %arg4: memref<1152x128xf32, #tpu.memory_space<vmem>>, %arg5: memref<128x128xf32, #tpu.memory_space<vmem>>, %arg6: memref<128x128xf32, #tpu.memory_space<vmem>>, %arg7: memref<8x128xf32, #tpu.memory_space<vmem>>, %arg8: memref<32x128xf32, #tpu.memory_space<vmem>>) attributes {dimension_semantics = [#tpu.dimension_semantics<parallel>], iteration_bounds = array<i64: 2>, scalar_prefetch = 0 : i64, scratch_operands = 0 : i64, tpu.core_type = #tpu.core_type<tc>, window_params = [{transform_indices = @transform_0, window_bounds = array<i64: 1568, 16>}, {pipeline_mode = #tpu.pipeline_mode<synchronous>, transform_indices = @transform_1, window_bounds = array<i64: 16, 128>}, {pipeline_mode = #tpu.pipeline_mode<synchronous>, transform_indices = @transform_2, window_bounds = array<i64: 1152, 128>}, {pipeline_mode = #tpu.pipeline_mode<synchronous>, transform_indices = @transform_3, window_bounds = array<i64: 1152, 128>}, {pipeline_mode = #tpu.pipeline_mode<synchronous>, transform_indices = @transform_4, window_bounds = array<i64: 128, 128>}, {pipeline_mode = #tpu.pipeline_mode<synchronous>, transform_indices = @transform_5, window_bounds = array<i64: 128, 128>}, {pipeline_mode = #tpu.pipeline_mode<synchronous>, transform_indices = @transform_6, window_bounds = array<i64: 8, 128>}, {transform_indices = @transform_7, window_bounds = array<i64: 32, 128>}]} {
    %c0 = arith.constant 0 : index
    %c0_0 = arith.constant 0 : index
    %0 = vector.load %arg1[%c0, %c0_0] : memref<1568x16xf32, #tpu.memory_space<vmem>>, vector<1568x16xf32>
    %c0_1 = arith.constant 0 : index
    %c0_2 = arith.constant 0 : index
    %1 = vector.load %arg2[%c0_1, %c0_2] : memref<16x128xf32, #tpu.memory_space<vmem>>, vector<16x128xf32>
    %cst = arith.constant dense<0.000000e+00> : vector<1568x128xf32>
    %2 = tpu.matmul %0, %1, %cst {dimension_numbers = #tpu.dot_dimension_numbers<[1], [0], [0], [1], [0, 0, 1, 1], [], []>} : vector<1568x16xf32>, vector<16x128xf32>, vector<1568x128xf32> -> vector<1568x128xf32>
    %c0_3 = arith.constant 0 : index
    %c0_4 = arith.constant 0 : index
    %3 = vector.load %arg7[%c0_3, %c0_4] : memref<8x128xf32, #tpu.memory_space<vmem>>, vector<1x128xf32>
    %4 = vector.broadcast %3 : vector<1x128xf32> to vector<1568x128xf32>
    %5 = arith.addf %2, %4 : vector<1568x128xf32>
    %cst_5 = arith.constant 0.000000e+00 : f32
    %6 = vector.broadcast %cst_5 : f32 to vector<1568x128xf32>
    %7 = arith.maximumf %5, %6 : vector<1568x128xf32>
    %8 = vector.extract_strided_slice %7 {offsets = [0, 0], sizes = [32, 128], strides = [1, 1]} : vector<1568x128xf32> to vector<32x128xf32>
    %9 = vector.extract_strided_slice %7 {offsets = [32, 0], sizes = [32, 128], strides = [1, 1]} : vector<1568x128xf32> to vector<32x128xf32>
    %10 = vector.extract_strided_slice %7 {offsets = [64, 0], sizes = [32, 128], strides = [1, 1]} : vector<1568x128xf32> to vector<32x128xf32>
    %11 = vector.extract_strided_slice %7 {offsets = [224, 0], sizes = [32, 128], strides = [1, 1]} : vector<1568x128xf32> to vector<32x128xf32>
    %12 = vector.extract_strided_slice %7 {offsets = [256, 0], sizes = [32, 128], strides = [1, 1]} : vector<1568x128xf32> to vector<32x128xf32>
    %13 = vector.extract_strided_slice %7 {offsets = [288, 0], sizes = [32, 128], strides = [1, 1]} : vector<1568x128xf32> to vector<32x128xf32>
    %14 = vector.extract_strided_slice %7 {offsets = [448, 0], sizes = [32, 128], strides = [1, 1]} : vector<1568x128xf32> to vector<32x128xf32>
    %15 = vector.extract_strided_slice %7 {offsets = [480, 0], sizes = [32, 128], strides = [1, 1]} : vector<1568x128xf32> to vector<32x128xf32>
    %16 = vector.extract_strided_slice %7 {offsets = [512, 0], sizes = [32, 128], strides = [1, 1]} : vector<1568x128xf32> to vector<32x128xf32>
    %17 = tpu.concatenate %8, %9, %10, %11, %12, %13, %14, %15, %16 in 1 : vector<32x128xf32>, vector<32x128xf32>, vector<32x128xf32>, vector<32x128xf32>, vector<32x128xf32>, vector<32x128xf32>, vector<32x128xf32>, vector<32x128xf32>, vector<32x128xf32> -> vector<32x1152xf32>
    %18 = vector.extract_strided_slice %7 {offsets = [64, 0], sizes = [32, 128], strides = [1, 1]} : vector<1568x128xf32> to vector<32x128xf32>
    %19 = vector.extract_strided_slice %7 {offsets = [96, 0], sizes = [32, 128], strides = [1, 1]} : vector<1568x128xf32> to vector<32x128xf32>
    %20 = vector.extract_strided_slice %7 {offsets = [128, 0], sizes = [32, 128], strides = [1, 1]} : vector<1568x128xf32> to vector<32x128xf32>
    %21 = vector.extract_strided_slice %7 {offsets = [288, 0], sizes = [32, 128], strides = [1, 1]} : vector<1568x128xf32> to vector<32x128xf32>
    %22 = vector.extract_strided_slice %7 {offsets = [320, 0], sizes = [32, 128], strides = [1, 1]} : vector<1568x128xf32> to vector<32x128xf32>
    %23 = vector.extract_strided_slice %7 {offsets = [352, 0], sizes = [32, 128], strides = [1, 1]} : vector<1568x128xf32> to vector<32x128xf32>
    %24 = vector.extract_strided_slice %7 {offsets = [512, 0], sizes = [32, 128], strides = [1, 1]} : vector<1568x128xf32> to vector<32x128xf32>
    %25 = vector.extract_strided_slice %7 {offsets = [544, 0], sizes = [32, 128], strides = [1, 1]} : vector<1568x128xf32> to vector<32x128xf32>
    %26 = vector.extract_strided_slice %7 {offsets = [576, 0], sizes = [32, 128], strides = [1, 1]} : vector<1568x128xf32> to vector<32x128xf32>
    %27 = tpu.concatenate %18, %19, %20, %21, %22, %23, %24, %25, %26 in 1 : vector<32x128xf32>, vector<32x128xf32>, vector<32x128xf32>, vector<32x128xf32>, vector<32x128xf32>, vector<32x128xf32>, vector<32x128xf32>, vector<32x128xf32>, vector<32x128xf32> -> vector<32x1152xf32>
    %28 = vector.extract_strided_slice %7 {offsets = [128, 0], sizes = [32, 128], strides = [1, 1]} : vector<1568x128xf32> to vector<32x128xf32>
    %29 = vector.extract_strided_slice %7 {offsets = [160, 0], sizes = [32, 128], strides = [1, 1]} : vector<1568x128xf32> to vector<32x128xf32>
    %30 = vector.extract_strided_slice %7 {offsets = [192, 0], sizes = [32, 128], strides = [1, 1]} : vector<1568x128xf32> to vector<32x128xf32>
    %31 = vector.extract_strided_slice %7 {offsets = [352, 0], sizes = [32, 128], strides = [1, 1]} : vector<1568x128xf32> to vector<32x128xf32>
    %32 = vector.extract_strided_slice %7 {offsets = [384, 0], sizes = [32, 128], strides = [1, 1]} : vector<1568x128xf32> to vector<32x128xf32>
    %33 = vector.extract_strided_slice %7 {offsets = [416, 0], sizes = [32, 128], strides = [1, 1]} : vector<1568x128xf32> to vector<32x128xf32>
    %34 = vector.extract_strided_slice %7 {offsets = [576, 0], sizes = [32, 128], strides = [1, 1]} : vector<1568x128xf32> to vector<32x128xf32>
    %35 = vector.extract_strided_slice %7 {offsets = [608, 0], sizes = [32, 128], strides = [1, 1]} : vector<1568x128xf32> to vector<32x128xf32>
    %36 = vector.extract_strided_slice %7 {offsets = [640, 0], sizes = [32, 128], strides = [1, 1]} : vector<1568x128xf32> to vector<32x128xf32>
    %37 = tpu.concatenate %28, %29, %30, %31, %32, %33, %34, %35, %36 in 1 : vector<32x128xf32>, vector<32x128xf32>, vector<32x128xf32>, vector<32x128xf32>, vector<32x128xf32>, vector<32x128xf32>, vector<32x128xf32>, vector<32x128xf32>, vector<32x128xf32> -> vector<32x1152xf32>
    %38 = vector.extract_strided_slice %7 {offsets = [448, 0], sizes = [32, 128], strides = [1, 1]} : vector<1568x128xf32> to vector<32x128xf32>
    %39 = vector.extract_strided_slice %7 {offsets = [480, 0], sizes = [32, 128], strides = [1, 1]} : vector<1568x128xf32> to vector<32x128xf32>
    %40 = vector.extract_strided_slice %7 {offsets = [512, 0], sizes = [32, 128], strides = [1, 1]} : vector<1568x128xf32> to vector<32x128xf32>
    %41 = vector.extract_strided_slice %7 {offsets = [672, 0], sizes = [32, 128], strides = [1, 1]} : vector<1568x128xf32> to vector<32x128xf32>
    %42 = vector.extract_strided_slice %7 {offsets = [704, 0], sizes = [32, 128], strides = [1, 1]} : vector<1568x128xf32> to vector<32x128xf32>
    %43 = vector.extract_strided_slice %7 {offsets = [736, 0], sizes = [32, 128], strides = [1, 1]} : vector<1568x128xf32> to vector<32x128xf32>
    %44 = vector.extract_strided_slice %7 {offsets = [896, 0], sizes = [32, 128], strides = [1, 1]} : vector<1568x128xf32> to vector<32x128xf32>
    %45 = vector.extract_strided_slice %7 {offsets = [928, 0], sizes = [32, 128], strides = [1, 1]} : vector<1568x128xf32> to vector<32x128xf32>
    %46 = vector.extract_strided_slice %7 {offsets = [960, 0], sizes = [32, 128], strides = [1, 1]} : vector<1568x128xf32> to vector<32x128xf32>
    %47 = tpu.concatenate %38, %39, %40, %41, %42, %43, %44, %45, %46 in 1 : vector<32x128xf32>, vector<32x128xf32>, vector<32x128xf32>, vector<32x128xf32>, vector<32x128xf32>, vector<32x128xf32>, vector<32x128xf32>, vector<32x128xf32>, vector<32x128xf32> -> vector<32x1152xf32>
    %48 = vector.extract_strided_slice %7 {offsets = [512, 0], sizes = [32, 128], strides = [1, 1]} : vector<1568x128xf32> to vector<32x128xf32>
    %49 = vector.extract_strided_slice %7 {offsets = [544, 0], sizes = [32, 128], strides = [1, 1]} : vector<1568x128xf32> to vector<32x128xf32>
    %50 = vector.extract_strided_slice %7 {offsets = [576, 0], sizes = [32, 128], strides = [1, 1]} : vector<1568x128xf32> to vector<32x128xf32>
    %51 = vector.extract_strided_slice %7 {offsets = [736, 0], sizes = [32, 128], strides = [1, 1]} : vector<1568x128xf32> to vector<32x128xf32>
    %52 = vector.extract_strided_slice %7 {offsets = [768, 0], sizes = [32, 128], strides = [1, 1]} : vector<1568x128xf32> to vector<32x128xf32>
    %53 = vector.extract_strided_slice %7 {offsets = [800, 0], sizes = [32, 128], strides = [1, 1]} : vector<1568x128xf32> to vector<32x128xf32>
    %54 = vector.extract_strided_slice %7 {offsets = [960, 0], sizes = [32, 128], strides = [1, 1]} : vector<1568x128xf32> to vector<32x128xf32>
    %55 = vector.extract_strided_slice %7 {offsets = [992, 0], sizes = [32, 128], strides = [1, 1]} : vector<1568x128xf32> to vector<32x128xf32>
    %56 = vector.extract_strided_slice %7 {offsets = [1024, 0], sizes = [32, 128], strides = [1, 1]} : vector<1568x128xf32> to vector<32x128xf32>
    %57 = tpu.concatenate %48, %49, %50, %51, %52, %53, %54, %55, %56 in 1 : vector<32x128xf32>, vector<32x128xf32>, vector<32x128xf32>, vector<32x128xf32>, vector<32x128xf32>, vector<32x128xf32>, vector<32x128xf32>, vector<32x128xf32>, vector<32x128xf32> -> vector<32x1152xf32>
    %58 = vector.extract_strided_slice %7 {offsets = [576, 0], sizes = [32, 128], strides = [1, 1]} : vector<1568x128xf32> to vector<32x128xf32>
    %59 = vector.extract_strided_slice %7 {offsets = [608, 0], sizes = [32, 128], strides = [1, 1]} : vector<1568x128xf32> to vector<32x128xf32>
    %60 = vector.extract_strided_slice %7 {offsets = [640, 0], sizes = [32, 128], strides = [1, 1]} : vector<1568x128xf32> to vector<32x128xf32>
    %61 = vector.extract_strided_slice %7 {offsets = [800, 0], sizes = [32, 128], strides = [1, 1]} : vector<1568x128xf32> to vector<32x128xf32>
    %62 = vector.extract_strided_slice %7 {offsets = [832, 0], sizes = [32, 128], strides = [1, 1]} : vector<1568x128xf32> to vector<32x128xf32>
    %63 = vector.extract_strided_slice %7 {offsets = [864, 0], sizes = [32, 128], strides = [1, 1]} : vector<1568x128xf32> to vector<32x128xf32>
    %64 = vector.extract_strided_slice %7 {offsets = [1024, 0], sizes = [32, 128], strides = [1, 1]} : vector<1568x128xf32> to vector<32x128xf32>
    %65 = vector.extract_strided_slice %7 {offsets = [1056, 0], sizes = [32, 128], strides = [1, 1]} : vector<1568x128xf32> to vector<32x128xf32>
    %66 = vector.extract_strided_slice %7 {offsets = [1088, 0], sizes = [32, 128], strides = [1, 1]} : vector<1568x128xf32> to vector<32x128xf32>
    %67 = tpu.concatenate %58, %59, %60, %61, %62, %63, %64, %65, %66 in 1 : vector<32x128xf32>, vector<32x128xf32>, vector<32x128xf32>, vector<32x128xf32>, vector<32x128xf32>, vector<32x128xf32>, vector<32x128xf32>, vector<32x128xf32>, vector<32x128xf32> -> vector<32x1152xf32>
    %68 = vector.extract_strided_slice %7 {offsets = [896, 0], sizes = [32, 128], strides = [1, 1]} : vector<1568x128xf32> to vector<32x128xf32>
    %69 = vector.extract_strided_slice %7 {offsets = [928, 0], sizes = [32, 128], strides = [1, 1]} : vector<1568x128xf32> to vector<32x128xf32>
    %70 = vector.extract_strided_slice %7 {offsets = [960, 0], sizes = [32, 128], strides = [1, 1]} : vector<1568x128xf32> to vector<32x128xf32>
    %71 = vector.extract_strided_slice %7 {offsets = [1120, 0], sizes = [32, 128], strides = [1, 1]} : vector<1568x128xf32> to vector<32x128xf32>
    %72 = vector.extract_strided_slice %7 {offsets = [1152, 0], sizes = [32, 128], strides = [1, 1]} : vector<1568x128xf32> to vector<32x128xf32>
    %73 = vector.extract_strided_slice %7 {offsets = [1184, 0], sizes = [32, 128], strides = [1, 1]} : vector<1568x128xf32> to vector<32x128xf32>
    %74 = vector.extract_strided_slice %7 {offsets = [1344, 0], sizes = [32, 128], strides = [1, 1]} : vector<1568x128xf32> to vector<32x128xf32>
    %75 = vector.extract_strided_slice %7 {offsets = [1376, 0], sizes = [32, 128], strides = [1, 1]} : vector<1568x128xf32> to vector<32x128xf32>
    %76 = vector.extract_strided_slice %7 {offsets = [1408, 0], sizes = [32, 128], strides = [1, 1]} : vector<1568x128xf32> to vector<32x128xf32>
    %77 = tpu.concatenate %68, %69, %70, %71, %72, %73, %74, %75, %76 in 1 : vector<32x128xf32>, vector<32x128xf32>, vector<32x128xf32>, vector<32x128xf32>, vector<32x128xf32>, vector<32x128xf32>, vector<32x128xf32>, vector<32x128xf32>, vector<32x128xf32> -> vector<32x1152xf32>
    %78 = vector.extract_strided_slice %7 {offsets = [960, 0], sizes = [32, 128], strides = [1, 1]} : vector<1568x128xf32> to vector<32x128xf32>
    %79 = vector.extract_strided_slice %7 {offsets = [992, 0], sizes = [32, 128], strides = [1, 1]} : vector<1568x128xf32> to vector<32x128xf32>
    %80 = vector.extract_strided_slice %7 {offsets = [1024, 0], sizes = [32, 128], strides = [1, 1]} : vector<1568x128xf32> to vector<32x128xf32>
    %81 = vector.extract_strided_slice %7 {offsets = [1184, 0], sizes = [32, 128], strides = [1, 1]} : vector<1568x128xf32> to vector<32x128xf32>
    %82 = vector.extract_strided_slice %7 {offsets = [1216, 0], sizes = [32, 128], strides = [1, 1]} : vector<1568x128xf32> to vector<32x128xf32>
    %83 = vector.extract_strided_slice %7 {offsets = [1248, 0], sizes = [32, 128], strides = [1, 1]} : vector<1568x128xf32> to vector<32x128xf32>
    %84 = vector.extract_strided_slice %7 {offsets = [1408, 0], sizes = [32, 128], strides = [1, 1]} : vector<1568x128xf32> to vector<32x128xf32>
    %85 = vector.extract_strided_slice %7 {offsets = [1440, 0], sizes = [32, 128], strides = [1, 1]} : vector<1568x128xf32> to vector<32x128xf32>
    %86 = vector.extract_strided_slice %7 {offsets = [1472, 0], sizes = [32, 128], strides = [1, 1]} : vector<1568x128xf32> to vector<32x128xf32>
    %87 = tpu.concatenate %78, %79, %80, %81, %82, %83, %84, %85, %86 in 1 : vector<32x128xf32>, vector<32x128xf32>, vector<32x128xf32>, vector<32x128xf32>, vector<32x128xf32>, vector<32x128xf32>, vector<32x128xf32>, vector<32x128xf32>, vector<32x128xf32> -> vector<32x1152xf32>
    %88 = vector.extract_strided_slice %7 {offsets = [1024, 0], sizes = [32, 128], strides = [1, 1]} : vector<1568x128xf32> to vector<32x128xf32>
    %89 = vector.extract_strided_slice %7 {offsets = [1056, 0], sizes = [32, 128], strides = [1, 1]} : vector<1568x128xf32> to vector<32x128xf32>
    %90 = vector.extract_strided_slice %7 {offsets = [1088, 0], sizes = [32, 128], strides = [1, 1]} : vector<1568x128xf32> to vector<32x128xf32>
    %91 = vector.extract_strided_slice %7 {offsets = [1248, 0], sizes = [32, 128], strides = [1, 1]} : vector<1568x128xf32> to vector<32x128xf32>
    %92 = vector.extract_strided_slice %7 {offsets = [1280, 0], sizes = [32, 128], strides = [1, 1]} : vector<1568x128xf32> to vector<32x128xf32>
    %93 = vector.extract_strided_slice %7 {offsets = [1312, 0], sizes = [32, 128], strides = [1, 1]} : vector<1568x128xf32> to vector<32x128xf32>
    %94 = vector.extract_strided_slice %7 {offsets = [1472, 0], sizes = [32, 128], strides = [1, 1]} : vector<1568x128xf32> to vector<32x128xf32>
    %95 = vector.extract_strided_slice %7 {offsets = [1504, 0], sizes = [32, 128], strides = [1, 1]} : vector<1568x128xf32> to vector<32x128xf32>
    %96 = vector.extract_strided_slice %7 {offsets = [1536, 0], sizes = [32, 128], strides = [1, 1]} : vector<1568x128xf32> to vector<32x128xf32>
    %97 = tpu.concatenate %88, %89, %90, %91, %92, %93, %94, %95, %96 in 1 : vector<32x128xf32>, vector<32x128xf32>, vector<32x128xf32>, vector<32x128xf32>, vector<32x128xf32>, vector<32x128xf32>, vector<32x128xf32>, vector<32x128xf32>, vector<32x128xf32> -> vector<32x1152xf32>
    %98 = tpu.concatenate %17, %27, %37, %47, %57, %67, %77, %87, %97 in 0 : vector<32x1152xf32>, vector<32x1152xf32>, vector<32x1152xf32>, vector<32x1152xf32>, vector<32x1152xf32>, vector<32x1152xf32>, vector<32x1152xf32>, vector<32x1152xf32>, vector<32x1152xf32> -> vector<288x1152xf32>
    %c0_6 = arith.constant 0 : index
    %c0_7 = arith.constant 0 : index
    %99 = vector.load %arg3[%c0_6, %c0_7] : memref<1152x128xf32, #tpu.memory_space<vmem>>, vector<1152x128xf32>
    %cst_8 = arith.constant dense<0.000000e+00> : vector<288x128xf32>
    %100 = tpu.matmul %98, %99, %cst_8 {dimension_numbers = #tpu.dot_dimension_numbers<[1], [0], [0], [1], [0, 0, 1, 1], [], []>} : vector<288x1152xf32>, vector<1152x128xf32>, vector<288x128xf32> -> vector<288x128xf32>
    %c1 = arith.constant 1 : index
    %c0_9 = arith.constant 0 : index
    %101 = vector.load %arg7[%c1, %c0_9] : memref<8x128xf32, #tpu.memory_space<vmem>>, vector<1x128xf32>
    %102 = vector.broadcast %101 : vector<1x128xf32> to vector<288x128xf32>
    %103 = arith.addf %100, %102 : vector<288x128xf32>
    %cst_10 = arith.constant 0.000000e+00 : f32
    %104 = vector.broadcast %cst_10 : f32 to vector<288x128xf32>
    %105 = arith.maximumf %103, %104 : vector<288x128xf32>
    %106 = vector.extract_strided_slice %105 {offsets = [0, 0], sizes = [32, 128], strides = [1, 1]} : vector<288x128xf32> to vector<32x128xf32>
    %107 = vector.extract_strided_slice %105 {offsets = [32, 0], sizes = [32, 128], strides = [1, 1]} : vector<288x128xf32> to vector<32x128xf32>
    %108 = vector.extract_strided_slice %105 {offsets = [64, 0], sizes = [32, 128], strides = [1, 1]} : vector<288x128xf32> to vector<32x128xf32>
    %109 = vector.extract_strided_slice %105 {offsets = [96, 0], sizes = [32, 128], strides = [1, 1]} : vector<288x128xf32> to vector<32x128xf32>
    %110 = vector.extract_strided_slice %105 {offsets = [128, 0], sizes = [32, 128], strides = [1, 1]} : vector<288x128xf32> to vector<32x128xf32>
    %111 = vector.extract_strided_slice %105 {offsets = [160, 0], sizes = [32, 128], strides = [1, 1]} : vector<288x128xf32> to vector<32x128xf32>
    %112 = vector.extract_strided_slice %105 {offsets = [192, 0], sizes = [32, 128], strides = [1, 1]} : vector<288x128xf32> to vector<32x128xf32>
    %113 = vector.extract_strided_slice %105 {offsets = [224, 0], sizes = [32, 128], strides = [1, 1]} : vector<288x128xf32> to vector<32x128xf32>
    %114 = vector.extract_strided_slice %105 {offsets = [256, 0], sizes = [32, 128], strides = [1, 1]} : vector<288x128xf32> to vector<32x128xf32>
    %115 = tpu.concatenate %106, %107, %108, %109, %110, %111, %112, %113, %114 in 1 : vector<32x128xf32>, vector<32x128xf32>, vector<32x128xf32>, vector<32x128xf32>, vector<32x128xf32>, vector<32x128xf32>, vector<32x128xf32>, vector<32x128xf32>, vector<32x128xf32> -> vector<32x1152xf32>
    %c0_11 = arith.constant 0 : index
    %c0_12 = arith.constant 0 : index
    %116 = vector.load %arg4[%c0_11, %c0_12] : memref<1152x128xf32, #tpu.memory_space<vmem>>, vector<1152x128xf32>
    %cst_13 = arith.constant dense<0.000000e+00> : vector<32x128xf32>
    %117 = tpu.matmul %115, %116, %cst_13 {dimension_numbers = #tpu.dot_dimension_numbers<[1], [0], [0], [1], [0, 0, 1, 1], [], []>} : vector<32x1152xf32>, vector<1152x128xf32>, vector<32x128xf32> -> vector<32x128xf32>
    %c2 = arith.constant 2 : index
    %c0_14 = arith.constant 0 : index
    %118 = vector.load %arg7[%c2, %c0_14] : memref<8x128xf32, #tpu.memory_space<vmem>>, vector<1x128xf32>
    %119 = vector.broadcast %118 : vector<1x128xf32> to vector<32x128xf32>
    %120 = arith.addf %117, %119 : vector<32x128xf32>
    %cst_15 = arith.constant 0.000000e+00 : f32
    %121 = vector.broadcast %cst_15 : f32 to vector<32x128xf32>
    %122 = arith.maximumf %120, %121 : vector<32x128xf32>
    %c0_16 = arith.constant 0 : index
    %c0_17 = arith.constant 0 : index
    %123 = vector.load %arg5[%c0_16, %c0_17] : memref<128x128xf32, #tpu.memory_space<vmem>>, vector<128x128xf32>
    %cst_18 = arith.constant dense<0.000000e+00> : vector<32x128xf32>
    %124 = tpu.matmul %122, %123, %cst_18 {dimension_numbers = #tpu.dot_dimension_numbers<[1], [0], [0], [1], [0, 0, 1, 1], [], []>} : vector<32x128xf32>, vector<128x128xf32>, vector<32x128xf32> -> vector<32x128xf32>
    %c3 = arith.constant 3 : index
    %c0_19 = arith.constant 0 : index
    %125 = vector.load %arg7[%c3, %c0_19] : memref<8x128xf32, #tpu.memory_space<vmem>>, vector<1x128xf32>
    %126 = vector.broadcast %125 : vector<1x128xf32> to vector<32x128xf32>
    %127 = arith.addf %124, %126 : vector<32x128xf32>
    %128 = math.tanh %127 : vector<32x128xf32>
    %c0_20 = arith.constant 0 : index
    %c0_21 = arith.constant 0 : index
    %129 = vector.load %arg6[%c0_20, %c0_21] : memref<128x128xf32, #tpu.memory_space<vmem>>, vector<128x128xf32>
    %cst_22 = arith.constant dense<0.000000e+00> : vector<32x128xf32>
    %130 = tpu.matmul %128, %129, %cst_22 {dimension_numbers = #tpu.dot_dimension_numbers<[1], [0], [0], [1], [0, 0, 1, 1], [], []>} : vector<32x128xf32>, vector<128x128xf32>, vector<32x128xf32> -> vector<32x128xf32>
    %c4 = arith.constant 4 : index
    %c0_23 = arith.constant 0 : index
    %131 = vector.load %arg7[%c4, %c0_23] : memref<8x128xf32, #tpu.memory_space<vmem>>, vector<1x128xf32>
    %132 = vector.broadcast %131 : vector<1x128xf32> to vector<32x128xf32>
    %133 = arith.addf %130, %132 : vector<32x128xf32>
    %c0_24 = arith.constant 0 : index
    %c0_25 = arith.constant 0 : index
    %134 = vector.load %arg8[%c0_24, %c0_25] : memref<32x128xf32, #tpu.memory_space<vmem>>, vector<32x128xf32>
    tpu.vector_store %arg8[%c0_24, %c0_25], %133 {strides = array<i32>} : memref<32x128xf32, #tpu.memory_space<vmem>>, vector<32x128xf32>,
    return
  }
  func.func @transform_0(%arg0: i32) -> (i32, i32) {
    %c0_i32 = arith.constant 0 : i32
    %c0_i32_0 = arith.constant 0 : i32
    return %arg0, %c0_i32 : i32, i32
  }
  func.func @transform_1(%arg0: i32) -> (i32, i32) {
    %c0_i32 = arith.constant 0 : i32
    %c0_i32_0 = arith.constant 0 : i32
    %c0_i32_1 = arith.constant 0 : i32
    return %c0_i32, %c0_i32_0 : i32, i32
  }
  func.func @transform_2(%arg0: i32) -> (i32, i32) {
    %c0_i32 = arith.constant 0 : i32
    %c0_i32_0 = arith.constant 0 : i32
    %c0_i32_1 = arith.constant 0 : i32
    return %c0_i32, %c0_i32_0 : i32, i32
  }
  func.func @transform_3(%arg0: i32) -> (i32, i32) {
    %c0_i32 = arith.constant 0 : i32
    %c0_i32_0 = arith.constant 0 : i32
    %c0_i32_1 = arith.constant 0 : i32
    return %c0_i32, %c0_i32_0 : i32, i32
  }
  func.func @transform_4(%arg0: i32) -> (i32, i32) {
    %c0_i32 = arith.constant 0 : i32
    %c0_i32_0 = arith.constant 0 : i32
    %c0_i32_1 = arith.constant 0 : i32
    return %c0_i32, %c0_i32_0 : i32, i32
  }
  func.func @transform_5(%arg0: i32) -> (i32, i32) {
    %c0_i32 = arith.constant 0 : i32
    %c0_i32_0 = arith.constant 0 : i32
    %c0_i32_1 = arith.constant 0 : i32
    return %c0_i32, %c0_i32_0 : i32, i32
  }
  func.func @transform_6(%arg0: i32) -> (i32, i32) {
    %c0_i32 = arith.constant 0 : i32
    %c0_i32_0 = arith.constant 0 : i32
    %c0_i32_1 = arith.constant 0 : i32
    return %c0_i32, %c0_i32_0 : i32, i32
  }
  func.func @transform_7(%arg0: i32) -> (i32, i32) {
    %c0_i32 = arith.constant 0 : i32
    %c0_i32_0 = arith.constant 0 : i32
    return %arg0, %c0_i32 : i32, i32
  }
}

</mosaic_0001>

<bundles_post_ra>
// kernel: forward.1
= control target key start
LH: loop header
LB: loop body
LE: loop exit
PB: predicated region body
PF: predicated region fallthrough
CT: control target
= control target key end

     0   :  { %s5843_s24 = smov 0   ;;  %s8955_s0 = inlined_call_operand.vmem [shape: f32[3136,16], index: 0, kind: input, shape index: {}]   ;;  %s8956_s1 = inlined_call_operand.vmem [shape: f32[16,128], index: 1, kind: input, shape index: {}]   ;;  %s8957_s2 = inlined_call_operand.vmem [shape: f32[1152,128], index: 2, kind: input, shape index: {}]   ;;  %s8958_s3 = inlined_call_operand.vmem [shape: f32[1152,128], index: 3, kind: input, shape index: {}]   ;;  %s8959_s4 = inlined_call_operand.vmem [shape: f32[128,128], index: 4, kind: input, shape index: {}]   ;;  %s8960_s5 = inlined_call_operand.vmem [shape: f32[128,128], index: 5, kind: input, shape index: {}]   ;;  %s8961_s6 = inlined_call_operand.vmem [shape: f32[8,128], index: 6, kind: input, shape index: {}]   ;;  %s8962_s7 = inlined_call_operand.vmem [shape: f32[64,128], index: 7, kind: output, shape index: {}]  }
   0x1 LB: > { %s4579_s25 = sadd.s32 4294967295, %s5800_s24   ;;  %p4583_p0 = scmp.ge.s32.totalorder %s5800_s24, 1  ;;  %s5800_s24 = sphi %s5843_s24, %s17_s24  }
   0x2   : > { %p238_p1 = scmp.lt.s32.totalorder %s5800_s24, 3 }
   0x4   : > { %p239_p2 = pnand %p4583_p0, %p238_p1 }
   0x6   : > { %242 = sbr.rel (%p239_p2) target bundleno = 1681 (0x691), region = 48 }
   0xb   : > { %v479_v0 = vld [vmem:[%s8956_s1 + $0x8] sm:$0xff]  ;;  %v478_v1 = vld [vmem:[%s8956_s1] sm:$0xff]  ;;  %s270_s30 = smul.u32 196, %s4579_s25  ;;  %vm485_vm0 = vcmask 130048   ;;  %v8976_v13 = vmov 0.0   ;;  %v2330_v18 = vld [vmem:[%s8957_s2 + $0x78] sm:$0xff] }
   0xc   : > { %5276 = vmatprep.subr.mxu0 %v479_v0  ;;  %2464 = vmatprep.subr.mxu1 %v8976_v13  ;;  %v2329_v19 = vld [vmem:[%s8957_s2 + $0x70] sm:$0xff]  ;;  %v2328_v20 = vld [vmem:[%s8957_s2 + $0x68] sm:$0xff]  ;;  %v2327_v23 = vld [vmem:[%s8957_s2 + $0x60] sm:$0xff]  ;;  %s4585_s26 = sshll.u32 %s4579_s25, 2 }
   0xd   : > { %5277 = vmatpush3.msra.mxu0 %v479_v0  ;;  %p271_p3 = scmp.lt.s32.totalorder %s270_s30, 391  ;;  %2465 = vmatpush1.msra.mxu1 %v2330_v18  ;;  %v2326_v24 = vld [vmem:[%s8957_s2 + $0x58] sm:$0xff]  ;;  %v2325_v27 = vld [vmem:[%s8957_s2 + $0x50] sm:$0xff]  ;;  %v2324_v28 = vld [vmem:[%s8957_s2 + $0x48] sm:$0xff]  ;;  %p277_p4 = scmp.lt.s32.totalorder %s4585_s26, 7 }
   0xe   : > { %5278 = vmatprep.subr.mxu0 %v478_v1  ;;  %2466 = vmatprep.subr.mxu1 %v8976_v13  ;;  %v2323_v31 = vld [vmem:[%s8957_s2 + $0x40] sm:$0xff]  ;;  %v2322_v32 = vld [vmem:[%s8957_s2 + $0x38] sm:$0xff]  ;;  %v2321_v35 = vld [vmem:[%s8957_s2 + $0x30] sm:$0xff] }
   0xf   : > { %5279 = vmatpush3.msra.mxu0 %v478_v1  ;;  %s9379_s30 = smov (!%p271_p3, %s270_s30), 391  ;;  %2467 = vmatpush1.msra.mxu1 %v2329_v19  ;;  %v2320_v36 = vld [vmem:[%s8957_s2 + $0x28] sm:$0xff]  ;;  %v2319_v39 = vld [vmem:[%s8957_s2 + $0x20] sm:$0xff]  ;;  %v2318_v40 = vld [vmem:[%s8957_s2 + $0x18] sm:$0xff]  ;;  %s9381_s26 = smov (!%p277_p4, %s4585_s26), 7 }
  0x10   : > { %s4584_s8 = sshll.u32 %s9379_s30, 3  ;;  %3199 = vmatprep.subr.mxu0 %v8976_v13  ;;  %2468 = vmatprep.subr.mxu1 %v8976_v13  ;;  %v2317_v43 = vld [vmem:[%s8957_s2 + $0x10] sm:$0xff]  ;;  %v2316_v44 = vld [vmem:[%s8957_s2 + $0x8] sm:$0xff]  ;;  %v2315_v47 = vld [vmem:[%s8957_s2] sm:$0xff]  ;;  %s4586_s27 = sshll.u32 %s9381_s26, 3 }
  0x11   : > { %s5862_s11 = scalar_lea.vmem %s8955_s0, %s4584_s8  ;;  %2469 = vmatpush1.msra.mxu1 %v2328_v20  ;;  %v2346_v48 = vld [vmem:[%s8957_s2 + $0xf8] sm:$0xff]  ;;  %v2345_v51 = vld [vmem:[%s8957_s2 + $0xf0] sm:$0xff]  ;;  %v2344_v52 = vld [vmem:[%s8957_s2 + $0xe8] sm:$0xff]  ;;  %s280_s8 = scalar_lea.vmem %s8962_s7, %s4586_s27 }
  0x12   : > { %v282_v2 = vld [vmem:[%s5862_s11] sm:$0xff]  ;;  %v283_v3 = vld [vmem:[%s5862_s11 + $0x8] sm:$0xff]  ;;  %v284_v4 = vld [vmem:[%s5862_s11 + $0x10] sm:$0xff]  ;;  %2470 = vmatprep.subr.mxu1 %v8976_v13 }
  0x13   : > { %5280 = vmatprep.mubr.msk.f32.mxu0 %vm485_vm0, %v282_v2  ;;  %v285_v5 = vld [vmem:[%s5862_s11 + $0x18] sm:$0xff]  ;;  %v286_v6 = vld [vmem:[%s5862_s11 + $0x20] sm:$0xff]  ;;  %v287_v7 = vld [vmem:[%s5862_s11 + $0x28] sm:$0xff]  ;;  %2471 = vmatpush1.msra.mxu1 %v2327_v23 }
  0x14   : > { %5281 = vmatmul.mubr.msk.f32.vlgmr.msra.gmra.mxu0 %vm485_vm0, %v283_v3  ;;  %v288_v8 = vld [vmem:[%s5862_s11 + $0x30] sm:$0xff]  ;;  %v289_v9 = vld [vmem:[%s5862_s11 + $0x38] sm:$0xff]  ;;  %v290_v10 = vld [vmem:[%s5862_s11 + $0x40] sm:$0xff]  ;;  %2472 = vmatprep.subr.mxu1 %v8976_v13 }
  0x15   : > { %5283 = vmatprep.mubr.msk.f32.mxu0 %vm485_vm0, %v284_v4  ;;  %v291_v11 = vld [vmem:[%s5862_s11 + $0x48] sm:$0xff]  ;;  %v292_v12 = vld [vmem:[%s5862_s11 + $0x50] sm:$0xff]  ;;  %v293_v14 = vld [vmem:[%s5862_s11 + $0x58] sm:$0xff]  ;;  %2473 = vmatpush1.msra.mxu1 %v2326_v24 }
  0x16   : > { %v294_v15 = vld [vmem:[%s5862_s11 + $0x60] sm:$0xff]  ;;  %v295_v16 = vld [vmem:[%s5862_s11 + $0x68] sm:$0xff]  ;;  %v296_v17 = vld [vmem:[%s5862_s11 + $0x70] sm:$0xff]  ;;  %2474 = vmatprep.subr.mxu1 %v8976_v13 }
  0x17   : > { %v297_v21 = vld [vmem:[%s5862_s11 + $0x78] sm:$0xff]  ;;  %v298_v22 = vld [vmem:[%s5862_s11 + $0x80] sm:$0xff]  ;;  %v299_v25 = vld [vmem:[%s5862_s11 + $0x88] sm:$0xff]  ;;  %2475 = vmatpush1.msra.mxu1 %v2325_v27 }
  0x18   : > { %5284 = vmatmul.mubr.msk.f32.gmra.mxu0 %vm485_vm0, %v285_v5  ;;  %v300_v26 = vld [vmem:[%s5862_s11 + $0x90] sm:$0xff]  ;;  %v301_v29 = vld [vmem:[%s5862_s11 + $0x98] sm:$0xff]  ;;  %v302_v30 = vld [vmem:[%s5862_s11 + $0xa0] sm:$0xff]  ;;  %2476 = vmatprep.subr.mxu1 %v8976_v13 }
  0x19   : > { %5286 = vmatprep.mubr.msk.f32.mxu0 %vm485_vm0, %v286_v6  ;;  %2477 = vmatpush1.msra.mxu1 %v2324_v28  ;;  %v303_v33 = vld [vmem:[%s5862_s11 + $0xa8] sm:$0xff]  ;;  %v304_v34 = vld [vmem:[%s5862_s11 + $0xb0] sm:$0xff]  ;;  %v305_v37 = vld [vmem:[%s5862_s11 + $0xb8] sm:$0xff] }
  0x1a   : > { %2478 = vmatprep.subr.mxu1 %v8976_v13  ;;  %v306_v38 = vld [vmem:[%s5862_s11 + $0xc0] sm:$0xff]  ;;  %v307_v41 = vld [vmem:[%s5862_s11 + $0xc8] sm:$0xff]  ;;  %v308_v42 = vld [vmem:[%s5862_s11 + $0xd0] sm:$0xff] }
  0x1b   : > { %2479 = vmatpush1.msra.mxu1 %v2323_v31  ;;  %v309_v45 = vld [vmem:[%s5862_s11 + $0xd8] sm:$0xff]  ;;  %v310_v46 = vld [vmem:[%s5862_s11 + $0xe0] sm:$0xff]  ;;  %v311_v49 = vld [vmem:[%s5862_s11 + $0xe8] sm:$0xff] }
  0x1c   : > { %5287 = vmatmul.mubr.msk.f32.gmra.mxu0 %vm485_vm0, %v287_v7  ;;  %2480 = vmatprep.subr.mxu1 %v8976_v13  ;;  %v312_v50 = vld [vmem:[%s5862_s11 + $0xf0] sm:$0xff]  ;;  %v313_v53 = vld [vmem:[%s5862_s11 + $0xf8] sm:$0xff]  ;;  %v314_v54 = vld [vmem:[%s5862_s11 + $0x100] sm:$0xff] }
  0x1d   : > { %5289 = vmatprep.mubr.msk.f32.mxu0 %vm485_vm0, %v288_v8  ;;  %2481 = vmatpush1.msra.mxu1 %v2322_v32  ;;  %v2343_v55 = vld [vmem:[%s8957_s2 + $0xe0] sm:$0xff]  ;;  %v2342_v56 = vld [vmem:[%s8957_s2 + $0xd8] sm:$0xff]  ;;  %v315_v57 = vld [vmem:[%s5862_s11 + $0x108] sm:$0xff] }
  0x1e   : > { %2482 = vmatprep.subr.mxu1 %v8976_v13  ;;  %v316_v58 = vld [vmem:[%s5862_s11 + $0x110] sm:$0xff]  ;;  %v2340_v60 = vld [vmem:[%s8957_s2 + $0xc8] sm:$0xff]  ;;  %v317_v61 = vld [vmem:[%s5862_s11 + $0x118] sm:$0xff] }
  0x1f   : > { %2483 = vmatpush1.msra.mxu1 %v2321_v35  ;;  %v2341_v59 = vld [vmem:[%s8957_s2 + $0xd0] sm:$0xff]  ;;  %v318_v62 = vld [vmem:[%s5862_s11 + $0x120] sm:$0xff]  ;;  %v2338_v0 = vld [vmem:[%s8957_s2 + $0xb8] sm:$0xff] }
  0x20   : > { %5290 = vmatmul.mubr.msk.f32.gmra.mxu0 %vm485_vm0, %v289_v9  ;;  %2484 = vmatprep.subr.mxu1 %v8976_v13  ;;  %v2339_v63 = vld [vmem:[%s8957_s2 + $0xc0] sm:$0xff]  ;;  %v319_v1 = vld [vmem:[%s5862_s11 + $0x128] sm:$0xff]  ;;  %v320_v2 = vld [vmem:[%s5862_s11 + $0x130] sm:$0xff] }
  0x21   : > { %5292 = vmatprep.mubr.msk.f32.mxu0 %vm485_vm0, %v290_v10  ;;  %2485 = vmatpush1.msra.mxu1 %v2320_v36  ;;  %v2337_v3 = vld [vmem:[%s8957_s2 + $0xb0] sm:$0xff]  ;;  %v2336_v4 = vld [vmem:[%s8957_s2 + $0xa8] sm:$0xff]  ;;  %v321_v5 = vld [vmem:[%s5862_s11 + $0x138] sm:$0xff] }
  0x22   : > { %2486 = vmatprep.subr.mxu1 %v8976_v13  ;;  %v322_v6 = vld [vmem:[%s5862_s11 + $0x140] sm:$0xff]  ;;  %v2334_v8 = vld [vmem:[%s8957_s2 + $0x98] sm:$0xff]  ;;  %v323_v9 = vld [vmem:[%s5862_s11 + $0x148] sm:$0xff] }
  0x23   : > { %2487 = vmatpush1.msra.mxu1 %v2319_v39  ;;  %v2335_v7 = vld [vmem:[%s8957_s2 + $0xa0] sm:$0xff]  ;;  %v324_v10 = vld [vmem:[%s5862_s11 + $0x150] sm:$0xff]  ;;  %v329_v19 = vld [vmem:[%s5862_s11 + $0x178] sm:$0xff] }
  0x24   : > { %5293 = vmatmul.mubr.msk.f32.gmra.mxu0 %vm485_vm0, %v291_v11  ;;  %2488 = vmatprep.subr.mxu1 %v8976_v13  ;;  %v2333_v11 = vld [vmem:[%s8957_s2 + $0x90] sm:$0xff]  ;;  %v330_v20 = vld [vmem:[%s5862_s11 + $0x180] sm:$0xff]  ;;  %v333_v23 = vld [vmem:[%s5862_s11 + $0x198] sm:$0xff] }
  0x25   : > { %5295 = vmatprep.mubr.msk.f32.mxu0 %vm485_vm0, %v292_v12  ;;  %2489 = vmatpush1.msra.mxu1 %v2318_v40  ;;  %v2332_v12 = vld [vmem:[%s8957_s2 + $0x88] sm:$0xff]  ;;  %v328_v18 = vld [vmem:[%s5862_s11 + $0x170] sm:$0xff]  ;;  %v334_v24 = vld [vmem:[%s5862_s11 + $0x1a0] sm:$0xff] }
  0x26   : > { %2490 = vmatprep.subr.mxu1 %v8976_v13  ;;  %v337_v27 = vld [vmem:[%s5862_s11 + $0x1b8] sm:$0xff]  ;;  %v338_v28 = vld [vmem:[%s5862_s11 + $0x1c0] sm:$0xff] }
  0x27   : > { %2491 = vmatpush1.msra.mxu1 %v2317_v43  ;;  %v341_v31 = vld [vmem:[%s5862_s11 + $0x1d8] sm:$0xff]  ;;  %v342_v32 = vld [vmem:[%s5862_s11 + $0x1e0] sm:$0xff] }
  0x28   : > { %5296 = vmatmul.mubr.msk.f32.gmra.mxu0 %vm485_vm0, %v293_v14  ;;  %2492 = vmatprep.subr.mxu1 %v8976_v13  ;;  %v325_v14 = vld [vmem:[%s5862_s11 + $0x158] sm:$0xff]  ;;  %v346_v36 = vld [vmem:[%s5862_s11 + $0x200] sm:$0xff] }
  0x29   : > { %5298 = vmatprep.mubr.msk.f32.mxu0 %vm485_vm0, %v294_v15  ;;  %2493 = vmatpush1.msra.mxu1 %v2316_v44  ;;  %v326_v15 = vld [vmem:[%s5862_s11 + $0x160] sm:$0xff]  ;;  %v345_v35 = vld [vmem:[%s5862_s11 + $0x1f8] sm:$0xff] }
  0x2a   : > { %2494 = vmatprep.subr.mxu1 %v8976_v13  ;;  %v349_v39 = vld [vmem:[%s5862_s11 + $0x218] sm:$0xff]  ;;  %v350_v40 = vld [vmem:[%s5862_s11 + $0x220] sm:$0xff] }
  0x2b   : > { %2495 = vmatpush1.msra.mxu1 %v2315_v47  ;;  %v353_v43 = vld [vmem:[%s5862_s11 + $0x238] sm:$0xff]  ;;  %v354_v44 = vld [vmem:[%s5862_s11 + $0x240] sm:$0xff] }
  0x2c   : > { %5299 = vmatmul.mubr.msk.f32.gmra.mxu0 %vm485_vm0, %v295_v16  ;;  %2496 = vmatprep.subr.mxu1 %v8976_v13  ;;  %v2331_v16 = vld [vmem:[%s8957_s2 + $0x80] sm:$0xff]  ;;  %v357_v47 = vld [vmem:[%s5862_s11 + $0x258] sm:$0xff] }
  0x2d   : > { %5301 = vmatprep.mubr.msk.f32.mxu0 %vm485_vm0, %v296_v17  ;;  %2497 = vmatpush2.msra.mxu1 %v2346_v48  ;;  %v327_v17 = vld [vmem:[%s5862_s11 + $0x168] sm:$0xff]  ;;  %v358_v48 = vld [vmem:[%s5862_s11 + $0x260] sm:$0xff] }
  0x2e   : > { %2498 = vmatprep.subr.mxu1 %v8976_v13 }
  0x2f   : > { %2499 = vmatpush2.msra.mxu1 %v2345_v51  ;;  %v361_v51 = vld [vmem:[%s5862_s11 + $0x278] sm:$0xff] }
  0x30   : > { %5302 = vmatmul.mubr.msk.f32.gmra.mxu0 %vm485_vm0, %v297_v21  ;;  %2500 = vmatprep.subr.mxu1 %v8976_v13  ;;  %v331_v21 = vld [vmem:[%s5862_s11 + $0x188] sm:$0xff] }
  0x31   : > { %5304 = vmatprep.mubr.msk.f32.mxu0 %vm485_vm0, %v298_v22  ;;  %2501 = vmatpush2.msra.mxu1 %v2344_v52  ;;  %v332_v22 = vld [vmem:[%s5862_s11 + $0x190] sm:$0xff]  ;;  %v362_v52 = vld [vmem:[%s5862_s11 + $0x280] sm:$0xff] }
  0x32   : > { %2502 = vmatprep.subr.mxu1 %v8976_v13 }
  0x33   : > { %2503 = vmatpush2.msra.mxu1 %v2343_v55  ;;  %v365_v55 = vld [vmem:[%s5862_s11 + $0x298] sm:$0xff] }
  0x34   : > { %5305 = vmatmul.mubr.msk.f32.gmra.mxu0 %vm485_vm0, %v299_v25  ;;  %2504 = vmatprep.subr.mxu1 %v8976_v13  ;;  %v335_v25 = vld [vmem:[%s5862_s11 + $0x1a8] sm:$0xff] }
  0x35   : > { %5307 = vmatprep.mubr.msk.f32.mxu0 %vm485_vm0, %v300_v26  ;;  %2505 = vmatpush2.msra.mxu1 %v2342_v56  ;;  %v336_v26 = vld [vmem:[%s5862_s11 + $0x1b0] sm:$0xff]  ;;  %v366_v56 = vld [vmem:[%s5862_s11 + $0x2a0] sm:$0xff] }
  0x36   : > { %2506 = vmatprep.subr.mxu1 %v8976_v13 }
  0x37   : > { %2507 = vmatpush2.msra.mxu1 %v2341_v59  ;;  %v369_v59 = vld [vmem:[%s5862_s11 + $0x2b8] sm:$0xff] }
  0x38   : > { %5308 = vmatmul.mubr.msk.f32.gmra.mxu0 %vm485_vm0, %v301_v29  ;;  %2508 = vmatprep.subr.mxu1 %v8976_v13  ;;  %v339_v29 = vld [vmem:[%s5862_s11 + $0x1c8] sm:$0xff] }
  0x39   : > { %5310 = vmatprep.mubr.msk.f32.mxu0 %vm485_vm0, %v302_v30  ;;  %2509 = vmatpush2.msra.mxu1 %v2340_v60  ;;  %v340_v30 = vld [vmem:[%s5862_s11 + $0x1d0] sm:$0xff]  ;;  %v370_v60 = vld [vmem:[%s5862_s11 + $0x2c0] sm:$0xff] }
  0x3a   : > { %2510 = vmatprep.subr.mxu1 %v8976_v13 }
  0x3b   : > { %2511 = vmatpush2.msra.mxu1 %v2339_v63  ;;  %v373_v63 = vld [vmem:[%s5862_s11 + $0x2d8] sm:$0xff] }
  0x3c   : > { %5311 = vmatmul.mubr.msk.f32.gmra.mxu0 %vm485_vm0, %v303_v33  ;;  %2512 = vmatprep.subr.mxu1 %v8976_v13  ;;  %v343_v33 = vld [vmem:[%s5862_s11 + $0x1e8] sm:$0xff] }
  0x3d   : > { %5313 = vmatprep.mubr.msk.f32.mxu0 %vm485_vm0, %v304_v34  ;;  %2513 = vmatpush2.msra.mxu1 %v2338_v0  ;;  %v344_v34 = vld [vmem:[%s5862_s11 + $0x1f0] sm:$0xff]  ;;  %v374_v0 = vld [vmem:[%s5862_s11 + $0x2e0] sm:$0xff] }
  0x3e   : > { %2514 = vmatprep.subr.mxu1 %v8976_v13 }
  0x3f   : > { %2515 = vmatpush2.msra.mxu1 %v2337_v3  ;;  %v377_v3 = vld [vmem:[%s5862_s11 + $0x2f8] sm:$0xff] }
  0x40   : > { %5314 = vmatmul.mubr.msk.f32.gmra.mxu0 %vm485_vm0, %v305_v37  ;;  %2516 = vmatprep.subr.mxu1 %v8976_v13  ;;  %v347_v37 = vld [vmem:[%s5862_s11 + $0x208] sm:$0xff] }
  0x41   : > { %5316 = vmatprep.mubr.msk.f32.mxu0 %vm485_vm0, %v306_v38  ;;  %2517 = vmatpush2.msra.mxu1 %v2336_v4  ;;  %v348_v38 = vld [vmem:[%s5862_s11 + $0x210] sm:$0xff]  ;;  %v378_v4 = vld [vmem:[%s5862_s11 + $0x300] sm:$0xff] }
  0x42   : > { %2518 = vmatprep.subr.mxu1 %v8976_v13 }
  0x43   : > { %2519 = vmatpush2.msra.mxu1 %v2335_v7  ;;  %v380_v7 = vld [vmem:[%s5862_s11 + $0x310] sm:$0xff] }
  0x44   : > { %5317 = vmatmul.mubr.msk.f32.gmra.mxu0 %vm485_vm0, %v307_v41  ;;  %2520 = vmatprep.subr.mxu1 %v8976_v13  ;;  %v351_v41 = vld [vmem:[%s5862_s11 + $0x228] sm:$0xff] }
  0x45   : > { %5319 = vmatprep.mubr.msk.f32.mxu0 %vm485_vm0, %v308_v42  ;;  %2521 = vmatpush2.msra.mxu1 %v2334_v8  ;;  %v352_v42 = vld [vmem:[%s5862_s11 + $0x230] sm:$0xff] }
  0x46   : > { %2522 = vmatprep.subr.mxu1 %v8976_v13 }
  0x47   : > { %2523 = vmatpush2.msra.mxu1 %v2333_v11  ;;  %v382_v11 = vld [vmem:[%s5862_s11 + $0x320] sm:$0xff] }
  0x48   : > { %5320 = vmatmul.mubr.msk.f32.gmra.mxu0 %vm485_vm0, %v309_v45  ;;  %2524 = vmatprep.subr.mxu1 %v8976_v13  ;;  %v355_v45 = vld [vmem:[%s5862_s11 + $0x248] sm:$0xff] }
  0x49   : > { %5322 = vmatprep.mubr.msk.f32.mxu0 %vm485_vm0, %v310_v46  ;;  %2525 = vmatpush2.msra.mxu1 %v2332_v12  ;;  %v356_v46 = vld [vmem:[%s5862_s11 + $0x250] sm:$0xff] }
  0x4a   : > { %2526 = vmatprep.subr.mxu1 %v8976_v13 }
  0x4b   : > { %2527 = vmatpush2.msra.mxu1 %v2331_v16  ;;  %v384_v16 = vld [vmem:[%s5862_s11 + $0x330] sm:$0xff] }
  0x4c   : > { %5323 = vmatmul.mubr.msk.f32.gmra.mxu0 %vm485_vm0, %v311_v49  ;;  %2709 = vmatprep.subr.mxu1 %v8976_v13  ;;  %v359_v49 = vld [vmem:[%s5862_s11 + $0x268] sm:$0xff] }
  0x4d   : > { %5325 = vmatprep.mubr.msk.f32.mxu0 %vm485_vm0, %v312_v50  ;;  %v360_v50 = vld [vmem:[%s5862_s11 + $0x270] sm:$0xff] }
  0x50   : > { %5326 = vmatmul.mubr.msk.f32.gmra.mxu0 %vm485_vm0, %v313_v53  ;;  %v363_v53 = vld [vmem:[%s5862_s11 + $0x288] sm:$0xff] }
  0x51   : > { %5328 = vmatprep.mubr.msk.f32.mxu0 %vm485_vm0, %v314_v54  ;;  %v364_v54 = vld [vmem:[%s5862_s11 + $0x290] sm:$0xff] }
  0x54   : > { %5329 = vmatmul.mubr.msk.f32.gmra.mxu0 %vm485_vm0, %v315_v57  ;;  %v367_v57 = vld [vmem:[%s5862_s11 + $0x2a8] sm:$0xff] }
  0x55   : > { %5331 = vmatprep.mubr.msk.f32.mxu0 %vm485_vm0, %v316_v58  ;;  %v368_v58 = vld [vmem:[%s5862_s11 + $0x2b0] sm:$0xff] }
  0x58   : > { %5332 = vmatmul.mubr.msk.f32.gmra.mxu0 %vm485_vm0, %v317_v61  ;;  %v371_v61 = vld [vmem:[%s5862_s11 + $0x2c8] sm:$0xff] }
  0x59   : > { %5334 = vmatprep.mubr.msk.f32.mxu0 %vm485_vm0, %v318_v62  ;;  %v372_v62 = vld [vmem:[%s5862_s11 + $0x2d0] sm:$0xff] }
  0x5c   : > { %5335 = vmatmul.mubr.msk.f32.gmra.mxu0 %vm485_vm0, %v319_v1  ;;  %v375_v1 = vld [vmem:[%s5862_s11 + $0x2e8] sm:$0xff] }
  0x5d   : > { %5337 = vmatprep.mubr.msk.f32.mxu0 %vm485_vm0, %v320_v2  ;;  %v376_v2 = vld [vmem:[%s5862_s11 + $0x2f0] sm:$0xff] }
  0x60   : > { %5338 = vmatmul.mubr.msk.f32.gmra.mxu0 %vm485_vm0, %v321_v5  ;;  %v2426_v5 = vld [vmem:[%s8957_s2 + $0x378] sm:$0xff] }
  0x61   : > { %5340 = vmatprep.mubr.msk.f32.mxu0 %vm485_vm0, %v322_v6  ;;  %v379_v6 = vld [vmem:[%s5862_s11 + $0x308] sm:$0xff]  ;;  %3200 = vmatpush1.msra.mxu0 %v2426_v5 }
  0x62   : > { %3201 = vmatprep.subr.mxu0 %v8976_v13  ;;  %v395_v5 = vld [vmem:[%s5862_s11 + $0x388] sm:$0xff] }
  0x64   : > { %5341 = vmatmul.mubr.msk.f32.gmra.mxu0 %vm485_vm0, %v323_v9  ;;  %v381_v9 = vld [vmem:[%s5862_s11 + $0x318] sm:$0xff] }
  0x65   : > { %5343 = vmatprep.mubr.msk.f32.mxu0 %vm485_vm0, %v324_v10 }
  0x68   : > { %5344 = vmatmul.mubr.msk.f32.gmra.mxu0 %vm485_vm0, %v325_v14  ;;  %v383_v14 = vld [vmem:[%s5862_s11 + $0x328] sm:$0xff] }
  0x69   : > { %5346 = vmatprep.mubr.msk.f32.mxu0 %vm485_vm0, %v326_v15 }
  0x6c   : > { %5347 = vmatmul.mubr.msk.f32.gmra.mxu0 %vm485_vm0, %v327_v17  ;;  %v2425_v17 = vld [vmem:[%s8957_s2 + $0x370] sm:$0xff] }
  0x6d   : > { %5349 = vmatprep.mubr.msk.f32.mxu0 %vm485_vm0, %v328_v18  ;;  %3202 = vmatpush1.msra.mxu0 %v2425_v17 }
  0x6e   : > { %3203 = vmatprep.subr.mxu0 %v8976_v13 }
  0x70   : > { %5350 = vmatmul.mubr.msk.f32.gmra.mxu0 %vm485_vm0, %v329_v19  ;;  %v6209_v19 = vld [vmem:[%s8961_s6] ss:$0 sm:$0xff] }
  0x71   : > { %5352 = vmatprep.mubr.msk.f32.mxu0 %vm485_vm0, %v330_v20  ;;  %v385_v20 = vld [vmem:[%s5862_s11 + $0x338] sm:$0xff] }
  0x74   : > { %5353 = vmatmul.mubr.msk.f32.gmra.mxu0 %vm485_vm0, %v331_v21 }
  0x75   : > { %5355 = vmatprep.mubr.msk.f32.mxu0 %vm485_vm0, %v332_v22 }
  0x78   : > { %5356 = vmatmul.mubr.msk.f32.gmra.mxu0 %vm485_vm0, %v333_v23  ;;  %v386_v23 = vld [vmem:[%s5862_s11 + $0x340] sm:$0xff] }
  0x79   : > { %5358 = vmatprep.mubr.msk.f32.mxu0 %vm485_vm0, %v334_v24 }
  0x7c   : > { %5359 = vmatmul.mubr.msk.f32.gmra.mxu0 %vm485_vm0, %v335_v25 }
  0x7d   : > { %5361 = vmatprep.mubr.msk.f32.mxu0 %vm485_vm0, %v336_v26 }
  0x80   : > { %5362 = vmatmul.mubr.msk.f32.gmra.mxu0 %vm485_vm0, %v337_v27  ;;  %v2424_v27 = vld [vmem:[%s8957_s2 + $0x368] sm:$0xff] }
  0x81   : > { %5364 = vmatprep.mubr.msk.f32.mxu0 %vm485_vm0, %v338_v28  ;;  %3204 = vmatpush1.msra.mxu0 %v2424_v27  ;;  %v2358_v27 = vld [vmem:[%s8957_s2 + $0x158] sm:$0xff] }
  0x82   : > { %3205 = vmatprep.subr.mxu0 %v8976_v13 }
  0x84   : > { %5365 = vmatmul.mubr.msk.f32.gmra.mxu0 %vm485_vm0, %v339_v29  ;;  %v387_v29 = vld [vmem:[%s5862_s11 + $0x348] sm:$0xff] }
  0x85   : > { %5367 = vmatprep.mubr.msk.f32.mxu0 %vm485_vm0, %v340_v30 }
  0x88   : > { %5368 = vmatmul.mubr.msk.f32.gmra.mxu0 %vm485_vm0, %v341_v31 }
  0x89   : > { %5370 = vmatprep.mubr.msk.f32.mxu0 %vm485_vm0, %v342_v32 }
  0x8c   : > { %5371 = vmatmul.mubr.msk.f32.gmra.mxu0 %vm485_vm0, %v343_v33  ;;  %v388_v33 = vld [vmem:[%s5862_s11 + $0x350] sm:$0xff] }
  0x8d   : > { %5373 = vmatprep.mubr.msk.f32.mxu0 %vm485_vm0, %v344_v34  ;;  %v2423_v34 = vld [vmem:[%s8957_s2 + $0x360] sm:$0xff] }
  0x8e   : > { %3206 = vmatpush1.msra.mxu0 %v2423_v34 }
  0x8f   : > { %3207 = vmatprep.subr.mxu0 %v8976_v13 }
  0x90   : > { %5374 = vmatmul.mubr.msk.f32.gmra.mxu0 %vm485_vm0, %v345_v35 }
  0x91   : > { %5376 = vmatprep.mubr.msk.f32.mxu0 %vm485_vm0, %v346_v36 }
  0x94   : > { %5377 = vmatmul.mubr.msk.f32.gmra.mxu0 %vm485_vm0, %v347_v37 }
  0x95   : > { %5379 = vmatprep.mubr.msk.f32.mxu0 %vm485_vm0, %v348_v38  ;;  %v2422_v38 = vld [vmem:[%s8957_s2 + $0x358] sm:$0xff] }
  0x96   : > { %3208 = vmatpush1.msra.mxu0 %v2422_v38 }
  0x97   : > { %3209 = vmatprep.subr.mxu0 %v8976_v13 }
  0x98   : > { %5380 = vmatmul.mubr.msk.f32.gmra.mxu0 %vm485_vm0, %v349_v39  ;;  %v389_v39 = vld [vmem:[%s5862_s11 + $0x358] sm:$0xff] }
  0x99   : > { %5382 = vmatprep.mubr.msk.f32.mxu0 %vm485_vm0, %v350_v40 }
  0x9c   : > { %5383 = vmatmul.mubr.msk.f32.gmra.mxu0 %vm485_vm0, %v351_v41 }
  0x9d   : > { %5385 = vmatprep.mubr.msk.f32.mxu0 %vm485_vm0, %v352_v42 }
  0xa0   : > { %5386 = vmatmul.mubr.msk.f32.gmra.mxu0 %vm485_vm0, %v353_v43  ;;  %v390_v43 = vld [vmem:[%s5862_s11 + $0x360] sm:$0xff] }
  0xa1   : > { %5388 = vmatprep.mubr.msk.f32.mxu0 %vm485_vm0, %v354_v44 }
  0xa4   : > { %5389 = vmatmul.mubr.msk.f32.gmra.mxu0 %vm485_vm0, %v355_v45 }
  0xa5   : > { %5391 = vmatprep.mubr.msk.f32.mxu0 %vm485_vm0, %v356_v46  ;;  %v2362_v46 = vld [vmem:[%s8957_s2 + $0x178] sm:$0xff] }
  0xa8   : > { %5392 = vmatmul.mubr.msk.f32.gmra.mxu0 %vm485_vm0, %v357_v47 }
  0xa9   : > { %5394 = vmatprep.mubr.msk.f32.mxu0 %vm485_vm0, %v358_v48  ;;  %v2421_v48 = vld [vmem:[%s8957_s2 + $0x350] sm:$0xff] }
  0xaa   : > { %3210 = vmatpush1.msra.mxu0 %v2421_v48 }
  0xab   : > { %3211 = vmatprep.subr.mxu0 %v8976_v13 }
  0xac   : > { %5395 = vmatmul.mubr.msk.f32.gmra.mxu0 %vm485_vm0, %v359_v49  ;;  %v391_v49 = vld [vmem:[%s5862_s11 + $0x368] sm:$0xff] }
  0xad   : > { %5397 = vmatprep.mubr.msk.f32.mxu0 %vm485_vm0, %v360_v50 }
  0xb0   : > { %5398 = vmatmul.mubr.msk.f32.gmra.mxu0 %vm485_vm0, %v361_v51 }
  0xb1   : > { %5400 = vmatprep.mubr.msk.f32.mxu0 %vm485_vm0, %v362_v52 }
  0xb4   : > { %5401 = vmatmul.mubr.msk.f32.gmra.mxu0 %vm485_vm0, %v363_v53  ;;  %v392_v53 = vld [vmem:[%s5862_s11 + $0x370] sm:$0xff] }
  0xb5   : > { %5403 = vmatprep.mubr.msk.f32.mxu0 %vm485_vm0, %v364_v54 }
  0xb8   : > { %5404 = vmatmul.mubr.msk.f32.gmra.mxu0 %vm485_vm0, %v365_v55  ;;  %v2361_v55 = vld [vmem:[%s8957_s2 + $0x170] sm:$0xff] }
  0xb9   : > { %5406 = vmatprep.mubr.msk.f32.mxu0 %vm485_vm0, %v366_v56 }
  0xbc   : > { %5407 = vmatmul.mubr.msk.f32.gmra.mxu0 %vm485_vm0, %v367_v57  ;;  %v2420_v57 = vld [vmem:[%s8957_s2 + $0x348] sm:$0xff] }
  0xbd   : > { %5409 = vmatprep.mubr.msk.f32.mxu0 %vm485_vm0, %v368_v58  ;;  %v393_v58 = vld [vmem:[%s5862_s11 + $0x378] sm:$0xff]  ;;  %3212 = vmatpush1.msra.mxu0 %v2420_v57 }
  0xbe   : > { %3213 = vmatprep.subr.mxu0 %v8976_v13  ;;  %v405_v57 = vld [vmem:[%s5862_s11 + $0x3d8] sm:$0xff] }
  0xc0   : > { %5410 = vmatmul.mubr.msk.f32.gmra.mxu0 %vm485_vm0, %v369_v59 }
  0xc1   : > { %5412 = vmatprep.mubr.msk.f32.mxu0 %vm485_vm0, %v370_v60 }
  0xc4   : > { %5413 = vmatmul.mubr.msk.f32.gmra.mxu0 %vm485_vm0, %v371_v61 }
  0xc5   : > { %5415 = vmatprep.mubr.msk.f32.mxu0 %vm485_vm0, %v372_v62  ;;  %v394_v62 = vld [vmem:[%s5862_s11 + $0x380] sm:$0xff] }
  0xc8   : > { %5416 = vmatmul.mubr.msk.f32.gmra.mxu0 %vm485_vm0, %v373_v63 }
  0xc9   : > { %5418 = vmatprep.mubr.msk.f32.mxu0 %vm485_vm0, %v374_v0 }
  0xcc   : > { %5419 = vmatmul.mubr.msk.f32.gmra.mxu0 %vm485_vm0, %v375_v1  ;;  %v2419_v1 = vld [vmem:[%s8957_s2 + $0x340] sm:$0xff] }
  0xcd   : > { %5421 = vmatprep.mubr.msk.f32.mxu0 %vm485_vm0, %v376_v2  ;;  %v2360_v2 = vld [vmem:[%s8957_s2 + $0x168] sm:$0xff]  ;;  %3214 = vmatpush1.msra.mxu0 %v2419_v1  ;;  %v2355_v1 = vld [vmem:[%s8957_s2 + $0x140] sm:$0xff] }
  0xce   : > { %3215 = vmatprep.subr.mxu0 %v8976_v13 }
  0xd0   : > { %5422 = vmatmul.mubr.msk.f32.gmra.mxu0 %vm485_vm0, %v377_v3 }
  0xd1   : > { %5424 = vmatprep.mubr.msk.f32.mxu0 %vm485_vm0, %v378_v4 }
  0xd4   : > { %v5282_v8 = vpop.f32.mrf.mxu0  ;;  %5425 = vmatmul.mubr.msk.f32.gmra.mxu0 %vm485_vm0, %v379_v6 }
  0xd5   : > { %5427 = vmatprep.mubr.msk.f32.mxu0 %vm485_vm0, %v380_v7  ;;  %v1146_v30 = vadd.f32 %v5282_v8, %v6209_v19 }
  0xd6   : > { %v1140_v10 = vpop.f32.mrf.mxu0 }
  0xd7   : > { %v1141_v21 = vadd.f32 %v6209_v19, %v1140_v10  ;;  %v2120_v40 = vmax.f32 %v1146_v30, 0.0 }
  0xd8   : > { %v5285_v12 = vpop.f32.mrf.mxu0  ;;  %5428 = vmatmul.mubr.msk.f32.gmra.mxu0 %vm485_vm0, %v381_v9  ;;  %v396_v9 = vld [vmem:[%s5862_s11 + $0x390] sm:$0xff] }
  0xd9   : > { %5430 = vmatprep.mubr.msk.f32.mxu0 %vm485_vm0, %v382_v11  ;;  %v2119_v31 = vmax.f32 %v1141_v21, 0.0  ;;  %v1156_v50 = vadd.f32 %v5285_v12, %v6209_v19  ;;  %v2418_v12 = vld [vmem:[%s8957_s2 + $0x338] sm:$0xff]  ;;  %v398_v21 = vld [vmem:[%s5862_s11 + $0x3a0] sm:$0xff] }
  0xda   : > { %v1150_v15 = vpop.f32.mrf.mxu0  ;;  %3216 = vmatpush1.msra.mxu0 %v2418_v12  ;;  %v2354_v12 = vld [vmem:[%s8957_s2 + $0x138] sm:$0xff] }
  0xdb   : > { %v1151_v41 = vadd.f32 %v6209_v19, %v1150_v15  ;;  %v2122_v59 = vmax.f32 %v1156_v50, 0.0  ;;  %v397_v15 = vld [vmem:[%s5862_s11 + $0x398] sm:$0xff]  ;;  %3217 = vmatprep.subr.mxu0 %v8976_v13 }
  0xdc   : > { %v5288_v18 = vpop.f32.mrf.mxu0  ;;  %5431 = vmatmul.mubr.msk.f32.gmra.mxu0 %vm485_vm0, %v383_v14 }
  0xdd   : > { %5433 = vmatprep.mubr.msk.f32.mxu0 %vm485_vm0, %v384_v16  ;;  %v1166_v24 = vadd.f32 %v5288_v18, %v6209_v19  ;;  %v2121_v51 = vmax.f32 %v1151_v41, 0.0  ;;  %v2359_v16 = vld [vmem:[%s8957_s2 + $0x160] sm:$0xff] }
  0xde   : > { %v1160_v22 = vpop.f32.mrf.mxu0  ;;  %v2415_v41 = vld [vmem:[%s8957_s2 + $0x320] sm:$0xff] }
  0xdf   : > { %v1161_v25 = vadd.f32 %v6209_v19, %v1160_v22  ;;  %v2124_v35 = vmax.f32 %v1166_v24, 0.0  ;;  %v2417_v24 = vld [vmem:[%s8957_s2 + $0x330] sm:$0xff] }
  0xe0   : > { %v5291_v26 = vpop.f32.mrf.mxu0  ;;  %5434 = vmatmul.mubr.msk.f32.gmra.mxu0 %vm485_vm0, %v385_v20 }
  0xe1   : > { %5436 = vmatprep.mubr.msk.f32.mxu0 %vm485_vm0, %v386_v23  ;;  %v2123_v28 = vmax.f32 %v1161_v25, 0.0  ;;  %v1176_v44 = vadd.f32 %v5291_v26, %v6209_v19  ;;  %v399_v26 = vld [vmem:[%s5862_s11 + $0x3a8] sm:$0xff]  ;;  %3218 = vmatpush1.msra.mxu0 %v2417_v24  ;;  %v2353_v24 = vld [vmem:[%s8957_s2 + $0x130] sm:$0xff] }
  0xe2   : > { %v1170_v32 = vpop.f32.mrf.mxu0  ;;  %3219 = vmatprep.subr.mxu0 %v8976_v13 }
  0xe3   : > { %v1171_v36 = vadd.f32 %v6209_v19, %v1170_v32  ;;  %2528 = vmatprep.mubr.f32.mxu1 %v2123_v28  ;;  %v2126_v54 = vmax.f32 %v1176_v44, 0.0 }
  0xe4   : > { %v5294_v37 = vpop.f32.mrf.mxu0  ;;  %5437 = vmatmul.mubr.msk.f32.gmra.mxu0 %vm485_vm0, %v387_v29  ;;  %2529 = vmatmul.mubr.f32.vlgmr.msra.gmra.mxu1 %v2119_v31  ;;  %v400_v31 = vld [vmem:[%s5862_s11 + $0x3b0] sm:$0xff] }
  0xe5   : > { %2533 = vmatprep.mubr.f32.mxu1 %v2124_v35  ;;  %5439 = vmatprep.mubr.msk.f32.mxu0 %vm485_vm0, %v388_v33  ;;  %v2125_v45 = vmax.f32 %v1171_v36, 0.0  ;;  %v6284_v6 = vadd.f32 %v5294_v37, %v6209_v19  ;;  %v2416_v33 = vld [vmem:[%s8957_s2 + $0x328] sm:$0xff]  ;;  %v401_v35 = vld [vmem:[%s5862_s11 + $0x3b8] sm:$0xff]  ;;  %v2357_v36 = vld [vmem:[%s8957_s2 + $0x150] sm:$0xff] }
  0xe6   : > { %v1180_v42 = vpop.f32.mrf.mxu0  ;;  %2710 = vmatpush1.msra.mxu1 %v2362_v46  ;;  %3220 = vmatpush1.msra.mxu0 %v2416_v33 }
  0xe7   : > { %2711 = vmatprep.subr.mxu1 %v8976_v13  ;;  %v6266_v60 = vadd.f32 %v6209_v19, %v1180_v42  ;;  %v8969_v17 = vmax.f32 %v6284_v6, 0.0  ;;  %3221 = vmatprep.subr.mxu0 %v8976_v13 }
  0xe8   : > { %v6244_v47 = vpop.f32.mrf.mxu0  ;;  %5440 = vmatmul.mubr.msk.f32.gmra.mxu0 %vm485_vm0, %v389_v39  ;;  %2534 = vmatmul.mubr.f32.gmra.mxu1 %v2120_v40  ;;  %v402_v40 = vld [vmem:[%s5862_s11 + $0x3c0] sm:$0xff] }
  0xe9   : > { %2538 = vmatprep.mubr.f32.mxu1 %v2125_v45  ;;  %5442 = vmatprep.mubr.msk.f32.mxu0 %vm485_vm0, %v390_v43  ;;  %v8970_v7 = vmax.f32 %v6266_v60, 0.0  ;;  %v6324_v28 = vadd.f32 %v6244_v47, %v6209_v19  ;;  %v2414_v45 = vld [vmem:[%s8957_s2 + $0x318] sm:$0xff]  ;;  %v403_v47 = vld [vmem:[%s5862_s11 + $0x3c8] sm:$0xff] }
  0xea   : > { %v1190_v52 = vpop.f32.mrf.mxu0  ;;  %2712 = vmatpush1.msra.mxu1 %v2361_v55  ;;  %3222 = vmatpush1.msra.mxu0 %v2415_v41 }
  0xeb   : > { %2713 = vmatprep.subr.mxu1 %v8976_v13  ;;  %v6303_v18 = vadd.f32 %v6209_v19, %v1190_v52  ;;  %v8967_v37 = vmax.f32 %v6324_v28, 0.0  ;;  %3223 = vmatprep.subr.mxu0 %v8976_v13 }
  0xec   : > { %v5300_v56 = vpop.f32.mrf.mxu0  ;;  %5443 = vmatmul.mubr.msk.f32.gmra.mxu0 %vm485_vm0, %v391_v49  ;;  %2539 = vmatmul.mubr.f32.gmra.mxu1 %v2121_v51  ;;  %v404_v51 = vld [vmem:[%s5862_s11 + $0x3d0] sm:$0xff] }
  0xed   : > { %2543 = vmatprep.mubr.f32.mxu1 %v2126_v54  ;;  %5445 = vmatprep.mubr.msk.f32.mxu0 %vm485_vm0, %v392_v53  ;;  %v1206_v63 = vadd.f32 %v5300_v56, %v6209_v19  ;;  %v8968_v29 = vmax.f32 %v6303_v18, 0.0  ;;  %v2356_v54 = vld [vmem:[%s8957_s2 + $0x148] sm:$0xff]  ;;  %v2413_v56 = vld [vmem:[%s8957_s2 + $0x310] sm:$0xff] }
  0xee   : > { %v1200_v61 = vpop.f32.mrf.mxu0  ;;  %2714 = vmatpush1.msra.mxu1 %v2360_v2  ;;  %3224 = vmatpush1.msra.mxu0 %v2414_v45 }
  0xef   : > { %v1201_v0 = vadd.f32 %v6209_v19, %v1200_v61  ;;  %v2132_v10 = vmax.f32 %v1206_v63, 0.0  ;;  %2715 = vmatprep.subr.mxu1 %v8976_v13  ;;  %3225 = vmatprep.subr.mxu0 %v8976_v13 }
  0xf0   : > { %v5303_v3 = vpop.f32.mrf.mxu0  ;;  %5446 = vmatmul.mubr.msk.f32.gmra.mxu0 %vm485_vm0, %v393_v58  ;;  %2544 = vmatmul.mubr.f32.gmra.mxu1 %v2122_v59 }
  0xf1   : > { %v2131_v4 = vmax.f32 %v1201_v0, 0.0  ;;  %5448 = vmatprep.mubr.msk.f32.mxu0 %vm485_vm0, %v394_v62  ;;  %v1216_v22 = vadd.f32 %v5303_v3, %v6209_v19  ;;  %2716 = vmatpush1.msra.mxu1 %v2359_v16  ;;  %v406_v62 = vld [vmem:[%s5862_s11 + $0x3e0] sm:$0xff]  ;;  %v2412_v3 = vld [vmem:[%s8957_s2 + $0x308] sm:$0xff]  ;;  %v409_v16 = vld [vmem:[%s5862_s11 + $0x3f8] sm:$0xff] }
  0xf2   : > { %v1210_v8 = vpop.f32.mrf.mxu0  ;;  %2717 = vmatprep.subr.mxu1 %v8976_v13  ;;  %3226 = vmatpush1.msra.mxu0 %v2413_v56  ;;  %v418_v56 = vld [vmem:[%s5862_s11 + $0x440] sm:$0xff] }
  0xf3   : > { %v1211_v11 = vadd.f32 %v6209_v19, %v1210_v8  ;;  %2548 = vmatprep.mubr.f32.mxu1 %v2131_v4  ;;  %v2134_v32 = vmax.f32 %v1216_v22, 0.0  ;;  %2718 = vmatpush1.msra.mxu1 %v2358_v27  ;;  %v407_v4 = vld [vmem:[%s5862_s11 + $0x3e8] sm:$0xff]  ;;  %v410_v22 = vld [vmem:[%s5862_s11 + $0x400] sm:$0xff] }
  0xf4   : > { %v5306_v14 = vpop.f32.mrf.mxu0  ;;  %5449 = vmatmul.mubr.msk.f32.gmra.mxu0 %vm485_vm0, %v395_v5  ;;  %2549 = vmatmul.mubr.f32.gmra.mxu1 %v8970_v7 }
  0xf5   : > { %2553 = vmatprep.mubr.f32.mxu1 %v2132_v10  ;;  %5451 = vmatprep.mubr.msk.f32.mxu0 %vm485_vm0, %v396_v9  ;;  %v2133_v23 = vmax.f32 %v1211_v11, 0.0  ;;  %v6362_v48 = vadd.f32 %v5306_v14, %v6209_v19  ;;  %v408_v10 = vld [vmem:[%s5862_s11 + $0x3f0] sm:$0xff] }
  0xf6   : > { %v1220_v20 = vpop.f32.mrf.mxu0  ;;  %2719 = vmatprep.subr.mxu1 %v8976_v13  ;;  %3227 = vmatprep.subr.mxu0 %v8976_v13 }
  0xf7   : > { %v6343_v38 = vadd.f32 %v6209_v19, %v1220_v20  ;;  %2720 = vmatpush1.msra.mxu1 %v2357_v36  ;;  %v8965_v58 = vmax.f32 %v6362_v48, 0.0  ;;  %3228 = vmatpush1.msra.mxu0 %v2412_v3 }
  0xf8   : > { %v6312_v25 = vpop.f32.mrf.mxu0  ;;  %5452 = vmatmul.mubr.msk.f32.gmra.mxu0 %vm485_vm0, %v397_v15  ;;  %2554 = vmatmul.mubr.f32.gmra.mxu1 %v8969_v17  ;;  %v2411_v15 = vld [vmem:[%s8957_s2 + $0x300] sm:$0xff] }
  0xf9   : > { %2558 = vmatprep.mubr.f32.mxu1 %v2133_v23  ;;  %5454 = vmatprep.mubr.msk.f32.mxu0 %vm485_vm0, %v398_v21  ;;  %v8966_v49 = vmax.f32 %v6343_v38, 0.0  ;;  %v6407_v5 = vadd.f32 %v6312_v25, %v6209_v19  ;;  %v2442_v23 = vld [vmem:[%s8957_s2 + $0x3f8] sm:$0xff] }
  0xfa   : > { %v1230_v30 = vpop.f32.mrf.mxu0  ;;  %2721 = vmatprep.subr.mxu1 %v8976_v13  ;;  %3229 = vmatprep.subr.mxu0 %v8976_v13 }
  0xfb   : > { %v6384_v59 = vadd.f32 %v6209_v19, %v1230_v30  ;;  %2722 = vmatpush1.msra.mxu1 %v2356_v54  ;;  %v8963_v20 = vmax.f32 %v6407_v5, 0.0  ;;  %3230 = vmatpush1.msra.mxu0 %v2411_v15  ;;  %v412_v30 = vld [vmem:[%s5862_s11 + $0x410] sm:$0xff]  ;;  %v421_v15 = vld [vmem:[%s5862_s11 + $0x458] sm:$0xff] }
  0xfc   : > { %v5312_v34 = vpop.f32.mrf.mxu0  ;;  %5455 = vmatmul.mubr.msk.f32.gmra.mxu0 %vm485_vm0, %v399_v26  ;;  %2559 = vmatmul.mubr.f32.gmra.mxu1 %v8968_v29  ;;  %v411_v26 = vld [vmem:[%s5862_s11 + $0x408] sm:$0xff]  ;;  %v446_v29 = vld [vmem:[%s5862_s11 + $0x520] sm:$0xff] }
  0xfd   : > { %2563 = vmatprep.mubr.f32.mxu1 %v2134_v32  ;;  %5457 = vmatprep.mubr.msk.f32.mxu0 %vm485_vm0, %v400_v31  ;;  %v1246_v42 = vadd.f32 %v5312_v34, %v6209_v19  ;;  %v8964_v8 = vmax.f32 %v6384_v59, 0.0  ;;  %v2441_v31 = vld [vmem:[%s8957_s2 + $0x3f0] sm:$0xff]  ;;  %v2352_v32 = vld [vmem:[%s8957_s2 + $0x128] sm:$0xff] }
  0xfe   : > { %v1240_v39 = vpop.f32.mrf.mxu0  ;;  %2723 = vmatprep.subr.mxu1 %v8976_v13  ;;  %3231 = vmatprep.subr.mxu0 %v8976_v13  ;;  %v2440_v34 = vld [vmem:[%s8957_s2 + $0x3e8] sm:$0xff] }
  0xff   : > { %v1241_v43 = vadd.f32 %v6209_v19, %v1240_v39  ;;  %v2140_v52 = vmax.f32 %v1246_v42, 0.0  ;;  %2724 = vmatpush1.msra.mxu1 %v2355_v1  ;;  %3232 = vmatpush2.msra.mxu0 %v2442_v23  ;;  %v414_v39 = vld [vmem:[%s5862_s11 + $0x420] sm:$0xff]  ;;  %v2438_v42 = vld [vmem:[%s8957_s2 + $0x3d8] sm:$0xff]  ;;  %v2349_v1 = vld [vmem:[%s8957_s2 + $0x110] sm:$0xff] }
 0x100   : > { %v5315_v44 = vpop.f32.mrf.mxu0  ;;  %5458 = vmatmul.mubr.msk.f32.gmra.mxu0 %vm485_vm0, %v401_v35  ;;  %2564 = vmatmul.mubr.f32.gmra.mxu1 %v8967_v37  ;;  %v413_v35 = vld [vmem:[%s5862_s11 + $0x418] sm:$0xff]  ;;  %v422_v23 = vld [vmem:[%s5862_s11 + $0x460] sm:$0xff] }
 0x101   : > { %v2139_v46 = vmax.f32 %v1241_v43, 0.0  ;;  %5460 = vmatprep.mubr.msk.f32.mxu0 %vm485_vm0, %v402_v40  ;;  %v1256_v63 = vadd.f32 %v5315_v44, %v6209_v19  ;;  %2725 = vmatprep.subr.mxu1 %v8976_v13  ;;  %v2439_v40 = vld [vmem:[%s8957_s2 + $0x3e0] sm:$0xff]  ;;  %v415_v43 = vld [vmem:[%s5862_s11 + $0x428] sm:$0xff] }
 0x102   : > { %v1250_v50 = vpop.f32.mrf.mxu0  ;;  %2726 = vmatpush1.msra.mxu1 %v2354_v12  ;;  %3233 = vmatprep.subr.mxu0 %v8976_v13  ;;  %v2351_v44 = vld [vmem:[%s8957_s2 + $0x120] sm:$0xff]  ;;  %v2432_v12 = vld [vmem:[%s8957_s2 + $0x3a8] sm:$0xff] }
 0x103   : > { %v1251_v53 = vadd.f32 %v6209_v19, %v1250_v50  ;;  %2568 = vmatprep.mubr.f32.mxu1 %v2139_v46  ;;  %v2142_v11 = vmax.f32 %v1256_v63, 0.0  ;;  %2727 = vmatprep.subr.mxu1 %v8976_v13  ;;  %v416_v46 = vld [vmem:[%s5862_s11 + $0x430] sm:$0xff]  ;;  %v2434_v63 = vld [vmem:[%s8957_s2 + $0x3b8] sm:$0xff] }
 0x104   : > { %v6372_v55 = vpop.f32.mrf.mxu0  ;;  %5461 = vmatmul.mubr.msk.f32.gmra.mxu0 %vm485_vm0, %v403_v47  ;;  %2569 = vmatmul.mubr.f32.gmra.mxu1 %v8966_v49  ;;  %v2437_v47 = vld [vmem:[%s8957_s2 + $0x3d0] sm:$0xff] }
 0x105   : > { %2573 = vmatprep.mubr.f32.mxu1 %v2140_v52  ;;  %5463 = vmatprep.mubr.msk.f32.mxu0 %vm485_vm0, %v404_v51  ;;  %v2141_v0 = vmax.f32 %v1251_v53, 0.0  ;;  %v2436_v51 = vld [vmem:[%s8957_s2 + $0x3c8] sm:$0xff]  ;;  %v417_v52 = vld [vmem:[%s5862_s11 + $0x438] sm:$0xff] }
 0x106   : > { %v6386_v61 = vpop.f32.mrf.mxu0  ;;  %2728 = vmatpush1.msra.mxu1 %v2353_v24  ;;  %3234 = vmatpush2.msra.mxu0 %v2441_v31  ;;  %v2350_v53 = vld [vmem:[%s8957_s2 + $0x118] sm:$0xff]  ;;  %v2431_v24 = vld [vmem:[%s8957_s2 + $0x3a0] sm:$0xff]  ;;  %v423_v31 = vld [vmem:[%s5862_s11 + $0x468] sm:$0xff] }
 0x107   : > { %2729 = vmatprep.subr.mxu1 %v8976_v13  ;;  %3235 = vmatprep.subr.mxu0 %v8976_v13 }
 0x108   : > { %v6395_v2 = vpop.f32.mrf.mxu0  ;;  %5464 = vmatmul.mubr.msk.f32.gmra.mxu0 %vm485_vm0, %v405_v57  ;;  %2574 = vmatmul.mubr.f32.gmra.mxu1 %v8965_v58  ;;  %v2435_v57 = vld [vmem:[%s8957_s2 + $0x3c0] sm:$0xff] }
 0x109   : > { %2578 = vmatprep.mubr.f32.mxu1 %v2141_v0  ;;  %5466 = vmatprep.mubr.msk.f32.mxu0 %vm485_vm0, %v406_v62  ;;  %v419_v0 = vld [vmem:[%s5862_s11 + $0x448] sm:$0xff] }
 0x10a   : > { %v6410_v9 = vpop.f32.mrf.mxu0  ;;  %2730 = vmatpush1.msra.mxu1 %v2352_v32  ;;  %3236 = vmatpush2.msra.mxu0 %v2440_v34  ;;  %v424_v34 = vld [vmem:[%s5862_s11 + $0x470] sm:$0xff] }
 0x10b   : > { %2731 = vmatprep.subr.mxu1 %v8976_v13  ;;  %3237 = vmatprep.subr.mxu0 %v8976_v13 }
 0x10c   : > { %v6418_v14 = vpop.f32.mrf.mxu0  ;;  %5467 = vmatmul.mubr.msk.f32.gmra.mxu0 %vm485_vm0, %v407_v4  ;;  %2579 = vmatmul.mubr.f32.gmra.mxu1 %v8964_v8  ;;  %v420_v4 = vld [vmem:[%s5862_s11 + $0x450] sm:$0xff] }
 0x10d   : > { %2583 = vmatprep.mubr.f32.mxu1 %v2142_v11  ;;  %5469 = vmatprep.mubr.msk.f32.mxu0 %vm485_vm0, %v408_v10  ;;  %v2433_v10 = vld [vmem:[%s8957_s2 + $0x3b0] sm:$0xff] }
 0x10e   : > { %v6429_v21 = vpop.f32.mrf.mxu0  ;;  %3238 = vmatpush2.msra.mxu0 %v2439_v40  ;;  %2732 = vmatpush1.msra.mxu1 %v2351_v44  ;;  %v444_v8 = vld [vmem:[%s5862_s11 + $0x510] sm:$0xff] }
 0x10f   : > { %3239 = vmatprep.subr.mxu0 %v8976_v13  ;;  %2733 = vmatprep.subr.mxu1 %v8976_v13 }
 0x110   : > { %v6440_v25 = vpop.f32.mrf.mxu0  ;;  %5470 = vmatmul.mubr.msk.f32.gmra.mxu0 %vm485_vm0, %v409_v16  ;;  %2584 = vmatmul.mubr.f32.gmra.mxu1 %v8963_v20  ;;  %v2348_v16 = vld [vmem:[%s8957_s2 + $0x108] sm:$0xff] }
 0x111   : > { %5472 = vmatprep.mubr.msk.f32.mxu0 %vm485_vm0, %v410_v22  ;;  %3240 = vmatpush2.msra.mxu0 %v2438_v42  ;;  %v2428_v42 = vld [vmem:[%s8957_s2 + $0x388] sm:$0xff] }
 0x112   : > { %v6448_v27 = vpop.f32.mrf.mxu0  ;;  %3241 = vmatprep.subr.mxu0 %v8976_v13  ;;  %2734 = vmatpush1.msra.mxu1 %v2350_v53  ;;  %v427_v53 = vld [vmem:[%s5862_s11 + $0x488] sm:$0xff] }
 0x113   : > { %3242 = vmatpush2.msra.mxu0 %v2437_v47  ;;  %2735 = vmatprep.subr.mxu1 %v8976_v13  ;;  %v2427_v47 = vld [vmem:[%s8957_s2 + $0x380] sm:$0xff] }
 0x114   : > { %v6459_v33 = vpop.f32.mrf.mxu0  ;;  %5473 = vmatmul.mubr.msk.f32.gmra.mxu0 %vm485_vm0, %v411_v26  ;;  %3243 = vmatprep.subr.mxu0 %v8976_v13 }
 0x115   : > { %9041 = vst [vmem:[#allocation2_spill] sm:$0xff] %v6459_v33  ;;  %5475 = vmatprep.mubr.msk.f32.mxu0 %vm485_vm0, %v412_v30  ;;  %3244 = vmatpush2.msra.mxu0 %v2436_v51  ;;  %v2430_v30 = vld [vmem:[%s8957_s2 + $0x398] sm:$0xff] }
 0x116   : > { %v6467_v36 = vpop.f32.mrf.mxu0  ;;  %3245 = vmatprep.subr.mxu0 %v8976_v13  ;;  %2736 = vmatpush1.msra.mxu1 %v2349_v1  ;;  %v2378_v51 = vld [vmem:[%s8957_s2 + $0x1f8] sm:$0xff] }
 0x117   : > { %9042 = vst [vmem:[#allocation3_spill] sm:$0xff] %v6467_v36  ;;  %3246 = vmatpush2.msra.mxu0 %v2435_v57  ;;  %2737 = vmatprep.subr.mxu1 %v8976_v13  ;;  %v428_v57 = vld [vmem:[%s5862_s11 + $0x490] sm:$0xff]  ;;  %v429_v1 = vld [vmem:[%s5862_s11 + $0x498] sm:$0xff] }
 0x118   : > { %v6475_v41 = vpop.f32.mrf.mxu0  ;;  %5476 = vmatmul.mubr.msk.f32.gmra.mxu0 %vm485_vm0, %v413_v35  ;;  %3247 = vmatprep.subr.mxu0 %v8976_v13  ;;  %v2429_v35 = vld [vmem:[%s8957_s2 + $0x390] sm:$0xff]  ;;  %v469_v36 = vld [vmem:[%s5862_s11 + $0x5d8] sm:$0xff] }
 0x119   : > { %9043 = vst [vmem:[#allocation4_spill] sm:$0xff] %v6475_v41  ;;  %5478 = vmatprep.mubr.msk.f32.mxu0 %vm485_vm0, %v414_v39  ;;  %3248 = vmatpush2.msra.mxu0 %v2434_v63  ;;  %v2347_v39 = vld [vmem:[%s8957_s2 + $0x100] sm:$0xff]  ;;  %v2377_v63 = vld [vmem:[%s8957_s2 + $0x1f0] sm:$0xff] }
 0x11a   : > { %v6487_v45 = vpop.f32.mrf.mxu0  ;;  %3249 = vmatprep.subr.mxu0 %v8976_v13  ;;  %2738 = vmatpush1.msra.mxu1 %v2348_v16  ;;  %v431_v16 = vld [vmem:[%s5862_s11 + $0x4a8] sm:$0xff] }
 0x11b   : > { %9044 = vst [vmem:[#allocation5_spill] sm:$0xff] %v6487_v45  ;;  %3250 = vmatpush2.msra.mxu0 %v2433_v10  ;;  %2739 = vmatprep.subr.mxu1 %v8976_v13  ;;  %v430_v10 = vld [vmem:[%s5862_s11 + $0x4a0] sm:$0xff] }
 0x11c   : > { %v6495_v50 = vpop.f32.mrf.mxu0  ;;  %5479 = vmatmul.mubr.msk.f32.gmra.mxu0 %vm485_vm0, %v415_v43  ;;  %3251 = vmatprep.subr.mxu0 %v8976_v13  ;;  %v425_v43 = vld [vmem:[%s5862_s11 + $0x478] sm:$0xff] }
 0x11d   : > { %5481 = vmatprep.mubr.msk.f32.mxu0 %vm485_vm0, %v416_v46  ;;  %3252 = vmatpush2.msra.mxu0 %v2432_v12  ;;  %v426_v46 = vld [vmem:[%s5862_s11 + $0x480] sm:$0xff]  ;;  %v2376_v12 = vld [vmem:[%s8957_s2 + $0x1e8] sm:$0xff] }
 0x11e   : > { %v6507_v54 = vpop.f32.mrf.mxu0  ;;  %3253 = vmatprep.subr.mxu0 %v8976_v13  ;;  %2740 = vmatpush1.msra.mxu1 %v2347_v39  ;;  %v434_v39 = vld [vmem:[%s5862_s11 + $0x4c0] sm:$0xff] }
 0x11f   : > { %3254 = vmatpush2.msra.mxu0 %v2431_v24  ;;  %2741 = vmatprep.subr.mxu1 %v8976_v13  ;;  %v432_v24 = vld [vmem:[%s5862_s11 + $0x4b0] sm:$0xff] }
 0x120   : > { %v6515_v62 = vpop.f32.mrf.mxu0  ;;  %5482 = vmatmul.mubr.msk.f32.gmra.mxu0 %vm485_vm0, %v417_v52  ;;  %3255 = vmatprep.subr.mxu0 %v8976_v13 }
 0x121   : > { %5484 = vmatprep.mubr.msk.f32.mxu0 %vm485_vm0, %v418_v56  ;;  %3256 = vmatpush2.msra.mxu0 %v2430_v30 }
 0x122   : > { %v6527_v3 = vpop.f32.mrf.mxu0  ;;  %3257 = vmatprep.subr.mxu0 %v8976_v13  ;;  %2742 = vmatpush2.msra.mxu1 %v2378_v51  ;;  %v436_v51 = vld [vmem:[%s5862_s11 + $0x4d0] sm:$0xff] }
 0x123   : > { %3258 = vmatpush2.msra.mxu0 %v2429_v35  ;;  %2743 = vmatprep.subr.mxu1 %v8976_v13 }
 0x124   : > { %v6535_v11 = vpop.f32.mrf.mxu0  ;;  %5485 = vmatmul.mubr.msk.f32.gmra.mxu0 %vm485_vm0, %v419_v0  ;;  %3259 = vmatprep.subr.mxu0 %v8976_v13 }
 0x125   : > { %9045 = vst [vmem:[#allocation6_spill] sm:$0xff] %v6535_v11  ;;  %5487 = vmatprep.mubr.msk.f32.mxu0 %vm485_vm0, %v420_v4  ;;  %3260 = vmatpush2.msra.mxu0 %v2428_v42 }
 0x126   : > { %v6547_v22 = vpop.f32.mrf.mxu0  ;;  %3261 = vmatprep.subr.mxu0 %v8976_v13  ;;  %2744 = vmatpush2.msra.mxu1 %v2377_v63  ;;  %v2373_v63 = vld [vmem:[%s8957_s2 + $0x1d0] sm:$0xff] }
 0x127   : > { %9046 = vst [vmem:[#allocation7_spill] sm:$0xff] %v6547_v22  ;;  %3262 = vmatpush2.msra.mxu0 %v2427_v47  ;;  %2745 = vmatprep.subr.mxu1 %v8976_v13 }
 0x128   : > { %v6555_v26 = vpop.f32.mrf.mxu0  ;;  %5488 = vmatmul.mubr.msk.f32.gmra.mxu0 %vm485_vm0, %v421_v15  ;;  %2746 = vmatpush2.msra.mxu1 %v2376_v12 }
 0x129   : > { %9047 = vst [vmem:[#allocation8_spill] sm:$0xff] %v6555_v26  ;;  %5490 = vmatprep.mubr.msk.f32.mxu0 %vm485_vm0, %v422_v23  ;;  %2747 = vmatprep.subr.mxu1 %v8976_v13 }
 0x12a   : > { %v6564_v32 = vpop.f32.mrf.mxu0 }
 0x12b   : > { %9048 = vst [vmem:[#allocation9_spill] sm:$0xff] %v6564_v32  ;;  %v2363_v32 = vld [vmem:[%s8957_s2 + $0x180] sm:$0xff] }
 0x12c   : > { %v6574_v40 = vpop.f32.mrf.mxu0  ;;  %5491 = vmatmul.mubr.msk.f32.gmra.mxu0 %vm485_vm0, %v423_v31  ;;  %v433_v31 = vld [vmem:[%s5862_s11 + $0x4b8] sm:$0xff] }
 0x12d   : > { %5493 = vmatprep.mubr.msk.f32.mxu0 %vm485_vm0, %v424_v34  ;;  %v2375_v34 = vld [vmem:[%s8957_s2 + $0x1e0] sm:$0xff] }
 0x12e   : > { %v6583_v44 = vpop.f32.mrf.mxu0  ;;  %2748 = vmatpush2.msra.mxu1 %v2375_v34  ;;  %v440_v34 = vld [vmem:[%s5862_s11 + $0x4f0] sm:$0xff] }
 0x12f   : > { %2749 = vmatprep.subr.mxu1 %v8976_v13 }
 0x130   : > { %v6594_v52 = vpop.f32.mrf.mxu0  ;;  %5494 = vmatmul.mubr.msk.f32.gmra.mxu0 %vm485_vm0, %v425_v43  ;;  %v435_v43 = vld [vmem:[%s5862_s11 + $0x4c8] sm:$0xff] }
 0x131   : > { %5496 = vmatprep.mubr.msk.f32.mxu0 %vm485_vm0, %v426_v46  ;;  %v2374_v46 = vld [vmem:[%s8957_s2 + $0x1d8] sm:$0xff] }
 0x132   : > { %v6600_v56 = vpop.f32.mrf.mxu0  ;;  %2750 = vmatpush2.msra.mxu1 %v2374_v46 }
 0x133   : > { %2751 = vmatprep.subr.mxu1 %v8976_v13 }
 0x134   : > { %v6607_v0 = vpop.f32.mrf.mxu0  ;;  %5497 = vmatmul.mubr.msk.f32.gmra.mxu0 %vm485_vm0, %v427_v53  ;;  %2752 = vmatpush2.msra.mxu1 %v2373_v63 }
 0x135   : > { %9049 = vst [vmem:[#allocation10_spill] sm:$0xff] %v6607_v0  ;;  %5499 = vmatprep.mubr.msk.f32.mxu0 %vm485_vm0, %v428_v57  ;;  %v437_v57 = vld [vmem:[%s5862_s11 + $0x4d8] sm:$0xff]  ;;  %2753 = vmatprep.subr.mxu1 %v8976_v13 }
 0x136   : > { %v6613_v4 = vpop.f32.mrf.mxu0 }
 0x137   : > { %9050 = vst [vmem:[#allocation11_spill] sm:$0xff] %v6613_v4 }
 0x138   : > { %v6619_v15 = vpop.f32.mrf.mxu0  ;;  %5500 = vmatmul.mubr.msk.f32.gmra.mxu0 %vm485_vm0, %v429_v1 }
 0x139   : > { %9051 = vst [vmem:[#allocation12_spill] sm:$0xff] %v6619_v15  ;;  %5502 = vmatprep.mubr.msk.f32.mxu0 %vm485_vm0, %v430_v10  ;;  %v438_v10 = vld [vmem:[%s5862_s11 + $0x4e0] sm:$0xff]  ;;  %v9057_v15 = vmov 0.0  }
 0x13a   : > { %v6625_v23 = vpop.f32.mrf.mxu0 }
 0x13b   : > { %9052 = vst [vmem:[#allocation13_spill] sm:$0xff] %v6625_v23  ;;  %v452_v23 = vld [vmem:[%s5862_s11 + $0x550] sm:$0xff] }
 0x13c   : > { %v6628_v30 = vpop.f32.mrf.mxu0  ;;  %5503 = vmatmul.mubr.msk.f32.gmra.mxu0 %vm485_vm0, %v431_v16  ;;  %v439_v16 = vld [vmem:[%s5862_s11 + $0x4e8] sm:$0xff] }
 0x13d   : > { %9053 = vst [vmem:[#allocation14_spill] sm:$0xff] %v6628_v30  ;;  %5505 = vmatprep.mubr.msk.f32.mxu0 %vm485_vm0, %v432_v24  ;;  %v2372_v24 = vld [vmem:[%s8957_s2 + $0x1c8] sm:$0xff] }
 0x13e   : > { %v6636_v35 = vpop.f32.mrf.mxu0  ;;  %2754 = vmatpush2.msra.mxu1 %v2372_v24  ;;  %v2371_v24 = vld [vmem:[%s8957_s2 + $0x1c0] sm:$0xff] }
 0x13f   : > { %9054 = vst [vmem:[#allocation15_spill] sm:$0xff] %v6636_v35  ;;  %2755 = vmatprep.subr.mxu1 %v8976_v13 }
 0x140   : > { %v6640_v42 = vpop.f32.mrf.mxu0  ;;  %5506 = vmatmul.mubr.msk.f32.gmra.mxu0 %vm485_vm0, %v433_v31  ;;  %2756 = vmatpush2.msra.mxu1 %v2371_v24 }
 0x141   : > { %9055 = vst [vmem:[#allocation16_spill] sm:$0xff] %v6640_v42  ;;  %5508 = vmatprep.mubr.msk.f32.mxu0 %vm485_vm0, %v434_v39  ;;  %2757 = vmatprep.subr.mxu1 %v8976_v13 }
 0x142   : > { %v6648_v47 = vpop.f32.mrf.mxu0 }
 0x143   : > { %9056 = vst [vmem:[#allocation17_spill] sm:$0xff] %v6648_v47 }
 0x144   : > { %v5366_v53 = vpop.f32.mrf.mxu0  ;;  %5509 = vmatmul.mubr.msk.f32.gmra.mxu0 %vm485_vm0, %v435_v43  ;;  %v441_v43 = vld [vmem:[%s5862_s11 + $0x4f8] sm:$0xff] }
 0x145   : > { %5511 = vmatprep.mubr.msk.f32.mxu0 %vm485_vm0, %v436_v51 }
 0x146   : > { %v1420_v1 = vpop.f32.mrf.mxu0 }
 0x147   : > { %v6672_v46 = vadd.f32 %v6209_v19, %v1420_v1 }
 0x148   : > { %v5369_v12 = vpop.f32.mrf.mxu0  ;;  %5512 = vmatmul.mubr.msk.f32.gmra.mxu0 %vm485_vm0, %v437_v57  ;;  %v442_v57 = vld [vmem:[%s5862_s11 + $0x500] sm:$0xff] }
 0x149   : > { %5514 = vmatprep.mubr.msk.f32.mxu0 %vm485_vm0, %v438_v10 }
 0x14a   : > { %v1430_v31 = vpop.f32.mrf.mxu0 }
 0x14b   : > { %v6712_v49 = vadd.f32 %v6209_v19, %v1430_v31  ;;  %v447_v31 = vld [vmem:[%s5862_s11 + $0x528] sm:$0xff] }
 0x14c   : > { %v5372_v39 = vpop.f32.mrf.mxu0  ;;  %5515 = vmatmul.mubr.msk.f32.gmra.mxu0 %vm485_vm0, %v439_v16 }
 0x14d   : > { %5517 = vmatprep.mubr.msk.f32.mxu0 %vm485_vm0, %v440_v34  ;;  %v6676_v63 = vadd.f32 %v5372_v39, %v6209_v19  ;;  %v443_v34 = vld [vmem:[%s5862_s11 + $0x508] sm:$0xff]  ;;  %v6690_v39 = vadd.f32 %v5366_v53, %v6209_v19 }
 0x14e   : > { %v1440_v51 = vpop.f32.mrf.mxu0 }
 0x14f   : > { %v6679_v10 = vadd.f32 %v6209_v19, %v1440_v51  ;;  %v8972_v51 = vmax.f32 %v6672_v46, 0.0  ;;  %v8971_v58 = vmax.f32 %v6676_v63, 0.0  ;;  %v8974_v53 = vmax.f32 %v6690_v39, 0.0 }
 0x150   : > { %v5375_v16 = vpop.f32.mrf.mxu0  ;;  %5518 = vmatmul.mubr.msk.f32.gmra.mxu0 %vm485_vm0, %v441_v43 }
 0x151   : > { %v8975_v1 = vmax.f32 %v6679_v10, 0.0  ;;  %5520 = vmatprep.mubr.msk.f32.mxu0 %vm485_vm0, %v442_v57  ;;  %v2370_v57 = vld [vmem:[%s8957_s2 + $0x1b8] sm:$0xff] }
 0x152   : > { %v1450_v20 = vpop.f32.mrf.mxu0  ;;  %2758 = vmatpush2.msra.mxu1 %v2370_v57  ;;  %v8978_v57 = vmax.f32 %v6712_v49, 0.0 }
 0x153   : > { %v6696_v43 = vadd.f32 %v6209_v19, %v1450_v20  ;;  %2588 = vmatprep.mubr.f32.mxu1 %v8975_v1  ;;  %v445_v20 = vld [vmem:[%s5862_s11 + $0x518] sm:$0xff]  ;;  %2759 = vmatprep.subr.mxu1 %v8976_v13 }
 0x154   : > { %v5378_v24 = vpop.f32.mrf.mxu0  ;;  %5521 = vmatmul.mubr.msk.f32.gmra.mxu0 %vm485_vm0, %v443_v34  ;;  %2589 = vmatmul.mubr.f32.gmra.mxu1 %v8972_v51  ;;  %v6716_v34 = vadd.f32 %v5375_v16, %v6209_v19  ;;  %v6733_v16 = vadd.f32 %v5369_v12, %v6209_v19  ;;  %v448_v51 = vld [vmem:[%s5862_s11 + $0x530] sm:$0xff] }
 0x155   : > { %2593 = vmatprep.mubr.f32.mxu1 %v8971_v58  ;;  %5523 = vmatprep.mubr.msk.f32.mxu0 %vm485_vm0, %v444_v8  ;;  %v8973_v17 = vmax.f32 %v6696_v43, 0.0  ;;  %v2369_v8 = vld [vmem:[%s8957_s2 + $0x1b0] sm:$0xff] }
 0x156   : > { %v1460_v37 = vpop.f32.mrf.mxu0  ;;  %2760 = vmatpush2.msra.mxu1 %v2369_v8  ;;  %v8980_v12 = vmax.f32 %v6733_v16, 0.0 }
 0x157   : > { %2761 = vmatprep.subr.mxu1 %v8976_v13  ;;  %v1461_v8 = vadd.f32 %v6209_v19, %v1460_v37  ;;  %v450_v13 = vld [vmem:[%s5862_s11 + $0x540] sm:$0xff] }
 0x158   : > { %v6723_v7 = vpop.f32.mrf.mxu0  ;;  %5524 = vmatmul.mubr.msk.f32.gmra.mxu0 %vm485_vm0, %v445_v20  ;;  %2594 = vmatmul.mubr.f32.gmra.mxu1 %v8974_v53  ;;  %v8979_v20 = vmax.f32 %v6716_v34, 0.0 }
 0x159   : > { %2598 = vmatprep.mubr.f32.mxu1 %v8973_v17  ;;  %5526 = vmatprep.mubr.msk.f32.mxu0 %vm485_vm0, %v446_v29  ;;  %v2368_v17 = vld [vmem:[%s8957_s2 + $0x1a8] sm:$0xff]  ;;  %v449_v29 = vld [vmem:[%s5862_s11 + $0x538] sm:$0xff] }
 0x15a   : > { %v1470_v58 = vpop.f32.mrf.mxu0  ;;  %2762 = vmatpush2.msra.mxu1 %v2368_v17  ;;  %v2367_v17 = vld [vmem:[%s8957_s2 + $0x1a0] sm:$0xff] }
 0x15b   : > { %2763 = vmatprep.subr.mxu1 %v9057_v15 }
 0x15c   : > { %v5384_v53 = vpop.f32.mrf.mxu0  ;;  %5527 = vmatmul.mubr.msk.f32.gmra.mxu0 %vm485_vm0, %v447_v31  ;;  %2599 = vmatmul.mubr.f32.gmra.mxu1 %v8978_v57 }
 0x15d   : > { %2603 = vmatprep.mubr.f32.mxu1 %v8979_v20  ;;  %5529 = vmatprep.mubr.msk.f32.mxu0 %vm485_vm0, %v448_v51  ;;  %v6753_v31 = vadd.f32 %v5384_v53, %v6209_v19  ;;  %v451_v51 = vld [vmem:[%s5862_s11 + $0x548] sm:$0xff]  ;;  %v6769_v53 = vmax.f32 %v1461_v8, 0.0 }
 0x15e   : > { %v1480_v1 = vpop.f32.mrf.mxu0  ;;  %2764 = vmatpush2.msra.mxu1 %v2367_v17  ;;  %v1471_v17 = vadd.f32 %v6209_v19, %v1470_v58  ;;  %v455_v58 = vld [vmem:[%s5862_s11 + $0x568] sm:$0xff] }
 0x15f   : > { %v6756_v57 = vadd.f32 %v6209_v19, %v1480_v1  ;;  %v1466_v1 = vadd.f32 %v5378_v24, %v6209_v19  ;;  %9058 = vst [vmem:[#allocation18_spill] sm:$0xff] %v6769_v53  ;;  %2765 = vmatprep.subr.mxu1 %v9057_v15  ;;  %v453_v24 = vld [vmem:[%s5862_s11 + $0x558] sm:$0xff] }
 0x160   : > { %v5387_v20 = vpop.f32.mrf.mxu0  ;;  %5530 = vmatmul.mubr.msk.f32.gmra.mxu0 %vm485_vm0, %v449_v29  ;;  %2604 = vmatmul.mubr.f32.gmra.mxu1 %v8980_v12  ;;  %v8982_v29 = vmax.f32 %v6753_v31, 0.0 }
 0x161   : > { %v8981_v37 = vmax.f32 %v6756_v57, 0.0  ;;  %5532 = vmatprep.mubr.msk.f32.mxu0 %vm485_vm0, %v450_v13  ;;  %v6788_v8 = vmax.f32 %v1466_v1, 0.0  ;;  %v6793_v47 = vadd.f32 %v5387_v20, %v6209_v19  ;;  %v2365_v20 = vld [vmem:[%s8957_s2 + $0x190] sm:$0xff]  ;;  %v1476_v1 = vadd.f32 %v6723_v7, %v6209_v19  ;;  %v2364_v7 = vld [vmem:[%s8957_s2 + $0x188] sm:$0xff] }
 0x162   : > { %v1490_v42 = vpop.f32.mrf.mxu0 }
 0x163   : > { %v6774_v12 = vadd.f32 %v6209_v19, %v1490_v42  ;;  %2608 = vmatprep.mubr.f32.mxu1 %v8981_v37  ;;  %v2366_v42 = vld [vmem:[%s8957_s2 + $0x198] sm:$0xff]  ;;  %9059 = vst [vmem:[#allocation19_spill] sm:$0xff] %v6788_v8  ;;  %v8984_v30 = vmax.f32 %v6793_v47, 0.0 }
 0x164   : > { %v5390_v13 = vpop.f32.mrf.mxu0  ;;  %5533 = vmatmul.mubr.msk.f32.gmra.mxu0 %vm485_vm0, %v451_v51  ;;  %2609 = vmatmul.mubr.f32.gmra.mxu1 %v6769_v53  ;;  %v454_v51 = vld [vmem:[%s5862_s11 + $0x560] sm:$0xff]  ;;  %v457_v19 = vld [vmem:[%s5862_s11 + $0x578] sm:$0xff] }
 0x165   : > { %2613 = vmatprep.mubr.f32.mxu1 %v8982_v29  ;;  %5535 = vmatprep.mubr.msk.f32.mxu0 %vm485_vm0, %v452_v23  ;;  %v8983_v29 = vmax.f32 %v6774_v12, 0.0 }
 0x166   : > { %v1500_v37 = vpop.f32.mrf.mxu0  ;;  %2766 = vmatpush2.msra.mxu1 %v2366_v42  ;;  %v6810_v42 = vmax.f32 %v1471_v17, 0.0  ;;  %v6824_v17 = vmax.f32 %v1476_v1, 0.0 }
 0x167   : > { %2767 = vmatprep.subr.mxu1 %v9057_v15 }
 0x168   : > { %v6797_v23 = vpop.f32.mrf.mxu0  ;;  %5536 = vmatmul.mubr.msk.f32.gmra.mxu0 %vm485_vm0, %v453_v24  ;;  %2614 = vmatmul.mubr.f32.gmra.mxu1 %v6788_v8  ;;  %9060 = vst [vmem:[#allocation20_spill] sm:$0xff] %v6810_v42  ;;  %v456_v24 = vld [vmem:[%s5862_s11 + $0x570] sm:$0xff]  ;;  %9061 = vst [vmem:[#allocation21_spill] sm:$0xff] %v6824_v17 }
 0x169   : > { %2618 = vmatprep.mubr.f32.mxu1 %v8983_v29  ;;  %5538 = vmatprep.mubr.msk.f32.mxu0 %vm485_vm0, %v454_v51  ;;  %v6829_v51 = vld [vmem:[%s8961_s6] ss:$0 sm:$0xff] }
 0x16a   : > { %v1510_v0 = vpop.f32.mrf.mxu0  ;;  %2768 = vmatpush2.msra.mxu1 %v2365_v20 }
 0x16b   : > { %2769 = vmatprep.subr.mxu1 %v9057_v15 }
 0x16c   : > { %v5396_v29 = vpop.f32.mrf.mxu0  ;;  %5539 = vmatmul.mubr.msk.f32.gmra.mxu0 %vm485_vm0, %v455_v58  ;;  %2619 = vmatmul.mubr.f32.gmra.mxu1 %v6810_v42  ;;  %v1501_v58 = vadd.f32 %v6829_v51, %v1500_v37  ;;  %v459_v37 = vld [vmem:[%s5862_s11 + $0x588] sm:$0xff] }
 0x16d   : > { %2623 = vmatprep.mubr.f32.mxu1 %v8984_v30  ;;  %5541 = vmatprep.mubr.msk.f32.mxu0 %vm485_vm0, %v456_v24  ;;  %v458_v30 = vld [vmem:[%s5862_s11 + $0x580] sm:$0xff]  ;;  %v6834_v24 = vadd.f32 %v6829_v51, %v5396_v29 }
 0x16e   : > { %v1520_v20 = vpop.f32.mrf.mxu0  ;;  %2770 = vmatpush2.msra.mxu1 %v2364_v7  ;;  %v1506_v7 = vadd.f32 %v6829_v51, %v5390_v13  ;;  %v6846_v29 = vmax.f32 %v1501_v58, 0.0  ;;  %v461_v13 = vld [vmem:[%s5862_s11 + $0x598] sm:$0xff] }
 0x16f   : > { %v6837_v4 = vadd.f32 %v6829_v51, %v1520_v20  ;;  %2771 = vmatprep.subr.mxu1 %v9057_v15  ;;  %v460_v20 = vld [vmem:[%s5862_s11 + $0x590] sm:$0xff] }
 0x170   : > { %v5399_v1 = vpop.f32.mrf.mxu0  ;;  %5542 = vmatmul.mubr.msk.f32.gmra.mxu0 %vm485_vm0, %v457_v19  ;;  %2624 = vmatmul.mubr.f32.gmra.mxu1 %v6824_v17  ;;  %9062 = vst [vmem:[#allocation22_spill] sm:$0xff] %v6846_v29  ;;  %v8986_v19 = vmax.f32 %v6834_v24, 0.0  ;;  %v6866_v58 = vmax.f32 %v1506_v7, 0.0 }
 0x171   : > { %v8985_v35 = vmax.f32 %v6837_v4, 0.0  ;;  %5544 = vmatprep.mubr.msk.f32.mxu0 %vm485_vm0, %v458_v30  ;;  %2772 = vmatpush2.msra.mxu1 %v2363_v32  ;;  %v462_v32 = vld [vmem:[%s5862_s11 + $0x5a0] sm:$0xff] }
 0x172   : > { %v1530_v26 = vpop.f32.mrf.mxu0  ;;  %9064 = vst [vmem:[#allocation24_spill] sm:$0xff] %v6866_v58  ;;  %2954 = vmatprep.subr.mxu1 %v9057_v15 }
 0x173   : > { %v6854_v11 = vadd.f32 %v6829_v51, %v1530_v26  ;;  %2628 = vmatprep.mubr.f32.mxu1 %v8985_v35  ;;  %v1511_v26 = vadd.f32 %v6829_v51, %v1510_v0  ;;  %v463_v0 = vld [vmem:[%s5862_s11 + $0x5a8] sm:$0xff] }
 0x174   : > { %v6858_v30 = vpop.f32.mrf.mxu0  ;;  %5545 = vmatmul.mubr.msk.f32.gmra.mxu0 %vm485_vm0, %v459_v37  ;;  %2629 = vmatmul.mubr.f32.gmra.mxu1 %v6846_v29  ;;  %v6874_v37 = vadd.f32 %v6829_v51, %v5399_v1  ;;  %v1516_v1 = vadd.f32 %v6829_v51, %v6797_v23  ;;  %v465_v23 = vld [vmem:[%s5862_s11 + $0x5b8] sm:$0xff] }
 0x175   : > { %9063 = vst [vmem:[#allocation23_spill] sm:$0xff] %v6858_v30  ;;  %2633 = vmatprep.mubr.f32.mxu1 %v8986_v19  ;;  %5547 = vmatprep.mubr.msk.f32.mxu0 %vm485_vm0, %v460_v20  ;;  %v8987_v22 = vmax.f32 %v6854_v11, 0.0  ;;  %v6887_v7 = vmax.f32 %v1511_v26, 0.0  ;;  %v464_v19 = vld [vmem:[%s5862_s11 + $0x5b0] sm:$0xff] }
 0x176   : > { %v6869_v35 = vpop.f32.mrf.mxu0  ;;  %v6901_v26 = vmax.f32 %v1516_v1, 0.0 }
 0x177   : > { %9065 = vst [vmem:[#allocation25_spill] sm:$0xff] %v6869_v35  ;;  %9067 = vst [vmem:[#allocation27_spill] sm:$0xff] %v6887_v7 }
 0x178   : > { %v6877_v41 = vpop.f32.mrf.mxu0  ;;  %5548 = vmatmul.mubr.msk.f32.gmra.mxu0 %vm485_vm0, %v461_v13  ;;  %2634 = vmatmul.mubr.f32.gmra.mxu1 %v6866_v58  ;;  %v8988_v13 = vmax.f32 %v6874_v37, 0.0  ;;  %9069 = vst [vmem:[#allocation29_spill] sm:$0xff] %v6901_v26 }
 0x179   : > { %9066 = vst [vmem:[#allocation26_spill] sm:$0xff] %v6877_v41  ;;  %2638 = vmatprep.mubr.f32.mxu1 %v8987_v22  ;;  %5550 = vmatprep.mubr.msk.f32.mxu0 %vm485_vm0, %v462_v32  ;;  %v466_v22 = vld [vmem:[%s5862_s11 + $0x5c0] sm:$0xff] }
 0x17a   : > { %v6889_v20 = vpop.f32.mrf.mxu0 }
 0x17b   : > { %9068 = vst [vmem:[#allocation28_spill] sm:$0xff] %v6889_v20 }
 0x17c   : > { %v6893_v45 = vpop.f32.mrf.mxu0  ;;  %5551 = vmatmul.mubr.msk.f32.gmra.mxu0 %vm485_vm0, %v463_v0  ;;  %2639 = vmatmul.mubr.f32.gmra.mxu1 %v6887_v7  ;;  %v467_v0 = vld [vmem:[%s5862_s11 + $0x5c8] sm:$0xff] }
 0x17d   : > { %2643 = vmatprep.mubr.f32.mxu1 %v8988_v13  ;;  %5553 = vmatprep.mubr.msk.f32.mxu0 %vm485_vm0, %v464_v19  ;;  %v468_v19 = vld [vmem:[%s5862_s11 + $0x5d0] sm:$0xff] }
 0x17e   : > { %v6903_v32 = vpop.f32.mrf.mxu0 }
 0x180   : > { %v6906_v33 = vpop.f32.mrf.mxu0  ;;  %5554 = vmatmul.mubr.msk.f32.gmra.mxu0 %vm485_vm0, %v465_v23  ;;  %2644 = vmatmul.mubr.f32.gmra.mxu1 %v6901_v26  ;;  %v470_v23 = vld [vmem:[%s5862_s11 + $0x5e0] sm:$0xff] }
 0x181   : > { %9070 = vst [vmem:[#allocation30_spill] sm:$0xff] %v6906_v33  ;;  %5556 = vmatprep.mubr.msk.f32.mxu0 %vm485_vm0, %v466_v22  ;;  %v471_v22 = vld [vmem:[%s5862_s11 + $0x5e8] sm:$0xff] }
 0x182   : > { %v6912_v13 = vpop.f32.mrf.mxu0 }
 0x184   : > { %v6915_v1 = vpop.f32.mrf.mxu0  ;;  %5557 = vmatmul.mubr.msk.f32.gmra.mxu0 %vm485_vm0, %v467_v0 }
 0x185   : > { %9071 = vst [vmem:[#allocation31_spill] sm:$0xff] %v6915_v1  ;;  %5559 = vmatprep.mubr.msk.f32.mxu0 %vm485_vm0, %v468_v19  ;;  %v472_v1 = vld [vmem:[%s5862_s11 + $0x5f0] sm:$0xff]  ;;  %v473_v19 = vld [vmem:[%s5862_s11 + $0x5f8] sm:$0xff] }
 0x186   : > { %v6920_v41 = vpop.f32.mrf.mxu0 }
 0x187   : > { %9072 = vst [vmem:[#allocation32_spill] sm:$0xff] %v6920_v41 }
 0x188   : > { %v6923_v20 = vpop.f32.mrf.mxu0  ;;  %5560 = vmatmul.mubr.msk.f32.gmra.mxu0 %vm485_vm0, %v469_v36  ;;  %v475_v36 = vld [vmem:[%s5862_s11 + $0x608] sm:$0xff] }
 0x189   : > { %9073 = vst [vmem:[#allocation33_spill] sm:$0xff] %v6923_v20  ;;  %5562 = vmatprep.mubr.msk.f32.mxu0 %vm485_vm0, %v470_v23  ;;  %v474_v20 = vld [vmem:[%s5862_s11 + $0x600] sm:$0xff] }
 0x18a   : > { %v6928_v30 = vpop.f32.mrf.mxu0 }
 0x18b   : > { %9074 = vst [vmem:[#allocation34_spill] sm:$0xff] %v6928_v30  ;;  %v476_v30 = vld [vmem:[%s5862_s11 + $0x610] sm:$0xff] }
 0x18c   : > { %v6931_v0 = vpop.f32.mrf.mxu0  ;;  %5563 = vmatmul.mubr.msk.f32.gmra.mxu0 %vm485_vm0, %v471_v22 }
 0x18d   : > { %9075 = vst [vmem:[#allocation35_spill] sm:$0xff] %v6931_v0  ;;  %5565 = vmatprep.mubr.msk.f32.mxu0 %vm485_vm0, %v472_v1  ;;  %v477_v1 = vld [vmem:[%s5862_s11 + $0x618] sm:$0xff] }
 0x18e   : > { %v6936_v41 = vpop.f32.mrf.mxu0 }
 0x190   : > { %v6939_v35 = vpop.f32.mrf.mxu0  ;;  %5566 = vmatmul.mubr.msk.f32.gmra.mxu0 %vm485_vm0, %v473_v19  ;;  %v9080_v19 = vmax.f32 %v6679_v10, 0.0  ;;  %v9086_v10 = vmax.f32 %v6696_v43, 0.0  ;;  %v9095_v43 = vmax.f32 %v6733_v16, 0.0 }
 0x191   : > { %9076 = vst [vmem:[#allocation36_spill] sm:$0xff] %v6939_v35  ;;  %5568 = vmatprep.mubr.msk.f32.mxu0 %vm485_vm0, %v474_v20 }
 0x192   : > { %v6944_v23 = vpop.f32.mrf.mxu0 }
 0x194   : > { %v6947_v33 = vpop.f32.mrf.mxu0  ;;  %5569 = vmatmul.mubr.msk.f32.gmra.mxu0 %vm485_vm0, %v475_v36  ;;  %v9083_v36 = vmax.f32 %v6676_v63, 0.0 }
 0x195   : > { %9077 = vst [vmem:[#allocation37_spill] sm:$0xff] %v6947_v33  ;;  %5571 = vmatprep.mubr.msk.f32.mxu0 %vm485_vm0, %v476_v30  ;;  %v9082_v33 = vmax.f32 %v6672_v46, 0.0  ;;  %v9091_v46 = vmax.f32 %v6716_v34, 0.0 }
 0x196   : > { %v6952_v22 = vpop.f32.mrf.mxu0 }
 0x197   : > { %9078 = vst [vmem:[#allocation38_spill] sm:$0xff] %v6952_v22 }
 0x198   : > { %v6954_v0 = vpop.f32.mrf.mxu0  ;;  %5572 = vmatmul.mubr.msk.f32.gmra.mxu0 %vm485_vm0, %v477_v1 }
 0x199   : > { %9079 = vst [vmem:[#allocation39_spill] sm:$0xff] %v6954_v0  ;;  %3263 = vmatprep.mubr.f32.mxu0 %v9080_v19  ;;  %v9085_v0 = vmax.f32 %v6690_v39, 0.0 }
 0x19a   : > { %v6959_v20 = vpop.f32.mrf.mxu0 }
 0x19b   : > { %9081 = vst [vmem:[#allocation40_spill] sm:$0xff] %v6959_v20 }
 0x19c   : > { %v6961_v35 = vpop.f32.mrf.mxu0  ;;  %3264 = vmatmul.mubr.f32.vlgmr.msra.gmra.mxu0 %v9082_v33  ;;  %v9090_v33 = vmax.f32 %v6712_v49, 0.0 }
 0x19d   : > { %3268 = vmatprep.mubr.f32.mxu0 %v9083_v36 }
 0x19e   : > { %v6967_v30 = vpop.f32.mrf.mxu0 }
 0x1a0   : > { %v6969_v22 = vpop.f32.mrf.mxu0  ;;  %3269 = vmatmul.mubr.f32.gmra.mxu0 %v9085_v0 }
 0x1a1   : > { %9084 = vst [vmem:[#allocation41_spill] sm:$0xff] %v6969_v22  ;;  %3273 = vmatprep.mubr.f32.mxu0 %v9086_v10  ;;  %v9096_v10 = vmax.f32 %v6756_v57, 0.0  ;;  %v9104_v57 = vmax.f32 %v6774_v12, 0.0  ;;  %v9109_v12 = vmax.f32 %v6837_v4, 0.0 }
 0x1a2   : > { %v6975_v1 = vpop.f32.mrf.mxu0 }
 0x1a3   : > { %9087 = vst [vmem:[#allocation42_spill] sm:$0xff] %v6975_v1 }
 0x1a4   : > { %v6977_v19 = vpop.f32.mrf.mxu0  ;;  %v6979_v20 = vpop.f32.mrf.mxu1  ;;  %3274 = vmatmul.mubr.f32.gmra.mxu0 %v9090_v33 }
 0x1a5   : > { %9088 = vst [vmem:[#allocation43_spill] sm:$0xff] %v6977_v19  ;;  %9089 = vst [vmem:[#allocation44_spill] sm:$0xff] %v6979_v20  ;;  %3278 = vmatprep.mubr.f32.mxu0 %v9091_v46  ;;  %v9100_v46 = vmax.f32 %v6753_v31, 0.0  ;;  %v9107_v31 = vmax.f32 %v6793_v47, 0.0  ;;  %v9111_v47 = vmax.f32 %v6834_v24, 0.0 }
 0x1a6   : > { %v6985_v63 = vpop.f32.mrf.mxu0  ;;  %v2532_v36 = vpop.f32.mrf.mxu1 }
 0x1a7   : > { %9092 = vst [vmem:[#allocation45_spill] sm:$0xff] %v6985_v63 }
 0x1a8   : > { %v6987_v39 = vpop.f32.mrf.mxu0  ;;  %v6989_v0 = vpop.f32.mrf.mxu1  ;;  %3279 = vmatmul.mubr.f32.gmra.mxu0 %v9095_v43 }
 0x1a9   : > { %9093 = vst [vmem:[#allocation46_spill] sm:$0xff] %v6987_v39  ;;  %9094 = vst [vmem:[#allocation47_spill] sm:$0xff] %v6989_v0  ;;  %3283 = vmatprep.mubr.f32.mxu0 %v9096_v10 }
 0x1aa   : > { %v6995_v19 = vpop.f32.mrf.mxu0  ;;  %v2537_v49 = vpop.f32.mrf.mxu1 }
 0x1ab   : > { %9097 = vst [vmem:[#allocation48_spill] sm:$0xff] %v6995_v19 }
 0x1ac   : > { %v6997_v33 = vpop.f32.mrf.mxu0  ;;  %v6999_v34 = vpop.f32.mrf.mxu1  ;;  %3284 = vmatmul.mubr.f32.gmra.mxu0 %v6769_v53 }
 0x1ad   : > { %9098 = vst [vmem:[#allocation49_spill] sm:$0xff] %v6997_v33  ;;  %9099 = vst [vmem:[#allocation50_spill] sm:$0xff] %v6999_v34  ;;  %3288 = vmatprep.mubr.f32.mxu0 %v9100_v46 }
 0x1ae   : > { %v7004_v36 = vpop.f32.mrf.mxu0  ;;  %v2542_v39 = vpop.f32.mrf.mxu1 }
 0x1af   : > { %9101 = vst [vmem:[#allocation51_spill] sm:$0xff] %v7004_v36 }
 0x1b0   : > { %v7006_v16 = vpop.f32.mrf.mxu0  ;;  %v7008_v43 = vpop.f32.mrf.mxu1  ;;  %3289 = vmatmul.mubr.f32.gmra.mxu0 %v6788_v8 }
 0x1b1   : > { %9102 = vst [vmem:[#allocation52_spill] sm:$0xff] %v7006_v16  ;;  %9103 = vst [vmem:[#allocation53_spill] sm:$0xff] %v7008_v43  ;;  %3293 = vmatprep.mubr.f32.mxu0 %v9104_v57 }
 0x1b2   : > { %v7013_v10 = vpop.f32.mrf.mxu0  ;;  %v2547_v49 = vpop.f32.mrf.mxu1 }
 0x1b3   : > { %9105 = vst [vmem:[#allocation54_spill] sm:$0xff] %v7013_v10 }
 0x1b4   : > { %v5450_v19 = vpop.f32.mrf.mxu0  ;;  %v7015_v33 = vpop.f32.mrf.mxu1  ;;  %3294 = vmatmul.mubr.f32.gmra.mxu0 %v6810_v42 }
 0x1b5   : > { %9106 = vst [vmem:[#allocation55_spill] sm:$0xff] %v7015_v33  ;;  %3298 = vmatprep.mubr.f32.mxu0 %v9107_v31  ;;  %v1706_v24 = vadd.f32 %v6829_v51, %v5450_v19 }
 0x1b6   : > { %v1700_v39 = vpop.f32.mrf.mxu0  ;;  %v2552_v46 = vpop.f32.mrf.mxu1 }
 0x1b7   : > { %v1701_v31 = vadd.f32 %v6829_v51, %v1700_v39 }
 0x1b8   : > { %v5453_v16 = vpop.f32.mrf.mxu0  ;;  %v7020_v63 = vpop.f32.mrf.mxu1  ;;  %3299 = vmatmul.mubr.f32.gmra.mxu0 %v6824_v17 }
 0x1b9   : > { %9108 = vst [vmem:[#allocation56_spill] sm:$0xff] %v7020_v63  ;;  %3303 = vmatprep.mubr.f32.mxu0 %v9109_v12 }
 0x1ba   : > { %v1710_v57 = vpop.f32.mrf.mxu0  ;;  %v2557_v49 = vpop.f32.mrf.mxu1 }
 0x1bb   : > { %v1711_v19 = vadd.f32 %v6829_v51, %v1710_v57 }
 0x1bc   : > { %v5456_v10 = vpop.f32.mrf.mxu0  ;;  %v7025_v36 = vpop.f32.mrf.mxu1  ;;  %3304 = vmatmul.mubr.f32.gmra.mxu0 %v6846_v29 }
 0x1bd   : > { %9110 = vst [vmem:[#allocation57_spill] sm:$0xff] %v7025_v36  ;;  %3308 = vmatprep.mubr.f32.mxu0 %v9111_v47  ;;  %v1726_v63 = vadd.f32 %v6829_v51, %v5456_v10  ;;  %v9113_v36 = vmax.f32 %v6854_v11, 0.0  ;;  %v2231_v47 = vmax.f32 %v1701_v31, 0.0  ;;  %v2232_v11 = vmax.f32 %v1706_v24, 0.0 }
 0x1be   : > { %v1720_v46 = vpop.f32.mrf.mxu0  ;;  %v2562_v33 = vpop.f32.mrf.mxu1 }
 0x1bf   : > { %v1721_v43 = vadd.f32 %v6829_v51, %v1720_v46  ;;  %v2236_v0 = vmax.f32 %v1726_v63, 0.0 }
 0x1c0   : > { %v5459_v4 = vpop.f32.mrf.mxu0  ;;  %v7033_v12 = vpop.f32.mrf.mxu1  ;;  %3309 = vmatmul.mubr.f32.gmra.mxu0 %v6866_v58 }
 0x1c1   : > { %9112 = vst [vmem:[#allocation58_spill] sm:$0xff] %v7033_v12  ;;  %v2235_v49 = vmax.f32 %v1721_v43, 0.0  ;;  %3313 = vmatprep.mubr.f32.mxu0 %v9113_v36  ;;  %v9115_v43 = vmax.f32 %v6874_v37, 0.0  ;;  %v1736_v63 = vadd.f32 %v6829_v51, %v5459_v4  ;;  %v2233_v37 = vmax.f32 %v1711_v19, 0.0 }
 0x1c2   : > { %v1730_v34 = vpop.f32.mrf.mxu0  ;;  %v2567_v39 = vpop.f32.mrf.mxu1 }
 0x1c3   : > { %v1731_v33 = vadd.f32 %v6829_v51, %v1730_v34  ;;  %2648 = vmatprep.mubr.f32.mxu1 %v2235_v49  ;;  %v2238_v20 = vmax.f32 %v1736_v63, 0.0 }
 0x1c4   : > { %v5462_v10 = vpop.f32.mrf.mxu0  ;;  %v7040_v46 = vpop.f32.mrf.mxu1  ;;  %2649 = vmatmul.mubr.f32.gmra.mxu1 %v2231_v47  ;;  %3314 = vmatmul.mubr.f32.gmra.mxu0 %v6887_v7 }
 0x1c5   : > { %9114 = vst [vmem:[#allocation59_spill] sm:$0xff] %v7040_v46  ;;  %2653 = vmatprep.mubr.f32.mxu1 %v2236_v0  ;;  %3318 = vmatprep.mubr.f32.mxu0 %v9115_v43  ;;  %v2237_v39 = vmax.f32 %v1731_v33, 0.0  ;;  %v1716_v46 = vadd.f32 %v6829_v51, %v5453_v16 }
 0x1c6   : > { %v1740_v36 = vpop.f32.mrf.mxu0  ;;  %v2572_v31 = vpop.f32.mrf.mxu1 }
 0x1c7   : > { %v2234_v4 = vmax.f32 %v1716_v46, 0.0  ;;  %v1741_v33 = vadd.f32 %v6829_v51, %v1740_v36 }
 0x1c8   : > { %v5465_v34 = vpop.f32.mrf.mxu0  ;;  %v7047_v12 = vpop.f32.mrf.mxu1  ;;  %2654 = vmatmul.mubr.f32.gmra.mxu1 %v2232_v11  ;;  %3319 = vmatmul.mubr.f32.gmra.mxu0 %v6901_v26 }
 0x1c9   : > { %9116 = vst [vmem:[#allocation60_spill] sm:$0xff] %v7047_v12  ;;  %2658 = vmatprep.mubr.f32.mxu1 %v2237_v39  ;;  %3323 = vmatprep.mubr.f32.mxu0 %v2235_v49 }
 0x1ca   : > { %v1750_v43 = vpop.f32.mrf.mxu0  ;;  %v2577_v24 = vpop.f32.mrf.mxu1 }
 0x1cb   : > { %v7059_v24 = vmax.f32 %v1741_v33, 0.0 }
 0x1cc   : > { %v5468_v57 = vpop.f32.mrf.mxu0  ;;  %v7051_v22 = vpop.f32.mrf.mxu1  ;;  %2659 = vmatmul.mubr.f32.gmra.mxu1 %v2233_v37  ;;  %3324 = vmatmul.mubr.f32.gmra.mxu0 %v2231_v47  ;;  %v1746_v47 = vadd.f32 %v6829_v51, %v5462_v10 }
 0x1cd   : > { %9117 = vst [vmem:[#allocation61_spill] sm:$0xff] %v7051_v22  ;;  %2663 = vmatprep.mubr.f32.mxu1 %v2238_v20  ;;  %3328 = vmatprep.mubr.f32.mxu0 %v2236_v0  ;;  %v1766_v49 = vadd.f32 %v6829_v51, %v5468_v57 }
 0x1ce   : > { %v1760_v31 = vpop.f32.mrf.mxu0  ;;  %v2582_v12 = vpop.f32.mrf.mxu1 }
 0x1cf   : > { %v1761_v16 = vadd.f32 %v6829_v51, %v1760_v31  ;;  %v2244_v36 = vmax.f32 %v1766_v49, 0.0  ;;  %v7063_v31 = vmax.f32 %v1746_v47, 0.0  ;;  %v1756_v49 = vadd.f32 %v6829_v51, %v5465_v34 }
 0x1d0   : > { %v5471_v19 = vpop.f32.mrf.mxu0  ;;  %v7056_v1 = vpop.f32.mrf.mxu1  ;;  %2664 = vmatmul.mubr.f32.gmra.mxu1 %v2234_v4  ;;  %3329 = vmatmul.mubr.f32.gmra.mxu0 %v2232_v11  ;;  %v1751_v11 = vadd.f32 %v6829_v51, %v1750_v43 }
 0x1d1   : > { %9118 = vst [vmem:[#allocation62_spill] sm:$0xff] %v7056_v1  ;;  %v2243_v63 = vmax.f32 %v1761_v16, 0.0  ;;  %3333 = vmatprep.mubr.f32.mxu0 %v2237_v39  ;;  %v1776_v10 = vadd.f32 %v6829_v51, %v5471_v19  ;;  %v7073_v43 = vmax.f32 %v1756_v49, 0.0 }
 0x1d2   : > { %v1770_v0 = vpop.f32.mrf.mxu0  ;;  %v2587_v46 = vpop.f32.mrf.mxu1 }
 0x1d3   : > { %v1771_v12 = vadd.f32 %v6829_v51, %v1770_v0  ;;  %2668 = vmatprep.mubr.f32.mxu1 %v2243_v63  ;;  %v7069_v0 = vmax.f32 %v1751_v11, 0.0 }
 0x1d4   : > { %v5474_v57 = vpop.f32.mrf.mxu0  ;;  %2669 = vmatmul.mubr.f32.gmra.mxu1 %v7059_v24  ;;  %3334 = vmatmul.mubr.f32.gmra.mxu0 %v2233_v37 }
 0x1d5   : > { %2673 = vmatprep.mubr.f32.mxu1 %v2244_v36  ;;  %3338 = vmatprep.mubr.f32.mxu0 %v2238_v20  ;;  %v2245_v33 = vmax.f32 %v1771_v12, 0.0  ;;  %v2246_v20 = vmax.f32 %v1776_v10, 0.0  ;;  %v1786_v11 = vadd.f32 %v6829_v51, %v5474_v57 }
 0x1d6   : > { %v1780_v39 = vpop.f32.mrf.mxu0 }
 0x1d7   : > { %v1781_v19 = vadd.f32 %v6829_v51, %v1780_v39 }
 0x1d8   : > { %v5477_v16 = vpop.f32.mrf.mxu0  ;;  %2674 = vmatmul.mubr.f32.gmra.mxu1 %v7063_v31  ;;  %3339 = vmatmul.mubr.f32.gmra.mxu0 %v2234_v4 }
 0x1d9   : > { %2678 = vmatprep.mubr.f32.mxu1 %v2245_v33  ;;  %3343 = vmatprep.mubr.f32.mxu0 %v2243_v63  ;;  %v7081_v10 = vmax.f32 %v1781_v19, 0.0 }
 0x1da   : > { %v1790_v37 = vpop.f32.mrf.mxu0 }
 0x1db   : > { %v1791_v57 = vadd.f32 %v6829_v51, %v1790_v37  ;;  %v1281_v37 = vadd.f32 %v6829_v51, %v6429_v21 }
 0x1dc   : > { %v5480_v47 = vpop.f32.mrf.mxu0  ;;  %2679 = vmatmul.mubr.f32.gmra.mxu1 %v7069_v0  ;;  %3344 = vmatmul.mubr.f32.gmra.mxu0 %v7059_v24 }
 0x1dd   : > { %2683 = vmatprep.mubr.f32.mxu1 %v2246_v20  ;;  %3348 = vmatprep.mubr.f32.mxu0 %v2244_v36  ;;  %v1806_v63 = vadd.f32 %v6829_v51, %v5480_v47 }
 0x1de   : > { %v1800_v4 = vpop.f32.mrf.mxu0 }
 0x1df   : > { %v1801_v34 = vadd.f32 %v6829_v51, %v1800_v4  ;;  %v2252_v49 = vmax.f32 %v1806_v63, 0.0  ;;  %v7088_v4 = vmax.f32 %v1786_v11, 0.0 }
 0x1e0   : > { %v5483_v46 = vpop.f32.mrf.mxu0  ;;  %2684 = vmatmul.mubr.f32.gmra.mxu1 %v7073_v43  ;;  %3349 = vmatmul.mubr.f32.gmra.mxu0 %v7063_v31 }
 0x1e1   : > { %v2251_v12 = vmax.f32 %v1801_v34, 0.0  ;;  %3353 = vmatprep.mubr.f32.mxu0 %v2245_v33  ;;  %v1816_v19 = vadd.f32 %v6829_v51, %v5483_v46  ;;  %v1796_v34 = vadd.f32 %v6829_v51, %v5477_v16  ;;  %v1286_v16 = vadd.f32 %v6829_v51, %v6418_v14 }
 0x1e2   : > { %v1810_v36 = vpop.f32.mrf.mxu0 }
 0x1e3   : > { %v1811_v39 = vadd.f32 %v6829_v51, %v1810_v36  ;;  %2688 = vmatprep.mubr.f32.mxu1 %v2251_v12  ;;  %v7099_v36 = vmax.f32 %v1791_v57, 0.0  ;;  %v2254_v11 = vmax.f32 %v1816_v19, 0.0  ;;  %v7109_v46 = vmax.f32 %v1796_v34, 0.0 }
 0x1e4   : > { %v7084_v1 = vpop.f32.mrf.mxu0  ;;  %2689 = vmatmul.mubr.f32.gmra.mxu1 %v7081_v10  ;;  %3354 = vmatmul.mubr.f32.gmra.mxu0 %v7069_v0  ;;  %v2147_v57 = vmax.f32 %v1281_v37, 0.0  ;;  %v2148_v19 = vmax.f32 %v1286_v16, 0.0  ;;  %v1291_v34 = vadd.f32 %v6829_v51, %v6448_v27  ;;  %v9120_v37 = vmax.f32 %v6266_v60, 0.0  ;;  %v2392_v60 = vld [vmem:[%s8957_s2 + $0x268] sm:$0xff] }
 0x1e5   : > { %v2253_v47 = vmax.f32 %v1811_v39, 0.0  ;;  %2693 = vmatprep.mubr.f32.mxu1 %v2252_v49  ;;  %3358 = vmatprep.mubr.f32.mxu0 %v2246_v20  ;;  %v1296_v27 = vadd.f32 %v6829_v51, %v6440_v25  ;;  %v2391_v25 = vld [vmem:[%s8957_s2 + $0x260] sm:$0xff] }
 0x1e6   : > { %v7091_v33 = vpop.f32.mrf.mxu0  ;;  %v2149_v16 = vmax.f32 %v1291_v34, 0.0  ;;  %v9124_v34 = vmax.f32 %v6303_v18, 0.0 }
 0x1e8   : > { %v7094_v63 = vpop.f32.mrf.mxu0  ;;  %2694 = vmatmul.mubr.f32.gmra.mxu1 %v7088_v4  ;;  %3359 = vmatmul.mubr.f32.gmra.mxu0 %v7073_v43 }
 0x1e9   : > { %2698 = vmatprep.mubr.f32.mxu1 %v2253_v47  ;;  %3363 = vmatprep.mubr.f32.mxu0 %v2251_v12 }
 0x1ea   : > { %v7101_v20 = vpop.f32.mrf.mxu0 }
 0x1ec   : > { %v7105_v39 = vpop.f32.mrf.mxu0  ;;  %2699 = vmatmul.mubr.f32.gmra.mxu1 %v7099_v36  ;;  %3364 = vmatmul.mubr.f32.gmra.mxu0 %v7081_v10 }
 0x1ed   : > { %2703 = vmatprep.mubr.f32.mxu1 %v2254_v11  ;;  %3368 = vmatprep.mubr.f32.mxu0 %v2252_v49  ;;  %v2394_v49 = vld [vmem:[%s8957_s2 + $0x278] sm:$0xff] }
 0x1ee   : > { %v7111_v12 = vpop.f32.mrf.mxu0 }
 0x1f0   : > { %v7115_v22 = vpop.f32.mrf.mxu0  ;;  %2704 = vmatmul.mubr.f32.gmra.mxu1 %v7109_v46  ;;  %3369 = vmatmul.mubr.f32.gmra.mxu0 %v7088_v4 }
 0x1f1   : > { %2773 = vmatprep.mubr.f32.mxu1 %v2147_v57  ;;  %3373 = vmatprep.mubr.f32.mxu0 %v2253_v47  ;;  %v2393_v47 = vld [vmem:[%s8957_s2 + $0x270] sm:$0xff] }
 0x1f2   : > { %v7119_v21 = vpop.f32.mrf.mxu0 }
 0x1f4   : > { %v7126_v14 = vpop.f32.mrf.mxu0  ;;  %2774 = vmatmul.mubr.f32.vlgmr.msra.gmra.mxu1 %v9120_v37  ;;  %3374 = vmatmul.mubr.f32.gmra.mxu0 %v7099_v36 }
 0x1f5   : > { %9119 = vst [vmem:[#allocation63_spill] sm:$0xff] %v7126_v14  ;;  %2955 = vmatpush1.msra.mxu1 %v2394_v49  ;;  %2778 = vmatprep.mubr.f32.mxu1 %v2148_v19  ;;  %v9122_v14 = vmax.f32 %v6284_v6, 0.0  ;;  %v2150_v49 = vmax.f32 %v1296_v27, 0.0  ;;  %v7155_v19 = vadd.f32 %v6829_v51, %v6507_v54  ;;  %v2389_v54 = vld [vmem:[%s8957_s2 + $0x250] sm:$0xff]  ;;  %v7173_v27 = vadd.f32 %v6829_v51, %v6495_v50 }
 0x1f6   : > { %3378 = vmatprep.mubr.f32.mxu0 %v2254_v11  ;;  %v7134_v57 = vpop.f32.mrf.mxu0  ;;  %2956 = vmatprep.subr.mxu1 %v9057_v15 }
 0x1f7   : > { %2957 = vmatpush1.msra.mxu1 %v2393_v47  ;;  %v8989_v18 = vmax.f32 %v7155_v19, 0.0 }
 0x1f8   : > { %v7142_v37 = vpop.f32.mrf.mxu0  ;;  %2779 = vmatmul.mubr.f32.gmra.mxu1 %v9122_v14  ;;  %3379 = vmatmul.mubr.f32.gmra.mxu0 %v7109_v46  ;;  %v2390_v14 = vld [vmem:[%s8957_s2 + $0x258] sm:$0xff] }
 0x1f9   : > { %9121 = vst [vmem:[#allocation64_spill] sm:$0xff] %v7142_v37  ;;  %2783 = vmatprep.mubr.f32.mxu1 %v2149_v16  ;;  %2958 = vmatprep.subr.mxu1 %v9057_v15  ;;  %v7305_v37 = vadd.f32 %v6829_v51, %v6594_v52  ;;  %v1276_v52 = vadd.f32 %v6829_v51, %v6395_v2  ;;  %v2406_v2 = vld [vmem:[%s8957_s2 + $0x2d8] sm:$0xff] }
 0x1fa   : > { %v7148_v11 = vpop.f32.mrf.mxu0  ;;  %2959 = vmatpush1.msra.mxu1 %v2392_v60  ;;  %v9125_v60 = vmax.f32 %v6324_v28, 0.0  ;;  %v8990_v28 = vmax.f32 %v7173_v27, 0.0 }
 0x1fb   : > { %9123 = vst [vmem:[#allocation65_spill] sm:$0xff] %v7148_v11  ;;  %2960 = vmatprep.subr.mxu1 %v9057_v15 }
 0x1fc   : > { %v7158_v6 = vpop.f32.mrf.mxu0  ;;  %2784 = vmatmul.mubr.f32.gmra.mxu1 %v9124_v34  ;;  %v7195_v34 = vadd.f32 %v6829_v51, %v6527_v3  ;;  %v2385_v3 = vld [vmem:[%s8957_s2 + $0x230] sm:$0xff] }
 0x1fd   : > { %2788 = vmatprep.mubr.f32.mxu1 %v2150_v49  ;;  %2961 = vmatpush1.msra.mxu1 %v2391_v25  ;;  %v2388_v25 = vld [vmem:[%s8957_s2 + $0x248] sm:$0xff]  ;;  %v2387_v49 = vld [vmem:[%s8957_s2 + $0x240] sm:$0xff] }
 0x1fe   : > { %v7165_v47 = vpop.f32.mrf.mxu0  ;;  %2962 = vmatprep.subr.mxu1 %v9057_v15 }
 0x1ff   : > { %2963 = vmatpush1.msra.mxu1 %v2390_v14 }
 0x200   : > { %v7176_v16 = vpop.f32.mrf.mxu0  ;;  %2789 = vmatmul.mubr.f32.gmra.mxu1 %v9125_v60  ;;  %2964 = vmatprep.subr.mxu1 %v9057_v15  ;;  %v9127_v60 = vmax.f32 %v6343_v38, 0.0  ;;  %v7215_v38 = vadd.f32 %v6829_v51, %v6515_v62 }
 0x201   : > { %2793 = vmatprep.mubr.f32.mxu1 %v8989_v18  ;;  %2965 = vmatpush1.msra.mxu1 %v2389_v54  ;;  %v2386_v54 = vld [vmem:[%s8957_s2 + $0x238] sm:$0xff] }
 0x202   : > { %v7186_v50 = vpop.f32.mrf.mxu0  ;;  %2966 = vmatprep.subr.mxu1 %v9057_v15 }
 0x203   : > { %2967 = vmatpush1.msra.mxu1 %v2388_v25  ;;  %v8991_v25 = vmax.f32 %v7195_v34, 0.0 }
 0x204   : > { %v7197_v14 = vpop.f32.mrf.mxu0  ;;  %2794 = vmatmul.mubr.f32.gmra.mxu1 %v9127_v60  ;;  %2968 = vmatprep.subr.mxu1 %v9057_v15 }
 0x205   : > { %9126 = vst [vmem:[#allocation66_spill] sm:$0xff] %v7197_v14  ;;  %2798 = vmatprep.mubr.f32.mxu1 %v8990_v28  ;;  %2969 = vmatpush1.msra.mxu1 %v2387_v49  ;;  %v9130_v28 = vmax.f32 %v6362_v48, 0.0  ;;  %v2384_v49 = vld [vmem:[%s8957_s2 + $0x228] sm:$0xff]  ;;  %v8992_v48 = vmax.f32 %v7215_v38, 0.0 }
 0x206   : > { %v7207_v18 = vpop.f32.mrf.mxu0  ;;  %2970 = vmatprep.subr.mxu1 %v9057_v15 }
 0x207   : > { %9128 = vst [vmem:[#allocation67_spill] sm:$0xff] %v7207_v18  ;;  %2971 = vmatpush1.msra.mxu1 %v2386_v54  ;;  %v2383_v54 = vld [vmem:[%s8957_s2 + $0x220] sm:$0xff]  ;;  %v7283_v18 = vadd.f32 %v6829_v51, %v6600_v56  ;;  %v1271_v56 = vadd.f32 %v6829_v51, %v6410_v9  ;;  %v2408_v9 = vld [vmem:[%s8957_s2 + $0x2e8] sm:$0xff] }
 0x208   : > { %v7218_v60 = vpop.f32.mrf.mxu0  ;;  %2799 = vmatmul.mubr.f32.gmra.mxu1 %v9130_v28  ;;  %2972 = vmatprep.subr.mxu1 %v9057_v15  ;;  %v7237_v28 = vadd.f32 %v6829_v51, %v6583_v44  ;;  %v1261_v44 = vadd.f32 %v6829_v51, %v6386_v61  ;;  %v2380_v61 = vld [vmem:[%s8957_s2 + $0x208] sm:$0xff] }
 0x209   : > { %9129 = vst [vmem:[#allocation68_spill] sm:$0xff] %v7218_v60  ;;  %2803 = vmatprep.mubr.f32.mxu1 %v8991_v25  ;;  %2973 = vmatpush1.msra.mxu1 %v2385_v3  ;;  %v9132_v25 = vmax.f32 %v6384_v59, 0.0  ;;  %v2382_v3 = vld [vmem:[%s8957_s2 + $0x218] sm:$0xff]  ;;  %v2381_v59 = vld [vmem:[%s8957_s2 + $0x210] sm:$0xff] }
 0x20a   : > { %v7228_v62 = vpop.f32.mrf.mxu0  ;;  %2974 = vmatprep.subr.mxu1 %v9057_v15  ;;  %v2143_v14 = vmax.f32 %v1261_v44, 0.0 }
 0x20b   : > { %9131 = vst [vmem:[#allocation69_spill] sm:$0xff] %v7228_v62  ;;  %2975 = vmatpush1.msra.mxu1 %v2384_v49  ;;  %v8993_v49 = vmax.f32 %v7237_v28, 0.0 }
 0x20c   : > { %v7239_v60 = vpop.f32.mrf.mxu0  ;;  %2804 = vmatmul.mubr.f32.gmra.mxu1 %v9132_v25  ;;  %2976 = vmatprep.subr.mxu1 %v9057_v15  ;;  %v7259_v25 = vadd.f32 %v6829_v51, %v6574_v40  ;;  %v1266_v40 = vadd.f32 %v6829_v51, %v6372_v55  ;;  %v2410_v55 = vld [vmem:[%s8957_s2 + $0x2f8] sm:$0xff] }
 0x20d   : > { %2808 = vmatprep.mubr.f32.mxu1 %v8992_v48  ;;  %2977 = vmatpush1.msra.mxu1 %v2383_v54  ;;  %v9133_v54 = vmax.f32 %v6407_v5, 0.0  ;;  %v2379_v5 = vld [vmem:[%s8957_s2 + $0x200] sm:$0xff] }
 0x20e   : > { %v7251_v62 = vpop.f32.mrf.mxu0  ;;  %2978 = vmatprep.subr.mxu1 %v9057_v15  ;;  %v2144_v44 = vmax.f32 %v1266_v40, 0.0 }
 0x20f   : > { %2979 = vmatpush1.msra.mxu1 %v2382_v3 }
 0x210   : > { %v7262_v48 = vpop.f32.mrf.mxu0  ;;  %2809 = vmatmul.mubr.f32.gmra.mxu1 %v9133_v54  ;;  %2980 = vmatprep.subr.mxu1 %v9057_v15  ;;  %v8994_v54 = vmax.f32 %v7259_v25, 0.0 }
 0x211   : > { %2813 = vmatprep.mubr.f32.mxu1 %v8993_v49  ;;  %2981 = vmatpush1.msra.mxu1 %v2381_v59 }
 0x212   : > { %v7274_v3 = vpop.f32.mrf.mxu0  ;;  %2982 = vmatprep.subr.mxu1 %v9057_v15 }
 0x213   : > { %2983 = vmatpush1.msra.mxu1 %v2380_v61 }
 0x214   : > { %v7285_v59 = vpop.f32.mrf.mxu0  ;;  %v7287_v49 = vpop.f32.mrf.mxu1  ;;  %2814 = vmatmul.mubr.f32.gmra.mxu1 %v2143_v14  ;;  %2984 = vmatprep.subr.mxu1 %v9057_v15  ;;  %v2409_v14 = vld [vmem:[%s8957_s2 + $0x2f0] sm:$0xff] }
 0x215   : > { %9134 = vst [vmem:[#allocation70_spill] sm:$0xff] %v7285_v59  ;;  %2818 = vmatprep.mubr.f32.mxu1 %v8994_v54  ;;  %2985 = vmatpush1.msra.mxu1 %v2379_v5  ;;  %v8995_v54 = vmax.f32 %v7283_v18, 0.0 }
 0x216   : > { %v7297_v61 = vpop.f32.mrf.mxu0  ;;  %v2592_v59 = vpop.f32.mrf.mxu1  ;;  %2986 = vmatprep.subr.mxu1 %v9057_v15 }
 0x217   : > { %9135 = vst [vmem:[#allocation71_spill] sm:$0xff] %v7297_v61  ;;  %2987 = vmatpush2.msra.mxu1 %v2410_v55  ;;  %v2145_v59 = vmax.f32 %v1271_v56, 0.0  ;;  %v8996_v61 = vmax.f32 %v7305_v37, 0.0  ;;  %v2146_v56 = vmax.f32 %v1276_v52, 0.0  ;;  %v2404_v52 = vld [vmem:[%s8957_s2 + $0x2c8] sm:$0xff] }
 0x218   : > { %v7308_v40 = vpop.f32.mrf.mxu0  ;;  %v7310_v5 = vpop.f32.mrf.mxu1  ;;  %2819 = vmatmul.mubr.f32.gmra.mxu1 %v2144_v44  ;;  %2988 = vmatprep.subr.mxu1 %v9057_v15  ;;  %v2407_v44 = vld [vmem:[%s8957_s2 + $0x2e0] sm:$0xff] }
 0x219   : > { %9136 = vst [vmem:[#allocation72_spill] sm:$0xff] %v7308_v40  ;;  %9137 = vst [vmem:[#allocation73_spill] sm:$0xff] %v7310_v5  ;;  %2823 = vmatprep.mubr.f32.mxu1 %v8995_v54  ;;  %2989 = vmatpush2.msra.mxu1 %v2409_v14  ;;  %v1561_v5 = vadd.f32 %v6829_v51, %v6903_v32 }
 0x21a   : > { %v7320_v55 = vpop.f32.mrf.mxu0  ;;  %v2597_v40 = vpop.f32.mrf.mxu1  ;;  %2990 = vmatprep.subr.mxu1 %v9057_v15 }
 0x21b   : > { %9138 = vst [vmem:[#allocation74_spill] sm:$0xff] %v7320_v55  ;;  %2991 = vmatpush2.msra.mxu1 %v2408_v9  ;;  %v2405_v9 = vld [vmem:[%s8957_s2 + $0x2d0] sm:$0xff]  ;;  %v2203_v55 = vmax.f32 %v1561_v5, 0.0 }
 0x21c   : > { %v7329_v14 = vpop.f32.mrf.mxu0  ;;  %v7331_v54 = vpop.f32.mrf.mxu1  ;;  %2824 = vmatmul.mubr.f32.gmra.mxu1 %v2145_v59  ;;  %2992 = vmatprep.subr.mxu1 %v9057_v15  ;;  %v1566_v59 = vadd.f32 %v6829_v51, %v6893_v45  ;;  %v2403_v45 = vld [vmem:[%s8957_s2 + $0x2c0] sm:$0xff] }
 0x21d   : > { %9139 = vst [vmem:[#allocation75_spill] sm:$0xff] %v7329_v14  ;;  %9140 = vst [vmem:[#allocation76_spill] sm:$0xff] %v7331_v54  ;;  %2828 = vmatprep.mubr.f32.mxu1 %v8996_v61  ;;  %2993 = vmatpush2.msra.mxu1 %v2407_v44 }
 0x21e   : > { %v7339_v40 = vpop.f32.mrf.mxu0  ;;  %v2602_v32 = vpop.f32.mrf.mxu1  ;;  %2994 = vmatprep.subr.mxu1 %v9057_v15  ;;  %v2204_v5 = vmax.f32 %v1566_v59, 0.0  ;;  %v9146_v59 = vld [vmem:[#allocation30_spill] sm:$0xff] }
 0x21f   : > { %9141 = vst [vmem:[#allocation77_spill] sm:$0xff] %v7339_v40  ;;  %2995 = vmatpush2.msra.mxu1 %v2406_v2  ;;  %v1571_v2 = vadd.f32 %v6829_v51, %v6912_v13  ;;  %v2401_v13 = vld [vmem:[%s8957_s2 + $0x2b0] sm:$0xff] }
 0x220   : > { %v7347_v14 = vpop.f32.mrf.mxu0  ;;  %v7349_v54 = vpop.f32.mrf.mxu1  ;;  %2829 = vmatmul.mubr.f32.gmra.mxu1 %v2146_v56  ;;  %2996 = vmatprep.subr.mxu1 %v9057_v15 }
 0x221   : > { %9142 = vst [vmem:[#allocation78_spill] sm:$0xff] %v7347_v14  ;;  %9143 = vst [vmem:[#allocation79_spill] sm:$0xff] %v7349_v54  ;;  %2833 = vmatprep.mubr.f32.mxu1 %v2203_v55  ;;  %2997 = vmatpush2.msra.mxu1 %v2405_v9  ;;  %v2402_v55 = vld [vmem:[%s8957_s2 + $0x2b8] sm:$0xff] }
 0x222   : > { %v7355_v44 = vpop.f32.mrf.mxu0  ;;  %v2607_v32 = vpop.f32.mrf.mxu1  ;;  %2998 = vmatprep.subr.mxu1 %v9057_v15 }
 0x223   : > { %9144 = vst [vmem:[#allocation80_spill] sm:$0xff] %v7355_v44  ;;  %2999 = vmatpush2.msra.mxu1 %v2404_v52  ;;  %v1576_v52 = vadd.f32 %v6829_v51, %v9146_v59  ;;  %v7391_v59 = vadd.f32 %v6829_v51, %v6936_v41  ;;  %v2397_v41 = vld [vmem:[%s8957_s2 + $0x290] sm:$0xff] }
 0x224   : > { %v5534_v56 = vpop.f32.mrf.mxu0  ;;  %v7363_v61 = vpop.f32.mrf.mxu1  ;;  %2834 = vmatmul.mubr.f32.gmra.mxu1 %v6769_v53  ;;  %3000 = vmatprep.subr.mxu1 %v9057_v15  ;;  %v2205_v53 = vmax.f32 %v1571_v2, 0.0  ;;  %v2399_v2 = vld [vmem:[%s8957_s2 + $0x2a0] sm:$0xff] }
 0x225   : > { %9145 = vst [vmem:[#allocation81_spill] sm:$0xff] %v7363_v61  ;;  %2838 = vmatprep.mubr.f32.mxu1 %v2204_v5  ;;  %3001 = vmatpush2.msra.mxu1 %v2403_v45  ;;  %v2400_v45 = vld [vmem:[%s8957_s2 + $0x2a8] sm:$0xff] }
 0x226   : > { %v1980_v9 = vpop.f32.mrf.mxu0  ;;  %v2612_v32 = vpop.f32.mrf.mxu1  ;;  %3002 = vmatprep.subr.mxu1 %v9057_v15 }
 0x227   : > { %3003 = vmatpush2.msra.mxu1 %v2402_v55  ;;  %v2206_v55 = vmax.f32 %v1576_v52, 0.0 }
 0x228   : > { %v7376_v14 = vpop.f32.mrf.mxu0  ;;  %v7378_v44 = vpop.f32.mrf.mxu1  ;;  %2839 = vmatmul.mubr.f32.gmra.mxu1 %v6788_v8  ;;  %3004 = vmatprep.subr.mxu1 %v9057_v15 }
 0x229   : > { %9147 = vst [vmem:[#allocation30_spill] sm:$0xff] %v7378_v44  ;;  %2843 = vmatprep.mubr.f32.mxu1 %v2205_v53  ;;  %3005 = vmatpush2.msra.mxu1 %v2401_v13  ;;  %v2398_v53 = vld [vmem:[%s8957_s2 + $0x298] sm:$0xff]  ;;  %v1981_v13 = vadd.f32 %v6829_v51, %v1980_v9 }
 0x22a   : > { %v1990_v5 = vpop.f32.mrf.mxu0  ;;  %v2617_v32 = vpop.f32.mrf.mxu1  ;;  %3006 = vmatprep.subr.mxu1 %v9057_v15 }
 0x22b   : > { %3007 = vmatpush2.msra.mxu1 %v2400_v45  ;;  %v9149_v45 = vld [vmem:[#allocation35_spill] sm:$0xff] }
 0x22c   : > { %v5540_v8 = vpop.f32.mrf.mxu0  ;;  %v7393_v40 = vpop.f32.mrf.mxu1  ;;  %2844 = vmatmul.mubr.f32.gmra.mxu1 %v6810_v42  ;;  %3008 = vmatprep.subr.mxu1 %v9057_v15  ;;  %v7407_v42 = vadd.f32 %v6829_v51, %v9149_v45 }
 0x22d   : > { %9148 = vst [vmem:[#allocation82_spill] sm:$0xff] %v7393_v40  ;;  %2848 = vmatprep.mubr.f32.mxu1 %v2206_v55  ;;  %3009 = vmatpush2.msra.mxu1 %v2399_v2  ;;  %v9002_v40 = vmax.f32 %v7391_v59, 0.0  ;;  %v2006_v44 = vadd.f32 %v6829_v51, %v5540_v8  ;;  %v1986_v8 = vadd.f32 %v6829_v51, %v5534_v56 }
 0x22e   : > { %v2000_v52 = vpop.f32.mrf.mxu0  ;;  %v2622_v32 = vpop.f32.mrf.mxu1  ;;  %3010 = vmatprep.subr.mxu1 %v9057_v15 }
 0x22f   : > { %v2001_v2 = vadd.f32 %v6829_v51, %v2000_v52  ;;  %3011 = vmatpush2.msra.mxu1 %v2398_v53  ;;  %v2396_v32 = vld [vmem:[%s8957_s2 + $0x288] sm:$0xff]  ;;  %v2287_v52 = vmax.f32 %v1981_v13, 0.0  ;;  %v2292_v54 = vmax.f32 %v2006_v44, 0.0 }
 0x230   : > { %v5543_v9 = vpop.f32.mrf.mxu0  ;;  %v7412_v55 = vpop.f32.mrf.mxu1  ;;  %2849 = vmatmul.mubr.f32.gmra.mxu1 %v6824_v17  ;;  %3012 = vmatprep.subr.mxu1 %v9057_v15  ;;  %v2395_v17 = vld [vmem:[%s8957_s2 + $0x280] sm:$0xff] }
 0x231   : > { %9150 = vst [vmem:[#allocation35_spill] sm:$0xff] %v7412_v55  ;;  %v2291_v45 = vmax.f32 %v2001_v2, 0.0  ;;  %2853 = vmatprep.mubr.f32.mxu1 %v9002_v40  ;;  %3013 = vmatpush2.msra.mxu1 %v2397_v41  ;;  %v9001_v55 = vmax.f32 %v7407_v42, 0.0  ;;  %v7429_v2 = vadd.f32 %v6829_v51, %v6944_v23  ;;  %v2288_v23 = vmax.f32 %v1986_v8, 0.0 }
 0x232   : > { %v2010_v53 = vpop.f32.mrf.mxu0  ;;  %v2627_v61 = vpop.f32.mrf.mxu1  ;;  %3014 = vmatprep.subr.mxu1 %v9057_v15 }
 0x233   : > { %v2011_v41 = vadd.f32 %v6829_v51, %v2010_v53  ;;  %3015 = vmatpush2.msra.mxu1 %v2396_v32  ;;  %v7435_v61 = vld [vmem:[%s8957_s2 + $0x478] sm:$0xff]  ;;  %3383 = vmatprep.mubr.f32.mxu0 %v2291_v45  ;;  %v7446_v51 = vld [vmem:[%s8961_s6] ss:$0 sm:$0xff]  ;;  %v9152_v53 = vld [vmem:[#allocation36_spill] sm:$0xff] }
 0x234   : > { %v5546_v56 = vpop.f32.mrf.mxu0  ;;  %v7437_v13 = vpop.f32.mrf.mxu1  ;;  %2854 = vmatmul.mubr.f32.gmra.mxu1 %v6846_v29  ;;  %3016 = vmatprep.subr.mxu1 %v9057_v15  ;;  %v1991_v44 = vadd.f32 %v7446_v51, %v1990_v5  ;;  %v7452_v15 = vadd.f32 %v7446_v51, %v9152_v53  ;;  %v1996_v5 = vadd.f32 %v7446_v51, %v7376_v14  ;;  %v9155_v14 = vld [vmem:[#allocation25_spill] sm:$0xff] }
 0x235   : > { %9151 = vst [vmem:[#allocation83_spill] sm:$0xff] %v7437_v13  ;;  %2858 = vmatprep.mubr.f32.mxu1 %v9001_v55  ;;  %3017 = vmatpush2.msra.mxu1 %v2395_v17  ;;  %v9005_v55 = vmax.f32 %v7429_v2, 0.0  ;;  %v2016_v17 = vadd.f32 %v7446_v51, %v5543_v9  ;;  %v2293_v8 = vmax.f32 %v2011_v41, 0.0 }
 0x236   : > { %v2020_v32 = vpop.f32.mrf.mxu0  ;;  %v2632_v45 = vpop.f32.mrf.mxu1  ;;  %5574 = vmatprep.subr.mxu1 %v7435_v61  ;;  %3384 = vmatmul.mubr.f32.gmra.mxu0 %v2287_v52  ;;  %v2289_v52 = vmax.f32 %v1991_v44, 0.0  ;;  %v9007_v9 = vmax.f32 %v7452_v15, 0.0  ;;  %v7477_v44 = vadd.f32 %v7446_v51, %v9155_v14 }
 0x237   : > { %3388 = vmatprep.mubr.f32.mxu0 %v2292_v54  ;;  %v7468_v54 = vadd.f32 %v7446_v51, %v6967_v30  ;;  %v2294_v41 = vmax.f32 %v2016_v17, 0.0  ;;  %v7484_v17 = vadd.f32 %v7446_v51, %v6961_v35 }
 0x238   : > { %v7456_v40 = vpop.f32.mrf.mxu0  ;;  %v7458_v29 = vpop.f32.mrf.mxu1  ;;  %2859 = vmatmul.mubr.f32.gmra.mxu1 %v6866_v58  ;;  %9156 = vst [vmem:[#allocation25_spill] sm:$0xff] %v7477_v44 }
 0x239   : > { %9153 = vst [vmem:[#allocation36_spill] sm:$0xff] %v7458_v29  ;;  %2863 = vmatprep.mubr.f32.mxu1 %v9005_v55 }
 0x23a   : > { %v2030_v45 = vpop.f32.mrf.mxu0  ;;  %v2637_v53 = vpop.f32.mrf.mxu1  ;;  %3389 = vmatmul.mubr.f32.gmra.mxu0 %v2288_v23  ;;  %v2290_v23 = vmax.f32 %v1996_v5, 0.0  ;;  %v9010_v5 = vmax.f32 %v7477_v44, 0.0 }
 0x23b   : > { %3393 = vmatprep.mubr.f32.mxu0 %v2293_v8  ;;  %v7480_v53 = vadd.f32 %v7446_v51, %v2020_v32  ;;  %v9009_v8 = vmax.f32 %v7468_v54, 0.0 }
 0x23c   : > { %v5552_v29 = vpop.f32.mrf.mxu0  ;;  %v7470_v58 = vpop.f32.mrf.mxu1  ;;  %2864 = vmatmul.mubr.f32.gmra.mxu1 %v6887_v7 }
 0x23d   : > { %9154 = vst [vmem:[#allocation84_spill] sm:$0xff] %v7470_v58  ;;  %2868 = vmatprep.mubr.f32.mxu1 %v9007_v9  ;;  %9157 = vst [vmem:[#allocation85_spill] sm:$0xff] %v7480_v53  ;;  %v2046_v7 = vadd.f32 %v7446_v51, %v5552_v29  ;;  %v7500_v29 = vadd.f32 %v7446_v51, %v5546_v56 }
 0x23e   : > { %v2040_v30 = vpop.f32.mrf.mxu0  ;;  %v2642_v55 = vpop.f32.mrf.mxu1  ;;  %3394 = vmatmul.mubr.f32.gmra.mxu0 %v2289_v52  ;;  %v9013_v52 = vmax.f32 %v7480_v53, 0.0 }
 0x23f   : > { %v2041_v9 = vadd.f32 %v7446_v51, %v2040_v30  ;;  %3398 = vmatprep.mubr.f32.mxu0 %v2294_v41  ;;  %v9159_v55 = vld [vmem:[#allocation23_spill] sm:$0xff]  ;;  %9161 = vst [vmem:[#allocation87_spill] sm:$0xff] %v7500_v29 }
 0x240   : > { %v5555_v14 = vpop.f32.mrf.mxu0  ;;  %v7489_v58 = vpop.f32.mrf.mxu1  ;;  %2869 = vmatmul.mubr.f32.gmra.mxu1 %v6901_v26  ;;  %v7496_v35 = vadd.f32 %v7446_v51, %v9159_v55  ;;  %v9011_v26 = vmax.f32 %v7484_v17, 0.0 }
 0x241   : > { %9158 = vst [vmem:[#allocation86_spill] sm:$0xff] %v7489_v58  ;;  %v2299_v32 = vmax.f32 %v2041_v9, 0.0  ;;  %2873 = vmatprep.mubr.f32.mxu1 %v9009_v8  ;;  %v9162_v9 = vld [vmem:[#allocation42_spill] sm:$0xff]  ;;  %v2300_v8 = vmax.f32 %v2046_v7, 0.0  ;;  %v7520_v7 = vadd.f32 %v7446_v51, %v2030_v45  ;;  %v2056_v56 = vadd.f32 %v7446_v51, %v5555_v14 }
 0x242   : > { %9160 = vst [vmem:[#allocation23_spill] sm:$0xff] %v7496_v35  ;;  %v2050_v41 = vpop.f32.mrf.mxu0  ;;  %v2647_v30 = vpop.f32.mrf.mxu1  ;;  %3399 = vmatmul.mubr.f32.gmra.mxu0 %v2290_v23  ;;  %v7506_v58 = vadd.f32 %v7446_v51, %v9162_v9  ;;  %v9163_v23 = vld [vmem:[#allocation28_spill] sm:$0xff]  ;;  %v9166_v9 = vmax.f32 %v7496_v35, 0.0  ;;  %v1841_v45 = vadd.f32 %v7446_v51, %v7111_v12  ;;  %v7543_v14 = vadd.f32 %v7446_v51, %v7456_v40 }
 0x243   : > { %v2051_v55 = vadd.f32 %v7446_v51, %v2050_v41  ;;  %3403 = vmatprep.mubr.f32.mxu0 %v2299_v32  ;;  %v7516_v30 = vadd.f32 %v7446_v51, %v9163_v23  ;;  %9164 = vst [vmem:[#allocation42_spill] sm:$0xff] %v7520_v7  ;;  %v9165_v32 = vld [vmem:[#allocation41_spill] sm:$0xff]  ;;  %v2302_v35 = vmax.f32 %v2056_v56, 0.0 }
 0x244   : > { %v5558_v13 = vpop.f32.mrf.mxu0  ;;  %2874 = vmatmul.mubr.f32.gmra.mxu1 %v9010_v5  ;;  %v7526_v5 = vadd.f32 %v7446_v51, %v9165_v32 }
 0x245   : > { %2878 = vmatprep.mubr.f32.mxu1 %v9011_v26  ;;  %v9016_v26 = vmax.f32 %v7506_v58, 0.0  ;;  %v2301_v44 = vmax.f32 %v2051_v55, 0.0  ;;  %v9018_v53 = vmax.f32 %v7516_v30, 0.0 }
 0x246   : > { %v2060_v41 = vpop.f32.mrf.mxu0  ;;  %3404 = vmatmul.mubr.f32.gmra.mxu0 %v9013_v52  ;;  %v9167_v52 = vld [vmem:[#allocation26_spill] sm:$0xff]  ;;  %v9019_v12 = vmax.f32 %v7526_v5, 0.0 }
 0x247   : > { %3408 = vmatprep.mubr.f32.mxu0 %v2300_v8  ;;  %v7538_v32 = vadd.f32 %v7446_v51, %v9167_v52  ;;  %v2259_v52 = vmax.f32 %v1841_v45, 0.0  ;;  %v7556_v11 = vadd.f32 %v7446_v51, %v2060_v41  ;;  %v7567_v41 = vadd.f32 %v7446_v51, %v5558_v13 }
 0x248   : > { %v5561_v23 = vpop.f32.mrf.mxu0  ;;  %2879 = vmatmul.mubr.f32.gmra.mxu1 %v9166_v9  ;;  %v9168_v9 = vmax.f32 %v7500_v29, 0.0  ;;  %v9169_v29 = vmax.f32 %v7520_v7, 0.0  ;;  %v9171_v7 = vmax.f32 %v7543_v14, 0.0 }
 0x249   : > { %2883 = vmatprep.mubr.f32.mxu1 %v9016_v26  ;;  %v9021_v40 = vmax.f32 %v7538_v32, 0.0  ;;  %9170 = vst [vmem:[#allocation28_spill] sm:$0xff] %v7567_v41  ;;  %v9025_v8 = vmax.f32 %v7556_v11, 0.0  ;;  %v9024_v13 = vmax.f32 %v7567_v41, 0.0 }
 0x24a   : > { %v2070_v55 = vpop.f32.mrf.mxu0  ;;  %3409 = vmatmul.mubr.f32.gmra.mxu0 %v9168_v9 }
 0x24b   : > { %3413 = vmatprep.mubr.f32.mxu0 %v2301_v44  ;;  %v1846_v44 = vadd.f32 %v7446_v51, %v7105_v39 }
 0x24c   : > { %v5564_v26 = vpop.f32.mrf.mxu0  ;;  %2884 = vmatmul.mubr.f32.gmra.mxu1 %v9018_v53 }
 0x24d   : > { %2888 = vmatprep.mubr.f32.mxu1 %v9019_v12  ;;  %v2086_v56 = vadd.f32 %v7446_v51, %v5564_v26  ;;  %v2260_v39 = vmax.f32 %v1846_v44, 0.0  ;;  %v1851_v26 = vadd.f32 %v7446_v51, %v7119_v21  ;;  %v1856_v21 = vadd.f32 %v7446_v51, %v7115_v22 }
 0x24e   : > { %v2080_v9 = vpop.f32.mrf.mxu0  ;;  %3414 = vmatmul.mubr.f32.gmra.mxu0 %v9169_v29 }
 0x24f   : > { %v2081_v45 = vadd.f32 %v7446_v51, %v2080_v9  ;;  %3418 = vmatprep.mubr.f32.mxu0 %v2302_v35  ;;  %v2308_v35 = vmax.f32 %v2086_v56, 0.0 }
 0x250   : > { %v5567_v53 = vpop.f32.mrf.mxu0  ;;  %2889 = vmatmul.mubr.f32.gmra.mxu1 %v9021_v40 }
 0x251   : > { %v2307_v12 = vmax.f32 %v2081_v45, 0.0  ;;  %2893 = vmatprep.mubr.f32.mxu1 %v2259_v52  ;;  %v7580_v52 = vadd.f32 %v7446_v51, %v2070_v55  ;;  %v7594_v55 = vadd.f32 %v7446_v51, %v7165_v47 }
 0x252   : > { %v2090_v29 = vpop.f32.mrf.mxu0  ;;  %3419 = vmatmul.mubr.f32.gmra.mxu0 %v9171_v7  ;;  %v2261_v7 = vmax.f32 %v1851_v26, 0.0 }
 0x253   : > { %v2091_v9 = vadd.f32 %v7446_v51, %v2090_v29  ;;  %3423 = vmatprep.mubr.f32.mxu0 %v2307_v12  ;;  %9173 = vst [vmem:[#allocation26_spill] sm:$0xff] %v7580_v52  ;;  %v2096_v12 = vadd.f32 %v7446_v51, %v5567_v53  ;;  %v7597_v29 = vadd.f32 %v7446_v51, %v5561_v23  ;;  %v2262_v53 = vmax.f32 %v1856_v21, 0.0 }
 0x254   : > { %v7575_v40 = vpop.f32.mrf.mxu0  ;;  %2894 = vmatmul.mubr.f32.gmra.mxu1 %v7059_v24  ;;  %v9029_v47 = vmax.f32 %v7594_v55, 0.0 }
 0x255   : > { %9172 = vst [vmem:[#allocation41_spill] sm:$0xff] %v7575_v40  ;;  %2898 = vmatprep.mubr.f32.mxu1 %v2260_v39  ;;  %v2309_v44 = vmax.f32 %v2091_v9, 0.0  ;;  %9175 = vst [vmem:[#allocation89_spill] sm:$0xff] %v7597_v29  ;;  %v9023_v39 = vmax.f32 %v7580_v52, 0.0  ;;  %v2310_v26 = vmax.f32 %v2096_v12, 0.0  ;;  %v9022_v23 = vmax.f32 %v7597_v29, 0.0 }
 0x256   : > { %v7582_v45 = vpop.f32.mrf.mxu0  ;;  %3424 = vmatmul.mubr.f32.gmra.mxu0 %v9025_v8  ;;  %v7655_v8 = vadd.f32 %v7446_v51, %v7091_v33  ;;  %v7672_v33 = vadd.f32 %v7446_v51, %v7084_v1  ;;  %v7686_v1 = vadd.f32 %v7446_v51, %v7101_v20 }
 0x257   : > { %3428 = vmatprep.mubr.f32.mxu0 %v2308_v35 }
 0x258   : > { %v7589_v56 = vpop.f32.mrf.mxu0  ;;  %2899 = vmatmul.mubr.f32.gmra.mxu1 %v7063_v31  ;;  %v9035_v20 = vmax.f32 %v7686_v1, 0.0 }
 0x259   : > { %9174 = vst [vmem:[#allocation88_spill] sm:$0xff] %v7589_v56  ;;  %2903 = vmatprep.mubr.f32.mxu1 %v2261_v7  ;;  %v7613_v7 = vadd.f32 %v7446_v51, %v7158_v6 }
 0x25a   : > { %v7600_v22 = vpop.f32.mrf.mxu0  ;;  %3429 = vmatmul.mubr.f32.gmra.mxu0 %v9024_v13 }
 0x25b   : > { %9176 = vst [vmem:[#allocation90_spill] sm:$0xff] %v7600_v22  ;;  %3433 = vmatprep.mubr.f32.mxu0 %v2309_v44  ;;  %v9027_v44 = vmax.f32 %v7613_v7, 0.0 }
 0x25c   : > { %2904 = vmatmul.mubr.f32.gmra.mxu1 %v7069_v0  ;;  %v7605_v35 = vpop.f32.mrf.mxu0 }
 0x25d   : > { %9177 = vst [vmem:[#allocation91_spill] sm:$0xff] %v7605_v35  ;;  %2908 = vmatprep.mubr.f32.mxu1 %v2262_v53  ;;  %v7625_v53 = vadd.f32 %v7446_v51, %v7186_v50  ;;  %v7642_v50 = vadd.f32 %v7446_v51, %v7251_v62  ;;  %v9212_v35 = vld [vmem:[#allocation14_spill] sm:$0xff] }
 0x25e   : > { %v3267_v9 = vpop.f32.mrf.mxu0  ;;  %3434 = vmatmul.mubr.f32.gmra.mxu0 %v9023_v39 }
 0x25f   : > { %3438 = vmatprep.mubr.f32.mxu0 %v2310_v26  ;;  %v7634_v9 = vadd.f32 %v7446_v51, %v7176_v16  ;;  %v9030_v13 = vmax.f32 %v7642_v50, 0.0 }
 0x260   : > { %2909 = vmatmul.mubr.f32.gmra.mxu1 %v7073_v43  ;;  %v7616_v21 = vpop.f32.mrf.mxu0 }
 0x261   : > { %9178 = vst [vmem:[#allocation92_spill] sm:$0xff] %v7616_v21  ;;  %2913 = vmatprep.mubr.f32.mxu1 %v9029_v47 }
 0x262   : > { %v3272_v12 = vpop.f32.mrf.mxu0  ;;  %3439 = vmatmul.mubr.f32.gmra.mxu0 %v9022_v23 }
 0x263   : > { %v9026_v12 = vmax.f32 %v7625_v53, 0.0 }
 0x264   : > { %2914 = vmatmul.mubr.f32.gmra.mxu1 %v7081_v10  ;;  %v7628_v6 = vpop.f32.mrf.mxu0 }
 0x265   : > { %9179 = vst [vmem:[#allocation93_spill] sm:$0xff] %v7628_v6  ;;  %2918 = vmatprep.mubr.f32.mxu1 %v9027_v44  ;;  %v7666_v44 = vadd.f32 %v7446_v51, %v7274_v3 }
 0x266   : > { %v3277_v26 = vpop.f32.mrf.mxu0 }
 0x267   : > { %v9028_v26 = vmax.f32 %v7634_v9, 0.0  ;;  %v9034_v3 = vmax.f32 %v7666_v44, 0.0 }
 0x268   : > { %2919 = vmatmul.mubr.f32.gmra.mxu1 %v7088_v4  ;;  %v7638_v23 = vpop.f32.mrf.mxu0 }
 0x269   : > { %9180 = vst [vmem:[#allocation94_spill] sm:$0xff] %v7638_v23  ;;  %2923 = vmatprep.mubr.f32.mxu1 %v9026_v12  ;;  %v7659_v12 = vadd.f32 %v7446_v51, %v7239_v60 }
 0x26a   : > { %v3282_v39 = vpop.f32.mrf.mxu0 }
 0x26b   : > { %v9032_v60 = vmax.f32 %v7659_v12, 0.0 }
 0x26c   : > { %2924 = vmatmul.mubr.f32.gmra.mxu1 %v7099_v36  ;;  %v7648_v16 = vpop.f32.mrf.mxu0 }
 0x26d   : > { %9181 = vst [vmem:[#allocation95_spill] sm:$0xff] %v7648_v16  ;;  %2928 = vmatprep.mubr.f32.mxu1 %v9028_v26 }
 0x26e   : > { %v3287_v62 = vpop.f32.mrf.mxu0 }
 0x26f   : > { %v9031_v62 = vmax.f32 %v7655_v8, 0.0 }
 0x270   : > { %2929 = vmatmul.mubr.f32.gmra.mxu1 %v7109_v46  ;;  %v7662_v39 = vpop.f32.mrf.mxu0 }
 0x271   : > { %9182 = vst [vmem:[#allocation96_spill] sm:$0xff] %v7662_v39  ;;  %2933 = vmatprep.mubr.f32.mxu1 %v9030_v13  ;;  %v9033_v13 = vmax.f32 %v7672_v33, 0.0  ;;  %v9208_v39 = vld [vmem:[#allocation15_spill] sm:$0xff] }
 0x272   : > { %v3292_v26 = vpop.f32.mrf.mxu0 }
 0x273   : > { %v7690_v26 = vadd.f32 %v7446_v51, %v7262_v48 }
 0x274   : > { %2934 = vmatmul.mubr.f32.gmra.mxu1 %v9031_v62  ;;  %v7678_v47 = vpop.f32.mrf.mxu0 }
 0x275   : > { %9183 = vst [vmem:[#allocation97_spill] sm:$0xff] %v7678_v47  ;;  %2938 = vmatprep.mubr.f32.mxu1 %v9032_v60  ;;  %v7700_v60 = vadd.f32 %v7446_v51, %v7094_v63  ;;  %v9188_v47 = vmax.f32 %v7155_v19, 0.0  ;;  %v2456_v19 = vld [vmem:[%s8957_s2 + $0x468] sm:$0xff] }
 0x276   : > { %v3297_v23 = vpop.f32.mrf.mxu0 }
 0x277   : > { %v9036_v23 = vmax.f32 %v7690_v26, 0.0 }
 0x278   : > { %2939 = vmatmul.mubr.f32.gmra.mxu1 %v9033_v13  ;;  %v7694_v62 = vpop.f32.mrf.mxu0  ;;  %v9186_v13 = vld [vmem:[#allocation3_spill] sm:$0xff] }
 0x279   : > { %9184 = vst [vmem:[#allocation98_spill] sm:$0xff] %v7694_v62  ;;  %2943 = vmatprep.mubr.f32.mxu1 %v9034_v3  ;;  %v1301_v3 = vadd.f32 %v7446_v51, %v9186_v13  ;;  %v9037_v62 = vmax.f32 %v7700_v60, 0.0  ;;  %v2457_v13 = vld [vmem:[%s8957_s2 + $0x470] sm:$0xff] }
 0x27a   : > { %v3302_v6 = vpop.f32.mrf.mxu0 }
 0x27b   : > { %v2151_v21 = vmax.f32 %v1301_v3, 0.0 }
 0x27c   : > { %2944 = vmatmul.mubr.f32.gmra.mxu1 %v9035_v20  ;;  %v7706_v48 = vpop.f32.mrf.mxu0  ;;  %v9189_v20 = vld [vmem:[#allocation2_spill] sm:$0xff] }
 0x27d   : > { %9185 = vst [vmem:[#allocation99_spill] sm:$0xff] %v7706_v48  ;;  %2948 = vmatprep.mubr.f32.mxu1 %v9036_v23  ;;  %v1306_v48 = vadd.f32 %v7446_v51, %v9189_v20 }
 0x27e   : > { %v3307_v63 = vpop.f32.mrf.mxu0 }
 0x280   : > { %2949 = vmatmul.mubr.f32.gmra.mxu1 %v9037_v62  ;;  %v7715_v6 = vpop.f32.mrf.mxu0  ;;  %v9191_v62 = vmax.f32 %v7173_v27, 0.0 }
 0x281   : > { %9187 = vst [vmem:[#allocation3_spill] sm:$0xff] %v7715_v6  ;;  %3018 = vmatprep.mubr.f32.mxu1 %v9188_v47  ;;  %v2152_v47 = vmax.f32 %v1306_v48, 0.0  ;;  %v2454_v48 = vld [vmem:[%s8957_s2 + $0x458] sm:$0xff] }
 0x282   : > { %v3312_v16 = vpop.f32.mrf.mxu0 }
 0x283   : > { %v9192_v16 = vld [vmem:[#allocation5_spill] sm:$0xff] }
 0x284   : > { %v7724_v23 = vpop.f32.mrf.mxu1  ;;  %3019 = vmatmul.mubr.f32.vlgmr.msra.gmra.mxu1 %v2151_v21  ;;  %v7726_v63 = vpop.f32.mrf.mxu0  ;;  %v1311_v3 = vadd.f32 %v7446_v51, %v9192_v16  ;;  %v2455_v21 = vld [vmem:[%s8957_s2 + $0x460] sm:$0xff] }
 0x285   : > { %9190 = vst [vmem:[#allocation2_spill] sm:$0xff] %v7726_v63  ;;  %5575 = vmatpush3.msra.mxu1 %v7435_v61  ;;  %3023 = vmatprep.mubr.f32.mxu1 %v9191_v62  ;;  %v9194_v62 = vmax.f32 %v7195_v34, 0.0 }
 0x286   : > { %v2652_v20 = vpop.f32.mrf.mxu1  ;;  %v3317_v6 = vpop.f32.mrf.mxu0  ;;  %5576 = vmatprep.subr.mxu1 %v2457_v13  ;;  %v2153_v16 = vmax.f32 %v1311_v3, 0.0 }
 0x287   : > { %5577 = vmatpush3.msra.mxu1 %v2457_v13  ;;  %v9195_v6 = vld [vmem:[#allocation4_spill] sm:$0xff] }
 0x288   : > { %v7739_v61 = vpop.f32.mrf.mxu1  ;;  %3024 = vmatmul.mubr.f32.gmra.mxu1 %v2152_v47  ;;  %v7741_v27 = vpop.f32.mrf.mxu0  ;;  %5578 = vmatprep.subr.mxu1 %v2456_v19  ;;  %v1316_v13 = vadd.f32 %v7446_v51, %v9195_v6  ;;  %v2453_v47 = vld [vmem:[%s8957_s2 + $0x450] sm:$0xff] }
 0x289   : > { %9193 = vst [vmem:[#allocation5_spill] sm:$0xff] %v7741_v27  ;;  %3028 = vmatprep.mubr.f32.mxu1 %v9194_v62  ;;  %5579 = vmatpush3.msra.mxu1 %v2456_v19  ;;  %v9197_v19 = vmax.f32 %v7215_v38, 0.0 }
 0x28a   : > { %v2657_v20 = vpop.f32.mrf.mxu1  ;;  %v3322_v63 = vpop.f32.mrf.mxu0  ;;  %5580 = vmatprep.subr.mxu1 %v2455_v21  ;;  %v2154_v3 = vmax.f32 %v1316_v13, 0.0  ;;  %v2450_v13 = vld [vmem:[%s8957_s2 + $0x438] sm:$0xff] }
 0x28b   : > { %5581 = vmatpush3.msra.mxu1 %v2455_v21  ;;  %v2452_v63 = vld [vmem:[%s8957_s2 + $0x448] sm:$0xff] }
 0x28c   : > { %v7753_v27 = vpop.f32.mrf.mxu1  ;;  %3029 = vmatmul.mubr.f32.gmra.mxu1 %v2153_v16  ;;  %v7755_v34 = vpop.f32.mrf.mxu0  ;;  %5582 = vmatprep.subr.mxu1 %v2454_v48  ;;  %v9198_v21 = vld [vmem:[#allocation7_spill] sm:$0xff]  ;;  %v2451_v16 = vld [vmem:[%s8957_s2 + $0x440] sm:$0xff] }
 0x28d   : > { %9196 = vst [vmem:[#allocation4_spill] sm:$0xff] %v7755_v34  ;;  %3033 = vmatprep.mubr.f32.mxu1 %v9197_v19  ;;  %5583 = vmatpush3.msra.mxu1 %v2454_v48  ;;  %v1341_v62 = vadd.f32 %v7446_v51, %v9198_v21  ;;  %v9200_v48 = vmax.f32 %v7237_v28, 0.0  ;;  %v9201_v19 = vld [vmem:[#allocation6_spill] sm:$0xff] }
 0x28e   : > { %v2662_v6 = vpop.f32.mrf.mxu1  ;;  %v3327_v20 = vpop.f32.mrf.mxu0  ;;  %5584 = vmatprep.subr.mxu1 %v2453_v47 }
 0x28f   : > { %5585 = vmatpush3.msra.mxu1 %v2453_v47  ;;  %v1346_v47 = vadd.f32 %v7446_v51, %v9201_v19  ;;  %v2159_v21 = vmax.f32 %v1341_v62, 0.0  ;;  %v2448_v62 = vld [vmem:[%s8957_s2 + $0x428] sm:$0xff] }
 0x290   : > { %v7767_v34 = vpop.f32.mrf.mxu1  ;;  %3034 = vmatmul.mubr.f32.gmra.mxu1 %v2154_v3  ;;  %v7769_v38 = vpop.f32.mrf.mxu0  ;;  %5586 = vmatprep.subr.mxu1 %v2452_v63  ;;  %v2449_v3 = vld [vmem:[%s8957_s2 + $0x430] sm:$0xff] }
 0x291   : > { %9199 = vst [vmem:[#allocation7_spill] sm:$0xff] %v7769_v38  ;;  %3038 = vmatprep.mubr.f32.mxu1 %v9200_v48  ;;  %5587 = vmatpush3.msra.mxu1 %v2452_v63  ;;  %v9203_v63 = vmax.f32 %v7259_v25, 0.0  ;;  %v2160_v48 = vmax.f32 %v1346_v47, 0.0  ;;  %v2446_v47 = vld [vmem:[%s8957_s2 + $0x418] sm:$0xff] }
 0x292   : > { %v2667_v6 = vpop.f32.mrf.mxu1  ;;  %v3332_v20 = vpop.f32.mrf.mxu0  ;;  %5588 = vmatprep.subr.mxu1 %v2451_v16 }
 0x293   : > { %5589 = vmatpush3.msra.mxu1 %v2451_v16  ;;  %v9204_v16 = vld [vmem:[#allocation9_spill] sm:$0xff] }
 0x294   : > { %v7781_v38 = vpop.f32.mrf.mxu1  ;;  %3039 = vmatmul.mubr.f32.gmra.mxu1 %v2159_v21  ;;  %v7783_v28 = vpop.f32.mrf.mxu0  ;;  %5590 = vmatprep.subr.mxu1 %v2450_v13  ;;  %v1351_v19 = vadd.f32 %v7446_v51, %v9204_v16  ;;  %v2447_v21 = vld [vmem:[%s8957_s2 + $0x420] sm:$0xff] }
 0x295   : > { %9202 = vst [vmem:[#allocation6_spill] sm:$0xff] %v7783_v28  ;;  %3043 = vmatprep.mubr.f32.mxu1 %v9203_v63  ;;  %5591 = vmatpush3.msra.mxu1 %v2450_v13  ;;  %v9206_v13 = vmax.f32 %v7283_v18, 0.0  ;;  %v9207_v63 = vld [vmem:[#allocation8_spill] sm:$0xff] }
 0x296   : > { %v2672_v6 = vpop.f32.mrf.mxu1  ;;  %v3337_v20 = vpop.f32.mrf.mxu0  ;;  %5592 = vmatprep.subr.mxu1 %v2449_v3  ;;  %v2161_v16 = vmax.f32 %v1351_v19, 0.0  ;;  %v2445_v18 = vld [vmem:[%s8957_s2 + $0x410] sm:$0xff]  ;;  %v2444_v19 = vld [vmem:[%s8957_s2 + $0x408] sm:$0xff] }
 0x297   : > { %5593 = vmatpush3.msra.mxu1 %v2449_v3  ;;  %v1356_v3 = vadd.f32 %v7446_v51, %v9207_v63  ;;  %v9210_v63 = vmax.f32 %v7305_v37, 0.0  ;;  %v2443_v37 = vld [vmem:[%s8957_s2 + $0x400] sm:$0xff] }
 0x298   : > { %v7795_v28 = vpop.f32.mrf.mxu1  ;;  %3044 = vmatmul.mubr.f32.gmra.mxu1 %v2160_v48  ;;  %v7797_v25 = vpop.f32.mrf.mxu0  ;;  %5594 = vmatprep.subr.mxu1 %v2448_v62  ;;  %v1401_v48 = vadd.f32 %v7446_v51, %v9208_v39 }
 0x299   : > { %9205 = vst [vmem:[#allocation9_spill] sm:$0xff] %v7797_v25  ;;  %3048 = vmatprep.mubr.f32.mxu1 %v9206_v13  ;;  %5595 = vmatpush3.msra.mxu1 %v2448_v62  ;;  %v2162_v39 = vmax.f32 %v1356_v3, 0.0  ;;  %v9214_v3 = vld [vmem:[#allocation10_spill] sm:$0xff] }
 0x29a   : > { %v2677_v6 = vpop.f32.mrf.mxu1  ;;  %v3342_v20 = vpop.f32.mrf.mxu0  ;;  %5596 = vmatprep.subr.mxu1 %v2447_v21 }
 0x29b   : > { %5597 = vmatpush3.msra.mxu1 %v2447_v21  ;;  %v9211_v21 = vld [vmem:[#allocation11_spill] sm:$0xff] }
 0x29c   : > { %v7811_v62 = vpop.f32.mrf.mxu1  ;;  %3049 = vmatmul.mubr.f32.gmra.mxu1 %v2161_v16  ;;  %v7813_v13 = vpop.f32.mrf.mxu0  ;;  %5598 = vmatprep.subr.mxu1 %v2446_v47  ;;  %v1381_v6 = vadd.f32 %v7446_v51, %v9211_v21  ;;  %v1406_v16 = vadd.f32 %v7446_v51, %v9212_v35 }
 0x29d   : > { %9209 = vst [vmem:[#allocation8_spill] sm:$0xff] %v7813_v13  ;;  %3053 = vmatprep.mubr.f32.mxu1 %v9210_v63  ;;  %5599 = vmatpush3.msra.mxu1 %v2446_v47  ;;  %v2171_v13 = vmax.f32 %v1401_v48, 0.0 }
 0x29e   : > { %v2682_v20 = vpop.f32.mrf.mxu1  ;;  %v3347_v25 = vpop.f32.mrf.mxu0  ;;  %5600 = vmatprep.subr.mxu1 %v2445_v18  ;;  %v2167_v21 = vmax.f32 %v1381_v6, 0.0  ;;  %v2172_v48 = vmax.f32 %v1406_v16, 0.0 }
 0x29f   : > { %5601 = vmatpush3.msra.mxu1 %v2445_v18  ;;  %v1386_v25 = vadd.f32 %v7446_v51, %v9214_v3  ;;  %v9215_v18 = vld [vmem:[#allocation17_spill] sm:$0xff] }
 0x2a0   : > { %v7827_v47 = vpop.f32.mrf.mxu1  ;;  %3054 = vmatmul.mubr.f32.gmra.mxu1 %v2162_v39  ;;  %v7829_v63 = vpop.f32.mrf.mxu0  ;;  %5602 = vmatprep.subr.mxu1 %v2444_v19  ;;  %v1411_v29 = vadd.f32 %v7446_v51, %v9215_v18 }
 0x2a1   : > { %9213 = vst [vmem:[#allocation15_spill] sm:$0xff] %v7829_v63  ;;  %3058 = vmatprep.mubr.f32.mxu1 %v2171_v13  ;;  %5603 = vmatpush3.msra.mxu1 %v2444_v19  ;;  %v2168_v13 = vmax.f32 %v1386_v25, 0.0  ;;  %v9217_v19 = vld [vmem:[#allocation13_spill] sm:$0xff] }
 0x2a2   : > { %v2687_v20 = vpop.f32.mrf.mxu1  ;;  %v3352_v35 = vpop.f32.mrf.mxu0  ;;  %5604 = vmatprep.subr.mxu1 %v2443_v37  ;;  %v1391_v63 = vadd.f32 %v7446_v51, %v9217_v19  ;;  %v2173_v16 = vmax.f32 %v1411_v29, 0.0 }
 0x2a3   : > { %5605 = vmatpush3.msra.mxu1 %v2443_v37  ;;  %v9218_v20 = vld [vmem:[#allocation16_spill] sm:$0xff] }
 0x2a4   : > { %v7835_v56 = vpop.f32.mrf.mxu1  ;;  %3059 = vmatmul.mubr.f32.gmra.mxu1 %v2167_v21  ;;  %v7837_v39 = vpop.f32.mrf.mxu0  ;;  %v1416_v35 = vadd.f32 %v7446_v51, %v9218_v20  ;;  %v9220_v21 = vld [vmem:[#allocation12_spill] sm:$0xff] }
 0x2a5   : > { %9216 = vst [vmem:[#allocation11_spill] sm:$0xff] %v7837_v39  ;;  %3063 = vmatprep.mubr.f32.mxu1 %v2172_v48  ;;  %v1396_v18 = vadd.f32 %v7446_v51, %v9220_v21  ;;  %v2169_v48 = vmax.f32 %v1391_v63, 0.0 }
 0x2a6   : > { %v2692_v3 = vpop.f32.mrf.mxu1  ;;  %v3357_v6 = vpop.f32.mrf.mxu0  ;;  %v2174_v22 = vmax.f32 %v1416_v35, 0.0  ;;  %v9224_v35 = vmax.f32 %v7391_v59, 0.0 }
 0x2a7   : > { %v2170_v29 = vmax.f32 %v1396_v18, 0.0  ;;  %v9222_v6 = vld [vmem:[#allocation32_spill] sm:$0xff] }
 0x2a8   : > { %v7843_v52 = vpop.f32.mrf.mxu1  ;;  %3064 = vmatmul.mubr.f32.gmra.mxu1 %v2168_v13  ;;  %v7845_v37 = vpop.f32.mrf.mxu0  ;;  %v1581_v13 = vadd.f32 %v7446_v51, %v9222_v6 }
 0x2a9   : > { %9219 = vst [vmem:[#allocation14_spill] sm:$0xff] %v7845_v37  ;;  %3068 = vmatprep.mubr.f32.mxu1 %v2173_v16  ;;  %v7858_v16 = vld [vmem:[%s8961_s6 + $0x1] ss:$0 sm:$0xff] }
 0x2aa   : > { %v2697_v25 = vpop.f32.mrf.mxu1  ;;  %v3362_v39 = vpop.f32.mrf.mxu0  ;;  %v2207_v18 = vmax.f32 %v1581_v13, 0.0 }
 0x2ac   : > { %v7849_v19 = vpop.f32.mrf.mxu1  ;;  %3069 = vmatmul.mubr.f32.gmra.mxu1 %v2169_v48  ;;  %v7851_v3 = vpop.f32.mrf.mxu0 }
 0x2ad   : > { %9221 = vst [vmem:[#allocation10_spill] sm:$0xff] %v7851_v3  ;;  %3073 = vmatprep.mubr.f32.mxu1 %v2174_v22  ;;  %v9225_v22 = vld [vmem:[#allocation31_spill] sm:$0xff] }
 0x2ae   : > { %v2702_v20 = vpop.f32.mrf.mxu1  ;;  %v3367_v37 = vpop.f32.mrf.mxu0  ;;  %v1586_v21 = vadd.f32 %v7446_v51, %v9225_v22 }
 0x2af   : > { %v9226_v37 = vld [vmem:[#allocation44_spill] sm:$0xff] }
 0x2b0   : > { %v7860_v63 = vpop.f32.mrf.mxu1  ;;  %3074 = vmatmul.mubr.f32.gmra.mxu1 %v2170_v29  ;;  %v7862_v39 = vpop.f32.mrf.mxu0  ;;  %v2531_v6 = vadd.f32 %v7858_v16, %v9226_v37  ;;  %v9228_v29 = vmax.f32 %v7407_v42, 0.0  ;;  %v2208_v59 = vmax.f32 %v1586_v21, 0.0  ;;  %v9233_v42 = vld [vmem:[#allocation33_spill] sm:$0xff] }
 0x2b1   : > { %9223 = vst [vmem:[#allocation17_spill] sm:$0xff] %v7862_v39  ;;  %3078 = vmatprep.mubr.f32.mxu1 %v9224_v35  ;;  %v9229_v35 = vld [vmem:[#allocation34_spill] sm:$0xff]  ;;  %v1596_v21 = vadd.f32 %v7446_v51, %v9233_v42 }
 0x2b2   : > { %v2707_v48 = vpop.f32.mrf.mxu1  ;;  %v3372_v25 = vpop.f32.mrf.mxu0  ;;  %v1591_v39 = vadd.f32 %v7446_v51, %v9229_v35 }
 0x2b3   : > { %v9230_v48 = vld [vmem:[#allocation47_spill] sm:$0xff] }
 0x2b4   : > { %v2775_v20 = vpop.f32.mrf.mxu1  ;;  %3079 = vmatmul.mubr.f32.gmra.mxu1 %v2207_v18  ;;  %v7870_v3 = vpop.f32.mrf.mxu0  ;;  %v2536_v25 = vadd.f32 %v7858_v16, %v9230_v48 }
 0x2b5   : > { %9227 = vst [vmem:[#allocation13_spill] sm:$0xff] %v7870_v3  ;;  %v7872_v41 = vadd.f32 %v2775_v20, %v2531_v6  ;;  %3083 = vmatprep.mubr.f32.mxu1 %v9228_v29  ;;  %v9232_v6 = vmax.f32 %v7429_v2, 0.0  ;;  %v2209_v20 = vmax.f32 %v1591_v39, 0.0 }
 0x2b6   : > { %v2777_v22 = vpop.f32.mrf.mxu1  ;;  %v3377_v13 = vpop.f32.mrf.mxu0 }
 0x2b7   : > { %v9234_v22 = vld [vmem:[#allocation50_spill] sm:$0xff] }
 0x2b8   : > { %v2780_v40 = vpop.f32.mrf.mxu1  ;;  %3084 = vmatmul.mubr.f32.gmra.mxu1 %v2208_v59  ;;  %v7880_v37 = vpop.f32.mrf.mxu0  ;;  %v2541_v13 = vadd.f32 %v7858_v16, %v9234_v22  ;;  %v9235_v59 = vmax.f32 %v7452_v15, 0.0 }
 0x2b9   : > { %9231 = vst [vmem:[#allocation16_spill] sm:$0xff] %v7880_v37  ;;  %v7882_v18 = vadd.f32 %v2780_v40, %v2536_v25  ;;  %3088 = vmatprep.mubr.f32.mxu1 %v9232_v6  ;;  %v2210_v40 = vmax.f32 %v1596_v21, 0.0  ;;  %v9236_v25 = vld [vmem:[#allocation38_spill] sm:$0xff]  ;;  %v9237_v37 = vld [vmem:[#allocation53_spill] sm:$0xff]  ;;  %v9240_v21 = vld [vmem:[#allocation55_spill] sm:$0xff] }
 0x2ba   : > { %v2782_v29 = vpop.f32.mrf.mxu1  ;;  %v3382_v35 = vpop.f32.mrf.mxu0  ;;  %v1621_v2 = vadd.f32 %v7446_v51, %v9236_v25  ;;  %v2546_v39 = vadd.f32 %v7858_v16, %v9237_v37  ;;  %v9241_v37 = vmax.f32 %v7484_v17, 0.0 }
 0x2bb   : > { %v9238_v35 = vmax.f32 %v7468_v54, 0.0 }
 0x2bc   : > { %v2785_v3 = vpop.f32.mrf.mxu1  ;;  %3089 = vmatmul.mubr.f32.gmra.mxu1 %v2209_v20  ;;  %v2215_v15 = vmax.f32 %v1621_v2, 0.0 }
 0x2bd   : > { %v7890_v48 = vadd.f32 %v2785_v3, %v2541_v13  ;;  %3093 = vmatprep.mubr.f32.mxu1 %v9235_v59  ;;  %v9239_v3 = vld [vmem:[#allocation37_spill] sm:$0xff]  ;;  %v2551_v13 = vadd.f32 %v7858_v16, %v9240_v21 }
 0x2be   : > { %v2787_v6 = vpop.f32.mrf.mxu1  ;;  %v1626_v20 = vadd.f32 %v7446_v51, %v9239_v3 }
 0x2bf   : > { %v9242_v6 = vld [vmem:[#allocation40_spill] sm:$0xff] }
 0x2c0   : > { %v2790_v42 = vpop.f32.mrf.mxu1  ;;  %3094 = vmatmul.mubr.f32.gmra.mxu1 %v2210_v40  ;;  %v2216_v40 = vmax.f32 %v1626_v20, 0.0  ;;  %v1631_v54 = vadd.f32 %v7446_v51, %v9242_v6  ;;  %v9247_v20 = vld [vmem:[#allocation51_spill] sm:$0xff] }
 0x2c1   : > { %v7898_v29 = vadd.f32 %v2790_v42, %v2546_v39  ;;  %3098 = vmatprep.mubr.f32.mxu1 %v9238_v35  ;;  %v9243_v42 = vld [vmem:[#allocation56_spill] sm:$0xff] }
 0x2c2   : > { %v2792_v22 = vpop.f32.mrf.mxu1  ;;  %v2556_v35 = vadd.f32 %v7858_v16, %v9243_v42  ;;  %v2217_v17 = vmax.f32 %v1631_v54, 0.0  ;;  %v9252_v54 = vld [vmem:[#allocation49_spill] sm:$0xff] }
 0x2c3   : > { %v9245_v22 = vmax.f32 %v7506_v58, 0.0 }
 0x2c4   : > { %v2795_v59 = vpop.f32.mrf.mxu1  ;;  %3099 = vmatmul.mubr.f32.gmra.mxu1 %v2215_v15  ;;  %v9246_v15 = vld [vmem:[#allocation39_spill] sm:$0xff] }
 0x2c5   : > { %v7906_v25 = vadd.f32 %v2795_v59, %v2551_v13  ;;  %3103 = vmatprep.mubr.f32.mxu1 %v9241_v37  ;;  %v1636_v21 = vadd.f32 %v7446_v51, %v9246_v15  ;;  %v1681_v59 = vadd.f32 %v7446_v51, %v9247_v20  ;;  %v9248_v37 = vld [vmem:[#allocation57_spill] sm:$0xff]  ;;  %v1686_v15 = vadd.f32 %v7446_v51, %v9252_v54  ;;  %v9253_v20 = vld [vmem:[#allocation58_spill] sm:$0xff]  ;;  %v9257_v54 = vld [vmem:[#allocation59_spill] sm:$0xff] }
 0x2c6   : > { %v2797_v39 = vpop.f32.mrf.mxu1  ;;  %v2561_v6 = vadd.f32 %v7858_v16, %v9248_v37 }
 0x2c7   : > { %v2218_v58 = vmax.f32 %v1636_v21, 0.0 }
 0x2c8   : > { %v2800_v2 = vpop.f32.mrf.mxu1  ;;  %3104 = vmatmul.mubr.f32.gmra.mxu1 %v2216_v40  ;;  %v9250_v40 = vmax.f32 %v7526_v5, 0.0 }
 0x2c9   : > { %v7914_v3 = vadd.f32 %v2800_v2, %v2556_v35  ;;  %3108 = vmatprep.mubr.f32.mxu1 %v9245_v22  ;;  %v9251_v35 = vld [vmem:[#allocation45_spill] sm:$0xff] }
 0x2ca   : > { %v2802_v13 = vpop.f32.mrf.mxu1  ;;  %v1661_v2 = vadd.f32 %v7446_v51, %v9251_v35  ;;  %v2228_v35 = vmax.f32 %v1686_v15, 0.0 }
 0x2cb   : > { %9244 = vst [vmem:[#allocation12_spill] sm:$0xff] %v7914_v3  ;;  %v2227_v13 = vmax.f32 %v1681_v59, 0.0  ;;  %v2566_v3 = vadd.f32 %v7858_v16, %v9253_v20  ;;  %v2571_v20 = vadd.f32 %v7858_v16, %v9257_v54 }
 0x2cc   : > { %v2805_v39 = vpop.f32.mrf.mxu1  ;;  %3109 = vmatmul.mubr.f32.gmra.mxu1 %v2217_v17  ;;  %v2223_v21 = vmax.f32 %v1661_v2, 0.0  ;;  %v3740_v2 = vld [vmem:[%s8958_s3 + $0x78] sm:$0xff] }
 0x2cd   : > { %v7924_v42 = vadd.f32 %v2805_v39, %v2561_v6  ;;  %3113 = vmatprep.mubr.f32.mxu1 %v9250_v40  ;;  %v9255_v6 = vld [vmem:[#allocation43_spill] sm:$0xff]  ;;  %v3756_v40 = vld [vmem:[%s8958_s3 + $0xf8] sm:$0xff] }
 0x2ce   : > { %v2807_v22 = vpop.f32.mrf.mxu1  ;;  %v1666_v5 = vadd.f32 %v7446_v51, %v9255_v6  ;;  %5040 = vmatprep.subr.mxu0 %v3756_v40  ;;  %v9261_v40 = vld [vmem:[#allocation60_spill] sm:$0xff] }
 0x2cf   : > { %9249 = vst [vmem:[#allocation32_spill] sm:$0xff] %v7924_v42  ;;  %v9256_v22 = vld [vmem:[#allocation54_spill] sm:$0xff]  ;;  %5041 = vmatpush3.msra.mxu0 %v3740_v2 }
 0x2d0   : > { %v2810_v37 = vpop.f32.mrf.mxu1  ;;  %3114 = vmatmul.mubr.f32.gmra.mxu1 %v2218_v58  ;;  %v1691_v59 = vadd.f32 %v7446_v51, %v9256_v22 }
 0x2d1   : > { %v7934_v17 = vadd.f32 %v2810_v37, %v2566_v3  ;;  %3118 = vmatprep.mubr.f32.mxu1 %v2227_v13  ;;  %v2224_v13 = vmax.f32 %v1666_v5, 0.0  ;;  %v9259_v37 = vld [vmem:[#allocation48_spill] sm:$0xff] }
 0x2d2   : > { %v2812_v39 = vpop.f32.mrf.mxu1  ;;  %v1671_v15 = vadd.f32 %v7446_v51, %v9259_v37  ;;  %v2229_v54 = vmax.f32 %v1691_v59, 0.0 }
 0x2d3   : > { %9254 = vst [vmem:[#allocation31_spill] sm:$0xff] %v7934_v17  ;;  %v9260_v39 = vld [vmem:[#allocation52_spill] sm:$0xff] }
 0x2d4   : > { %v2815_v3 = vpop.f32.mrf.mxu1  ;;  %3119 = vmatmul.mubr.f32.gmra.mxu1 %v2223_v21  ;;  %v1696_v22 = vadd.f32 %v7446_v51, %v9260_v39  ;;  %v2576_v21 = vadd.f32 %v7858_v16, %v9261_v40  ;;  %v3739_v39 = vld [vmem:[%s8958_s3 + $0x70] sm:$0xff] }
 0x2d5   : > { %v7945_v58 = vadd.f32 %v2815_v3, %v2571_v20  ;;  %3123 = vmatprep.mubr.f32.mxu1 %v2228_v35  ;;  %v9262_v3 = vld [vmem:[#allocation46_spill] sm:$0xff] }
 0x2d6   : > { %v2817_v6 = vpop.f32.mrf.mxu1  ;;  %v1676_v5 = vadd.f32 %v7446_v51, %v9262_v3  ;;  %v2230_v37 = vmax.f32 %v1696_v22, 0.0  ;;  %v9264_v22 = vld [vmem:[#allocation62_spill] sm:$0xff] }
 0x2d7   : > { %9258 = vst [vmem:[#allocation44_spill] sm:$0xff] %v7945_v58  ;;  %v2225_v58 = vmax.f32 %v1671_v15, 0.0  ;;  %v9263_v6 = vld [vmem:[#allocation61_spill] sm:$0xff] }
 0x2d8   : > { %v2820_v20 = vpop.f32.mrf.mxu1  ;;  %3124 = vmatmul.mubr.f32.gmra.mxu1 %v2224_v13  ;;  %v2581_v2 = vadd.f32 %v7858_v16, %v9263_v6  ;;  %v3755_v13 = vld [vmem:[%s8958_s3 + $0xf0] sm:$0xff] }
 0x2d9   : > { %v7956_v35 = vadd.f32 %v2820_v20, %v2576_v21  ;;  %3128 = vmatprep.mubr.f32.mxu1 %v2229_v54  ;;  %v2226_v54 = vmax.f32 %v1676_v5, 0.0  ;;  %5042 = vmatprep.subr.mxu0 %v3755_v13  ;;  %v9265_v21 = vmax.f32 %v7594_v55, 0.0  ;;  %v9266_v20 = vld [vmem:[#allocation63_spill] sm:$0xff]  ;;  %v9267_v13 = vmax.f32 %v7613_v7, 0.0 }
 0x2da   : > { %v2822_v17 = vpop.f32.mrf.mxu1  ;;  %5043 = vmatpush3.msra.mxu0 %v3739_v39  ;;  %v1866_v3 = vadd.f32 %v7446_v51, %v9266_v20  ;;  %v3754_v55 = vld [vmem:[%s8958_s3 + $0xe8] sm:$0xff]  ;;  %v9271_v20 = vld [vmem:[#allocation64_spill] sm:$0xff] }
 0x2db   : > { %v1861_v17 = vadd.f32 %v7446_v51, %v7134_v57  ;;  %v2591_v57 = vadd.f32 %v7858_v16, %v7287_v49  ;;  %5044 = vmatprep.subr.mxu0 %v3754_v55  ;;  %v3738_v49 = vld [vmem:[%s8958_s3 + $0x68] sm:$0xff] }
 0x2dc   : > { %v2825_v42 = vpop.f32.mrf.mxu1  ;;  %3129 = vmatmul.mubr.f32.gmra.mxu1 %v2225_v58  ;;  %v2586_v58 = vadd.f32 %v7858_v16, %v9264_v22  ;;  %v2264_v39 = vmax.f32 %v1866_v3, 0.0  ;;  %v9269_v22 = vld [vmem:[#allocation73_spill] sm:$0xff]  ;;  %5045 = vmatpush3.msra.mxu0 %v3738_v49  ;;  %v1876_v3 = vadd.f32 %v7446_v51, %v9271_v20  ;;  %v9276_v20 = vmax.f32 %v7642_v50, 0.0  ;;  %v8033_v50 = vld [vmem:[%s8961_s6] ss:$0 sm:$0xff] }
 0x2dd   : > { %v7962_v59 = vadd.f32 %v2825_v42, %v2581_v2  ;;  %3133 = vmatprep.mubr.f32.mxu1 %v2230_v37  ;;  %v2263_v5 = vmax.f32 %v1861_v17, 0.0 }
 0x2de   : > { %v2827_v15 = vpop.f32.mrf.mxu1 }
 0x2e0   : > { %v2830_v42 = vpop.f32.mrf.mxu1  ;;  %3134 = vmatmul.mubr.f32.gmra.mxu1 %v2226_v54  ;;  %v9268_v54 = vld [vmem:[#allocation65_spill] sm:$0xff] }
 0x2e1   : > { %v7974_v40 = vadd.f32 %v2830_v42, %v2586_v58  ;;  %3138 = vmatprep.mubr.f32.mxu1 %v9265_v21  ;;  %v1871_v15 = vadd.f32 %v7446_v51, %v9268_v54  ;;  %v2596_v58 = vadd.f32 %v7858_v16, %v9269_v22  ;;  %v9270_v21 = vmax.f32 %v7625_v53, 0.0  ;;  %v3737_v22 = vld [vmem:[%s8958_s3 + $0x60] sm:$0xff] }
 0x2e2   : > { %v2832_v37 = vpop.f32.mrf.mxu1  ;;  %v9273_v54 = vmax.f32 %v7634_v9, 0.0 }
 0x2e4   : > { %v2835_v6 = vpop.f32.mrf.mxu1  ;;  %3139 = vmatmul.mubr.f32.gmra.mxu1 %v2263_v5  ;;  %v2265_v5 = vmax.f32 %v1871_v15, 0.0  ;;  %v3753_v15 = vld [vmem:[%s8958_s3 + $0xe0] sm:$0xff] }
 0x2e5   : > { %v7982_v2 = vadd.f32 %v2835_v6, %v2591_v57  ;;  %3143 = vmatprep.mubr.f32.mxu1 %v9267_v13  ;;  %v9272_v57 = vld [vmem:[#allocation76_spill] sm:$0xff]  ;;  %5046 = vmatprep.subr.mxu0 %v3753_v15  ;;  %v9280_v15 = vld [vmem:[#allocation69_spill] sm:$0xff] }
 0x2e6   : > { %v2837_v17 = vpop.f32.mrf.mxu1  ;;  %v2601_v6 = vadd.f32 %v7858_v16, %v9272_v57  ;;  %5047 = vmatpush3.msra.mxu0 %v3737_v22  ;;  %v3752_v22 = vld [vmem:[%s8958_s3 + $0xd8] sm:$0xff] }
 0x2e7   : > { %v9274_v17 = vld [vmem:[#allocation67_spill] sm:$0xff]  ;;  %5048 = vmatprep.subr.mxu0 %v3752_v22 }
 0x2e8   : > { %v2840_v7 = vpop.f32.mrf.mxu1  ;;  %3144 = vmatmul.mubr.f32.gmra.mxu1 %v2264_v39  ;;  %v2266_v39 = vmax.f32 %v1876_v3, 0.0  ;;  %v1901_v53 = vadd.f32 %v7446_v51, %v9274_v17  ;;  %v9277_v3 = vld [vmem:[#allocation66_spill] sm:$0xff] }
 0x2e9   : > { %v7996_v42 = vadd.f32 %v2840_v7, %v2596_v58  ;;  %3148 = vmatprep.mubr.f32.mxu1 %v9270_v21  ;;  %v9275_v58 = vld [vmem:[#allocation79_spill] sm:$0xff] }
 0x2ea   : > { %v2842_v37 = vpop.f32.mrf.mxu1  ;;  %v2606_v7 = vadd.f32 %v7858_v16, %v9275_v58  ;;  %v9281_v58 = vld [vmem:[#allocation30_spill] sm:$0xff] }
 0x2eb   : > { %v2271_v37 = vmax.f32 %v1901_v53, 0.0 }
 0x2ec   : > { %v2845_v13 = vpop.f32.mrf.mxu1  ;;  %3149 = vmatmul.mubr.f32.gmra.mxu1 %v2265_v5  ;;  %v1906_v5 = vadd.f32 %v7446_v51, %v9277_v3  ;;  %v1911_v51 = vadd.f32 %v8033_v50, %v9280_v15 }
 0x2ed   : > { %v8004_v55 = vadd.f32 %v2845_v13, %v2601_v6  ;;  %3153 = vmatprep.mubr.f32.mxu1 %v9273_v54  ;;  %v9278_v6 = vld [vmem:[#allocation81_spill] sm:$0xff] }
 0x2ee   : > { %v2847_v49 = vpop.f32.mrf.mxu1  ;;  %v2611_v13 = vadd.f32 %v7858_v16, %v9278_v6 }
 0x2ef   : > { %v2272_v49 = vmax.f32 %v1906_v5, 0.0  ;;  %v9283_v5 = vmax.f32 %v7666_v44, 0.0  ;;  %v9287_v44 = vmax.f32 %v7690_v26, 0.0  ;;  %v3751_v26 = vld [vmem:[%s8958_s3 + $0xd0] sm:$0xff] }
 0x2f0   : > { %v2850_v21 = vpop.f32.mrf.mxu1  ;;  %3154 = vmatmul.mubr.f32.gmra.mxu1 %v2266_v39  ;;  %v9279_v39 = vmax.f32 %v7659_v12, 0.0 }
 0x2f1   : > { %v8018_v9 = vadd.f32 %v2850_v21, %v2606_v7  ;;  %3158 = vmatprep.mubr.f32.mxu1 %v9276_v20  ;;  %v2616_v7 = vadd.f32 %v7858_v16, %v9281_v58  ;;  %v9282_v21 = vld [vmem:[#allocation77_spill] sm:$0xff] }
 0x2f2   : > { %v2852_v57 = vpop.f32.mrf.mxu1  ;;  %v1961_v20 = vadd.f32 %v8033_v50, %v9282_v21 }
 0x2f3   : > { %v9284_v57 = vld [vmem:[#allocation68_spill] sm:$0xff] }
 0x2f4   : > { %v2855_v54 = vpop.f32.mrf.mxu1  ;;  %3159 = vmatmul.mubr.f32.gmra.mxu1 %v2271_v37  ;;  %v3736_v37 = vld [vmem:[%s8958_s3 + $0x58] sm:$0xff]  ;;  %v1916_v6 = vadd.f32 %v8033_v50, %v9284_v57 }
 0x2f5   : > { %v8026_v17 = vadd.f32 %v2855_v54, %v2611_v13  ;;  %3163 = vmatprep.mubr.f32.mxu1 %v9279_v39  ;;  %v2273_v13 = vmax.f32 %v1911_v51, 0.0  ;;  %5049 = vmatpush3.msra.mxu0 %v3736_v37  ;;  %v9285_v39 = vld [vmem:[#allocation82_spill] sm:$0xff]  ;;  %v9290_v37 = vld [vmem:[#allocation35_spill] sm:$0xff] }
 0x2f6   : > { %v2857_v53 = vpop.f32.mrf.mxu1  ;;  %v2274_v58 = vmax.f32 %v1916_v6, 0.0  ;;  %v2626_v57 = vadd.f32 %v7858_v16, %v9290_v37  ;;  %v3735_v6 = vld [vmem:[%s8958_s3 + $0x50] sm:$0xff]  ;;  %5050 = vmatprep.subr.mxu0 %v3751_v26 }
 0x2f7   : > { %v2283_v53 = vmax.f32 %v1961_v20, 0.0  ;;  %5051 = vmatpush3.msra.mxu0 %v3735_v6  ;;  %v9297_v26 = vld [vmem:[#allocation36_spill] sm:$0xff] }
 0x2f8   : > { %v2860_v12 = vpop.f32.mrf.mxu1  ;;  %3164 = vmatmul.mubr.f32.gmra.mxu1 %v2272_v49  ;;  %v2621_v49 = vadd.f32 %v7858_v16, %v9285_v39 }
 0x2f9   : > { %v8044_v3 = vadd.f32 %v2860_v12, %v2616_v7  ;;  %3168 = vmatprep.mubr.f32.mxu1 %v9283_v5  ;;  %v9288_v7 = vld [vmem:[#allocation71_spill] sm:$0xff] }
 0x2fa   : > { %v2862_v54 = vpop.f32.mrf.mxu1  ;;  %v1941_v12 = vadd.f32 %v8033_v50, %v9288_v7  ;;  %v9289_v5 = vld [vmem:[#allocation75_spill] sm:$0xff] }
 0x2fb   : > { %v1966_v51 = vadd.f32 %v8033_v50, %v9289_v5 }
 0x2fc   : > { %v2865_v15 = vpop.f32.mrf.mxu1  ;;  %3169 = vmatmul.mubr.f32.gmra.mxu1 %v2273_v13  ;;  %v9291_v13 = vld [vmem:[#allocation80_spill] sm:$0xff] }
 0x2fd   : > { %v8055_v22 = vadd.f32 %v2865_v15, %v2621_v49  ;;  %3173 = vmatprep.mubr.f32.mxu1 %v9287_v44  ;;  %v1971_v20 = vadd.f32 %v8033_v50, %v9291_v13  ;;  %v9293_v49 = vld [vmem:[#allocation70_spill] sm:$0xff]  ;;  %v2279_v44 = vmax.f32 %v1941_v12, 0.0 }
 0x2fe   : > { %v2867_v21 = vpop.f32.mrf.mxu1  ;;  %v1946_v15 = vadd.f32 %v8033_v50, %v9293_v49  ;;  %v9295_v13 = vld [vmem:[#allocation74_spill] sm:$0xff] }
 0x2ff   : > { %9286 = vst [vmem:[#allocation34_spill] sm:$0xff] %v8055_v22  ;;  %v9294_v21 = vld [vmem:[#allocation83_spill] sm:$0xff]  ;;  %v2285_v37 = vmax.f32 %v1971_v20, 0.0  ;;  %v9296_v49 = vld [vmem:[#allocation78_spill] sm:$0xff] }
 0x300   : > { %v2870_v54 = vpop.f32.mrf.mxu1  ;;  %3174 = vmatmul.mubr.f32.gmra.mxu1 %v2274_v58  ;;  %v2284_v58 = vmax.f32 %v1966_v51, 0.0  ;;  %v2631_v5 = vadd.f32 %v7858_v16, %v9294_v21  ;;  %v1976_v12 = vadd.f32 %v8033_v50, %v9296_v49  ;;  %v2636_v51 = vadd.f32 %v7858_v16, %v9297_v26  ;;  %v3750_v20 = vld [vmem:[%s8958_s3 + $0xc8] sm:$0xff] }
 0x301   : > { %v8067_v39 = vadd.f32 %v2870_v54, %v2626_v57  ;;  %3178 = vmatprep.mubr.f32.mxu1 %v2283_v53  ;;  %v2280_v54 = vmax.f32 %v1946_v15, 0.0  ;;  %v9298_v15 = vld [vmem:[#allocation72_spill] sm:$0xff]  ;;  %5052 = vmatprep.subr.mxu0 %v3750_v20  ;;  %v3734_v21 = vld [vmem:[%s8958_s3 + $0x48] sm:$0xff] }
 0x302   : > { %v2872_v7 = vpop.f32.mrf.mxu1  ;;  %5053 = vmatpush3.msra.mxu0 %v3734_v21 }
 0x303   : > { %9292 = vst [vmem:[#allocation47_spill] sm:$0xff] %v8067_v39  ;;  %v1951_v39 = vadd.f32 %v8033_v50, %v9295_v13 }
 0x304   : > { %v2875_v53 = vpop.f32.mrf.mxu1  ;;  %3179 = vmatmul.mubr.f32.gmra.mxu1 %v2279_v44  ;;  %v1956_v44 = vadd.f32 %v8033_v50, %v9298_v15  ;;  %v9301_v15 = vld [vmem:[#allocation18_spill] sm:$0xff] }
 0x305   : > { %v8079_v57 = vadd.f32 %v2875_v53, %v2631_v5  ;;  %3183 = vmatprep.mubr.f32.mxu1 %v2284_v58  ;;  %v2281_v58 = vmax.f32 %v1951_v39, 0.0  ;;  %v2286_v5 = vmax.f32 %v1976_v12, 0.0  ;;  %v9299_v53 = vld [vmem:[#allocation84_spill] sm:$0xff] }
 0x306   : > { %v2877_v22 = vpop.f32.mrf.mxu1  ;;  %v2282_v49 = vmax.f32 %v1956_v44, 0.0  ;;  %v2651_v44 = vadd.f32 %v7858_v16, %v7724_v23 }
 0x308   : > { %v2880_v7 = vpop.f32.mrf.mxu1  ;;  %3184 = vmatmul.mubr.f32.gmra.mxu1 %v2280_v54  ;;  %v2641_v54 = vadd.f32 %v7858_v16, %v9299_v53 }
 0x309   : > { %v8087_v6 = vadd.f32 %v2880_v7, %v2636_v51  ;;  %3188 = vmatprep.mubr.f32.mxu1 %v2285_v37  ;;  %v9300_v51 = vld [vmem:[#allocation86_spill] sm:$0xff] }
 0x30a   : > { %v2882_v22 = vpop.f32.mrf.mxu1  ;;  %v2646_v39 = vadd.f32 %v7858_v16, %v9300_v51  ;;  %v9304_v51 = vld [vmem:[#allocation21_spill] sm:$0xff] }
 0x30b   : > { %v3749_v22 = vld [vmem:[%s8958_s3 + $0xc0] sm:$0xff] }
 0x30c   : > { %v2885_v37 = vpop.f32.mrf.mxu1  ;;  %3189 = vmatmul.mubr.f32.gmra.mxu1 %v2281_v58  ;;  %v3733_v58 = vld [vmem:[%s8958_s3 + $0x40] sm:$0xff]  ;;  %5054 = vmatprep.subr.mxu0 %v3749_v22 }
 0x30d   : > { %v8099_v13 = vadd.f32 %v2885_v37, %v2641_v54  ;;  %3193 = vmatprep.mubr.f32.mxu1 %v2286_v5  ;;  %v9302_v5 = vld [vmem:[#allocation19_spill] sm:$0xff]  ;;  %5055 = vmatpush3.msra.mxu0 %v3733_v58  ;;  %v9303_v54 = vld [vmem:[#allocation20_spill] sm:$0xff] }
 0x30e   : > { %v2887_v26 = vpop.f32.mrf.mxu1  ;;  %v9306_v58 = vld [vmem:[#allocation24_spill] sm:$0xff] }
 0x310   : > { %v2890_v7 = vpop.f32.mrf.mxu1  ;;  %3194 = vmatmul.mubr.f32.gmra.mxu1 %v2282_v49  ;;  %v2656_v49 = vadd.f32 %v7858_v16, %v7739_v61 }
 0x311   : > { %v8103_v20 = vadd.f32 %v2890_v7, %v2646_v39  ;;  %5606 = vmatprep.mubr.f32.mxu1 %v9301_v15  ;;  %v9305_v7 = vld [vmem:[#allocation22_spill] sm:$0xff]  ;;  %v3748_v15 = vld [vmem:[%s8958_s3 + $0xb8] sm:$0xff] }
 0x312   : > { %v2892_v12 = vpop.f32.mrf.mxu1  ;;  %5056 = vmatprep.subr.mxu0 %v3748_v15 }
 0x313   : > { %v2661_v12 = vadd.f32 %v7858_v16, %v7753_v27 }
 0x314   : > { %v2895_v21 = vpop.f32.mrf.mxu1  ;;  %5607 = vmatmul.mubr.f32.vlgmr.msra.gmra.mxu1 %v9302_v5 }
 0x315   : > { %v8115_v53 = vadd.f32 %v2895_v21, %v2651_v44  ;;  %5609 = vmatprep.mubr.f32.mxu1 %v9303_v54  ;;  %v9307_v44 = vld [vmem:[#allocation27_spill] sm:$0xff]  ;;  %v3732_v21 = vld [vmem:[%s8958_s3 + $0x38] sm:$0xff]  ;;  %v2666_v54 = vadd.f32 %v7858_v16, %v7767_v34  ;;  %v9313_v34 = vmax.f32 %v7516_v30, 0.0  ;;  %v9314_v30 = vmax.f32 %v7538_v32, 0.0 }
 0x316   : > { %v2897_v37 = vpop.f32.mrf.mxu1  ;;  %5057 = vmatpush3.msra.mxu0 %v3732_v21  ;;  %v3731_v21 = vld [vmem:[%s8958_s3 + $0x30] sm:$0xff]  ;;  %v3746_v32 = vld [vmem:[%s8958_s3 + $0xa8] sm:$0xff] }
 0x318   : > { %v2900_v26 = vpop.f32.mrf.mxu1  ;;  %5610 = vmatmul.mubr.f32.gmra.mxu1 %v9304_v51 }
 0x319   : > { %v8121_v39 = vadd.f32 %v2900_v26, %v2656_v49  ;;  %5612 = vmatprep.mubr.f32.mxu1 %v9305_v7  ;;  %v9308_v49 = vld [vmem:[#allocation29_spill] sm:$0xff] }
 0x31a   : > { %v2902_v23 = vpop.f32.mrf.mxu1  ;;  %v9309_v26 = vld [vmem:[#allocation25_spill] sm:$0xff] }
 0x31b   : > { %v9310_v51 = vmax.f32 %v9309_v26, 0.0  ;;  %v2671_v23 = vadd.f32 %v7858_v16, %v7781_v38  ;;  %v8157_v38 = vpop.f32.mrf.mxu0 }
 0x31c   : > { %v2905_v22 = vpop.f32.mrf.mxu1  ;;  %5613 = vmatmul.mubr.f32.gmra.mxu1 %v9306_v58 }
 0x31d   : > { %v8130_v61 = vadd.f32 %v2905_v22, %v2661_v12  ;;  %5615 = vmatprep.mubr.f32.mxu1 %v9307_v44  ;;  %v9311_v12 = vld [vmem:[#allocation23_spill] sm:$0xff]  ;;  %v3747_v44 = vld [vmem:[%s8958_s3 + $0xb0] sm:$0xff] }
 0x31e   : > { %v2907_v5 = vpop.f32.mrf.mxu1  ;;  %v9312_v22 = vmax.f32 %v9311_v12, 0.0  ;;  %5058 = vmatprep.subr.mxu0 %v3747_v44 }
 0x31f   : > { %5059 = vmatpush3.msra.mxu0 %v3731_v21  ;;  %v3788_v21 = vld [vmem:[%s8958_s3 + $0x1f8] sm:$0xff] }
 0x320   : > { %v2910_v37 = vpop.f32.mrf.mxu1  ;;  %5616 = vmatmul.mubr.f32.gmra.mxu1 %v9308_v49  ;;  %v3387_v49 = vpop.f32.mrf.mxu0  ;;  %5060 = vmatprep.subr.mxu0 %v3746_v32 }
 0x321   : > { %v8139_v27 = vadd.f32 %v2910_v37, %v2666_v54  ;;  %5618 = vmatprep.mubr.f32.mxu1 %v9310_v51  ;;  %v2676_v54 = vadd.f32 %v7858_v16, %v7795_v28  ;;  %5084 = vmatprep.subr.mxu1 %v3788_v21  ;;  %v3787_v49 = vld [vmem:[%s8958_s3 + $0x1f0] sm:$0xff] }
 0x322   : > { %v2912_v7 = vpop.f32.mrf.mxu1 }
 0x323   : > { %v8166_v7 = vpop.f32.mrf.mxu0 }
 0x324   : > { %v2915_v15 = vpop.f32.mrf.mxu1  ;;  %5619 = vmatmul.mubr.f32.gmra.mxu1 %v9312_v22 }
 0x325   : > { %v8147_v58 = vadd.f32 %v2915_v15, %v2671_v23  ;;  %5621 = vmatprep.mubr.f32.mxu1 %v9313_v34  ;;  %v2681_v23 = vadd.f32 %v7858_v16, %v7811_v62  ;;  %v3392_v28 = vpop.f32.mrf.mxu0  ;;  %v2686_v34 = vadd.f32 %v7858_v16, %v7827_v47  ;;  %v3772_v47 = vld [vmem:[%s8958_s3 + $0x178] sm:$0xff] }
 0x326   : > { %v2917_v5 = vpop.f32.mrf.mxu1  ;;  %5085 = vmatpush3.msra.mxu1 %v3772_v47 }
 0x327   : > { %5086 = vmatprep.subr.mxu1 %v3787_v49  ;;  %v3785_v49 = vld [vmem:[%s8958_s3 + $0x1e0] sm:$0xff] }
 0x328   : > { %v2920_v37 = vpop.f32.mrf.mxu1  ;;  %5622 = vmatmul.mubr.f32.gmra.mxu1 %v9314_v30 }
 0x329   : > { %v8163_v26 = vadd.f32 %v2920_v37, %v2676_v54  ;;  %5624 = vmatprep.mubr.f32.mxu1 %v7059_v24  ;;  %v8177_v24 = vpop.f32.mrf.mxu0 }
 0x32a   : > { %v2922_v51 = vpop.f32.mrf.mxu1 }
 0x32c   : > { %v2925_v15 = vpop.f32.mrf.mxu1  ;;  %5625 = vmatmul.mubr.f32.gmra.mxu1 %v7063_v31  ;;  %v3730_v31 = vld [vmem:[%s8958_s3 + $0x28] sm:$0xff] }
 0x32d   : > { %v8171_v12 = vadd.f32 %v2925_v15, %v2681_v23  ;;  %5627 = vmatprep.mubr.f32.mxu1 %v7069_v0  ;;  %5061 = vmatpush3.msra.mxu0 %v3730_v31  ;;  %v3397_v0 = vpop.f32.mrf.mxu0  ;;  %v3771_v15 = vld [vmem:[%s8958_s3 + $0x170] sm:$0xff] }
 0x32e   : > { %v2927_v22 = vpop.f32.mrf.mxu1  ;;  %5087 = vmatpush3.msra.mxu1 %v3771_v15  ;;  %v3770_v0 = vld [vmem:[%s8958_s3 + $0x168] sm:$0xff] }
 0x32f   : > { %v8194_v54 = vpop.f32.mrf.mxu0 }
 0x330   : > { %v2930_v62 = vpop.f32.mrf.mxu1  ;;  %5628 = vmatmul.mubr.f32.gmra.mxu1 %v7073_v43  ;;  %v2691_v43 = vadd.f32 %v7858_v16, %v7835_v56  ;;  %v2696_v56 = vadd.f32 %v7858_v16, %v7843_v52  ;;  %v9315_v52 = vmax.f32 %v7655_v8, 0.0  ;;  %v9316_v8 = vmax.f32 %v7672_v33, 0.0  ;;  %v3744_v33 = vld [vmem:[%s8958_s3 + $0x98] sm:$0xff] }
 0x331   : > { %v8185_v44 = vadd.f32 %v2930_v62, %v2686_v34  ;;  %5630 = vmatprep.mubr.f32.mxu1 %v7081_v10  ;;  %v3402_v10 = vpop.f32.mrf.mxu0  ;;  %v3786_v34 = vld [vmem:[%s8958_s3 + $0x1e8] sm:$0xff] }
 0x332   : > { %v2932_v5 = vpop.f32.mrf.mxu1  ;;  %5088 = vmatprep.subr.mxu1 %v3786_v34 }
 0x333   : > { %v8205_v23 = vpop.f32.mrf.mxu0  ;;  %5089 = vmatpush3.msra.mxu1 %v3770_v0 }
 0x334   : > { %v2935_v37 = vpop.f32.mrf.mxu1  ;;  %5631 = vmatmul.mubr.f32.gmra.mxu1 %v7088_v4  ;;  %v3745_v4 = vld [vmem:[%s8958_s3 + $0xa0] sm:$0xff]  ;;  %5090 = vmatprep.subr.mxu1 %v3785_v49 }
 0x335   : > { %v8199_v30 = vadd.f32 %v2935_v37, %v2691_v43  ;;  %5633 = vmatprep.mubr.f32.mxu1 %v7099_v36  ;;  %v3729_v36 = vld [vmem:[%s8958_s3 + $0x20] sm:$0xff]  ;;  %5062 = vmatprep.subr.mxu0 %v3745_v4  ;;  %v3407_v32 = vpop.f32.mrf.mxu0  ;;  %v9317_v43 = vmax.f32 %v7686_v1, 0.0 }
 0x336   : > { %v2937_v51 = vpop.f32.mrf.mxu1  ;;  %5063 = vmatpush3.msra.mxu0 %v3729_v36  ;;  %v3769_v1 = vld [vmem:[%s8958_s3 + $0x160] sm:$0xff]  ;;  %v3728_v36 = vld [vmem:[%s8958_s3 + $0x18] sm:$0xff] }
 0x337   : > { %v8226_v62 = vpop.f32.mrf.mxu0  ;;  %5064 = vmatprep.subr.mxu0 %v3744_v33  ;;  %5091 = vmatpush3.msra.mxu1 %v3769_v1  ;;  %v9325_v33 = vmax.f32 %v7543_v14, 0.0  ;;  %v3767_v14 = vld [vmem:[%s8958_s3 + $0x150] sm:$0xff] }
 0x338   : > { %v2940_v28 = vpop.f32.mrf.mxu1  ;;  %5634 = vmatmul.mubr.f32.gmra.mxu1 %v7109_v46  ;;  %v2701_v46 = vadd.f32 %v7858_v16, %v7849_v19  ;;  %v2706_v19 = vadd.f32 %v7858_v16, %v7860_v63  ;;  %v9319_v16 = vld [vmem:[#allocation85_spill] sm:$0xff]  ;;  %5065 = vmatpush3.msra.mxu0 %v3728_v36 }
 0x339   : > { %v8219_v22 = vadd.f32 %v2940_v28, %v2696_v56  ;;  %5636 = vmatprep.mubr.f32.mxu1 %v9315_v52  ;;  %v3412_v47 = vpop.f32.mrf.mxu0  ;;  %v9318_v56 = vmax.f32 %v7700_v60, 0.0  ;;  %v9320_v63 = vmax.f32 %v9319_v16, 0.0  ;;  %v3784_v60 = vld [vmem:[%s8958_s3 + $0x1d8] sm:$0xff]  ;;  %v3727_v16 = vld [vmem:[%s8958_s3 + $0x10] sm:$0xff] }
 0x33a   : > { %v2942_v31 = vpop.f32.mrf.mxu1  ;;  %v3768_v52 = vld [vmem:[%s8958_s3 + $0x158] sm:$0xff]  ;;  %5092 = vmatprep.subr.mxu1 %v3784_v60  ;;  %v9329_v60 = vld [vmem:[#allocation28_spill] sm:$0xff] }
 0x33b   : > { %v8239_v10 = vpop.f32.mrf.mxu0  ;;  %v9321_v31 = vld [vmem:[#allocation87_spill] sm:$0xff]  ;;  %5093 = vmatpush3.msra.mxu1 %v3768_v52  ;;  %v9330_v52 = vmax.f32 %v9329_v60, 0.0 }
 0x33c   : > { %v2945_v21 = vpop.f32.mrf.mxu1  ;;  %5637 = vmatmul.mubr.f32.gmra.mxu1 %v9316_v8  ;;  %v9323_v8 = vld [vmem:[#allocation42_spill] sm:$0xff] }
 0x33d   : > { %v8235_v5 = vadd.f32 %v2945_v21, %v2701_v46  ;;  %5639 = vmatprep.mubr.f32.mxu1 %v9317_v43  ;;  %v3417_v4 = vpop.f32.mrf.mxu0  ;;  %v9322_v46 = vmax.f32 %v9321_v31, 0.0  ;;  %v9324_v47 = vmax.f32 %v9323_v8, 0.0 }
 0x33e   : > { %v2947_v37 = vpop.f32.mrf.mxu1  ;;  %v3743_v4 = vld [vmem:[%s8958_s3 + $0x90] sm:$0xff] }
 0x33f   : > { %v8261_v32 = vpop.f32.mrf.mxu0  ;;  %5066 = vmatprep.subr.mxu0 %v3743_v4 }
 0x340   : > { %v2950_v51 = vpop.f32.mrf.mxu1  ;;  %5640 = vmatmul.mubr.f32.gmra.mxu1 %v9318_v56  ;;  %v9326_v56 = vmax.f32 %v7556_v11, 0.0  ;;  %5067 = vmatpush3.msra.mxu0 %v3727_v16  ;;  %v3782_v11 = vld [vmem:[%s8958_s3 + $0x1c8] sm:$0xff] }
 0x341   : > { %v8254_v15 = vadd.f32 %v2950_v51, %v2706_v19  ;;  %5642 = vmatprep.mubr.f32.mxu1 %v9320_v63  ;;  %v3422_v0 = vpop.f32.mrf.mxu0  ;;  %v3783_v19 = vld [vmem:[%s8958_s3 + $0x1d0] sm:$0xff] }
 0x342   : > { %v2952_v28 = vpop.f32.mrf.mxu1  ;;  %5094 = vmatprep.subr.mxu1 %v3783_v19  ;;  %v3766_v19 = vld [vmem:[%s8958_s3 + $0x148] sm:$0xff] }
 0x343   : > { %v8276_v37 = vpop.f32.mrf.mxu0  ;;  %5095 = vmatpush3.msra.mxu1 %v3767_v14  ;;  %v9336_v14 = vld [vmem:[#allocation89_spill] sm:$0xff] }
 0x344   : > { %v3020_v34 = vpop.f32.mrf.mxu1  ;;  %5643 = vmatmul.mubr.f32.gmra.mxu1 %v9322_v46  ;;  %5096 = vmatprep.subr.mxu1 %v3782_v11  ;;  %v9331_v46 = vld [vmem:[#allocation90_spill] sm:$0xff]  ;;  %v9337_v16 = vmax.f32 %v9336_v14, 0.0 }
 0x345   : > { %v8272_v21 = vadd.f32 %v3020_v34, %v7872_v41  ;;  %5645 = vmatprep.mubr.f32.mxu1 %v9324_v47  ;;  %v3427_v1 = vpop.f32.mrf.mxu0  ;;  %v2101_v41 = vadd.f32 %v8033_v50, %v7582_v45  ;;  %v2111_v0 = vadd.f32 %v8033_v50, %v9331_v46  ;;  %v9332_v47 = vld [vmem:[#allocation26_spill] sm:$0xff]  ;;  %5097 = vmatpush3.msra.mxu1 %v3766_v19 }
 0x346   : > { %v3022_v43 = vpop.f32.mrf.mxu1 }
 0x347   : > { %v8299_v45 = vpop.f32.mrf.mxu0  ;;  %v2311_v31 = vmax.f32 %v2101_v41, 0.0  ;;  %v9333_v43 = vmax.f32 %v9332_v47, 0.0  ;;  %v3780_v47 = vld [vmem:[%s8958_s3 + $0x1b8] sm:$0xff] }
 0x348   : > { %v3025_v49 = vpop.f32.mrf.mxu1  ;;  %5646 = vmatmul.mubr.f32.gmra.mxu1 %v9325_v33  ;;  %9327 = vst [vmem:[#allocation33_spill] sm:$0xff] %v8299_v45 }
 0x349   : > { %v8286_v51 = vadd.f32 %v3025_v49, %v7882_v18  ;;  %5648 = vmatprep.mubr.f32.mxu1 %v9326_v56  ;;  %v9328_v18 = vld [vmem:[#allocation41_spill] sm:$0xff]  ;;  %v3432_v34 = vpop.f32.mrf.mxu0  ;;  %v9335_v56 = vld [vmem:[#allocation88_spill] sm:$0xff] }
 0x34a   : > { %v3027_v63 = vpop.f32.mrf.mxu1  ;;  %v2106_v36 = vadd.f32 %v8033_v50, %v9328_v18  ;;  %v2116_v41 = vadd.f32 %v8033_v50, %v9335_v56  ;;  %v3781_v18 = vld [vmem:[%s8958_s3 + $0x1c0] sm:$0xff] }
 0x34b   : > { %v8318_v33 = vpop.f32.mrf.mxu0  ;;  %v2313_v63 = vmax.f32 %v2111_v0, 0.0  ;;  %v3765_v50 = vld [vmem:[%s8958_s3 + $0x140] sm:$0xff]  ;;  %5098 = vmatprep.subr.mxu1 %v3781_v18 }
 0x34c   : > { %v3030_v28 = vpop.f32.mrf.mxu1  ;;  %5649 = vmatmul.mubr.f32.gmra.mxu1 %v9330_v52  ;;  %9334 = vst [vmem:[#allocation50_spill] sm:$0xff] %v8318_v33  ;;  %v2312_v1 = vmax.f32 %v2106_v36, 0.0  ;;  %v3742_v36 = vld [vmem:[%s8958_s3 + $0x88] sm:$0xff]  ;;  %v2314_v52 = vmax.f32 %v2116_v41, 0.0 }
 0x34d   : > { %v8311_v8 = vadd.f32 %v3030_v28, %v7890_v48  ;;  %5651 = vmatprep.mubr.f32.mxu1 %v9333_v43  ;;  %v3437_v48 = vpop.f32.mrf.mxu0  ;;  %5068 = vmatprep.subr.mxu0 %v3742_v36  ;;  %v3764_v43 = vld [vmem:[%s8958_s3 + $0x138] sm:$0xff]  ;;  %v3778_v36 = vld [vmem:[%s8958_s3 + $0x1a8] sm:$0xff] }
 0x34e   : > { %v3032_v49 = vpop.f32.mrf.mxu1  ;;  %5099 = vmatpush3.msra.mxu1 %v3765_v50  ;;  %v3763_v48 = vld [vmem:[%s8958_s3 + $0x130] sm:$0xff] }
 0x34f   : > { %v8336_v60 = vpop.f32.mrf.mxu0  ;;  %5100 = vmatprep.subr.mxu1 %v3780_v47  ;;  %v9339_v49 = vld [vmem:[#allocation12_spill] sm:$0xff] }
 0x350   : > { %v3035_v4 = vpop.f32.mrf.mxu1  ;;  %5652 = vmatmul.mubr.f32.gmra.mxu1 %v9337_v16  ;;  %9338 = vst [vmem:[#allocation38_spill] sm:$0xff] %v8336_v60  ;;  %v3741_v16 = vld [vmem:[%s8958_s3 + $0x80] sm:$0xff]  ;;  %v9342_v47 = vld [vmem:[#allocation44_spill] sm:$0xff] }
 0x351   : > { %v8325_v11 = vadd.f32 %v3035_v4, %v7898_v29  ;;  %5654 = vmatprep.mubr.f32.mxu1 %v2311_v31  ;;  %v3726_v29 = vld [vmem:[%s8958_s3 + $0x8] sm:$0xff]  ;;  %v3442_v31 = vpop.f32.mrf.mxu0  ;;  %5101 = vmatpush3.msra.mxu1 %v3764_v43  ;;  %v9340_v4 = vld [vmem:[#allocation32_spill] sm:$0xff] }
 0x352   : > { %v3037_v28 = vpop.f32.mrf.mxu1  ;;  %5069 = vmatpush3.msra.mxu0 %v3726_v29  ;;  %v3820_v31 = vld [vmem:[%s8958_s3 + $0x2f8] sm:$0xff] }
 0x353   : > { %5070 = vmatprep.subr.mxu0 %v3741_v16  ;;  %v9341_v28 = vld [vmem:[#allocation31_spill] sm:$0xff]  ;;  %v3760_v16 = vld [vmem:[%s8958_s3 + $0x118] sm:$0xff] }
 0x354   : > { %v3040_v34 = vpop.f32.mrf.mxu1  ;;  %5655 = vmatmul.mubr.f32.gmra.mxu1 %v2312_v1 }
 0x355   : > { %v8342_v46 = vadd.f32 %v3040_v34, %v7906_v25  ;;  %5657 = vmatprep.mubr.f32.mxu1 %v2313_v63  ;;  %v3779_v25 = vld [vmem:[%s8958_s3 + $0x1b0] sm:$0xff]  ;;  %v3725_v63 = vld [vmem:[%s8958_s3] sm:$0xff] }
 0x356   : > { %v3042_v0 = vpop.f32.mrf.mxu1  ;;  %5102 = vmatprep.subr.mxu1 %v3779_v25  ;;  %5071 = vmatpush3.msra.mxu0 %v3725_v63 }
 0x357   : > { %5103 = vmatpush3.msra.mxu1 %v3763_v48  ;;  %5128 = vmatprep.subr.mxu0 %v3820_v31 }
 0x358   : > { %v3045_v19 = vpop.f32.mrf.mxu1  ;;  %5658 = vmatmul.mubr.f32.gmra.mxu1 %v2314_v52  ;;  %5104 = vmatprep.subr.mxu1 %v3778_v36  ;;  %v3762_v52 = vld [vmem:[%s8958_s3 + $0x128] sm:$0xff] }
 0x359   : > { %v8351_v1 = vadd.f32 %v3045_v19, %v9339_v49  ;;  %5105 = vmatpush3.msra.mxu1 %v3762_v52  ;;  %v3777_v19 = vld [vmem:[%s8958_s3 + $0x1a0] sm:$0xff]  ;;  %v3774_v52 = vld [vmem:[%s8958_s3 + $0x188] sm:$0xff] }
 0x35a   : > { %v3047_v56 = vpop.f32.mrf.mxu1  ;;  %v3761_v49 = vld [vmem:[%s8958_s3 + $0x120] sm:$0xff]  ;;  %5106 = vmatprep.subr.mxu1 %v3777_v19 }
 0x35b   : > { %5107 = vmatpush3.msra.mxu1 %v3761_v49 }
 0x35c   : > { %v3050_v41 = vpop.f32.mrf.mxu1 }
 0x35d   : > { %v8357_v14 = vadd.f32 %v3050_v41, %v9340_v4  ;;  %v3776_v4 = vld [vmem:[%s8958_s3 + $0x198] sm:$0xff] }
 0x35e   : > { %v3052_v18 = vpop.f32.mrf.mxu1  ;;  %5108 = vmatprep.subr.mxu1 %v3776_v4 }
 0x35f   : > { %5109 = vmatpush3.msra.mxu1 %v3760_v16 }
 0x360   : > { %v3055_v50 = vpop.f32.mrf.mxu1 }
 0x361   : > { %v8372_v29 = vadd.f32 %v3055_v50, %v9341_v28  ;;  %v3759_v50 = vld [vmem:[%s8958_s3 + $0x110] sm:$0xff] }
 0x362   : > { %v3057_v34 = vpop.f32.mrf.mxu1 }
 0x364   : > { %v3060_v0 = vpop.f32.mrf.mxu1 }
 0x365   : > { %v8381_v43 = vadd.f32 %v3060_v0, %v9342_v47  ;;  %v3773_v0 = vld [vmem:[%s8958_s3 + $0x180] sm:$0xff] }
 0x366   : > { %v3062_v56 = vpop.f32.mrf.mxu1  ;;  %v3757_v47 = vld [vmem:[%s8958_s3 + $0x100] sm:$0xff] }
 0x368   : > { %v3065_v25 = vpop.f32.mrf.mxu1 }
 0x369   : > { %v8390_v41 = vadd.f32 %v3065_v25, %v7956_v35  ;;  %v3775_v35 = vld [vmem:[%s8958_s3 + $0x190] sm:$0xff] }
 0x36a   : > { %v3067_v48 = vpop.f32.mrf.mxu1  ;;  %5110 = vmatprep.subr.mxu1 %v3775_v35 }
 0x36b   : > { %5111 = vmatpush3.msra.mxu1 %v3759_v50 }
 0x36c   : > { %v3070_v63 = vpop.f32.mrf.mxu1  ;;  %5112 = vmatprep.subr.mxu1 %v3774_v52 }
 0x36d   : > { %v8399_v18 = vadd.f32 %v3070_v63, %v7962_v59  ;;  %v3758_v59 = vld [vmem:[%s8958_s3 + $0x108] sm:$0xff] }
 0x36e   : > { %v3072_v36 = vpop.f32.mrf.mxu1  ;;  %5113 = vmatpush3.msra.mxu1 %v3758_v59 }
 0x36f   : > { %5114 = vmatprep.subr.mxu1 %v3773_v0 }
 0x370   : > { %v3075_v28 = vpop.f32.mrf.mxu1  ;;  %5115 = vmatpush3.msra.mxu1 %v3757_v47 }
 0x371   : > { %v8411_v34 = vadd.f32 %v3075_v28, %v7974_v40  ;;  %v3852_v40 = vld [vmem:[%s8958_s3 + $0x3f8] sm:$0xff] }
 0x372   : > { %v3077_v31 = vpop.f32.mrf.mxu1  ;;  %5172 = vmatprep.subr.mxu1 %v3852_v40 }
 0x374   : > { %v3080_v19 = vpop.f32.mrf.mxu1 }
 0x375   : > { %v8426_v49 = vadd.f32 %v3080_v19, %v7982_v2  ;;  %v9343_v19 = vld [vmem:[#allocation34_spill] sm:$0xff] }
 0x376   : > { %v3082_v56 = vpop.f32.mrf.mxu1 }
 0x378   : > { %v3085_v25 = vpop.f32.mrf.mxu1 }
 0x379   : > { %v8429_v4 = vadd.f32 %v3085_v25, %v7996_v42  ;;  %v9344_v25 = vld [vmem:[#allocation47_spill] sm:$0xff] }
 0x37a   : > { %v3087_v16 = vpop.f32.mrf.mxu1 }
 0x37c   : > { %v3090_v48 = vpop.f32.mrf.mxu1 }
 0x37d   : > { %v8432_v63 = vadd.f32 %v3090_v48, %v8004_v55 }
 0x37e   : > { %v3092_v35 = vpop.f32.mrf.mxu1 }
 0x380   : > { %v3095_v36 = vpop.f32.mrf.mxu1 }
 0x381   : > { %v8435_v50 = vadd.f32 %v3095_v36, %v8018_v9 }
 0x382   : > { %v3097_v28 = vpop.f32.mrf.mxu1 }
 0x384   : > { %v3100_v52 = vpop.f32.mrf.mxu1 }
 0x385   : > { %v8438_v2 = vadd.f32 %v3100_v52, %v8026_v17 }
 0x386   : > { %v3102_v59 = vpop.f32.mrf.mxu1 }
 0x388   : > { %v3105_v31 = vpop.f32.mrf.mxu1 }
 0x389   : > { %v8441_v42 = vadd.f32 %v3105_v31, %v8044_v3 }
 0x38a   : > { %v3107_v0 = vpop.f32.mrf.mxu1 }
 0x38c   : > { %v3110_v47 = vpop.f32.mrf.mxu1 }
 0x38d   : > { %v8444_v55 = vadd.f32 %v3110_v47, %v9343_v19 }
 0x38e   : > { %v3112_v40 = vpop.f32.mrf.mxu1 }
 0x390   : > { %v3115_v56 = vpop.f32.mrf.mxu1 }
 0x391   : > { %v8447_v9 = vadd.f32 %v3115_v56, %v9344_v25 }
 0x392   : > { %v3117_v16 = vpop.f32.mrf.mxu1 }
 0x394   : > { %v3120_v48 = vpop.f32.mrf.mxu1 }
 0x395   : > { %v8450_v17 = vadd.f32 %v3120_v48, %v8079_v57 }
 0x396   : > { %v3122_v35 = vpop.f32.mrf.mxu1 }
 0x398   : > { %v3125_v36 = vpop.f32.mrf.mxu1 }
 0x399   : > { %v8453_v3 = vadd.f32 %v3125_v36, %v8087_v6 }
 0x39a   : > { %v3127_v28 = vpop.f32.mrf.mxu1 }
 0x39c   : > { %v3130_v52 = vpop.f32.mrf.mxu1 }
 0x39d   : > { %v8456_v59 = vadd.f32 %v3130_v52, %v8099_v13 }
 0x39e   : > { %v3132_v31 = vpop.f32.mrf.mxu1 }
 0x3a0   : > { %v3135_v0 = vpop.f32.mrf.mxu1 }
 0x3a1   : > { %v8459_v47 = vadd.f32 %v3135_v0, %v8103_v20 }
 0x3a2   : > { %v3137_v19 = vpop.f32.mrf.mxu1 }
 0x3a4   : > { %v3140_v40 = vpop.f32.mrf.mxu1 }
 0x3a5   : > { %v8462_v57 = vadd.f32 %v3140_v40, %v8115_v53 }
 0x3a6   : > { %v3142_v56 = vpop.f32.mrf.mxu1 }
 0x3a8   : > { %v3145_v25 = vpop.f32.mrf.mxu1 }
 0x3a9   : > { %v8465_v6 = vadd.f32 %v3145_v25, %v8121_v39 }
 0x3aa   : > { %v3147_v16 = vpop.f32.mrf.mxu1 }
 0x3ac   : > { %v3150_v48 = vpop.f32.mrf.mxu1 }
 0x3ad   : > { %v8468_v13 = vadd.f32 %v3150_v48, %v8130_v61 }
 0x3ae   : > { %v3152_v35 = vpop.f32.mrf.mxu1 }
 0x3b0   : > { %v3155_v36 = vpop.f32.mrf.mxu1 }
 0x3b1   : > { %v8471_v20 = vadd.f32 %v3155_v36, %v8139_v27 }
 0x3b2   : > { %v3157_v28 = vpop.f32.mrf.mxu1 }
 0x3b4   : > { %v3160_v52 = vpop.f32.mrf.mxu1 }
 0x3b5   : > { %v8474_v53 = vadd.f32 %v3160_v52, %v8147_v58 }
 0x3b6   : > { %v3162_v31 = vpop.f32.mrf.mxu1 }
 0x3b8   : > { %v3165_v0 = vpop.f32.mrf.mxu1 }
 0x3b9   : > { %v8477_v39 = vadd.f32 %v3165_v0, %v8163_v26 }
 0x3ba   : > { %v3167_v19 = vpop.f32.mrf.mxu1 }
 0x3bc   : > { %v3170_v40 = vpop.f32.mrf.mxu1 }
 0x3bd   : > { %v8480_v61 = vadd.f32 %v3170_v40, %v8171_v12 }
 0x3be   : > { %v3172_v56 = vpop.f32.mrf.mxu1 }
 0x3c0   : > { %v3175_v25 = vpop.f32.mrf.mxu1 }
 0x3c1   : > { %v8483_v27 = vadd.f32 %v3175_v25, %v8185_v44 }
 0x3c2   : > { %v3177_v16 = vpop.f32.mrf.mxu1 }
 0x3c3   : > { %v9348_v16 = vld [vmem:[#allocation91_spill] sm:$0xff] }
 0x3c4   : > { %v3180_v48 = vpop.f32.mrf.mxu1 }
 0x3c5   : > { %v8486_v58 = vadd.f32 %v3180_v48, %v8199_v30  ;;  %v3266_v48 = vadd.f32 %v9348_v16, %v8272_v21 }
 0x3c6   : > { %v3182_v35 = vpop.f32.mrf.mxu1 }
 0x3c7   : > { %v9349_v35 = vld [vmem:[#allocation96_spill] sm:$0xff] }
 0x3c8   : > { %v3185_v36 = vpop.f32.mrf.mxu1 }
 0x3c9   : > { %v8489_v26 = vadd.f32 %v3185_v36, %v8219_v22  ;;  %v3291_v36 = vadd.f32 %v9349_v35, %v8351_v1  ;;  %v3804_v1 = vld [vmem:[%s8958_s3 + $0x278] sm:$0xff] }
 0x3ca   : > { %v3187_v28 = vpop.f32.mrf.mxu1 }
 0x3cb   : > { %9345 = vst [vmem:[#allocation53_spill] sm:$0xff] %v8489_v26 }
 0x3cc   : > { %v3190_v52 = vpop.f32.mrf.mxu1 }
 0x3cd   : > { %v8492_v12 = vadd.f32 %v3190_v52, %v8235_v5  ;;  %v9350_v5 = vld [vmem:[#allocation95_spill] sm:$0xff] }
 0x3ce   : > { %v3192_v31 = vpop.f32.mrf.mxu1  ;;  %v3286_v28 = vadd.f32 %v9350_v5, %v8342_v46 }
 0x3cf   : > { %9346 = vst [vmem:[#allocation37_spill] sm:$0xff] %v8492_v12  ;;  %v9352_v12 = vld [vmem:[#allocation97_spill] sm:$0xff] }
 0x3d0   : > { %v3195_v0 = vpop.f32.mrf.mxu1  ;;  %v3296_v45 = vadd.f32 %v9352_v12, %v8357_v14  ;;  %v3803_v14 = vld [vmem:[%s8958_s3 + $0x270] sm:$0xff]  ;;  %v9354_v12 = vld [vmem:[#allocation98_spill] sm:$0xff] }
 0x3d1   : > { %v8495_v44 = vadd.f32 %v3195_v0, %v8254_v15  ;;  %v9351_v0 = vld [vmem:[#allocation92_spill] sm:$0xff] }
 0x3d2   : > { %v3197_v19 = vpop.f32.mrf.mxu1 }
 0x3d3   : > { %9347 = vst [vmem:[#allocation55_spill] sm:$0xff] %v8495_v44  ;;  %v3271_v19 = vadd.f32 %v9351_v0, %v8286_v51  ;;  %v9353_v51 = vld [vmem:[#allocation93_spill] sm:$0xff] }
 0x3d4   : > { %v5608_v40 = vpop.f32.mrf.mxu1 }
 0x3d5   : > { %v3516_v21 = vadd.f32 %v5608_v40, %v3271_v19  ;;  %v3301_v40 = vadd.f32 %v9354_v12, %v8372_v29  ;;  %v3817_v29 = vld [vmem:[%s8958_s3 + $0x2e0] sm:$0xff]  ;;  %v3814_v12 = vld [vmem:[%s8958_s3 + $0x2c8] sm:$0xff] }
 0x3d6   : > { %v3510_v56 = vpop.f32.mrf.mxu1 }
 0x3d7   : > { %v3511_v52 = vadd.f32 %v3510_v56, %v3266_v48  ;;  %v3819_v48 = vld [vmem:[%s8958_s3 + $0x2f0] sm:$0xff] }
 0x3d8   : > { %v5611_v30 = vpop.f32.mrf.mxu1 }
 0x3d9   : > { %v3689_v16 = vmax.f32 %v3511_v52, 0.0 }
 0x3da   : > { %v3520_v25 = vpop.f32.mrf.mxu1 }
 0x3dc   : > { %v5614_v22 = vpop.f32.mrf.mxu1 }
 0x3dd   : > { %v3536_v60 = vadd.f32 %v5614_v22, %v3291_v36  ;;  %v3276_v22 = vadd.f32 %v9353_v51, %v8311_v8 }
 0x3de   : > { %v3530_v31 = vpop.f32.mrf.mxu1 }
 0x3df   : > { %v3531_v15 = vadd.f32 %v3530_v31, %v3286_v28  ;;  %v3694_v46 = vmax.f32 %v3536_v60, 0.0  ;;  %v3521_v60 = vadd.f32 %v3520_v25, %v3276_v22  ;;  %v9355_v28 = vld [vmem:[#allocation94_spill] sm:$0xff]  ;;  %v9358_v22 = vld [vmem:[#allocation4_spill] sm:$0xff] }
 0x3e0   : > { %v5617_v44 = vpop.f32.mrf.mxu1  ;;  %v3281_v52 = vadd.f32 %v9355_v28, %v8325_v11  ;;  %v3801_v25 = vld [vmem:[%s8958_s3 + $0x260] sm:$0xff]  ;;  %v3800_v11 = vld [vmem:[%s8958_s3 + $0x258] sm:$0xff] }
 0x3e1   : > { %v3693_v33 = vmax.f32 %v3531_v15, 0.0  ;;  %v3546_v36 = vadd.f32 %v5617_v44, %v3301_v40  ;;  %v3816_v44 = vld [vmem:[%s8958_s3 + $0x2d8] sm:$0xff]  ;;  %v3691_v0 = vmax.f32 %v3521_v60, 0.0 }
 0x3e2   : > { %v3540_v26 = vpop.f32.mrf.mxu1  ;;  %v3526_v15 = vadd.f32 %v5611_v30, %v3281_v52  ;;  %v3799_v30 = vld [vmem:[%s8958_s3 + $0x250] sm:$0xff]  ;;  %v3812_v28 = vld [vmem:[%s8958_s3 + $0x2b8] sm:$0xff] }
 0x3e3   : > { %v3541_v56 = vadd.f32 %v3540_v26, %v3296_v45  ;;  %3938 = vmatprep.mubr.f32.mxu0 %v3693_v33  ;;  %v3818_v45 = vld [vmem:[%s8958_s3 + $0x2e8] sm:$0xff]  ;;  %v3690_v33 = vmax.f32 %v3516_v21, 0.0  ;;  %v3696_v21 = vmax.f32 %v3546_v36, 0.0 }
 0x3e4   : > { %v8515_v35 = vpop.f32.mrf.mxu1  ;;  %3939 = vmatmul.mubr.f32.vlgmr.msra.gmra.mxu0 %v3689_v16  ;;  %v3802_v26 = vld [vmem:[%s8958_s3 + $0x268] sm:$0xff]  ;;  %v3815_v16 = vld [vmem:[%s8958_s3 + $0x2d0] sm:$0xff] }
 0x3e5   : > { %5129 = vmatpush3.msra.mxu0 %v3804_v1  ;;  %3943 = vmatprep.mubr.f32.mxu0 %v3694_v46  ;;  %v3695_v5 = vmax.f32 %v3541_v56, 0.0  ;;  %v9356_v1 = vld [vmem:[#allocation99_spill] sm:$0xff] }
 0x3e6   : > { %5130 = vmatprep.subr.mxu0 %v3819_v48  ;;  %v3550_v8 = vpop.f32.mrf.mxu1  ;;  %v3306_v46 = vadd.f32 %v9356_v1, %v8381_v43  ;;  %v9357_v48 = vld [vmem:[#allocation7_spill] sm:$0xff]  ;;  %v3692_v43 = vmax.f32 %v3526_v15, 0.0 }
 0x3e7   : > { %5131 = vmatpush3.msra.mxu0 %v3803_v14  ;;  %v3331_v51 = vadd.f32 %v9357_v48, %v8429_v4  ;;  %v3326_v14 = vadd.f32 %v9358_v22, %v8426_v49  ;;  %v3813_v4 = vld [vmem:[%s8958_s3 + $0x2c0] sm:$0xff]  ;;  %v9359_v36 = vld [vmem:[#allocation3_spill] sm:$0xff] }
 0x3e8   : > { %5132 = vmatprep.subr.mxu0 %v3818_v45  ;;  %v8533_v31 = vpop.f32.mrf.mxu1  ;;  %3944 = vmatmul.mubr.f32.gmra.mxu0 %v3690_v33  ;;  %v3551_v40 = vadd.f32 %v3550_v8, %v3306_v46  ;;  %v3798_v33 = vld [vmem:[%s8958_s3 + $0x248] sm:$0xff]  ;;  %v3797_v8 = vld [vmem:[%s8958_s3 + $0x240] sm:$0xff]  ;;  %v3851_v46 = vld [vmem:[%s8958_s3 + $0x3f0] sm:$0xff] }
 0x3e9   : > { %5133 = vmatpush3.msra.mxu0 %v3802_v26  ;;  %3948 = vmatprep.mubr.f32.mxu0 %v3695_v5  ;;  %v3311_v5 = vadd.f32 %v9359_v36, %v8390_v41  ;;  %v3811_v41 = vld [vmem:[%s8958_s3 + $0x2b0] sm:$0xff]  ;;  %v9361_v48 = vld [vmem:[#allocation2_spill] sm:$0xff] }
 0x3ea   : > { %5134 = vmatprep.subr.mxu0 %v3817_v29  ;;  %v8541_v19 = vpop.f32.mrf.mxu1  ;;  %v3697_v52 = vmax.f32 %v3551_v40, 0.0 }
 0x3eb   : > { %5135 = vmatpush3.msra.mxu0 %v3801_v25  ;;  %v9360_v25 = vld [vmem:[#allocation6_spill] sm:$0xff] }
 0x3ec   : > { %5136 = vmatprep.subr.mxu0 %v3816_v44  ;;  %v5626_v56 = vpop.f32.mrf.mxu1  ;;  %3949 = vmatmul.mubr.f32.gmra.mxu0 %v3691_v0  ;;  %v3336_v44 = vadd.f32 %v9360_v25, %v8432_v63  ;;  %v3796_v0 = vld [vmem:[%s8958_s3 + $0x238] sm:$0xff] }
 0x3ed   : > { %5137 = vmatpush3.msra.mxu0 %v3800_v11  ;;  %3953 = vmatprep.mubr.f32.mxu0 %v3696_v21  ;;  %v3576_v60 = vadd.f32 %v5626_v56, %v3331_v51  ;;  %v3556_v11 = vadd.f32 %v8515_v35, %v3311_v5  ;;  %v3795_v35 = vld [vmem:[%s8958_s3 + $0x230] sm:$0xff]  ;;  %v3810_v56 = vld [vmem:[%s8958_s3 + $0x2a8] sm:$0xff]  ;;  %v3316_v51 = vadd.f32 %v9361_v48, %v8399_v18  ;;  %v3808_v5 = vld [vmem:[%s8958_s3 + $0x298] sm:$0xff] }
 0x3ee   : > { %5138 = vmatprep.subr.mxu0 %v3815_v16  ;;  %v3570_v45 = vpop.f32.mrf.mxu1  ;;  %v3836_v16 = vld [vmem:[%s8958_s3 + $0x378] sm:$0xff] }
 0x3ef   : > { %v3571_v26 = vadd.f32 %v3570_v45, %v3326_v14  ;;  %5139 = vmatpush3.msra.mxu0 %v3799_v30  ;;  %v3702_v21 = vmax.f32 %v3576_v60, 0.0  ;;  %v3835_v30 = vld [vmem:[%s8958_s3 + $0x370] sm:$0xff]  ;;  %v3794_v14 = vld [vmem:[%s8958_s3 + $0x228] sm:$0xff] }
 0x3f0   : > { %5140 = vmatprep.subr.mxu0 %v3814_v12  ;;  %v5629_v49 = vpop.f32.mrf.mxu1  ;;  %3954 = vmatmul.mubr.f32.gmra.mxu0 %v3692_v43  ;;  %v3698_v12 = vmax.f32 %v3556_v11, 0.0  ;;  %v9362_v43 = vld [vmem:[#allocation9_spill] sm:$0xff]  ;;  %v3850_v45 = vld [vmem:[%s8958_s3 + $0x3e8] sm:$0xff] }
 0x3f1   : > { %v3701_v29 = vmax.f32 %v3571_v26, 0.0  ;;  %5141 = vmatpush3.msra.mxu0 %v3798_v33  ;;  %v3341_v40 = vadd.f32 %v9362_v43, %v8435_v50  ;;  %v3561_v33 = vadd.f32 %v8541_v19, %v3316_v51  ;;  %v3809_v26 = vld [vmem:[%s8958_s3 + $0x2a0] sm:$0xff]  ;;  %v3834_v50 = vld [vmem:[%s8958_s3 + $0x368] sm:$0xff]  ;;  %v9366_v43 = vld [vmem:[#allocation17_spill] sm:$0xff] }
 0x3f2   : > { %5142 = vmatprep.subr.mxu0 %v3813_v4  ;;  %v3580_v15 = vpop.f32.mrf.mxu1  ;;  %v3793_v19 = vld [vmem:[%s8958_s3 + $0x220] sm:$0xff] }
 0x3f3   : > { %5143 = vmatpush3.msra.mxu0 %v3797_v8  ;;  %4023 = vmatprep.mubr.f32.mxu1 %v3701_v29  ;;  %v3581_v1 = vadd.f32 %v3580_v15, %v3336_v44  ;;  %v3586_v4 = vadd.f32 %v5629_v49, %v3341_v40  ;;  %v3849_v8 = vld [vmem:[%s8958_s3 + $0x3e0] sm:$0xff]  ;;  %v9363_v29 = vld [vmem:[#allocation5_spill] sm:$0xff]  ;;  %v3699_v25 = vmax.f32 %v3561_v33, 0.0  ;;  %v3371_v40 = vadd.f32 %v9366_v43, %v8453_v3 }
 0x3f4   : > { %5144 = vmatprep.subr.mxu0 %v3812_v28  ;;  %v8587_v63 = vpop.f32.mrf.mxu1  ;;  %4024 = vmatmul.mubr.f32.vlgmr.msra.gmra.mxu1 %v3697_v52  ;;  %v3833_v49 = vld [vmem:[%s8958_s3 + $0x360] sm:$0xff]  ;;  %v3321_v28 = vadd.f32 %v9363_v29, %v8411_v34  ;;  %v3792_v52 = vld [vmem:[%s8958_s3 + $0x218] sm:$0xff]  ;;  %v3807_v34 = vld [vmem:[%s8958_s3 + $0x290] sm:$0xff] }
 0x3f5   : > { %5145 = vmatpush3.msra.mxu0 %v3796_v0  ;;  %4028 = vmatprep.mubr.f32.mxu1 %v3702_v21  ;;  %v3703_v18 = vmax.f32 %v3581_v1, 0.0  ;;  %v3848_v15 = vld [vmem:[%s8958_s3 + $0x3d8] sm:$0xff]  ;;  %v3704_v11 = vmax.f32 %v3586_v4, 0.0  ;;  %v3789_v3 = vld [vmem:[%s8958_s3 + $0x200] sm:$0xff] }
 0x3f6   : > { %5146 = vmatprep.subr.mxu0 %v3811_v41  ;;  %5173 = vmatpush3.msra.mxu1 %v3836_v16  ;;  %v3590_v22 = vpop.f32.mrf.mxu1  ;;  %v3566_v0 = vadd.f32 %v8533_v31, %v3321_v28  ;;  %v3832_v21 = vld [vmem:[%s8958_s3 + $0x358] sm:$0xff]  ;;  %v9364_v41 = vld [vmem:[#allocation10_spill] sm:$0xff]  ;;  %v3791_v31 = vld [vmem:[%s8958_s3 + $0x210] sm:$0xff] }
 0x3f7   : > { %5147 = vmatpush3.msra.mxu0 %v3795_v35  ;;  %5174 = vmatprep.subr.mxu1 %v3851_v46  ;;  %v3366_v16 = vadd.f32 %v9364_v41, %v8450_v17  ;;  %v3847_v35 = vld [vmem:[%s8958_s3 + $0x3d0] sm:$0xff]  ;;  %v3844_v28 = vld [vmem:[%s8958_s3 + $0x3b8] sm:$0xff] }
 0x3f8   : > { %5148 = vmatprep.subr.mxu0 %v3810_v56  ;;  %5175 = vmatpush3.msra.mxu1 %v3835_v30  ;;  %v8612_v60 = vpop.f32.mrf.mxu1  ;;  %v3806_v56 = vld [vmem:[%s8958_s3 + $0x288] sm:$0xff]  ;;  %v3831_v17 = vld [vmem:[%s8958_s3 + $0x350] sm:$0xff] }
 0x3f9   : > { %4029 = vmatmul.mubr.f32.gmra.mxu1 %v3698_v12  ;;  %5149 = vmatpush3.msra.mxu0 %v3794_v14  ;;  %v9365_v30 = vld [vmem:[#allocation8_spill] sm:$0xff]  ;;  %v3790_v14 = vld [vmem:[%s8958_s3 + $0x208] sm:$0xff]  ;;  %v3700_v12 = vmax.f32 %v3566_v0, 0.0 }
 0x3fa   : > { %5176 = vmatprep.subr.mxu1 %v3850_v45  ;;  %4033 = vmatprep.mubr.f32.mxu1 %v3703_v18  ;;  %v8626_v36 = vpop.f32.mrf.mxu1  ;;  %v3346_v48 = vadd.f32 %v9365_v30, %v8438_v2  ;;  %v3846_v45 = vld [vmem:[%s8958_s3 + $0x3c8] sm:$0xff]  ;;  %v3805_v2 = vld [vmem:[%s8958_s3 + $0x280] sm:$0xff] }
 0x3fb   : > { %5150 = vmatprep.subr.mxu0 %v3809_v26  ;;  %5177 = vmatpush3.msra.mxu1 %v3834_v50  ;;  %v3830_v26 = vld [vmem:[%s8958_s3 + $0x348] sm:$0xff] }
 0x3fc   : > { %5151 = vmatpush3.msra.mxu0 %v3793_v19  ;;  %5178 = vmatprep.subr.mxu1 %v3849_v8  ;;  %v5638_v44 = vpop.f32.mrf.mxu1  ;;  %v3591_v33 = vadd.f32 %v3590_v22, %v3346_v48  ;;  %v3845_v19 = vld [vmem:[%s8958_s3 + $0x3c0] sm:$0xff]  ;;  %v3868_v8 = vld [vmem:[%s8958_s3 + $0x478] sm:$0xff] }
 0x3fd   : > { %5152 = vmatprep.subr.mxu0 %v3808_v5  ;;  %5179 = vmatpush3.msra.mxu1 %v3833_v49  ;;  %v3616_v4 = vadd.f32 %v5638_v44, %v3371_v40  ;;  %v3829_v22 = vld [vmem:[%s8958_s3 + $0x340] sm:$0xff]  ;;  %v9367_v49 = vld [vmem:[#allocation15_spill] sm:$0xff] }
 0x3fe   : > { %4034 = vmatmul.mubr.f32.gmra.mxu1 %v3699_v25  ;;  %5153 = vmatpush3.msra.mxu0 %v3792_v52  ;;  %v3610_v1 = vpop.f32.mrf.mxu1  ;;  %v3351_v29 = vadd.f32 %v9367_v49, %v8441_v42  ;;  %v3705_v52 = vmax.f32 %v3591_v33, 0.0  ;;  %v9368_v25 = vld [vmem:[#allocation13_spill] sm:$0xff]  ;;  %v9371_v33 = vld [vmem:[#allocation14_spill] sm:$0xff]  ;;  %v3862_v49 = vld [vmem:[%s8958_s3 + $0x448] sm:$0xff] }
 0x3ff   : > { %5180 = vmatprep.subr.mxu1 %v3848_v15  ;;  %4038 = vmatprep.mubr.f32.mxu1 %v3704_v11  ;;  %v3611_v46 = vadd.f32 %v3610_v1, %v3366_v16  ;;  %v3376_v44 = vadd.f32 %v9368_v25, %v8456_v59  ;;  %v3710_v11 = vmax.f32 %v3616_v4, 0.0  ;;  %v3828_v42 = vld [vmem:[%s8958_s3 + $0x338] sm:$0xff]  ;;  %v3843_v59 = vld [vmem:[%s8958_s3 + $0x3b0] sm:$0xff]  ;;  %v3866_v16 = vld [vmem:[%s8958_s3 + $0x468] sm:$0xff]  ;;  %v3411_v25 = vadd.f32 %v8226_v62, %v8477_v39 }
 0x400   : > { %5154 = vmatprep.subr.mxu0 %v3807_v34  ;;  %5181 = vmatpush3.msra.mxu1 %v3832_v21  ;;  %v8665_v51 = vpop.f32.mrf.mxu1  ;;  %v3596_v0 = vadd.f32 %v8587_v63, %v3351_v29  ;;  %v3867_v34 = vld [vmem:[%s8958_s3 + $0x470] sm:$0xff]  ;;  %v9369_v1 = vld [vmem:[#allocation11_spill] sm:$0xff]  ;;  %v3386_v29 = vadd.f32 %v8157_v38, %v8462_v57  ;;  %v3837_v62 = vld [vmem:[%s8958_s3 + $0x380] sm:$0xff] }
 0x401   : > { %5155 = vmatpush3.msra.mxu0 %v3791_v31  ;;  %5182 = vmatprep.subr.mxu1 %v3847_v35  ;;  %v3709_v18 = vmax.f32 %v3611_v46, 0.0  ;;  %v3827_v63 = vld [vmem:[%s8958_s3 + $0x330] sm:$0xff]  ;;  %v3356_v31 = vadd.f32 %v9369_v1, %v8444_v55  ;;  %v3842_v35 = vld [vmem:[%s8958_s3 + $0x3a8] sm:$0xff] }
 0x402   : > { %5156 = vmatprep.subr.mxu0 %v3806_v56  ;;  %5183 = vmatpush3.msra.mxu1 %v3831_v17  ;;  %v3620_v50 = vpop.f32.mrf.mxu1  ;;  %v3706_v56 = vmax.f32 %v3596_v0, 0.0  ;;  %v9370_v17 = vld [vmem:[#allocation16_spill] sm:$0xff]  ;;  %v3826_v55 = vld [vmem:[%s8958_s3 + $0x328] sm:$0xff] }
 0x403   : > { %4039 = vmatmul.mubr.f32.gmra.mxu1 %v3700_v12  ;;  %5157 = vmatpush3.msra.mxu0 %v3790_v14  ;;  %v3621_v21 = vadd.f32 %v3620_v50, %v3376_v44  ;;  %v3381_v30 = vadd.f32 %v9370_v17, %v8459_v47  ;;  %v3601_v48 = vadd.f32 %v8626_v36, %v3356_v31  ;;  %v3865_v12 = vld [vmem:[%s8958_s3 + $0x460] sm:$0xff]  ;;  %v3822_v38 = vld [vmem:[%s8958_s3 + $0x308] sm:$0xff] }
 0x404   : > { %5184 = vmatprep.subr.mxu1 %v3846_v45  ;;  %5158 = vmatprep.subr.mxu0 %v3805_v2  ;;  %v8693_v5 = vpop.f32.mrf.mxu1  ;;  %v3841_v47 = vld [vmem:[%s8958_s3 + $0x3a0] sm:$0xff]  ;;  %v3864_v45 = vld [vmem:[%s8958_s3 + $0x458] sm:$0xff]  ;;  %v3426_v44 = vadd.f32 %v8276_v37, %v8486_v58 }
 0x405   : > { %5185 = vmatpush3.msra.mxu1 %v3830_v26  ;;  %5159 = vmatpush3.msra.mxu0 %v3789_v3  ;;  %v3711_v14 = vmax.f32 %v3621_v21, 0.0  ;;  %v3626_v40 = vadd.f32 %v8665_v51, %v3381_v30  ;;  %v3825_v36 = vld [vmem:[%s8958_s3 + $0x320] sm:$0xff]  ;;  %v3361_v51 = vadd.f32 %v9371_v33, %v8447_v9  ;;  %v3707_v26 = vmax.f32 %v3601_v48, 0.0  ;;  %v3824_v9 = vld [vmem:[%s8958_s3 + $0x318] sm:$0xff] }
 0x406   : > { %5186 = vmatprep.subr.mxu1 %v3845_v19  ;;  %4108 = vmatprep.mubr.f32.mxu0 %v3709_v18  ;;  %v8702_v15 = vpop.f32.mrf.mxu1  ;;  %v3840_v18 = vld [vmem:[%s8958_s3 + $0x398] sm:$0xff]  ;;  %v3406_v3 = vadd.f32 %v8205_v23, %v8474_v53  ;;  %v3857_v17 = vld [vmem:[%s8958_s3 + $0x420] sm:$0xff]  ;;  %v3401_v48 = vadd.f32 %v8194_v54, %v8471_v20 }
 0x407   : > { %5187 = vmatpush3.msra.mxu1 %v3829_v22  ;;  %5660 = vmatprep.subr.mxu0 %v3868_v8  ;;  %v3606_v4 = vadd.f32 %v8612_v60, %v3361_v51  ;;  %v3712_v19 = vmax.f32 %v3626_v40, 0.0  ;;  %v3863_v22 = vld [vmem:[%s8958_s3 + $0x450] sm:$0xff]  ;;  %v3631_v57 = vadd.f32 %v8702_v15, %v3386_v29  ;;  %v3860_v21 = vld [vmem:[%s8958_s3 + $0x438] sm:$0xff]  ;;  %v3853_v51 = vld [vmem:[%s8958_s3 + $0x400] sm:$0xff] }
 0x408   : > { %4109 = vmatmul.mubr.f32.vlgmr.msra.gmra.mxu0 %v3705_v52  ;;  %5188 = vmatprep.subr.mxu1 %v3844_v28  ;;  %v8714_v41 = vpop.f32.mrf.mxu1  ;;  %v3823_v60 = vld [vmem:[%s8958_s3 + $0x310] sm:$0xff]  ;;  %v3838_v28 = vld [vmem:[%s8958_s3 + $0x388] sm:$0xff]  ;;  %v9374_v40 = vld [vmem:[#allocation37_spill] sm:$0xff] }
 0x409   : > { %5661 = vmatpush3.msra.mxu0 %v3868_v8  ;;  %4113 = vmatprep.mubr.f32.mxu0 %v3710_v11  ;;  %v3839_v8 = vld [vmem:[%s8958_s3 + $0x390] sm:$0xff]  ;;  %v3708_v0 = vmax.f32 %v3606_v4, 0.0  ;;  %v3861_v11 = vld [vmem:[%s8958_s3 + $0x440] sm:$0xff]  ;;  %v4312_v29 = vld [vmem:[%s8959_s4 + $0x48] sm:$0xff] }
 0x40a   : > { %5189 = vmatpush3.msra.mxu1 %v3828_v42  ;;  %5662 = vmatprep.subr.mxu0 %v3867_v34  ;;  %v8727_v46 = vpop.f32.mrf.mxu1  ;;  %v3821_v42 = vld [vmem:[%s8958_s3 + $0x300] sm:$0xff] }
 0x40b   : > { %5190 = vmatprep.subr.mxu1 %v3843_v59  ;;  %5663 = vmatpush3.msra.mxu0 %v3867_v34  ;;  %v3391_v34 = vadd.f32 %v8166_v7, %v8465_v6  ;;  %v3416_v59 = vadd.f32 %v8239_v10, %v8480_v61  ;;  %v3859_v7 = vld [vmem:[%s8958_s3 + $0x430] sm:$0xff]  ;;  %v3858_v10 = vld [vmem:[%s8958_s3 + $0x428] sm:$0xff]  ;;  %v3421_v61 = vadd.f32 %v8261_v32, %v8483_v27  ;;  %v3856_v32 = vld [vmem:[%s8958_s3 + $0x418] sm:$0xff] }
 0x40c   : > { %5191 = vmatpush3.msra.mxu1 %v3827_v63  ;;  %5664 = vmatprep.subr.mxu0 %v3866_v16  ;;  %v5650_v43 = vpop.f32.mrf.mxu1  ;;  %v3646_v27 = vadd.f32 %v8714_v41, %v3401_v48  ;;  %v3854_v41 = vld [vmem:[%s8958_s3 + $0x408] sm:$0xff] }
 0x40d   : > { %4114 = vmatmul.mubr.f32.gmra.mxu0 %v3706_v56  ;;  %5192 = vmatprep.subr.mxu1 %v3842_v35  ;;  %v3656_v39 = vadd.f32 %v5650_v43, %v3411_v25  ;;  %v3636_v63 = vadd.f32 %v8693_v5, %v3391_v34  ;;  %v3396_v35 = vadd.f32 %v8177_v24, %v8468_v13  ;;  %v4309_v25 = vld [vmem:[%s8959_s4 + $0x30] sm:$0xff] }
 0x40e   : > { %5665 = vmatpush3.msra.mxu0 %v3866_v16  ;;  %4118 = vmatprep.mubr.f32.mxu0 %v3711_v14  ;;  %v3650_v2 = vpop.f32.mrf.mxu1  ;;  %v3713_v16 = vmax.f32 %v3631_v57, 0.0  ;;  %v3855_v14 = vld [vmem:[%s8958_s3 + $0x410] sm:$0xff] }
 0x40f   : > { %5193 = vmatpush3.msra.mxu1 %v3826_v55  ;;  %5666 = vmatprep.subr.mxu0 %v3865_v12  ;;  %v3651_v53 = vadd.f32 %v3650_v2, %v3406_v3  ;;  %v3718_v1 = vmax.f32 %v3656_v39, 0.0  ;;  %v3714_v5 = vmax.f32 %v3636_v63, 0.0  ;;  %v3641_v56 = vadd.f32 %v8727_v46, %v3396_v35  ;;  %v9372_v55 = vld [vmem:[#allocation53_spill] sm:$0xff]  ;;  %v4305_v57 = vld [vmem:[%s8959_s4 + $0x10] sm:$0xff] }
 0x410   : > { %5194 = vmatprep.subr.mxu1 %v3841_v47  ;;  %5667 = vmatpush3.msra.mxu0 %v3865_v12  ;;  %v8753_v50 = vpop.f32.mrf.mxu1  ;;  %v9373_v12 = vld [vmem:[#allocation33_spill] sm:$0xff]  ;;  %v9375_v47 = vld [vmem:[#allocation50_spill] sm:$0xff]  ;;  %v3716_v2 = vmax.f32 %v3646_v27, 0.0  ;;  %v4427_v39 = vld [vmem:[%s8960_s5 + $0x70] sm:$0xff] }
 0x411   : > { %5195 = vmatpush3.msra.mxu1 %v3825_v36  ;;  %5668 = vmatprep.subr.mxu0 %v3864_v45  ;;  %v3717_v58 = vmax.f32 %v3651_v53, 0.0  ;;  %v3666_v24 = vadd.f32 %v8753_v50, %v3421_v61  ;;  %v3715_v46 = vmax.f32 %v3641_v56, 0.0  ;;  %v3431_v43 = vadd.f32 %v9373_v12, %v9372_v55  ;;  %v4315_v53 = vld [vmem:[%s8959_s4 + $0x60] sm:$0xff]  ;;  %v4423_v34 = vld [vmem:[%s8960_s5 + $0x50] sm:$0xff] }
 0x412   : > { %4119 = vmatmul.mubr.f32.gmra.mxu0 %v3707_v26  ;;  %5196 = vmatprep.subr.mxu1 %v3840_v18  ;;  %v3660_v23 = vpop.f32.mrf.mxu1  ;;  %v3436_v36 = vadd.f32 %v9375_v47, %v9374_v40  ;;  %v9376_v18 = vld [vmem:[#allocation55_spill] sm:$0xff]  ;;  %v9377_v26 = vld [vmem:[#allocation38_spill] sm:$0xff] }
 0x413   : > { %5669 = vmatpush3.msra.mxu0 %v3864_v45  ;;  %4123 = vmatprep.mubr.f32.mxu0 %v3712_v19  ;;  %v3661_v31 = vadd.f32 %v3660_v23, %v3416_v59  ;;  %v3720_v54 = vmax.f32 %v3666_v24, 0.0  ;;  %v3441_v50 = vadd.f32 %v9377_v26, %v9376_v18  ;;  %v4316_v23 = vld [vmem:[%s8959_s4 + $0x68] sm:$0xff] }
 0x414   : > { %5197 = vmatpush3.msra.mxu1 %v3824_v9  ;;  %5670 = vmatprep.subr.mxu0 %v3863_v22  ;;  %v8778_v52 = vpop.f32.mrf.mxu1 }
 0x415   : > { %5198 = vmatprep.subr.mxu1 %v3839_v8  ;;  %5671 = vmatpush3.msra.mxu0 %v3863_v22  ;;  %v3719_v13 = vmax.f32 %v3661_v31, 0.0  ;;  %v3676_v45 = vadd.f32 %v8778_v52, %v3431_v43  ;;  %v4318_v22 = vld [vmem:[%s8959_s4 + $0x78] sm:$0xff]  ;;  %v4317_v8 = vld [vmem:[%s8959_s4 + $0x70] sm:$0xff] }
 0x416   : > { %5199 = vmatpush3.msra.mxu1 %v3823_v60  ;;  %5672 = vmatprep.subr.mxu0 %v3862_v49  ;;  %v3670_v37 = vpop.f32.mrf.mxu1  ;;  %v4314_v60 = vld [vmem:[%s8959_s4 + $0x58] sm:$0xff] }
 0x417   : > { %4124 = vmatmul.mubr.f32.gmra.mxu0 %v3708_v0  ;;  %5200 = vmatprep.subr.mxu1 %v3838_v28  ;;  %v3671_v15 = vadd.f32 %v3670_v37, %v3426_v44  ;;  %v3722_v3 = vmax.f32 %v3676_v45, 0.0  ;;  %v4311_v28 = vld [vmem:[%s8959_s4 + $0x40] sm:$0xff]  ;;  %v4310_v52 = vld [vmem:[%s8959_s4 + $0x38] sm:$0xff]  ;;  %v4308_v44 = vld [vmem:[%s8959_s4 + $0x28] sm:$0xff] }
 0x418   : > { %5673 = vmatpush3.msra.mxu0 %v3862_v49  ;;  %5201 = vmatpush3.msra.mxu1 %v3822_v38  ;;  %v5659_v30 = vpop.f32.mrf.mxu1  ;;  %v4313_v49 = vld [vmem:[%s8959_s4 + $0x50] sm:$0xff]  ;;  %v4307_v0 = vld [vmem:[%s8959_s4 + $0x20] sm:$0xff]  ;;  %v4306_v38 = vld [vmem:[%s8959_s4 + $0x18] sm:$0xff] }
 0x419   : > { %5674 = vmatprep.subr.mxu0 %v3861_v11  ;;  %5202 = vmatprep.subr.mxu1 %v3837_v62  ;;  %v3721_v6 = vmax.f32 %v3671_v15, 0.0  ;;  %v3686_v4 = vadd.f32 %v5659_v30, %v3441_v50  ;;  %v4303_v62 = vld [vmem:[%s8959_s4] sm:$0xff]  ;;  %v4428_v37 = vld [vmem:[%s8960_s5 + $0x78] sm:$0xff] }
 0x41a   : > { %5675 = vmatpush3.msra.mxu0 %v3861_v11  ;;  %5203 = vmatpush3.msra.mxu1 %v3821_v42  ;;  %v3680_v20 = vpop.f32.mrf.mxu1  ;;  %v4304_v11 = vld [vmem:[%s8959_s4 + $0x8] sm:$0xff]  ;;  %v4425_v42 = vld [vmem:[%s8960_s5 + $0x60] sm:$0xff]  ;;  %v4424_v15 = vld [vmem:[%s8960_s5 + $0x58] sm:$0xff] }
 0x41b   : > { %4193 = vmatprep.mubr.f32.mxu1 %v3717_v58  ;;  %5676 = vmatprep.subr.mxu0 %v3860_v21  ;;  %v3681_v33 = vadd.f32 %v3680_v20, %v3436_v36  ;;  %v3724_v9 = vmax.f32 %v3686_v4, 0.0  ;;  %v4426_v58 = vld [vmem:[%s8960_s5 + $0x68] sm:$0xff]  ;;  %v4785_v36 = vld [vmem:[%s8961_s6 + $0x2] ss:$0 sm:$0xff] }
 0x41c   : > { %4194 = vmatmul.mubr.f32.vlgmr.msra.gmra.mxu1 %v3713_v16  ;;  %5677 = vmatpush3.msra.mxu0 %v3860_v21 }
 0x41d   : > { %4198 = vmatprep.mubr.f32.mxu1 %v3718_v1  ;;  %5678 = vmatprep.subr.mxu0 %v3859_v7  ;;  %v3723_v19 = vmax.f32 %v3681_v33, 0.0 }
 0x41e   : > { %5679 = vmatpush3.msra.mxu0 %v3859_v7  ;;  %5692 = vmatprep.mubr.f32.mxu0 %v3721_v6 }
 0x41f   : > { %5680 = vmatprep.subr.mxu0 %v3858_v10  ;;  %5698 = vmatprep.subr.mxu1 %v4318_v22 }
 0x420   : > { %4199 = vmatmul.mubr.f32.gmra.mxu1 %v3714_v5  ;;  %5681 = vmatpush3.msra.mxu0 %v3858_v10 }
 0x421   : > { %4203 = vmatprep.mubr.f32.mxu1 %v3719_v13  ;;  %5682 = vmatprep.subr.mxu0 %v3857_v17 }
 0x422   : > { %5683 = vmatpush3.msra.mxu0 %v3857_v17  ;;  %5699 = vmatpush3.msra.mxu1 %v4318_v22 }
 0x423   : > { %5684 = vmatprep.subr.mxu0 %v3856_v32  ;;  %5700 = vmatprep.subr.mxu1 %v4317_v8 }
 0x424   : > { %4204 = vmatmul.mubr.f32.gmra.mxu1 %v3715_v46  ;;  %5685 = vmatpush3.msra.mxu0 %v3856_v32 }
 0x425   : > { %4208 = vmatprep.mubr.f32.mxu1 %v3720_v54  ;;  %5686 = vmatprep.subr.mxu0 %v3855_v14 }
 0x426   : > { %5687 = vmatpush3.msra.mxu0 %v3855_v14  ;;  %5701 = vmatpush3.msra.mxu1 %v4317_v8 }
 0x427   : > { %5688 = vmatprep.subr.mxu0 %v3854_v41  ;;  %5702 = vmatprep.subr.mxu1 %v4316_v23 }
 0x428   : > { %4209 = vmatmul.mubr.f32.gmra.mxu1 %v3716_v2  ;;  %5689 = vmatpush3.msra.mxu0 %v3854_v41 }
 0x429   : > { %5690 = vmatprep.subr.mxu0 %v3853_v51  ;;  %5703 = vmatpush3.msra.mxu1 %v4316_v23 }
 0x42a   : > { %5691 = vmatpush3.msra.mxu0 %v3853_v51  ;;  %5704 = vmatprep.subr.mxu1 %v4315_v53 }
 0x42b   : > { %5693 = vmatmul.mubr.f32.vlgmr.msra.gmra.mxu0 %v3722_v3  ;;  %5705 = vmatpush3.msra.mxu1 %v4315_v53 }
 0x42c   : > { %5695 = vmatprep.mubr.f32.mxu0 %v3723_v19  ;;  %5706 = vmatprep.subr.mxu1 %v4314_v60 }
 0x42d   : > { %5707 = vmatpush3.msra.mxu1 %v4314_v60  ;;  %5736 = vmatprep.subr.mxu0 %v4428_v37 }
 0x42e   : > { %5708 = vmatprep.subr.mxu1 %v4313_v49  ;;  %5737 = vmatpush3.msra.mxu0 %v4428_v37 }
 0x42f   : > { %5696 = vmatmul.mubr.f32.gmra.mxu0 %v3724_v9  ;;  %5709 = vmatpush3.msra.mxu1 %v4313_v49 }
 0x430   : > { %5710 = vmatprep.subr.mxu1 %v4312_v29  ;;  %5738 = vmatprep.subr.mxu0 %v4427_v39 }
 0x431   : > { %5711 = vmatpush3.msra.mxu1 %v4312_v29  ;;  %5739 = vmatpush3.msra.mxu0 %v4427_v39 }
 0x432   : > { %5712 = vmatprep.subr.mxu1 %v4311_v28  ;;  %5740 = vmatprep.subr.mxu0 %v4426_v58 }
 0x433   : > { %5713 = vmatpush3.msra.mxu1 %v4311_v28  ;;  %5741 = vmatpush3.msra.mxu0 %v4426_v58 }
 0x434   : > { %5714 = vmatprep.subr.mxu1 %v4310_v52  ;;  %5742 = vmatprep.subr.mxu0 %v4425_v42 }
 0x435   : > { %5715 = vmatpush3.msra.mxu1 %v4310_v52  ;;  %5743 = vmatpush3.msra.mxu0 %v4425_v42 }
 0x436   : > { %5716 = vmatprep.subr.mxu1 %v4309_v25  ;;  %5744 = vmatprep.subr.mxu0 %v4424_v15 }
 0x437   : > { %5717 = vmatpush3.msra.mxu1 %v4309_v25  ;;  %5745 = vmatpush3.msra.mxu0 %v4424_v15 }
 0x438   : > { %5718 = vmatprep.subr.mxu1 %v4308_v44  ;;  %5746 = vmatprep.subr.mxu0 %v4423_v34 }
 0x439   : > { %5719 = vmatpush3.msra.mxu1 %v4308_v44  ;;  %5747 = vmatpush3.msra.mxu0 %v4423_v34 }
 0x43a   : > { %5720 = vmatprep.subr.mxu1 %v4307_v0 }
 0x43b   : > { %5721 = vmatpush3.msra.mxu1 %v4307_v0 }
 0x43c   : > { %5722 = vmatprep.subr.mxu1 %v4306_v38 }
 0x43d   : > { %5723 = vmatpush3.msra.mxu1 %v4306_v38 }
 0x43e   : > { %5724 = vmatprep.subr.mxu1 %v4305_v57 }
 0x43f   : > { %5725 = vmatpush3.msra.mxu1 %v4305_v57 }
 0x440   : > { %5726 = vmatprep.subr.mxu1 %v4304_v11 }
 0x441   : > { %5727 = vmatpush3.msra.mxu1 %v4304_v11 }
 0x442   : > { %5728 = vmatprep.subr.mxu1 %v4303_v62 }
 0x443   : > { %5729 = vmatpush3.msra.mxu1 %v4303_v62 }
 0x4a4   : > { %v5072_v21 = vpop.f32.mrf.mxu0 }
 0x4a6   : > { %v5073_v59 = vpop.f32.mrf.mxu0 }
 0x4a7   : > { %v5074_v40 = vadd.f32 %v5073_v59, %v5072_v21 }
 0x4a8   : > { %v5075_v63 = vpop.f32.mrf.mxu0 }
 0x4a9   : > { %v3941_v3 = vadd.f32 %v5074_v40, %v4785_v36 }
 0x4aa   : > { %v5076_v16 = vpop.f32.mrf.mxu0 }
 0x4ab   : > { %v5077_v20 = vadd.f32 %v5076_v16, %v5075_v63 }
 0x4ac   : > { %v5078_v7 = vpop.f32.mrf.mxu0 }
 0x4ad   : > { %v3946_v18 = vadd.f32 %v5077_v20, %v4785_v36 }
 0x4ae   : > { %v5079_v6 = vpop.f32.mrf.mxu0 }
 0x4af   : > { %v5080_v4 = vadd.f32 %v5079_v6, %v5078_v7 }
 0x4b0   : > { %v5081_v31 = vpop.f32.mrf.mxu0 }
 0x4b1   : > { %v3951_v44 = vadd.f32 %v5080_v4, %v4785_v36 }
 0x4b2   : > { %v5082_v10 = vpop.f32.mrf.mxu0 }
 0x4b3   : > { %v5083_v41 = vadd.f32 %v5082_v10, %v5081_v31 }
 0x4b4   : > { %v5116_v1 = vpop.f32.mrf.mxu1 }
 0x4b5   : > { %v3956_v22 = vadd.f32 %v5083_v41, %v4785_v36 }
 0x4b6   : > { %v5117_v35 = vpop.f32.mrf.mxu1 }
 0x4b7   : > { %v5118_v2 = vadd.f32 %v5117_v35, %v5116_v1 }
 0x4b9   : > { %v5119_v61 = vpop.f32.mrf.mxu1  ;;  %v4026_v60 = vadd.f32 %v5118_v2, %v3941_v3 }
 0x4bb   : > { %v5120_v56 = vpop.f32.mrf.mxu1 }
 0x4bc   : > { %v5121_v45 = vadd.f32 %v5120_v56, %v5119_v61 }
 0x4be   : > { %v5122_v24 = vpop.f32.mrf.mxu1  ;;  %v4031_v8 = vadd.f32 %v5121_v45, %v3946_v18 }
 0x4c0   : > { %v5123_v30 = vpop.f32.mrf.mxu1 }
 0x4c1   : > { %v5124_v49 = vadd.f32 %v5123_v30, %v5122_v24  ;;  %v4421_v24 = vld [vmem:[%s8960_s5 + $0x40] sm:$0xff]  ;;  %v4419_v30 = vld [vmem:[%s8960_s5 + $0x30] sm:$0xff] }
 0x4c3   : > { %v5125_v32 = vpop.f32.mrf.mxu1  ;;  %v4036_v58 = vadd.f32 %v5124_v49, %v3951_v44 }
 0x4c5   : > { %v5126_v46 = vpop.f32.mrf.mxu1 }
 0x4c6   : > { %v5127_v26 = vadd.f32 %v5126_v46, %v5125_v32  ;;  %v4417_v32 = vld [vmem:[%s8960_s5 + $0x20] sm:$0xff]  ;;  %v4415_v46 = vld [vmem:[%s8960_s5 + $0x10] sm:$0xff] }
 0x4c8   : > { %v5160_v5 = vpop.f32.mrf.mxu0  ;;  %v4041_v52 = vadd.f32 %v5127_v26, %v3956_v22 }
 0x4ca   : > { %v5161_v17 = vpop.f32.mrf.mxu0 }
 0x4cb   : > { %v5162_v19 = vadd.f32 %v5161_v17, %v5160_v5  ;;  %v4422_v17 = vld [vmem:[%s8960_s5 + $0x48] sm:$0xff] }
 0x4cc   : > { %5748 = vmatprep.subr.mxu0 %v4422_v17 }
 0x4cd   : > { %v5163_v13 = vpop.f32.mrf.mxu0  ;;  %v4111_v0 = vadd.f32 %v5162_v19, %v4026_v60  ;;  %5749 = vmatpush3.msra.mxu0 %v4422_v17 }
 0x4ce   : > { %5750 = vmatprep.subr.mxu0 %v4421_v24 }
 0x4cf   : > { %v5164_v48 = vpop.f32.mrf.mxu0  ;;  %5751 = vmatpush3.msra.mxu0 %v4421_v24 }
 0x4d0   : > { %v5165_v50 = vadd.f32 %v5164_v48, %v5163_v13  ;;  %v4420_v13 = vld [vmem:[%s8960_s5 + $0x38] sm:$0xff]  ;;  %v4418_v48 = vld [vmem:[%s8960_s5 + $0x28] sm:$0xff] }
 0x4d1   : > { %5752 = vmatprep.subr.mxu0 %v4420_v13 }
 0x4d2   : > { %v5166_v27 = vpop.f32.mrf.mxu0  ;;  %v4116_v25 = vadd.f32 %v5165_v50, %v4031_v8  ;;  %5753 = vmatpush3.msra.mxu0 %v4420_v13  ;;  %v4787_v50 = vld [vmem:[%s8961_s6 + $0x4] ss:$0 sm:$0xff] }
 0x4d3   : > { %5754 = vmatprep.subr.mxu0 %v4419_v30 }
 0x4d4   : > { %v5167_v14 = vpop.f32.mrf.mxu0  ;;  %5755 = vmatpush3.msra.mxu0 %v4419_v30 }
 0x4d5   : > { %v5168_v38 = vadd.f32 %v5167_v14, %v5166_v27  ;;  %5756 = vmatprep.subr.mxu0 %v4418_v48  ;;  %v4416_v27 = vld [vmem:[%s8960_s5 + $0x18] sm:$0xff]  ;;  %v4414_v14 = vld [vmem:[%s8960_s5 + $0x8] sm:$0xff] }
 0x4d6   : > { %5757 = vmatpush3.msra.mxu0 %v4418_v48 }
 0x4d7   : > { %v5169_v43 = vpop.f32.mrf.mxu0  ;;  %v4121_v63 = vadd.f32 %v5168_v38, %v4036_v58  ;;  %5758 = vmatprep.subr.mxu0 %v4417_v32 }
 0x4d8   : > { %5759 = vmatpush3.msra.mxu0 %v4417_v32 }
 0x4d9   : > { %v5170_v33 = vpop.f32.mrf.mxu0  ;;  %5760 = vmatprep.subr.mxu0 %v4416_v27 }
 0x4da   : > { %v5171_v23 = vadd.f32 %v5170_v33, %v5169_v43  ;;  %5761 = vmatpush3.msra.mxu0 %v4416_v27 }
 0x4db   : > { %5762 = vmatprep.subr.mxu0 %v4415_v46 }
 0x4dc   : > { %v5204_v55 = vpop.f32.mrf.mxu1  ;;  %v4126_v11 = vadd.f32 %v5171_v23, %v4041_v52  ;;  %5763 = vmatpush3.msra.mxu0 %v4415_v46 }
 0x4dd   : > { %5764 = vmatprep.subr.mxu0 %v4414_v14 }
 0x4de   : > { %v5205_v12 = vpop.f32.mrf.mxu1  ;;  %5765 = vmatpush3.msra.mxu0 %v4414_v14 }
 0x4df   : > { %v5206_v29 = vadd.f32 %v5205_v12, %v5204_v55  ;;  %v4413_v55 = vld [vmem:[%s8960_s5] sm:$0xff] }
 0x4e0   : > { %v5207_v54 = vpop.f32.mrf.mxu1  ;;  %5766 = vmatprep.subr.mxu0 %v4413_v55  ;;  %v4786_v12 = vld [vmem:[%s8961_s6 + $0x3] ss:$0 sm:$0xff] }
 0x4e1   : > { %v4196_v15 = vadd.f32 %v5206_v29, %v4111_v0  ;;  %5767 = vmatpush3.msra.mxu0 %v4413_v55 }
 0x4e2   : > { %v5208_v47 = vpop.f32.mrf.mxu1 }
 0x4e3   : > { %v5209_v53 = vadd.f32 %v5208_v47, %v5207_v54 }
 0x4e4   : > { %v5210_v51 = vpop.f32.mrf.mxu1 }
 0x4e5   : > { %v4201_v37 = vadd.f32 %v5209_v53, %v4116_v25 }
 0x4e6   : > { %v5211_v9 = vpop.f32.mrf.mxu1 }
 0x4e7   : > { %v5212_v42 = vadd.f32 %v5211_v9, %v5210_v51 }
 0x4e8   : > { %v5213_v28 = vpop.f32.mrf.mxu1 }
 0x4e9   : > { %v4206_v1 = vadd.f32 %v5212_v42, %v4121_v63 }
 0x4ea   : > { %v5214_v57 = vpop.f32.mrf.mxu1 }
 0x4eb   : > { %v5215_v62 = vadd.f32 %v5214_v57, %v5213_v28  ;;  %v5694_v39 = vpop.f32.mrf.mxu0 }
 0x4ec   : > { %v4286_v34 = vadd.f32 %v5694_v39, %v4201_v37 }
 0x4ed   : > { %v4280_v21 = vpop.f32.mrf.mxu0  ;;  %v4211_v59 = vadd.f32 %v5215_v62, %v4126_v11 }
 0x4ee   : > { %v4281_v16 = vadd.f32 %v4280_v21, %v4196_v15  ;;  %v4300_v31 = vmax.f32 %v4286_v34, 0.0 }
 0x4ef   : > { %v5697_v7 = vpop.f32.mrf.mxu0 }
 0x4f0   : > { %v4299_v6 = vmax.f32 %v4281_v16, 0.0  ;;  %v4296_v35 = vadd.f32 %v5697_v7, %v4211_v59 }
 0x4f1   : > { %v4290_v10 = vpop.f32.mrf.mxu0 }
 0x4f2   : > { %v4291_v61 = vadd.f32 %v4290_v10, %v4206_v1  ;;  %5730 = vmatprep.mubr.f32.mxu1 %v4299_v6  ;;  %v4302_v56 = vmax.f32 %v4296_v35, 0.0 }
 0x4f3   : > { %5731 = vmatmul.mubr.f32.vlgmr.msra.gmra.mxu1 %v4300_v31 }
 0x4f4   : > { %v4301_v5 = vmax.f32 %v4291_v61, 0.0 }
 0x4f6   : > { %5733 = vmatprep.mubr.f32.mxu1 %v4301_v5 }
 0x4f7   : > { %5734 = vmatmul.mubr.f32.gmra.mxu1 %v4302_v56 }
 0x5b3   : > { %v5732_v43 = vpop.f32.mrf.mxu1 }
 0x5b4   : > { %v4396_v54 = vadd.f32 %v5732_v43, %v4786_v12 }
 0x5b5   : > { %v4390_v20 = vpop.f32.mrf.mxu1 }
 0x5b6   : > { %v4391_v40 = vadd.f32 %v4786_v12, %v4390_v20 }
 0x5b7   : > { %v5735_v47 = vpop.f32.mrf.mxu1 }
 0x5b8   : > { %5783 = vtanh.f32 %v4391_v40  ;;  %v4406_v36 = vadd.f32 %v5735_v47, %v4786_v12 }
 0x5b9   : > { %5785 = vtanh.f32 %v4396_v54  ;;  %v4400_v41 = vpop.f32.mrf.mxu1 }
 0x5ba   : > { %v4401_v45 = vadd.f32 %v4786_v12, %v4400_v41 }
 0x5bc   : > { %5787 = vtanh.f32 %v4401_v45 }
 0x5bd   : > { %5789 = vtanh.f32 %v4406_v36 }
 0x5c5   : > { %v5784_v2 = vpop.eup %5783 }
 0x5c6   : > { %v5786_v33 = vpop.eup %5785  ;;  %5768 = vmatprep.mubr.f32.mxu0 %v5784_v2 }
 0x5c7   : > { %5769 = vmatmul.mubr.f32.vlgmr.msra.gmra.mxu0 %v5786_v33 }
 0x5c9   : > { %v5788_v51 = vpop.eup %5787 }
 0x5ca   : > { %v5790_v18 = vpop.eup %5789  ;;  %5771 = vmatprep.mubr.f32.mxu0 %v5788_v51 }
 0x5cb   : > { %5772 = vmatmul.mubr.f32.gmra.mxu0 %v5790_v18 }
 0x687   : > { %v5770_v26 = vpop.f32.mrf.mxu0 }
 0x688   : > { %v4506_v19 = vadd.f32 %v5770_v26, %v4787_v50 }
 0x689   : > { %v4500_v3 = vpop.f32.mrf.mxu0 }
 0x68a   : > { %v4501_v4 = vadd.f32 %v4787_v50, %v4500_v3  ;;  %4520 = vst [vmem:[%s280_s8 + $0x8] sm:$0xff] %v4506_v19 }
 0x68b   : > { %v5773_v9 = vpop.f32.mrf.mxu0 }
 0x68c   : > { %4519 = vst [vmem:[%s280_s8] sm:$0xff] %v4501_v4  ;;  %v4516_v23 = vadd.f32 %v5773_v9, %v4787_v50 }
 0x68d   : > { %v4510_v22 = vpop.f32.mrf.mxu0 }
 0x68e   : > { %v4511_v8 = vadd.f32 %v4787_v50, %v4510_v22  ;;  %4522 = vst [vmem:[%s280_s8 + $0x18] sm:$0xff] %v4516_v23 }
 0x690   : > { %4521 = vst [vmem:[%s280_s8 + $0x10] sm:$0xff] %v4511_v8 }
 0x691 PF: > { %s17_s24 = sadd.s32 1, %s5800_s24  }
 0x692   : > { %p14_p5 = scmp.ge.s32.totalorder %s17_s24, 4  }
 0x694   :  { %16 = sbr.rel (!%p14_p5) target bundleno = 1 (0x1), region = 78 }

// kernel: forward.1
= control target key start
LH: loop header
LB: loop body
LE: loop exit
PB: predicated region body
PF: predicated region fallthrough
CT: control target
= control target key end

     0   :  { %s5843_s24 = smov 0   ;;  %s8955_s0 = inlined_call_operand.vmem [shape: f32[3136,16], index: 0, kind: input, shape index: {}]   ;;  %s8956_s1 = inlined_call_operand.vmem [shape: f32[16,128], index: 1, kind: input, shape index: {}]   ;;  %s8957_s2 = inlined_call_operand.vmem [shape: f32[1152,128], index: 2, kind: input, shape index: {}]   ;;  %s8958_s3 = inlined_call_operand.vmem [shape: f32[1152,128], index: 3, kind: input, shape index: {}]   ;;  %s8959_s4 = inlined_call_operand.vmem [shape: f32[128,128], index: 4, kind: input, shape index: {}]   ;;  %s8960_s5 = inlined_call_operand.vmem [shape: f32[128,128], index: 5, kind: input, shape index: {}]   ;;  %s8961_s6 = inlined_call_operand.vmem [shape: f32[8,128], index: 6, kind: input, shape index: {}]   ;;  %s8962_s7 = inlined_call_operand.vmem [shape: f32[64,128], index: 7, kind: output, shape index: {}]  }
   0x1 LB: > { %s4579_s25 = sadd.s32 4294967295, %s5800_s24   ;;  %p4583_p0 = scmp.ge.s32.totalorder %s5800_s24, 1  ;;  %s5800_s24 = sphi %s5843_s24, %s17_s24  }
   0x2   : > { %p238_p1 = scmp.lt.s32.totalorder %s5800_s24, 3 }
   0x4   : > { %p239_p2 = pnand %p4583_p0, %p238_p1 }
   0x6   : > { %242 = sbr.rel (%p239_p2) target bundleno = 1681 (0x691), region = 48 }
   0xb   : > { %v479_v0 = vld [vmem:[%s8956_s1 + $0x8] sm:$0xff]  ;;  %v478_v1 = vld [vmem:[%s8956_s1] sm:$0xff]  ;;  %s270_s30 = smul.u32 196, %s4579_s25  ;;  %vm485_vm0 = vcmask 130048   ;;  %v8976_v13 = vmov 0.0   ;;  %v2330_v18 = vld [vmem:[%s8957_s2 + $0x78] sm:$0xff] }
   0xc   : > { %5276 = vmatprep.subr.mxu0 %v479_v0  ;;  %2464 = vmatprep.subr.mxu1 %v8976_v13  ;;  %v2329_v19 = vld [vmem:[%s8957_s2 + $0x70] sm:$0xff]  ;;  %v2328_v20 = vld [vmem:[%s8957_s2 + $0x68] sm:$0xff]  ;;  %v2327_v23 = vld [vmem:[%s8957_s2 + $0x60] sm:$0xff]  ;;  %s4585_s26 = sshll.u32 %s4579_s25, 2 }
   0xd   : > { %5277 = vmatpush3.msra.mxu0 %v479_v0  ;;  %p271_p3 = scmp.lt.s32.totalorder %s270_s30, 391  ;;  %2465 = vmatpush1.msra.mxu1 %v2330_v18  ;;  %v2326_v24 = vld [vmem:[%s8957_s2 + $0x58] sm:$0xff]  ;;  %v2325_v27 = vld [vmem:[%s8957_s2 + $0x50] sm:$0xff]  ;;  %v2324_v28 = vld [vmem:[%s8957_s2 + $0x48] sm:$0xff]  ;;  %p277_p4 = scmp.lt.s32.totalorder %s4585_s26, 7 }
   0xe   : > { %5278 = vmatprep.subr.mxu0 %v478_v1  ;;  %2466 = vmatprep.subr.mxu1 %v8976_v13  ;;  %v2323_v31 = vld [vmem:[%s8957_s2 + $0x40] sm:$0xff]  ;;  %v2322_v32 = vld [vmem:[%s8957_s2 + $0x38] sm:$0xff]  ;;  %v2321_v35 = vld [vmem:[%s8957_s2 + $0x30] sm:$0xff] }
   0xf   : > { %5279 = vmatpush3.msra.mxu0 %v478_v1  ;;  %s9379_s30 = smov (!%p271_p3, %s270_s30), 391  ;;  %2467 = vmatpush1.msra.mxu1 %v2329_v19  ;;  %v2320_v36 = vld [vmem:[%s8957_s2 + $0x28] sm:$0xff]  ;;  %v2319_v39 = vld [vmem:[%s8957_s2 + $0x20] sm:$0xff]  ;;  %v2318_v40 = vld [vmem:[%s8957_s2 + $0x18] sm:$0xff]  ;;  %s9381_s26 = smov (!%p277_p4, %s4585_s26), 7 }
  0x10   : > { %s4584_s8 = sshll.u32 %s9379_s30, 3  ;;  %3199 = vmatprep.subr.mxu0 %v8976_v13  ;;  %2468 = vmatprep.subr.mxu1 %v8976_v13  ;;  %v2317_v43 = vld [vmem:[%s8957_s2 + $0x10] sm:$0xff]  ;;  %v2316_v44 = vld [vmem:[%s8957_s2 + $0x8] sm:$0xff]  ;;  %v2315_v47 = vld [vmem:[%s8957_s2] sm:$0xff]  ;;  %s4586_s27 = sshll.u32 %s9381_s26, 3 }
  0x11   : > { %s5862_s11 = scalar_lea.vmem %s8955_s0, %s4584_s8  ;;  %2469 = vmatpush1.msra.mxu1 %v2328_v20  ;;  %v2346_v48 = vld [vmem:[%s8957_s2 + $0xf8] sm:$0xff]  ;;  %v2345_v51 = vld [vmem:[%s8957_s2 + $0xf0] sm:$0xff]  ;;  %v2344_v52 = vld [vmem:[%s8957_s2 + $0xe8] sm:$0xff]  ;;  %s280_s8 = scalar_lea.vmem %s8962_s7, %s4586_s27 }
  0x12   : > { %v282_v2 = vld [vmem:[%s5862_s11] sm:$0xff]  ;;  %v283_v3 = vld [vmem:[%s5862_s11 + $0x8] sm:$0xff]  ;;  %v284_v4 = vld [vmem:[%s5862_s11 + $0x10] sm:$0xff]  ;;  %2470 = vmatprep.subr.mxu1 %v8976_v13 }
  0x13   : > { %5280 = vmatprep.mubr.msk.f32.mxu0 %vm485_vm0, %v282_v2  ;;  %v285_v5 = vld [vmem:[%s5862_s11 + $0x18] sm:$0xff]  ;;  %v286_v6 = vld [vmem:[%s5862_s11 + $0x20] sm:$0xff]  ;;  %v287_v7 = vld [vmem:[%s5862_s11 + $0x28] sm:$0xff]  ;;  %2471 = vmatpush1.msra.mxu1 %v2327_v23 }
  0x14   : > { %5281 = vmatmul.mubr.msk.f32.vlgmr.msra.gmra.mxu0 %vm485_vm0, %v283_v3  ;;  %v288_v8 = vld [vmem:[%s5862_s11 + $0x30] sm:$0xff]  ;;  %v289_v9 = vld [vmem:[%s5862_s11 + $0x38] sm:$0xff]  ;;  %v290_v10 = vld [vmem:[%s5862_s11 + $0x40] sm:$0xff]  ;;  %2472 = vmatprep.subr.mxu1 %v8976_v13 }
  0x15   : > { %5283 = vmatprep.mubr.msk.f32.mxu0 %vm485_vm0, %v284_v4  ;;  %v291_v11 = vld [vmem:[%s5862_s11 + $0x48] sm:$0xff]  ;;  %v292_v12 = vld [vmem:[%s5862_s11 + $0x50] sm:$0xff]  ;;  %v293_v14 = vld [vmem:[%s5862_s11 + $0x58] sm:$0xff]  ;;  %2473 = vmatpush1.msra.mxu1 %v2326_v24 }
  0x16   : > { %v294_v15 = vld [vmem:[%s5862_s11 + $0x60] sm:$0xff]  ;;  %v295_v16 = vld [vmem:[%s5862_s11 + $0x68] sm:$0xff]  ;;  %v296_v17 = vld [vmem:[%s5862_s11 + $0x70] sm:$0xff]  ;;  %2474 = vmatprep.subr.mxu1 %v8976_v13 }
  0x17   : > { %v297_v21 = vld [vmem:[%s5862_s11 + $0x78] sm:$0xff]  ;;  %v298_v22 = vld [vmem:[%s5862_s11 + $0x80] sm:$0xff]  ;;  %v299_v25 = vld [vmem:[%s5862_s11 + $0x88] sm:$0xff]  ;;  %2475 = vmatpush1.msra.mxu1 %v2325_v27 }
  0x18   : > { %5284 = vmatmul.mubr.msk.f32.gmra.mxu0 %vm485_vm0, %v285_v5  ;;  %v300_v26 = vld [vmem:[%s5862_s11 + $0x90] sm:$0xff]  ;;  %v301_v29 = vld [vmem:[%s5862_s11 + $0x98] sm:$0xff]  ;;  %v302_v30 = vld [vmem:[%s5862_s11 + $0xa0] sm:$0xff]  ;;  %2476 = vmatprep.subr.mxu1 %v8976_v13 }
  0x19   : > { %5286 = vmatprep.mubr.msk.f32.mxu0 %vm485_vm0, %v286_v6  ;;  %2477 = vmatpush1.msra.mxu1 %v2324_v28  ;;  %v303_v33 = vld [vmem:[%s5862_s11 + $0xa8] sm:$0xff]  ;;  %v304_v34 = vld [vmem:[%s5862_s11 + $0xb0] sm:$0xff]  ;;  %v305_v37 = vld [vmem:[%s5862_s11 + $0xb8] sm:$0xff] }
  0x1a   : > { %2478 = vmatprep.subr.mxu1 %v8976_v13  ;;  %v306_v38 = vld [vmem:[%s5862_s11 + $0xc0] sm:$0xff]  ;;  %v307_v41 = vld [vmem:[%s5862_s11 + $0xc8] sm:$0xff]  ;;  %v308_v42 = vld [vmem:[%s5862_s11 + $0xd0] sm:$0xff] }
  0x1b   : > { %2479 = vmatpush1.msra.mxu1 %v2323_v31  ;;  %v309_v45 = vld [vmem:[%s5862_s11 + $0xd8] sm:$0xff]  ;;  %v310_v46 = vld [vmem:[%s5862_s11 + $0xe0] sm:$0xff]  ;;  %v311_v49 = vld [vmem:[%s5862_s11 + $0xe8] sm:$0xff] }
  0x1c   : > { %5287 = vmatmul.mubr.msk.f32.gmra.mxu0 %vm485_vm0, %v287_v7  ;;  %2480 = vmatprep.subr.mxu1 %v8976_v13  ;;  %v312_v50 = vld [vmem:[%s5862_s11 + $0xf0] sm:$0xff]  ;;  %v313_v53 = vld [vmem:[%s5862_s11 + $0xf8] sm:$0xff]  ;;  %v314_v54 = vld [vmem:[%s5862_s11 + $0x100] sm:$0xff] }
  0x1d   : > { %5289 = vmatprep.mubr.msk.f32.mxu0 %vm485_vm0, %v288_v8  ;;  %2481 = vmatpush1.msra.mxu1 %v2322_v32  ;;  %v2343_v55 = vld [vmem:[%s8957_s2 + $0xe0] sm:$0xff]  ;;  %v2342_v56 = vld [vmem:[%s8957_s2 + $0xd8] sm:$0xff]  ;;  %v315_v57 = vld [vmem:[%s5862_s11 + $0x108] sm:$0xff] }
  0x1e   : > { %2482 = vmatprep.subr.mxu1 %v8976_v13  ;;  %v316_v58 = vld [vmem:[%s5862_s11 + $0x110] sm:$0xff]  ;;  %v2340_v60 = vld [vmem:[%s8957_s2 + $0xc8] sm:$0xff]  ;;  %v317_v61 = vld [vmem:[%s5862_s11 + $0x118] sm:$0xff] }
  0x1f   : > { %2483 = vmatpush1.msra.mxu1 %v2321_v35  ;;  %v2341_v59 = vld [vmem:[%s8957_s2 + $0xd0] sm:$0xff]  ;;  %v318_v62 = vld [vmem:[%s5862_s11 + $0x120] sm:$0xff]  ;;  %v2338_v0 = vld [vmem:[%s8957_s2 + $0xb8] sm:$0xff] }
  0x20   : > { %5290 = vmatmul.mubr.msk.f32.gmra.mxu0 %vm485_vm0, %v289_v9  ;;  %2484 = vmatprep.subr.mxu1 %v8976_v13  ;;  %v2339_v63 = vld [vmem:[%s8957_s2 + $0xc0] sm:$0xff]  ;;  %v319_v1 = vld [vmem:[%s5862_s11 + $0x128] sm:$0xff]  ;;  %v320_v2 = vld [vmem:[%s5862_s11 + $0x130] sm:$0xff] }
  0x21   : > { %5292 = vmatprep.mubr.msk.f32.mxu0 %vm485_vm0, %v290_v10  ;;  %2485 = vmatpush1.msra.mxu1 %v2320_v36  ;;  %v2337_v3 = vld [vmem:[%s8957_s2 + $0xb0] sm:$0xff]  ;;  %v2336_v4 = vld [vmem:[%s8957_s2 + $0xa8] sm:$0xff]  ;;  %v321_v5 = vld [vmem:[%s5862_s11 + $0x138] sm:$0xff] }
  0x22   : > { %2486 = vmatprep.subr.mxu1 %v8976_v13  ;;  %v322_v6 = vld [vmem:[%s5862_s11 + $0x140] sm:$0xff]  ;;  %v2334_v8 = vld [vmem:[%s8957_s2 + $0x98] sm:$0xff]  ;;  %v323_v9 = vld [vmem:[%s5862_s11 + $0x148] sm:$0xff] }
  0x23   : > { %2487 = vmatpush1.msra.mxu1 %v2319_v39  ;;  %v2335_v7 = vld [vmem:[%s8957_s2 + $0xa0] sm:$0xff]  ;;  %v324_v10 = vld [vmem:[%s5862_s11 + $0x150] sm:$0xff]  ;;  %v329_v19 = vld [vmem:[%s5862_s11 + $0x178] sm:$0xff] }
  0x24   : > { %5293 = vmatmul.mubr.msk.f32.gmra.mxu0 %vm485_vm0, %v291_v11  ;;  %2488 = vmatprep.subr.mxu1 %v8976_v13  ;;  %v2333_v11 = vld [vmem:[%s8957_s2 + $0x90] sm:$0xff]  ;;  %v330_v20 = vld [vmem:[%s5862_s11 + $0x180] sm:$0xff]  ;;  %v333_v23 = vld [vmem:[%s5862_s11 + $0x198] sm:$0xff] }
  0x25   : > { %5295 = vmatprep.mubr.msk.f32.mxu0 %vm485_vm0, %v292_v12  ;;  %2489 = vmatpush1.msra.mxu1 %v2318_v40  ;;  %v2332_v12 = vld [vmem:[%s8957_s2 + $0x88] sm:$0xff]  ;;  %v328_v18 = vld [vmem:[%s5862_s11 + $0x170] sm:$0xff]  ;;  %v334_v24 = vld [vmem:[%s5862_s11 + $0x1a0] sm:$0xff] }
  0x26   : > { %2490 = vmatprep.subr.mxu1 %v8976_v13  ;;  %v337_v27 = vld [vmem:[%s5862_s11 + $0x1b8] sm:$0xff]  ;;  %v338_v28 = vld [vmem:[%s5862_s11 + $0x1c0] sm:$0xff] }
  0x27   : > { %2491 = vmatpush1.msra.mxu1 %v2317_v43  ;;  %v341_v31 = vld [vmem:[%s5862_s11 + $0x1d8] sm:$0xff]  ;;  %v342_v32 = vld [vmem:[%s5862_s11 + $0x1e0] sm:$0xff] }
  0x28   : > { %5296 = vmatmul.mubr.msk.f32.gmra.mxu0 %vm485_vm0, %v293_v14  ;;  %2492 = vmatprep.subr.mxu1 %v8976_v13  ;;  %v325_v14 = vld [vmem:[%s5862_s11 + $0x158] sm:$0xff]  ;;  %v346_v36 = vld [vmem:[%s5862_s11 + $0x200] sm:$0xff] }
  0x29   : > { %5298 = vmatprep.mubr.msk.f32.mxu0 %vm485_vm0, %v294_v15  ;;  %2493 = vmatpush1.msra.mxu1 %v2316_v44  ;;  %v326_v15 = vld [vmem:[%s5862_s11 + $0x160] sm:$0xff]  ;;  %v345_v35 = vld [vmem:[%s5862_s11 + $0x1f8] sm:$0xff] }
  0x2a   : > { %2494 = vmatprep.subr.mxu1 %v8976_v13  ;;  %v349_v39 = vld [vmem:[%s5862_s11 + $0x218] sm:$0xff]  ;;  %v350_v40 = vld [vmem:[%s5862_s11 + $0x220] sm:$0xff] }
  0x2b   : > { %2495 = vmatpush1.msra.mxu1 %v2315_v47  ;;  %v353_v43 = vld [vmem:[%s5862_s11 + $0x238] sm:$0xff]  ;;  %v354_v44 = vld [vmem:[%s5862_s11 + $0x240] sm:$0xff] }
  0x2c   : > { %5299 = vmatmul.mubr.msk.f32.gmra.mxu0 %vm485_vm0, %v295_v16  ;;  %2496 = vmatprep.subr.mxu1 %v8976_v13  ;;  %v2331_v16 = vld [vmem:[%s8957_s2 + $0x80] sm:$0xff]  ;;  %v357_v47 = vld [vmem:[%s5862_s11 + $0x258] sm:$0xff] }
  0x2d   : > { %5301 = vmatprep.mubr.msk.f32.mxu0 %vm485_vm0, %v296_v17  ;;  %2497 = vmatpush2.msra.mxu1 %v2346_v48  ;;  %v327_v17 = vld [vmem:[%s5862_s11 + $0x168] sm:$0xff]  ;;  %v358_v48 = vld [vmem:[%s5862_s11 + $0x260] sm:$0xff] }
  0x2e   : > { %2498 = vmatprep.subr.mxu1 %v8976_v13 }
  0x2f   : > { %2499 = vmatpush2.msra.mxu1 %v2345_v51  ;;  %v361_v51 = vld [vmem:[%s5862_s11 + $0x278] sm:$0xff] }
  0x30   : > { %5302 = vmatmul.mubr.msk.f32.gmra.mxu0 %vm485_vm0, %v297_v21  ;;  %2500 = vmatprep.subr.mxu1 %v8976_v13  ;;  %v331_v21 = vld [vmem:[%s5862_s11 + $0x188] sm:$0xff] }
  0x31   : > { %5304 = vmatprep.mubr.msk.f32.mxu0 %vm485_vm0, %v298_v22  ;;  %2501 = vmatpush2.msra.mxu1 %v2344_v52  ;;  %v332_v22 = vld [vmem:[%s5862_s11 + $0x190] sm:$0xff]  ;;  %v362_v52 = vld [vmem:[%s5862_s11 + $0x280] sm:$0xff] }
  0x32   : > { %2502 = vmatprep.subr.mxu1 %v8976_v13 }
  0x33   : > { %2503 = vmatpush2.msra.mxu1 %v2343_v55  ;;  %v365_v55 = vld [vmem:[%s5862_s11 + $0x298] sm:$0xff] }
  0x34   : > { %5305 = vmatmul.mubr.msk.f32.gmra.mxu0 %vm485_vm0, %v299_v25  ;;  %2504 = vmatprep.subr.mxu1 %v8976_v13  ;;  %v335_v25 = vld [vmem:[%s5862_s11 + $0x1a8] sm:$0xff] }
  0x35   : > { %5307 = vmatprep.mubr.msk.f32.mxu0 %vm485_vm0, %v300_v26  ;;  %2505 = vmatpush2.msra.mxu1 %v2342_v56  ;;  %v336_v26 = vld [vmem:[%s5862_s11 + $0x1b0] sm:$0xff]  ;;  %v366_v56 = vld [vmem:[%s5862_s11 + $0x2a0] sm:$0xff] }
  0x36   : > { %2506 = vmatprep.subr.mxu1 %v8976_v13 }
  0x37   : > { %2507 = vmatpush2.msra.mxu1 %v2341_v59  ;;  %v369_v59 = vld [vmem:[%s5862_s11 + $0x2b8] sm:$0xff] }
  0x38   : > { %5308 = vmatmul.mubr.msk.f32.gmra.mxu0 %vm485_vm0, %v301_v29  ;;  %2508 = vmatprep.subr.mxu1 %v8976_v13  ;;  %v339_v29 = vld [vmem:[%s5862_s11 + $0x1c8] sm:$0xff] }
  0x39   : > { %5310 = vmatprep.mubr.msk.f32.mxu0 %vm485_vm0, %v302_v30  ;;  %2509 = vmatpush2.msra.mxu1 %v2340_v60  ;;  %v340_v30 = vld [vmem:[%s5862_s11 + $0x1d0] sm:$0xff]  ;;  %v370_v60 = vld [vmem:[%s5862_s11 + $0x2c0] sm:$0xff] }
  0x3a   : > { %2510 = vmatprep.subr.mxu1 %v8976_v13 }
  0x3b   : > { %2511 = vmatpush2.msra.mxu1 %v2339_v63  ;;  %v373_v63 = vld [vmem:[%s5862_s11 + $0x2d8] sm:$0xff] }
  0x3c   : > { %5311 = vmatmul.mubr.msk.f32.gmra.mxu0 %vm485_vm0, %v303_v33  ;;  %2512 = vmatprep.subr.mxu1 %v8976_v13  ;;  %v343_v33 = vld [vmem:[%s5862_s11 + $0x1e8] sm:$0xff] }
  0x3d   : > { %5313 = vmatprep.mubr.msk.f32.mxu0 %vm485_vm0, %v304_v34  ;;  %2513 = vmatpush2.msra.mxu1 %v2338_v0  ;;  %v344_v34 = vld [vmem:[%s5862_s11 + $0x1f0] sm:$0xff]  ;;  %v374_v0 = vld [vmem:[%s5862_s11 + $0x2e0] sm:$0xff] }
  0x3e   : > { %2514 = vmatprep.subr.mxu1 %v8976_v13 }
  0x3f   : > { %2515 = vmatpush2.msra.mxu1 %v2337_v3  ;;  %v377_v3 = vld [vmem:[%s5862_s11 + $0x2f8] sm:$0xff] }
  0x40   : > { %5314 = vmatmul.mubr.msk.f32.gmra.mxu0 %vm485_vm0, %v305_v37  ;;  %2516 = vmatprep.subr.mxu1 %v8976_v13  ;;  %v347_v37 = vld [vmem:[%s5862_s11 + $0x208] sm:$0xff] }
  0x41   : > { %5316 = vmatprep.mubr.msk.f32.mxu0 %vm485_vm0, %v306_v38  ;;  %2517 = vmatpush2.msra.mxu1 %v2336_v4  ;;  %v348_v38 = vld [vmem:[%s5862_s11 + $0x210] sm:$0xff]  ;;  %v378_v4 = vld [vmem:[%s5862_s11 + $0x300] sm:$0xff] }
  0x42   : > { %2518 = vmatprep.subr.mxu1 %v8976_v13 }
  0x43   : > { %2519 = vmatpush2.msra.mxu1 %v2335_v7  ;;  %v380_v7 = vld [vmem:[%s5862_s11 + $0x310] sm:$0xff] }
  0x44   : > { %5317 = vmatmul.mubr.msk.f32.gmra.mxu0 %vm485_vm0, %v307_v41  ;;  %2520 = vmatprep.subr.mxu1 %v8976_v13  ;;  %v351_v41 = vld [vmem:[%s5862_s11 + $0x228] sm:$0xff] }
  0x45   : > { %5319 = vmatprep.mubr.msk.f32.mxu0 %vm485_vm0, %v308_v42  ;;  %2521 = vmatpush2.msra.mxu1 %v2334_v8  ;;  %v352_v42 = vld [vmem:[%s5862_s11 + $0x230] sm:$0xff] }
  0x46   : > { %2522 = vmatprep.subr.mxu1 %v8976_v13 }
  0x47   : > { %2523 = vmatpush2.msra.mxu1 %v2333_v11  ;;  %v382_v11 = vld [vmem:[%s5862_s11 + $0x320] sm:$0xff] }
  0x48   : > { %5320 = vmatmul.mubr.msk.f32.gmra.mxu0 %vm485_vm0, %v309_v45  ;;  %2524 = vmatprep.subr.mxu1 %v8976_v13  ;;  %v355_v45 = vld [vmem:[%s5862_s11 + $0x248] sm:$0xff] }
  0x49   : > { %5322 = vmatprep.mubr.msk.f32.mxu0 %vm485_vm0, %v310_v46  ;;  %2525 = vmatpush2.msra.mxu1 %v2332_v12  ;;  %v356_v46 = vld [vmem:[%s5862_s11 + $0x250] sm:$0xff] }
  0x4a   : > { %2526 = vmatprep.subr.mxu1 %v8976_v13 }
  0x4b   : > { %2527 = vmatpush2.msra.mxu1 %v2331_v16  ;;  %v384_v16 = vld [vmem:[%s5862_s11 + $0x330] sm:$0xff] }
  0x4c   : > { %5323 = vmatmul.mubr.msk.f32.gmra.mxu0 %vm485_vm0, %v311_v49  ;;  %2709 = vmatprep.subr.mxu1 %v8976_v13  ;;  %v359_v49 = vld [vmem:[%s5862_s11 + $0x268] sm:$0xff] }
  0x4d   : > { %5325 = vmatprep.mubr.msk.f32.mxu0 %vm485_vm0, %v312_v50  ;;  %v360_v50 = vld [vmem:[%s5862_s11 + $0x270] sm:$0xff] }
  0x50   : > { %5326 = vmatmul.mubr.msk.f32.gmra.mxu0 %vm485_vm0, %v313_v53  ;;  %v363_v53 = vld [vmem:[%s5862_s11 + $0x288] sm:$0xff] }
  0x51   : > { %5328 = vmatprep.mubr.msk.f32.mxu0 %vm485_vm0, %v314_v54  ;;  %v364_v54 = vld [vmem:[%s5862_s11 + $0x290] sm:$0xff] }
  0x54   : > { %5329 = vmatmul.mubr.msk.f32.gmra.mxu0 %vm485_vm0, %v315_v57  ;;  %v367_v57 = vld [vmem:[%s5862_s11 + $0x2a8] sm:$0xff] }
  0x55   : > { %5331 = vmatprep.mubr.msk.f32.mxu0 %vm485_vm0, %v316_v58  ;;  %v368_v58 = vld [vmem:[%s5862_s11 + $0x2b0] sm:$0xff] }
  0x58   : > { %5332 = vmatmul.mubr.msk.f32.gmra.mxu0 %vm485_vm0, %v317_v61  ;;  %v371_v61 = vld [vmem:[%s5862_s11 + $0x2c8] sm:$0xff] }
  0x59   : > { %5334 = vmatprep.mubr.msk.f32.mxu0 %vm485_vm0, %v318_v62  ;;  %v372_v62 = vld [vmem:[%s5862_s11 + $0x2d0] sm:$0xff] }
  0x5c   : > { %5335 = vmatmul.mubr.msk.f32.gmra.mxu0 %vm485_vm0, %v319_v1  ;;  %v375_v1 = vld [vmem:[%s5862_s11 + $0x2e8] sm:$0xff] }
  0x5d   : > { %5337 = vmatprep.mubr.msk.f32.mxu0 %vm485_vm0, %v320_v2  ;;  %v376_v2 = vld [vmem:[%s5862_s11 + $0x2f0] sm:$0xff] }
  0x60   : > { %5338 = vmatmul.mubr.msk.f32.gmra.mxu0 %vm485_vm0, %v321_v5  ;;  %v2426_v5 = vld [vmem:[%s8957_s2 + $0x378] sm:$0xff] }
  0x61   : > { %5340 = vmatprep.mubr.msk.f32.mxu0 %vm485_vm0, %v322_v6  ;;  %v379_v6 = vld [vmem:[%s5862_s11 + $0x308] sm:$0xff]  ;;  %3200 = vmatpush1.msra.mxu0 %v2426_v5 }
  0x62   : > { %3201 = vmatprep.subr.mxu0 %v8976_v13  ;;  %v395_v5 = vld [vmem:[%s5862_s11 + $0x388] sm:$0xff] }
  0x64   : > { %5341 = vmatmul.mubr.msk.f32.gmra.mxu0 %vm485_vm0, %v323_v9  ;;  %v381_v9 = vld [vmem:[%s5862_s11 + $0x318] sm:$0xff] }
  0x65   : > { %5343 = vmatprep.mubr.msk.f32.mxu0 %vm485_vm0, %v324_v10 }
  0x68   : > { %5344 = vmatmul.mubr.msk.f32.gmra.mxu0 %vm485_vm0, %v325_v14  ;;  %v383_v14 = vld [vmem:[%s5862_s11 + $0x328] sm:$0xff] }
  0x69   : > { %5346 = vmatprep.mubr.msk.f32.mxu0 %vm485_vm0, %v326_v15 }
  0x6c   : > { %5347 = vmatmul.mubr.msk.f32.gmra.mxu0 %vm485_vm0, %v327_v17  ;;  %v2425_v17 = vld [vmem:[%s8957_s2 + $0x370] sm:$0xff] }
  0x6d   : > { %5349 = vmatprep.mubr.msk.f32.mxu0 %vm485_vm0, %v328_v18  ;;  %3202 = vmatpush1.msra.mxu0 %v2425_v17 }
  0x6e   : > { %3203 = vmatprep.subr.mxu0 %v8976_v13 }
  0x70   : > { %5350 = vmatmul.mubr.msk.f32.gmra.mxu0 %vm485_vm0, %v329_v19  ;;  %v6209_v19 = vld [vmem:[%s8961_s6] ss:$0 sm:$0xff] }
  0x71   : > { %5352 = vmatprep.mubr.msk.f32.mxu0 %vm485_vm0, %v330_v20  ;;  %v385_v20 = vld [vmem:[%s5862_s11 + $0x338] sm:$0xff] }
  0x74   : > { %5353 = vmatmul.mubr.msk.f32.gmra.mxu0 %vm485_vm0, %v331_v21 }
  0x75   : > { %5355 = vmatprep.mubr.msk.f32.mxu0 %vm485_vm0, %v332_v22 }
  0x78   : > { %5356 = vmatmul.mubr.msk.f32.gmra.mxu0 %vm485_vm0, %v333_v23  ;;  %v386_v23 = vld [vmem:[%s5862_s11 + $0x340] sm:$0xff] }
  0x79   : > { %5358 = vmatprep.mubr.msk.f32.mxu0 %vm485_vm0, %v334_v24 }
  0x7c   : > { %5359 = vmatmul.mubr.msk.f32.gmra.mxu0 %vm485_vm0, %v335_v25 }
  0x7d   : > { %5361 = vmatprep.mubr.msk.f32.mxu0 %vm485_vm0, %v336_v26 }
  0x80   : > { %5362 = vmatmul.mubr.msk.f32.gmra.mxu0 %vm485_vm0, %v337_v27  ;;  %v2424_v27 = vld [vmem:[%s8957_s2 + $0x368] sm:$0xff] }
  0x81   : > { %5364 = vmatprep.mubr.msk.f32.mxu0 %vm485_vm0, %v338_v28  ;;  %3204 = vmatpush1.msra.mxu0 %v2424_v27  ;;  %v2358_v27 = vld [vmem:[%s8957_s2 + $0x158] sm:$0xff] }
  0x82   : > { %3205 = vmatprep.subr.mxu0 %v8976_v13 }
  0x84   : > { %5365 = vmatmul.mubr.msk.f32.gmra.mxu0 %vm485_vm0, %v339_v29  ;;  %v387_v29 = vld [vmem:[%s5862_s11 + $0x348] sm:$0xff] }
  0x85   : > { %5367 = vmatprep.mubr.msk.f32.mxu0 %vm485_vm0, %v340_v30 }
  0x88   : > { %5368 = vmatmul.mubr.msk.f32.gmra.mxu0 %vm485_vm0, %v341_v31 }
  0x89   : > { %5370 = vmatprep.mubr.msk.f32.mxu0 %vm485_vm0, %v342_v32 }
  0x8c   : > { %5371 = vmatmul.mubr.msk.f32.gmra.mxu0 %vm485_vm0, %v343_v33  ;;  %v388_v33 = vld [vmem:[%s5862_s11 + $0x350] sm:$0xff] }
  0x8d   : > { %5373 = vmatprep.mubr.msk.f32.mxu0 %vm485_vm0, %v344_v34  ;;  %v2423_v34 = vld [vmem:[%s8957_s2 + $0x360] sm:$0xff] }
  0x8e   : > { %3206 = vmatpush1.msra.mxu0 %v2423_v34 }
  0x8f   : > { %3207 = vmatprep.subr.mxu0 %v8976_v13 }
  0x90   : > { %5374 = vmatmul.mubr.msk.f32.gmra.mxu0 %vm485_vm0, %v345_v35 }
  0x91   : > { %5376 = vmatprep.mubr.msk.f32.mxu0 %vm485_vm0, %v346_v36 }
  0x94   : > { %5377 = vmatmul.mubr.msk.f32.gmra.mxu0 %vm485_vm0, %v347_v37 }
  0x95   : > { %5379 = vmatprep.mubr.msk.f32.mxu0 %vm485_vm0, %v348_v38  ;;  %v2422_v38 = vld [vmem:[%s8957_s2 + $0x358] sm:$0xff] }
  0x96   : > { %3208 = vmatpush1.msra.mxu0 %v2422_v38 }
  0x97   : > { %3209 = vmatprep.subr.mxu0 %v8976_v13 }
  0x98   : > { %5380 = vmatmul.mubr.msk.f32.gmra.mxu0 %vm485_vm0, %v349_v39  ;;  %v389_v39 = vld [vmem:[%s5862_s11 + $0x358] sm:$0xff] }
  0x99   : > { %5382 = vmatprep.mubr.msk.f32.mxu0 %vm485_vm0, %v350_v40 }
  0x9c   : > { %5383 = vmatmul.mubr.msk.f32.gmra.mxu0 %vm485_vm0, %v351_v41 }
  0x9d   : > { %5385 = vmatprep.mubr.msk.f32.mxu0 %vm485_vm0, %v352_v42 }
  0xa0   : > { %5386 = vmatmul.mubr.msk.f32.gmra.mxu0 %vm485_vm0, %v353_v43  ;;  %v390_v43 = vld [vmem:[%s5862_s11 + $0x360] sm:$0xff] }
  0xa1   : > { %5388 = vmatprep.mubr.msk.f32.mxu0 %vm485_vm0, %v354_v44 }
  0xa4   : > { %5389 = vmatmul.mubr.msk.f32.gmra.mxu0 %vm485_vm0, %v355_v45 }
  0xa5   : > { %5391 = vmatprep.mubr.msk.f32.mxu0 %vm485_vm0, %v356_v46  ;;  %v2362_v46 = vld [vmem:[%s8957_s2 + $0x178] sm:$0xff] }
  0xa8   : > { %5392 = vmatmul.mubr.msk.f32.gmra.mxu0 %vm485_vm0, %v357_v47 }
  0xa9   : > { %5394 = vmatprep.mubr.msk.f32.mxu0 %vm485_vm0, %v358_v48  ;;  %v2421_v48 = vld [vmem:[%s8957_s2 + $0x350] sm:$0xff] }
  0xaa   : > { %3210 = vmatpush1.msra.mxu0 %v2421_v48 }
  0xab   : > { %3211 = vmatprep.subr.mxu0 %v8976_v13 }
  0xac   : > { %5395 = vmatmul.mubr.msk.f32.gmra.mxu0 %vm485_vm0, %v359_v49  ;;  %v391_v49 = vld [vmem:[%s5862_s11 + $0x368] sm:$0xff] }
  0xad   : > { %5397 = vmatprep.mubr.msk.f32.mxu0 %vm485_vm0, %v360_v50 }
  0xb0   : > { %5398 = vmatmul.mubr.msk.f32.gmra.mxu0 %vm485_vm0, %v361_v51 }
  0xb1   : > { %5400 = vmatprep.mubr.msk.f32.mxu0 %vm485_vm0, %v362_v52 }
  0xb4   : > { %5401 = vmatmul.mubr.msk.f32.gmra.mxu0 %vm485_vm0, %v363_v53  ;;  %v392_v53 = vld [vmem:[%s5862_s11 + $0x370] sm:$0xff] }
  0xb5   : > { %5403 = vmatprep.mubr.msk.f32.mxu0 %vm485_vm0, %v364_v54 }
  0xb8   : > { %5404 = vmatmul.mubr.msk.f32.gmra.mxu0 %vm485_vm0, %v365_v55  ;;  %v2361_v55 = vld [vmem:[%s8957_s2 + $0x170] sm:$0xff] }
  0xb9   : > { %5406 = vmatprep.mubr.msk.f32.mxu0 %vm485_vm0, %v366_v56 }
  0xbc   : > { %5407 = vmatmul.mubr.msk.f32.gmra.mxu0 %vm485_vm0, %v367_v57  ;;  %v2420_v57 = vld [vmem:[%s8957_s2 + $0x348] sm:$0xff] }
  0xbd   : > { %5409 = vmatprep.mubr.msk.f32.mxu0 %vm485_vm0, %v368_v58  ;;  %v393_v58 = vld [vmem:[%s5862_s11 + $0x378] sm:$0xff]  ;;  %3212 = vmatpush1.msra.mxu0 %v2420_v57 }
  0xbe   : > { %3213 = vmatprep.subr.mxu0 %v8976_v13  ;;  %v405_v57 = vld [vmem:[%s5862_s11 + $0x3d8] sm:$0xff] }
  0xc0   : > { %5410 = vmatmul.mubr.msk.f32.gmra.mxu0 %vm485_vm0, %v369_v59 }
  0xc1   : > { %5412 = vmatprep.mubr.msk.f32.mxu0 %vm485_vm0, %v370_v60 }
  0xc4   : > { %5413 = vmatmul.mubr.msk.f32.gmra.mxu0 %vm485_vm0, %v371_v61 }
  0xc5   : > { %5415 = vmatprep.mubr.msk.f32.mxu0 %vm485_vm0, %v372_v62  ;;  %v394_v62 = vld [vmem:[%s5862_s11 + $0x380] sm:$0xff] }
  0xc8   : > { %5416 = vmatmul.mubr.msk.f32.gmra.mxu0 %vm485_vm0, %v373_v63 }
  0xc9   : > { %5418 = vmatprep.mubr.msk.f32.mxu0 %vm485_vm0, %v374_v0 }
  0xcc   : > { %5419 = vmatmul.mubr.msk.f32.gmra.mxu0 %vm485_vm0, %v375_v1  ;;  %v2419_v1 = vld [vmem:[%s8957_s2 + $0x340] sm:$0xff] }
  0xcd   : > { %5421 = vmatprep.mubr.msk.f32.mxu0 %vm485_vm0, %v376_v2  ;;  %v2360_v2 = vld [vmem:[%s8957_s2 + $0x168] sm:$0xff]  ;;  %3214 = vmatpush1.msra.mxu0 %v2419_v1  ;;  %v2355_v1 = vld [vmem:[%s8957_s2 + $0x140] sm:$0xff] }
  0xce   : > { %3215 = vmatprep.subr.mxu0 %v8976_v13 }
  0xd0   : > { %5422 = vmatmul.mubr.msk.f32.gmra.mxu0 %vm485_vm0, %v377_v3 }
  0xd1   : > { %5424 = vmatprep.mubr.msk.f32.mxu0 %vm485_vm0, %v378_v4 }
  0xd4   : > { %v5282_v8 = vpop.f32.mrf.mxu0  ;;  %5425 = vmatmul.mubr.msk.f32.gmra.mxu0 %vm485_vm0, %v379_v6 }
  0xd5   : > { %5427 = vmatprep.mubr.msk.f32.mxu0 %vm485_vm0, %v380_v7  ;;  %v1146_v30 = vadd.f32 %v5282_v8, %v6209_v19 }
  0xd6   : > { %v1140_v10 = vpop.f32.mrf.mxu0 }
  0xd7   : > { %v1141_v21 = vadd.f32 %v6209_v19, %v1140_v10  ;;  %v2120_v40 = vmax.f32 %v1146_v30, 0.0 }
  0xd8   : > { %v5285_v12 = vpop.f32.mrf.mxu0  ;;  %5428 = vmatmul.mubr.msk.f32.gmra.mxu0 %vm485_vm0, %v381_v9  ;;  %v396_v9 = vld [vmem:[%s5862_s11 + $0x390] sm:$0xff] }
  0xd9   : > { %5430 = vmatprep.mubr.msk.f32.mxu0 %vm485_vm0, %v382_v11  ;;  %v2119_v31 = vmax.f32 %v1141_v21, 0.0  ;;  %v1156_v50 = vadd.f32 %v5285_v12, %v6209_v19  ;;  %v2418_v12 = vld [vmem:[%s8957_s2 + $0x338] sm:$0xff]  ;;  %v398_v21 = vld [vmem:[%s5862_s11 + $0x3a0] sm:$0xff] }
  0xda   : > { %v1150_v15 = vpop.f32.mrf.mxu0  ;;  %3216 = vmatpush1.msra.mxu0 %v2418_v12  ;;  %v2354_v12 = vld [vmem:[%s8957_s2 + $0x138] sm:$0xff] }
  0xdb   : > { %v1151_v41 = vadd.f32 %v6209_v19, %v1150_v15  ;;  %v2122_v59 = vmax.f32 %v1156_v50, 0.0  ;;  %v397_v15 = vld [vmem:[%s5862_s11 + $0x398] sm:$0xff]  ;;  %3217 = vmatprep.subr.mxu0 %v8976_v13 }
  0xdc   : > { %v5288_v18 = vpop.f32.mrf.mxu0  ;;  %5431 = vmatmul.mubr.msk.f32.gmra.mxu0 %vm485_vm0, %v383_v14 }
  0xdd   : > { %5433 = vmatprep.mubr.msk.f32.mxu0 %vm485_vm0, %v384_v16  ;;  %v1166_v24 = vadd.f32 %v5288_v18, %v6209_v19  ;;  %v2121_v51 = vmax.f32 %v1151_v41, 0.0  ;;  %v2359_v16 = vld [vmem:[%s8957_s2 + $0x160] sm:$0xff] }
  0xde   : > { %v1160_v22 = vpop.f32.mrf.mxu0  ;;  %v2415_v41 = vld [vmem:[%s8957_s2 + $0x320] sm:$0xff] }
  0xdf   : > { %v1161_v25 = vadd.f32 %v6209_v19, %v1160_v22  ;;  %v2124_v35 = vmax.f32 %v1166_v24, 0.0  ;;  %v2417_v24 = vld [vmem:[%s8957_s2 + $0x330] sm:$0xff] }
  0xe0   : > { %v5291_v26 = vpop.f32.mrf.mxu0  ;;  %5434 = vmatmul.mubr.msk.f32.gmra.mxu0 %vm485_vm0, %v385_v20 }
  0xe1   : > { %5436 = vmatprep.mubr.msk.f32.mxu0 %vm485_vm0, %v386_v23  ;;  %v2123_v28 = vmax.f32 %v1161_v25, 0.0  ;;  %v1176_v44 = vadd.f32 %v5291_v26, %v6209_v19  ;;  %v399_v26 = vld [vmem:[%s5862_s11 + $0x3a8] sm:$0xff]  ;;  %3218 = vmatpush1.msra.mxu0 %v2417_v24  ;;  %v2353_v24 = vld [vmem:[%s8957_s2 + $0x130] sm:$0xff] }
  0xe2   : > { %v1170_v32 = vpop.f32.mrf.mxu0  ;;  %3219 = vmatprep.subr.mxu0 %v8976_v13 }
  0xe3   : > { %v1171_v36 = vadd.f32 %v6209_v19, %v1170_v32  ;;  %2528 = vmatprep.mubr.f32.mxu1 %v2123_v28  ;;  %v2126_v54 = vmax.f32 %v1176_v44, 0.0 }
  0xe4   : > { %v5294_v37 = vpop.f32.mrf.mxu0  ;;  %5437 = vmatmul.mubr.msk.f32.gmra.mxu0 %vm485_vm0, %v387_v29  ;;  %2529 = vmatmul.mubr.f32.vlgmr.msra.gmra.mxu1 %v2119_v31  ;;  %v400_v31 = vld [vmem:[%s5862_s11 + $0x3b0] sm:$0xff] }
  0xe5   : > { %2533 = vmatprep.mubr.f32.mxu1 %v2124_v35  ;;  %5439 = vmatprep.mubr.msk.f32.mxu0 %vm485_vm0, %v388_v33  ;;  %v2125_v45 = vmax.f32 %v1171_v36, 0.0  ;;  %v6284_v6 = vadd.f32 %v5294_v37, %v6209_v19  ;;  %v2416_v33 = vld [vmem:[%s8957_s2 + $0x328] sm:$0xff]  ;;  %v401_v35 = vld [vmem:[%s5862_s11 + $0x3b8] sm:$0xff]  ;;  %v2357_v36 = vld [vmem:[%s8957_s2 + $0x150] sm:$0xff] }
  0xe6   : > { %v1180_v42 = vpop.f32.mrf.mxu0  ;;  %2710 = vmatpush1.msra.mxu1 %v2362_v46  ;;  %3220 = vmatpush1.msra.mxu0 %v2416_v33 }
  0xe7   : > { %2711 = vmatprep.subr.mxu1 %v8976_v13  ;;  %v6266_v60 = vadd.f32 %v6209_v19, %v1180_v42  ;;  %v8969_v17 = vmax.f32 %v6284_v6, 0.0  ;;  %3221 = vmatprep.subr.mxu0 %v8976_v13 }
  0xe8   : > { %v6244_v47 = vpop.f32.mrf.mxu0  ;;  %5440 = vmatmul.mubr.msk.f32.gmra.mxu0 %vm485_vm0, %v389_v39  ;;  %2534 = vmatmul.mubr.f32.gmra.mxu1 %v2120_v40  ;;  %v402_v40 = vld [vmem:[%s5862_s11 + $0x3c0] sm:$0xff] }
  0xe9   : > { %2538 = vmatprep.mubr.f32.mxu1 %v2125_v45  ;;  %5442 = vmatprep.mubr.msk.f32.mxu0 %vm485_vm0, %v390_v43  ;;  %v8970_v7 = vmax.f32 %v6266_v60, 0.0  ;;  %v6324_v28 = vadd.f32 %v6244_v47, %v6209_v19  ;;  %v2414_v45 = vld [vmem:[%s8957_s2 + $0x318] sm:$0xff]  ;;  %v403_v47 = vld [vmem:[%s5862_s11 + $0x3c8] sm:$0xff] }
  0xea   : > { %v1190_v52 = vpop.f32.mrf.mxu0  ;;  %2712 = vmatpush1.msra.mxu1 %v2361_v55  ;;  %3222 = vmatpush1.msra.mxu0 %v2415_v41 }
  0xeb   : > { %2713 = vmatprep.subr.mxu1 %v8976_v13  ;;  %v6303_v18 = vadd.f32 %v6209_v19, %v1190_v52  ;;  %v8967_v37 = vmax.f32 %v6324_v28, 0.0  ;;  %3223 = vmatprep.subr.mxu0 %v8976_v13 }
  0xec   : > { %v5300_v56 = vpop.f32.mrf.mxu0  ;;  %5443 = vmatmul.mubr.msk.f32.gmra.mxu0 %vm485_vm0, %v391_v49  ;;  %2539 = vmatmul.mubr.f32.gmra.mxu1 %v2121_v51  ;;  %v404_v51 = vld [vmem:[%s5862_s11 + $0x3d0] sm:$0xff] }
  0xed   : > { %2543 = vmatprep.mubr.f32.mxu1 %v2126_v54  ;;  %5445 = vmatprep.mubr.msk.f32.mxu0 %vm485_vm0, %v392_v53  ;;  %v1206_v63 = vadd.f32 %v5300_v56, %v6209_v19  ;;  %v8968_v29 = vmax.f32 %v6303_v18, 0.0  ;;  %v2356_v54 = vld [vmem:[%s8957_s2 + $0x148] sm:$0xff]  ;;  %v2413_v56 = vld [vmem:[%s8957_s2 + $0x310] sm:$0xff] }
  0xee   : > { %v1200_v61 = vpop.f32.mrf.mxu0  ;;  %2714 = vmatpush1.msra.mxu1 %v2360_v2  ;;  %3224 = vmatpush1.msra.mxu0 %v2414_v45 }
  0xef   : > { %v1201_v0 = vadd.f32 %v6209_v19, %v1200_v61  ;;  %v2132_v10 = vmax.f32 %v1206_v63, 0.0  ;;  %2715 = vmatprep.subr.mxu1 %v8976_v13  ;;  %3225 = vmatprep.subr.mxu0 %v8976_v13 }
  0xf0   : > { %v5303_v3 = vpop.f32.mrf.mxu0  ;;  %5446 = vmatmul.mubr.msk.f32.gmra.mxu0 %vm485_vm0, %v393_v58  ;;  %2544 = vmatmul.mubr.f32.gmra.mxu1 %v2122_v59 }
  0xf1   : > { %v2131_v4 = vmax.f32 %v1201_v0, 0.0  ;;  %5448 = vmatprep.mubr.msk.f32.mxu0 %vm485_vm0, %v394_v62  ;;  %v1216_v22 = vadd.f32 %v5303_v3, %v6209_v19  ;;  %2716 = vmatpush1.msra.mxu1 %v2359_v16  ;;  %v406_v62 = vld [vmem:[%s5862_s11 + $0x3e0] sm:$0xff]  ;;  %v2412_v3 = vld [vmem:[%s8957_s2 + $0x308] sm:$0xff]  ;;  %v409_v16 = vld [vmem:[%s5862_s11 + $0x3f8] sm:$0xff] }
  0xf2   : > { %v1210_v8 = vpop.f32.mrf.mxu0  ;;  %2717 = vmatprep.subr.mxu1 %v8976_v13  ;;  %3226 = vmatpush1.msra.mxu0 %v2413_v56  ;;  %v418_v56 = vld [vmem:[%s5862_s11 + $0x440] sm:$0xff] }
  0xf3   : > { %v1211_v11 = vadd.f32 %v6209_v19, %v1210_v8  ;;  %2548 = vmatprep.mubr.f32.mxu1 %v2131_v4  ;;  %v2134_v32 = vmax.f32 %v1216_v22, 0.0  ;;  %2718 = vmatpush1.msra.mxu1 %v2358_v27  ;;  %v407_v4 = vld [vmem:[%s5862_s11 + $0x3e8] sm:$0xff]  ;;  %v410_v22 = vld [vmem:[%s5862_s11 + $0x400] sm:$0xff] }
  0xf4   : > { %v5306_v14 = vpop.f32.mrf.mxu0  ;;  %5449 = vmatmul.mubr.msk.f32.gmra.mxu0 %vm485_vm0, %v395_v5  ;;  %2549 = vmatmul.mubr.f32.gmra.mxu1 %v8970_v7 }
  0xf5   : > { %2553 = vmatprep.mubr.f32.mxu1 %v2132_v10  ;;  %5451 = vmatprep.mubr.msk.f32.mxu0 %vm485_vm0, %v396_v9  ;;  %v2133_v23 = vmax.f32 %v1211_v11, 0.0  ;;  %v6362_v48 = vadd.f32 %v5306_v14, %v6209_v19  ;;  %v408_v10 = vld [vmem:[%s5862_s11 + $0x3f0] sm:$0xff] }
  0xf6   : > { %v1220_v20 = vpop.f32.mrf.mxu0  ;;  %2719 = vmatprep.subr.mxu1 %v8976_v13  ;;  %3227 = vmatprep.subr.mxu0 %v8976_v13 }
  0xf7   : > { %v6343_v38 = vadd.f32 %v6209_v19, %v1220_v20  ;;  %2720 = vmatpush1.msra.mxu1 %v2357_v36  ;;  %v8965_v58 = vmax.f32 %v6362_v48, 0.0  ;;  %3228 = vmatpush1.msra.mxu0 %v2412_v3 }
  0xf8   : > { %v6312_v25 = vpop.f32.mrf.mxu0  ;;  %5452 = vmatmul.mubr.msk.f32.gmra.mxu0 %vm485_vm0, %v397_v15  ;;  %2554 = vmatmul.mubr.f32.gmra.mxu1 %v8969_v17  ;;  %v2411_v15 = vld [vmem:[%s8957_s2 + $0x300] sm:$0xff] }
  0xf9   : > { %2558 = vmatprep.mubr.f32.mxu1 %v2133_v23  ;;  %5454 = vmatprep.mubr.msk.f32.mxu0 %vm485_vm0, %v398_v21  ;;  %v8966_v49 = vmax.f32 %v6343_v38, 0.0  ;;  %v6407_v5 = vadd.f32 %v6312_v25, %v6209_v19  ;;  %v2442_v23 = vld [vmem:[%s8957_s2 + $0x3f8] sm:$0xff] }
  0xfa   : > { %v1230_v30 = vpop.f32.mrf.mxu0  ;;  %2721 = vmatprep.subr.mxu1 %v8976_v13  ;;  %3229 = vmatprep.subr.mxu0 %v8976_v13 }
  0xfb   : > { %v6384_v59 = vadd.f32 %v6209_v19, %v1230_v30  ;;  %2722 = vmatpush1.msra.mxu1 %v2356_v54  ;;  %v8963_v20 = vmax.f32 %v6407_v5, 0.0  ;;  %3230 = vmatpush1.msra.mxu0 %v2411_v15  ;;  %v412_v30 = vld [vmem:[%s5862_s11 + $0x410] sm:$0xff]  ;;  %v421_v15 = vld [vmem:[%s5862_s11 + $0x458] sm:$0xff] }
  0xfc   : > { %v5312_v34 = vpop.f32.mrf.mxu0  ;;  %5455 = vmatmul.mubr.msk.f32.gmra.mxu0 %vm485_vm0, %v399_v26  ;;  %2559 = vmatmul.mubr.f32.gmra.mxu1 %v8968_v29  ;;  %v411_v26 = vld [vmem:[%s5862_s11 + $0x408] sm:$0xff]  ;;  %v446_v29 = vld [vmem:[%s5862_s11 + $0x520] sm:$0xff] }
  0xfd   : > { %2563 = vmatprep.mubr.f32.mxu1 %v2134_v32  ;;  %5457 = vmatprep.mubr.msk.f32.mxu0 %vm485_vm0, %v400_v31  ;;  %v1246_v42 = vadd.f32 %v5312_v34, %v6209_v19  ;;  %v8964_v8 = vmax.f32 %v6384_v59, 0.0  ;;  %v2441_v31 = vld [vmem:[%s8957_s2 + $0x3f0] sm:$0xff]  ;;  %v2352_v32 = vld [vmem:[%s8957_s2 + $0x128] sm:$0xff] }
  0xfe   : > { %v1240_v39 = vpop.f32.mrf.mxu0  ;;  %2723 = vmatprep.subr.mxu1 %v8976_v13  ;;  %3231 = vmatprep.subr.mxu0 %v8976_v13  ;;  %v2440_v34 = vld [vmem:[%s8957_s2 + $0x3e8] sm:$0xff] }
  0xff   : > { %v1241_v43 = vadd.f32 %v6209_v19, %v1240_v39  ;;  %v2140_v52 = vmax.f32 %v1246_v42, 0.0  ;;  %2724 = vmatpush1.msra.mxu1 %v2355_v1  ;;  %3232 = vmatpush2.msra.mxu0 %v2442_v23  ;;  %v414_v39 = vld [vmem:[%s5862_s11 + $0x420] sm:$0xff]  ;;  %v2438_v42 = vld [vmem:[%s8957_s2 + $0x3d8] sm:$0xff]  ;;  %v2349_v1 = vld [vmem:[%s8957_s2 + $0x110] sm:$0xff] }
 0x100   : > { %v5315_v44 = vpop.f32.mrf.mxu0  ;;  %5458 = vmatmul.mubr.msk.f32.gmra.mxu0 %vm485_vm0, %v401_v35  ;;  %2564 = vmatmul.mubr.f32.gmra.mxu1 %v8967_v37  ;;  %v413_v35 = vld [vmem:[%s5862_s11 + $0x418] sm:$0xff]  ;;  %v422_v23 = vld [vmem:[%s5862_s11 + $0x460] sm:$0xff] }
 0x101   : > { %v2139_v46 = vmax.f32 %v1241_v43, 0.0  ;;  %5460 = vmatprep.mubr.msk.f32.mxu0 %vm485_vm0, %v402_v40  ;;  %v1256_v63 = vadd.f32 %v5315_v44, %v6209_v19  ;;  %2725 = vmatprep.subr.mxu1 %v8976_v13  ;;  %v2439_v40 = vld [vmem:[%s8957_s2 + $0x3e0] sm:$0xff]  ;;  %v415_v43 = vld [vmem:[%s5862_s11 + $0x428] sm:$0xff] }
 0x102   : > { %v1250_v50 = vpop.f32.mrf.mxu0  ;;  %2726 = vmatpush1.msra.mxu1 %v2354_v12  ;;  %3233 = vmatprep.subr.mxu0 %v8976_v13  ;;  %v2351_v44 = vld [vmem:[%s8957_s2 + $0x120] sm:$0xff]  ;;  %v2432_v12 = vld [vmem:[%s8957_s2 + $0x3a8] sm:$0xff] }
 0x103   : > { %v1251_v53 = vadd.f32 %v6209_v19, %v1250_v50  ;;  %2568 = vmatprep.mubr.f32.mxu1 %v2139_v46  ;;  %v2142_v11 = vmax.f32 %v1256_v63, 0.0  ;;  %2727 = vmatprep.subr.mxu1 %v8976_v13  ;;  %v416_v46 = vld [vmem:[%s5862_s11 + $0x430] sm:$0xff]  ;;  %v2434_v63 = vld [vmem:[%s8957_s2 + $0x3b8] sm:$0xff] }
 0x104   : > { %v6372_v55 = vpop.f32.mrf.mxu0  ;;  %5461 = vmatmul.mubr.msk.f32.gmra.mxu0 %vm485_vm0, %v403_v47  ;;  %2569 = vmatmul.mubr.f32.gmra.mxu1 %v8966_v49  ;;  %v2437_v47 = vld [vmem:[%s8957_s2 + $0x3d0] sm:$0xff] }
 0x105   : > { %2573 = vmatprep.mubr.f32.mxu1 %v2140_v52  ;;  %5463 = vmatprep.mubr.msk.f32.mxu0 %vm485_vm0, %v404_v51  ;;  %v2141_v0 = vmax.f32 %v1251_v53, 0.0  ;;  %v2436_v51 = vld [vmem:[%s8957_s2 + $0x3c8] sm:$0xff]  ;;  %v417_v52 = vld [vmem:[%s5862_s11 + $0x438] sm:$0xff] }
 0x106   : > { %v6386_v61 = vpop.f32.mrf.mxu0  ;;  %2728 = vmatpush1.msra.mxu1 %v2353_v24  ;;  %3234 = vmatpush2.msra.mxu0 %v2441_v31  ;;  %v2350_v53 = vld [vmem:[%s8957_s2 + $0x118] sm:$0xff]  ;;  %v2431_v24 = vld [vmem:[%s8957_s2 + $0x3a0] sm:$0xff]  ;;  %v423_v31 = vld [vmem:[%s5862_s11 + $0x468] sm:$0xff] }
 0x107   : > { %2729 = vmatprep.subr.mxu1 %v8976_v13  ;;  %3235 = vmatprep.subr.mxu0 %v8976_v13 }
 0x108   : > { %v6395_v2 = vpop.f32.mrf.mxu0  ;;  %5464 = vmatmul.mubr.msk.f32.gmra.mxu0 %vm485_vm0, %v405_v57  ;;  %2574 = vmatmul.mubr.f32.gmra.mxu1 %v8965_v58  ;;  %v2435_v57 = vld [vmem:[%s8957_s2 + $0x3c0] sm:$0xff] }
 0x109   : > { %2578 = vmatprep.mubr.f32.mxu1 %v2141_v0  ;;  %5466 = vmatprep.mubr.msk.f32.mxu0 %vm485_vm0, %v406_v62  ;;  %v419_v0 = vld [vmem:[%s5862_s11 + $0x448] sm:$0xff] }
 0x10a   : > { %v6410_v9 = vpop.f32.mrf.mxu0  ;;  %2730 = vmatpush1.msra.mxu1 %v2352_v32  ;;  %3236 = vmatpush2.msra.mxu0 %v2440_v34  ;;  %v424_v34 = vld [vmem:[%s5862_s11 + $0x470] sm:$0xff] }
 0x10b   : > { %2731 = vmatprep.subr.mxu1 %v8976_v13  ;;  %3237 = vmatprep.subr.mxu0 %v8976_v13 }
 0x10c   : > { %v6418_v14 = vpop.f32.mrf.mxu0  ;;  %5467 = vmatmul.mubr.msk.f32.gmra.mxu0 %vm485_vm0, %v407_v4  ;;  %2579 = vmatmul.mubr.f32.gmra.mxu1 %v8964_v8  ;;  %v420_v4 = vld [vmem:[%s5862_s11 + $0x450] sm:$0xff] }
 0x10d   : > { %2583 = vmatprep.mubr.f32.mxu1 %v2142_v11  ;;  %5469 = vmatprep.mubr.msk.f32.mxu0 %vm485_vm0, %v408_v10  ;;  %v2433_v10 = vld [vmem:[%s8957_s2 + $0x3b0] sm:$0xff] }
 0x10e   : > { %v6429_v21 = vpop.f32.mrf.mxu0  ;;  %3238 = vmatpush2.msra.mxu0 %v2439_v40  ;;  %2732 = vmatpush1.msra.mxu1 %v2351_v44  ;;  %v444_v8 = vld [vmem:[%s5862_s11 + $0x510] sm:$0xff] }
 0x10f   : > { %3239 = vmatprep.subr.mxu0 %v8976_v13  ;;  %2733 = vmatprep.subr.mxu1 %v8976_v13 }
 0x110   : > { %v6440_v25 = vpop.f32.mrf.mxu0  ;;  %5470 = vmatmul.mubr.msk.f32.gmra.mxu0 %vm485_vm0, %v409_v16  ;;  %2584 = vmatmul.mubr.f32.gmra.mxu1 %v8963_v20  ;;  %v2348_v16 = vld [vmem:[%s8957_s2 + $0x108] sm:$0xff] }
 0x111   : > { %5472 = vmatprep.mubr.msk.f32.mxu0 %vm485_vm0, %v410_v22  ;;  %3240 = vmatpush2.msra.mxu0 %v2438_v42  ;;  %v2428_v42 = vld [vmem:[%s8957_s2 + $0x388] sm:$0xff] }
 0x112   : > { %v6448_v27 = vpop.f32.mrf.mxu0  ;;  %3241 = vmatprep.subr.mxu0 %v8976_v13  ;;  %2734 = vmatpush1.msra.mxu1 %v2350_v53  ;;  %v427_v53 = vld [vmem:[%s5862_s11 + $0x488] sm:$0xff] }
 0x113   : > { %3242 = vmatpush2.msra.mxu0 %v2437_v47  ;;  %2735 = vmatprep.subr.mxu1 %v8976_v13  ;;  %v2427_v47 = vld [vmem:[%s8957_s2 + $0x380] sm:$0xff] }
 0x114   : > { %v6459_v33 = vpop.f32.mrf.mxu0  ;;  %5473 = vmatmul.mubr.msk.f32.gmra.mxu0 %vm485_vm0, %v411_v26  ;;  %3243 = vmatprep.subr.mxu0 %v8976_v13 }
 0x115   : > { %9041 = vst [vmem:[#allocation2_spill] sm:$0xff] %v6459_v33  ;;  %5475 = vmatprep.mubr.msk.f32.mxu0 %vm485_vm0, %v412_v30  ;;  %3244 = vmatpush2.msra.mxu0 %v2436_v51  ;;  %v2430_v30 = vld [vmem:[%s8957_s2 + $0x398] sm:$0xff] }
 0x116   : > { %v6467_v36 = vpop.f32.mrf.mxu0  ;;  %3245 = vmatprep.subr.mxu0 %v8976_v13  ;;  %2736 = vmatpush1.msra.mxu1 %v2349_v1  ;;  %v2378_v51 = vld [vmem:[%s8957_s2 + $0x1f8] sm:$0xff] }
 0x117   : > { %9042 = vst [vmem:[#allocation3_spill] sm:$0xff] %v6467_v36  ;;  %3246 = vmatpush2.msra.mxu0 %v2435_v57  ;;  %2737 = vmatprep.subr.mxu1 %v8976_v13  ;;  %v428_v57 = vld [vmem:[%s5862_s11 + $0x490] sm:$0xff]  ;;  %v429_v1 = vld [vmem:[%s5862_s11 + $0x498] sm:$0xff] }
 0x118   : > { %v6475_v41 = vpop.f32.mrf.mxu0  ;;  %5476 = vmatmul.mubr.msk.f32.gmra.mxu0 %vm485_vm0, %v413_v35  ;;  %3247 = vmatprep.subr.mxu0 %v8976_v13  ;;  %v2429_v35 = vld [vmem:[%s8957_s2 + $0x390] sm:$0xff]  ;;  %v469_v36 = vld [vmem:[%s5862_s11 + $0x5d8] sm:$0xff] }
 0x119   : > { %9043 = vst [vmem:[#allocation4_spill] sm:$0xff] %v6475_v41  ;;  %5478 = vmatprep.mubr.msk.f32.mxu0 %vm485_vm0, %v414_v39  ;;  %3248 = vmatpush2.msra.mxu0 %v2434_v63  ;;  %v2347_v39 = vld [vmem:[%s8957_s2 + $0x100] sm:$0xff]  ;;  %v2377_v63 = vld [vmem:[%s8957_s2 + $0x1f0] sm:$0xff] }
 0x11a   : > { %v6487_v45 = vpop.f32.mrf.mxu0  ;;  %3249 = vmatprep.subr.mxu0 %v8976_v13  ;;  %2738 = vmatpush1.msra.mxu1 %v2348_v16  ;;  %v431_v16 = vld [vmem:[%s5862_s11 + $0x4a8] sm:$0xff] }
 0x11b   : > { %9044 = vst [vmem:[#allocation5_spill] sm:$0xff] %v6487_v45  ;;  %3250 = vmatpush2.msra.mxu0 %v2433_v10  ;;  %2739 = vmatprep.subr.mxu1 %v8976_v13  ;;  %v430_v10 = vld [vmem:[%s5862_s11 + $0x4a0] sm:$0xff] }
 0x11c   : > { %v6495_v50 = vpop.f32.mrf.mxu0  ;;  %5479 = vmatmul.mubr.msk.f32.gmra.mxu0 %vm485_vm0, %v415_v43  ;;  %3251 = vmatprep.subr.mxu0 %v8976_v13  ;;  %v425_v43 = vld [vmem:[%s5862_s11 + $0x478] sm:$0xff] }
 0x11d   : > { %5481 = vmatprep.mubr.msk.f32.mxu0 %vm485_vm0, %v416_v46  ;;  %3252 = vmatpush2.msra.mxu0 %v2432_v12  ;;  %v426_v46 = vld [vmem:[%s5862_s11 + $0x480] sm:$0xff]  ;;  %v2376_v12 = vld [vmem:[%s8957_s2 + $0x1e8] sm:$0xff] }
 0x11e   : > { %v6507_v54 = vpop.f32.mrf.mxu0  ;;  %3253 = vmatprep.subr.mxu0 %v8976_v13  ;;  %2740 = vmatpush1.msra.mxu1 %v2347_v39  ;;  %v434_v39 = vld [vmem:[%s5862_s11 + $0x4c0] sm:$0xff] }
 0x11f   : > { %3254 = vmatpush2.msra.mxu0 %v2431_v24  ;;  %2741 = vmatprep.subr.mxu1 %v8976_v13  ;;  %v432_v24 = vld [vmem:[%s5862_s11 + $0x4b0] sm:$0xff] }
 0x120   : > { %v6515_v62 = vpop.f32.mrf.mxu0  ;;  %5482 = vmatmul.mubr.msk.f32.gmra.mxu0 %vm485_vm0, %v417_v52  ;;  %3255 = vmatprep.subr.mxu0 %v8976_v13 }
 0x121   : > { %5484 = vmatprep.mubr.msk.f32.mxu0 %vm485_vm0, %v418_v56  ;;  %3256 = vmatpush2.msra.mxu0 %v2430_v30 }
 0x122   : > { %v6527_v3 = vpop.f32.mrf.mxu0  ;;  %3257 = vmatprep.subr.mxu0 %v8976_v13  ;;  %2742 = vmatpush2.msra.mxu1 %v2378_v51  ;;  %v436_v51 = vld [vmem:[%s5862_s11 + $0x4d0] sm:$0xff] }
 0x123   : > { %3258 = vmatpush2.msra.mxu0 %v2429_v35  ;;  %2743 = vmatprep.subr.mxu1 %v8976_v13 }
 0x124   : > { %v6535_v11 = vpop.f32.mrf.mxu0  ;;  %5485 = vmatmul.mubr.msk.f32.gmra.mxu0 %vm485_vm0, %v419_v0  ;;  %3259 = vmatprep.subr.mxu0 %v8976_v13 }
 0x125   : > { %9045 = vst [vmem:[#allocation6_spill] sm:$0xff] %v6535_v11  ;;  %5487 = vmatprep.mubr.msk.f32.mxu0 %vm485_vm0, %v420_v4  ;;  %3260 = vmatpush2.msra.mxu0 %v2428_v42 }
 0x126   : > { %v6547_v22 = vpop.f32.mrf.mxu0  ;;  %3261 = vmatprep.subr.mxu0 %v8976_v13  ;;  %2744 = vmatpush2.msra.mxu1 %v2377_v63  ;;  %v2373_v63 = vld [vmem:[%s8957_s2 + $0x1d0] sm:$0xff] }
 0x127   : > { %9046 = vst [vmem:[#allocation7_spill] sm:$0xff] %v6547_v22  ;;  %3262 = vmatpush2.msra.mxu0 %v2427_v47  ;;  %2745 = vmatprep.subr.mxu1 %v8976_v13 }
 0x128   : > { %v6555_v26 = vpop.f32.mrf.mxu0  ;;  %5488 = vmatmul.mubr.msk.f32.gmra.mxu0 %vm485_vm0, %v421_v15  ;;  %2746 = vmatpush2.msra.mxu1 %v2376_v12 }
 0x129   : > { %9047 = vst [vmem:[#allocation8_spill] sm:$0xff] %v6555_v26  ;;  %5490 = vmatprep.mubr.msk.f32.mxu0 %vm485_vm0, %v422_v23  ;;  %2747 = vmatprep.subr.mxu1 %v8976_v13 }
 0x12a   : > { %v6564_v32 = vpop.f32.mrf.mxu0 }
 0x12b   : > { %9048 = vst [vmem:[#allocation9_spill] sm:$0xff] %v6564_v32  ;;  %v2363_v32 = vld [vmem:[%s8957_s2 + $0x180] sm:$0xff] }
 0x12c   : > { %v6574_v40 = vpop.f32.mrf.mxu0  ;;  %5491 = vmatmul.mubr.msk.f32.gmra.mxu0 %vm485_vm0, %v423_v31  ;;  %v433_v31 = vld [vmem:[%s5862_s11 + $0x4b8] sm:$0xff] }
 0x12d   : > { %5493 = vmatprep.mubr.msk.f32.mxu0 %vm485_vm0, %v424_v34  ;;  %v2375_v34 = vld [vmem:[%s8957_s2 + $0x1e0] sm:$0xff] }
 0x12e   : > { %v6583_v44 = vpop.f32.mrf.mxu0  ;;  %2748 = vmatpush2.msra.mxu1 %v2375_v34  ;;  %v440_v34 = vld [vmem:[%s5862_s11 + $0x4f0] sm:$0xff] }
 0x12f   : > { %2749 = vmatprep.subr.mxu1 %v8976_v13 }
 0x130   : > { %v6594_v52 = vpop.f32.mrf.mxu0  ;;  %5494 = vmatmul.mubr.msk.f32.gmra.mxu0 %vm485_vm0, %v425_v43  ;;  %v435_v43 = vld [vmem:[%s5862_s11 + $0x4c8] sm:$0xff] }
 0x131   : > { %5496 = vmatprep.mubr.msk.f32.mxu0 %vm485_vm0, %v426_v46  ;;  %v2374_v46 = vld [vmem:[%s8957_s2 + $0x1d8] sm:$0xff] }
 0x132   : > { %v6600_v56 = vpop.f32.mrf.mxu0  ;;  %2750 = vmatpush2.msra.mxu1 %v2374_v46 }
 0x133   : > { %2751 = vmatprep.subr.mxu1 %v8976_v13 }
 0x134   : > { %v6607_v0 = vpop.f32.mrf.mxu0  ;;  %5497 = vmatmul.mubr.msk.f32.gmra.mxu0 %vm485_vm0, %v427_v53  ;;  %2752 = vmatpush2.msra.mxu1 %v2373_v63 }
 0x135   : > { %9049 = vst [vmem:[#allocation10_spill] sm:$0xff] %v6607_v0  ;;  %5499 = vmatprep.mubr.msk.f32.mxu0 %vm485_vm0, %v428_v57  ;;  %v437_v57 = vld [vmem:[%s5862_s11 + $0x4d8] sm:$0xff]  ;;  %2753 = vmatprep.subr.mxu1 %v8976_v13 }
 0x136   : > { %v6613_v4 = vpop.f32.mrf.mxu0 }
 0x137   : > { %9050 = vst [vmem:[#allocation11_spill] sm:$0xff] %v6613_v4 }
 0x138   : > { %v6619_v15 = vpop.f32.mrf.mxu0  ;;  %5500 = vmatmul.mubr.msk.f32.gmra.mxu0 %vm485_vm0, %v429_v1 }
 0x139   : > { %9051 = vst [vmem:[#allocation12_spill] sm:$0xff] %v6619_v15  ;;  %5502 = vmatprep.mubr.msk.f32.mxu0 %vm485_vm0, %v430_v10  ;;  %v438_v10 = vld [vmem:[%s5862_s11 + $0x4e0] sm:$0xff]  ;;  %v9057_v15 = vmov 0.0  }
 0x13a   : > { %v6625_v23 = vpop.f32.mrf.mxu0 }
 0x13b   : > { %9052 = vst [vmem:[#allocation13_spill] sm:$0xff] %v6625_v23  ;;  %v452_v23 = vld [vmem:[%s5862_s11 + $0x550] sm:$0xff] }
 0x13c   : > { %v6628_v30 = vpop.f32.mrf.mxu0  ;;  %5503 = vmatmul.mubr.msk.f32.gmra.mxu0 %vm485_vm0, %v431_v16  ;;  %v439_v16 = vld [vmem:[%s5862_s11 + $0x4e8] sm:$0xff] }
 0x13d   : > { %9053 = vst [vmem:[#allocation14_spill] sm:$0xff] %v6628_v30  ;;  %5505 = vmatprep.mubr.msk.f32.mxu0 %vm485_vm0, %v432_v24  ;;  %v2372_v24 = vld [vmem:[%s8957_s2 + $0x1c8] sm:$0xff] }
 0x13e   : > { %v6636_v35 = vpop.f32.mrf.mxu0  ;;  %2754 = vmatpush2.msra.mxu1 %v2372_v24  ;;  %v2371_v24 = vld [vmem:[%s8957_s2 + $0x1c0] sm:$0xff] }
 0x13f   : > { %9054 = vst [vmem:[#allocation15_spill] sm:$0xff] %v6636_v35  ;;  %2755 = vmatprep.subr.mxu1 %v8976_v13 }
 0x140   : > { %v6640_v42 = vpop.f32.mrf.mxu0  ;;  %5506 = vmatmul.mubr.msk.f32.gmra.mxu0 %vm485_vm0, %v433_v31  ;;  %2756 = vmatpush2.msra.mxu1 %v2371_v24 }
 0x141   : > { %9055 = vst [vmem:[#allocation16_spill] sm:$0xff] %v6640_v42  ;;  %5508 = vmatprep.mubr.msk.f32.mxu0 %vm485_vm0, %v434_v39  ;;  %2757 = vmatprep.subr.mxu1 %v8976_v13 }
 0x142   : > { %v6648_v47 = vpop.f32.mrf.mxu0 }
 0x143   : > { %9056 = vst [vmem:[#allocation17_spill] sm:$0xff] %v6648_v47 }
 0x144   : > { %v5366_v53 = vpop.f32.mrf.mxu0  ;;  %5509 = vmatmul.mubr.msk.f32.gmra.mxu0 %vm485_vm0, %v435_v43  ;;  %v441_v43 = vld [vmem:[%s5862_s11 + $0x4f8] sm:$0xff] }
 0x145   : > { %5511 = vmatprep.mubr.msk.f32.mxu0 %vm485_vm0, %v436_v51 }
 0x146   : > { %v1420_v1 = vpop.f32.mrf.mxu0 }
 0x147   : > { %v6672_v46 = vadd.f32 %v6209_v19, %v1420_v1 }
 0x148   : > { %v5369_v12 = vpop.f32.mrf.mxu0  ;;  %5512 = vmatmul.mubr.msk.f32.gmra.mxu0 %vm485_vm0, %v437_v57  ;;  %v442_v57 = vld [vmem:[%s5862_s11 + $0x500] sm:$0xff] }
 0x149   : > { %5514 = vmatprep.mubr.msk.f32.mxu0 %vm485_vm0, %v438_v10 }
 0x14a   : > { %v1430_v31 = vpop.f32.mrf.mxu0 }
 0x14b   : > { %v6712_v49 = vadd.f32 %v6209_v19, %v1430_v31  ;;  %v447_v31 = vld [vmem:[%s5862_s11 + $0x528] sm:$0xff] }
 0x14c   : > { %v5372_v39 = vpop.f32.mrf.mxu0  ;;  %5515 = vmatmul.mubr.msk.f32.gmra.mxu0 %vm485_vm0, %v439_v16 }
 0x14d   : > { %5517 = vmatprep.mubr.msk.f32.mxu0 %vm485_vm0, %v440_v34  ;;  %v6676_v63 = vadd.f32 %v5372_v39, %v6209_v19  ;;  %v443_v34 = vld [vmem:[%s5862_s11 + $0x508] sm:$0xff]  ;;  %v6690_v39 = vadd.f32 %v5366_v53, %v6209_v19 }
 0x14e   : > { %v1440_v51 = vpop.f32.mrf.mxu0 }
 0x14f   : > { %v6679_v10 = vadd.f32 %v6209_v19, %v1440_v51  ;;  %v8972_v51 = vmax.f32 %v6672_v46, 0.0  ;;  %v8971_v58 = vmax.f32 %v6676_v63, 0.0  ;;  %v8974_v53 = vmax.f32 %v6690_v39, 0.0 }
 0x150   : > { %v5375_v16 = vpop.f32.mrf.mxu0  ;;  %5518 = vmatmul.mubr.msk.f32.gmra.mxu0 %vm485_vm0, %v441_v43 }
 0x151   : > { %v8975_v1 = vmax.f32 %v6679_v10, 0.0  ;;  %5520 = vmatprep.mubr.msk.f32.mxu0 %vm485_vm0, %v442_v57  ;;  %v2370_v57 = vld [vmem:[%s8957_s2 + $0x1b8] sm:$0xff] }
 0x152   : > { %v1450_v20 = vpop.f32.mrf.mxu0  ;;  %2758 = vmatpush2.msra.mxu1 %v2370_v57  ;;  %v8978_v57 = vmax.f32 %v6712_v49, 0.0 }
 0x153   : > { %v6696_v43 = vadd.f32 %v6209_v19, %v1450_v20  ;;  %2588 = vmatprep.mubr.f32.mxu1 %v8975_v1  ;;  %v445_v20 = vld [vmem:[%s5862_s11 + $0x518] sm:$0xff]  ;;  %2759 = vmatprep.subr.mxu1 %v8976_v13 }
 0x154   : > { %v5378_v24 = vpop.f32.mrf.mxu0  ;;  %5521 = vmatmul.mubr.msk.f32.gmra.mxu0 %vm485_vm0, %v443_v34  ;;  %2589 = vmatmul.mubr.f32.gmra.mxu1 %v8972_v51  ;;  %v6716_v34 = vadd.f32 %v5375_v16, %v6209_v19  ;;  %v6733_v16 = vadd.f32 %v5369_v12, %v6209_v19  ;;  %v448_v51 = vld [vmem:[%s5862_s11 + $0x530] sm:$0xff] }
 0x155   : > { %2593 = vmatprep.mubr.f32.mxu1 %v8971_v58  ;;  %5523 = vmatprep.mubr.msk.f32.mxu0 %vm485_vm0, %v444_v8  ;;  %v8973_v17 = vmax.f32 %v6696_v43, 0.0  ;;  %v2369_v8 = vld [vmem:[%s8957_s2 + $0x1b0] sm:$0xff] }
 0x156   : > { %v1460_v37 = vpop.f32.mrf.mxu0  ;;  %2760 = vmatpush2.msra.mxu1 %v2369_v8  ;;  %v8980_v12 = vmax.f32 %v6733_v16, 0.0 }
 0x157   : > { %2761 = vmatprep.subr.mxu1 %v8976_v13  ;;  %v1461_v8 = vadd.f32 %v6209_v19, %v1460_v37  ;;  %v450_v13 = vld [vmem:[%s5862_s11 + $0x540] sm:$0xff] }
 0x158   : > { %v6723_v7 = vpop.f32.mrf.mxu0  ;;  %5524 = vmatmul.mubr.msk.f32.gmra.mxu0 %vm485_vm0, %v445_v20  ;;  %2594 = vmatmul.mubr.f32.gmra.mxu1 %v8974_v53  ;;  %v8979_v20 = vmax.f32 %v6716_v34, 0.0 }
 0x159   : > { %2598 = vmatprep.mubr.f32.mxu1 %v8973_v17  ;;  %5526 = vmatprep.mubr.msk.f32.mxu0 %vm485_vm0, %v446_v29  ;;  %v2368_v17 = vld [vmem:[%s8957_s2 + $0x1a8] sm:$0xff]  ;;  %v449_v29 = vld [vmem:[%s5862_s11 + $0x538] sm:$0xff] }
 0x15a   : > { %v1470_v58 = vpop.f32.mrf.mxu0  ;;  %2762 = vmatpush2.msra.mxu1 %v2368_v17  ;;  %v2367_v17 = vld [vmem:[%s8957_s2 + $0x1a0] sm:$0xff] }
 0x15b   : > { %2763 = vmatprep.subr.mxu1 %v9057_v15 }
 0x15c   : > { %v5384_v53 = vpop.f32.mrf.mxu0  ;;  %5527 = vmatmul.mubr.msk.f32.gmra.mxu0 %vm485_vm0, %v447_v31  ;;  %2599 = vmatmul.mubr.f32.gmra.mxu1 %v8978_v57 }
 0x15d   : > { %2603 = vmatprep.mubr.f32.mxu1 %v8979_v20  ;;  %5529 = vmatprep.mubr.msk.f32.mxu0 %vm485_vm0, %v448_v51  ;;  %v6753_v31 = vadd.f32 %v5384_v53, %v6209_v19  ;;  %v451_v51 = vld [vmem:[%s5862_s11 + $0x548] sm:$0xff]  ;;  %v6769_v53 = vmax.f32 %v1461_v8, 0.0 }
 0x15e   : > { %v1480_v1 = vpop.f32.mrf.mxu0  ;;  %2764 = vmatpush2.msra.mxu1 %v2367_v17  ;;  %v1471_v17 = vadd.f32 %v6209_v19, %v1470_v58  ;;  %v455_v58 = vld [vmem:[%s5862_s11 + $0x568] sm:$0xff] }
 0x15f   : > { %v6756_v57 = vadd.f32 %v6209_v19, %v1480_v1  ;;  %v1466_v1 = vadd.f32 %v5378_v24, %v6209_v19  ;;  %9058 = vst [vmem:[#allocation18_spill] sm:$0xff] %v6769_v53  ;;  %2765 = vmatprep.subr.mxu1 %v9057_v15  ;;  %v453_v24 = vld [vmem:[%s5862_s11 + $0x558] sm:$0xff] }
 0x160   : > { %v5387_v20 = vpop.f32.mrf.mxu0  ;;  %5530 = vmatmul.mubr.msk.f32.gmra.mxu0 %vm485_vm0, %v449_v29  ;;  %2604 = vmatmul.mubr.f32.gmra.mxu1 %v8980_v12  ;;  %v8982_v29 = vmax.f32 %v6753_v31, 0.0 }
 0x161   : > { %v8981_v37 = vmax.f32 %v6756_v57, 0.0  ;;  %5532 = vmatprep.mubr.msk.f32.mxu0 %vm485_vm0, %v450_v13  ;;  %v6788_v8 = vmax.f32 %v1466_v1, 0.0  ;;  %v6793_v47 = vadd.f32 %v5387_v20, %v6209_v19  ;;  %v2365_v20 = vld [vmem:[%s8957_s2 + $0x190] sm:$0xff]  ;;  %v1476_v1 = vadd.f32 %v6723_v7, %v6209_v19  ;;  %v2364_v7 = vld [vmem:[%s8957_s2 + $0x188] sm:$0xff] }
 0x162   : > { %v1490_v42 = vpop.f32.mrf.mxu0 }
 0x163   : > { %v6774_v12 = vadd.f32 %v6209_v19, %v1490_v42  ;;  %2608 = vmatprep.mubr.f32.mxu1 %v8981_v37  ;;  %v2366_v42 = vld [vmem:[%s8957_s2 + $0x198] sm:$0xff]  ;;  %9059 = vst [vmem:[#allocation19_spill] sm:$0xff] %v6788_v8  ;;  %v8984_v30 = vmax.f32 %v6793_v47, 0.0 }
 0x164   : > { %v5390_v13 = vpop.f32.mrf.mxu0  ;;  %5533 = vmatmul.mubr.msk.f32.gmra.mxu0 %vm485_vm0, %v451_v51  ;;  %2609 = vmatmul.mubr.f32.gmra.mxu1 %v6769_v53  ;;  %v454_v51 = vld [vmem:[%s5862_s11 + $0x560] sm:$0xff]  ;;  %v457_v19 = vld [vmem:[%s5862_s11 + $0x578] sm:$0xff] }
 0x165   : > { %2613 = vmatprep.mubr.f32.mxu1 %v8982_v29  ;;  %5535 = vmatprep.mubr.msk.f32.mxu0 %vm485_vm0, %v452_v23  ;;  %v8983_v29 = vmax.f32 %v6774_v12, 0.0 }
 0x166   : > { %v1500_v37 = vpop.f32.mrf.mxu0  ;;  %2766 = vmatpush2.msra.mxu1 %v2366_v42  ;;  %v6810_v42 = vmax.f32 %v1471_v17, 0.0  ;;  %v6824_v17 = vmax.f32 %v1476_v1, 0.0 }
 0x167   : > { %2767 = vmatprep.subr.mxu1 %v9057_v15 }
 0x168   : > { %v6797_v23 = vpop.f32.mrf.mxu0  ;;  %5536 = vmatmul.mubr.msk.f32.gmra.mxu0 %vm485_vm0, %v453_v24  ;;  %2614 = vmatmul.mubr.f32.gmra.mxu1 %v6788_v8  ;;  %9060 = vst [vmem:[#allocation20_spill] sm:$0xff] %v6810_v42  ;;  %v456_v24 = vld [vmem:[%s5862_s11 + $0x570] sm:$0xff]  ;;  %9061 = vst [vmem:[#allocation21_spill] sm:$0xff] %v6824_v17 }
 0x169   : > { %2618 = vmatprep.mubr.f32.mxu1 %v8983_v29  ;;  %5538 = vmatprep.mubr.msk.f32.mxu0 %vm485_vm0, %v454_v51  ;;  %v6829_v51 = vld [vmem:[%s8961_s6] ss:$0 sm:$0xff] }
 0x16a   : > { %v1510_v0 = vpop.f32.mrf.mxu0  ;;  %2768 = vmatpush2.msra.mxu1 %v2365_v20 }
 0x16b   : > { %2769 = vmatprep.subr.mxu1 %v9057_v15 }
 0x16c   : > { %v5396_v29 = vpop.f32.mrf.mxu0  ;;  %5539 = vmatmul.mubr.msk.f32.gmra.mxu0 %vm485_vm0, %v455_v58  ;;  %2619 = vmatmul.mubr.f32.gmra.mxu1 %v6810_v42  ;;  %v1501_v58 = vadd.f32 %v6829_v51, %v1500_v37  ;;  %v459_v37 = vld [vmem:[%s5862_s11 + $0x588] sm:$0xff] }
 0x16d   : > { %2623 = vmatprep.mubr.f32.mxu1 %v8984_v30  ;;  %5541 = vmatprep.mubr.msk.f32.mxu0 %vm485_vm0, %v456_v24  ;;  %v458_v30 = vld [vmem:[%s5862_s11 + $0x580] sm:$0xff]  ;;  %v6834_v24 = vadd.f32 %v6829_v51, %v5396_v29 }
 0x16e   : > { %v1520_v20 = vpop.f32.mrf.mxu0  ;;  %2770 = vmatpush2.msra.mxu1 %v2364_v7  ;;  %v1506_v7 = vadd.f32 %v6829_v51, %v5390_v13  ;;  %v6846_v29 = vmax.f32 %v1501_v58, 0.0  ;;  %v461_v13 = vld [vmem:[%s5862_s11 + $0x598] sm:$0xff] }
 0x16f   : > { %v6837_v4 = vadd.f32 %v6829_v51, %v1520_v20  ;;  %2771 = vmatprep.subr.mxu1 %v9057_v15  ;;  %v460_v20 = vld [vmem:[%s5862_s11 + $0x590] sm:$0xff] }
 0x170   : > { %v5399_v1 = vpop.f32.mrf.mxu0  ;;  %5542 = vmatmul.mubr.msk.f32.gmra.mxu0 %vm485_vm0, %v457_v19  ;;  %2624 = vmatmul.mubr.f32.gmra.mxu1 %v6824_v17  ;;  %9062 = vst [vmem:[#allocation22_spill] sm:$0xff] %v6846_v29  ;;  %v8986_v19 = vmax.f32 %v6834_v24, 0.0  ;;  %v6866_v58 = vmax.f32 %v1506_v7, 0.0 }
 0x171   : > { %v8985_v35 = vmax.f32 %v6837_v4, 0.0  ;;  %5544 = vmatprep.mubr.msk.f32.mxu0 %vm485_vm0, %v458_v30  ;;  %2772 = vmatpush2.msra.mxu1 %v2363_v32  ;;  %v462_v32 = vld [vmem:[%s5862_s11 + $0x5a0] sm:$0xff] }
 0x172   : > { %v1530_v26 = vpop.f32.mrf.mxu0  ;;  %9064 = vst [vmem:[#allocation24_spill] sm:$0xff] %v6866_v58  ;;  %2954 = vmatprep.subr.mxu1 %v9057_v15 }
 0x173   : > { %v6854_v11 = vadd.f32 %v6829_v51, %v1530_v26  ;;  %2628 = vmatprep.mubr.f32.mxu1 %v8985_v35  ;;  %v1511_v26 = vadd.f32 %v6829_v51, %v1510_v0  ;;  %v463_v0 = vld [vmem:[%s5862_s11 + $0x5a8] sm:$0xff] }
 0x174   : > { %v6858_v30 = vpop.f32.mrf.mxu0  ;;  %5545 = vmatmul.mubr.msk.f32.gmra.mxu0 %vm485_vm0, %v459_v37  ;;  %2629 = vmatmul.mubr.f32.gmra.mxu1 %v6846_v29  ;;  %v6874_v37 = vadd.f32 %v6829_v51, %v5399_v1  ;;  %v1516_v1 = vadd.f32 %v6829_v51, %v6797_v23  ;;  %v465_v23 = vld [vmem:[%s5862_s11 + $0x5b8] sm:$0xff] }
 0x175   : > { %9063 = vst [vmem:[#allocation23_spill] sm:$0xff] %v6858_v30  ;;  %2633 = vmatprep.mubr.f32.mxu1 %v8986_v19  ;;  %5547 = vmatprep.mubr.msk.f32.mxu0 %vm485_vm0, %v460_v20  ;;  %v8987_v22 = vmax.f32 %v6854_v11, 0.0  ;;  %v6887_v7 = vmax.f32 %v1511_v26, 0.0  ;;  %v464_v19 = vld [vmem:[%s5862_s11 + $0x5b0] sm:$0xff] }
 0x176   : > { %v6869_v35 = vpop.f32.mrf.mxu0  ;;  %v6901_v26 = vmax.f32 %v1516_v1, 0.0 }
 0x177   : > { %9065 = vst [vmem:[#allocation25_spill] sm:$0xff] %v6869_v35  ;;  %9067 = vst [vmem:[#allocation27_spill] sm:$0xff] %v6887_v7 }
 0x178   : > { %v6877_v41 = vpop.f32.mrf.mxu0  ;;  %5548 = vmatmul.mubr.msk.f32.gmra.mxu0 %vm485_vm0, %v461_v13  ;;  %2634 = vmatmul.mubr.f32.gmra.mxu1 %v6866_v58  ;;  %v8988_v13 = vmax.f32 %v6874_v37, 0.0  ;;  %9069 = vst [vmem:[#allocation29_spill] sm:$0xff] %v6901_v26 }
 0x179   : > { %9066 = vst [vmem:[#allocation26_spill] sm:$0xff] %v6877_v41  ;;  %2638 = vmatprep.mubr.f32.mxu1 %v8987_v22  ;;  %5550 = vmatprep.mubr.msk.f32.mxu0 %vm485_vm0, %v462_v32  ;;  %v466_v22 = vld [vmem:[%s5862_s11 + $0x5c0] sm:$0xff] }
 0x17a   : > { %v6889_v20 = vpop.f32.mrf.mxu0 }
 0x17b   : > { %9068 = vst [vmem:[#allocation28_spill] sm:$0xff] %v6889_v20 }
 0x17c   : > { %v6893_v45 = vpop.f32.mrf.mxu0  ;;  %5551 = vmatmul.mubr.msk.f32.gmra.mxu0 %vm485_vm0, %v463_v0  ;;  %2639 = vmatmul.mubr.f32.gmra.mxu1 %v6887_v7  ;;  %v467_v0 = vld [vmem:[%s5862_s11 + $0x5c8] sm:$0xff] }
 0x17d   : > { %2643 = vmatprep.mubr.f32.mxu1 %v8988_v13  ;;  %5553 = vmatprep.mubr.msk.f32.mxu0 %vm485_vm0, %v464_v19  ;;  %v468_v19 = vld [vmem:[%s5862_s11 + $0x5d0] sm:$0xff] }
 0x17e   : > { %v6903_v32 = vpop.f32.mrf.mxu0 }
 0x180   : > { %v6906_v33 = vpop.f32.mrf.mxu0  ;;  %5554 = vmatmul.mubr.msk.f32.gmra.mxu0 %vm485_vm0, %v465_v23  ;;  %2644 = vmatmul.mubr.f32.gmra.mxu1 %v6901_v26  ;;  %v470_v23 = vld [vmem:[%s5862_s11 + $0x5e0] sm:$0xff] }
 0x181   : > { %9070 = vst [vmem:[#allocation30_spill] sm:$0xff] %v6906_v33  ;;  %5556 = vmatprep.mubr.msk.f32.mxu0 %vm485_vm0, %v466_v22  ;;  %v471_v22 = vld [vmem:[%s5862_s11 + $0x5e8] sm:$0xff] }
 0x182   : > { %v6912_v13 = vpop.f32.mrf.mxu0 }
 0x184   : > { %v6915_v1 = vpop.f32.mrf.mxu0  ;;  %5557 = vmatmul.mubr.msk.f32.gmra.mxu0 %vm485_vm0, %v467_v0 }
 0x185   : > { %9071 = vst [vmem:[#allocation31_spill] sm:$0xff] %v6915_v1  ;;  %5559 = vmatprep.mubr.msk.f32.mxu0 %vm485_vm0, %v468_v19  ;;  %v472_v1 = vld [vmem:[%s5862_s11 + $0x5f0] sm:$0xff]  ;;  %v473_v19 = vld [vmem:[%s5862_s11 + $0x5f8] sm:$0xff] }
 0x186   : > { %v6920_v41 = vpop.f32.mrf.mxu0 }
 0x187   : > { %9072 = vst [vmem:[#allocation32_spill] sm:$0xff] %v6920_v41 }
 0x188   : > { %v6923_v20 = vpop.f32.mrf.mxu0  ;;  %5560 = vmatmul.mubr.msk.f32.gmra.mxu0 %vm485_vm0, %v469_v36  ;;  %v475_v36 = vld [vmem:[%s5862_s11 + $0x608] sm:$0xff] }
 0x189   : > { %9073 = vst [vmem:[#allocation33_spill] sm:$0xff] %v6923_v20  ;;  %5562 = vmatprep.mubr.msk.f32.mxu0 %vm485_vm0, %v470_v23  ;;  %v474_v20 = vld [vmem:[%s5862_s11 + $0x600] sm:$0xff] }
 0x18a   : > { %v6928_v30 = vpop.f32.mrf.mxu0 }
 0x18b   : > { %9074 = vst [vmem:[#allocation34_spill] sm:$0xff] %v6928_v30  ;;  %v476_v30 = vld [vmem:[%s5862_s11 + $0x610] sm:$0xff] }
 0x18c   : > { %v6931_v0 = vpop.f32.mrf.mxu0  ;;  %5563 = vmatmul.mubr.msk.f32.gmra.mxu0 %vm485_vm0, %v471_v22 }
 0x18d   : > { %9075 = vst [vmem:[#allocation35_spill] sm:$0xff] %v6931_v0  ;;  %5565 = vmatprep.mubr.msk.f32.mxu0 %vm485_vm0, %v472_v1  ;;  %v477_v1 = vld [vmem:[%s5862_s11 + $0x618] sm:$0xff] }
 0x18e   : > { %v6936_v41 = vpop.f32.mrf.mxu0 }
 0x190   : > { %v6939_v35 = vpop.f32.mrf.mxu0  ;;  %5566 = vmatmul.mubr.msk.f32.gmra.mxu0 %vm485_vm0, %v473_v19  ;;  %v9080_v19 = vmax.f32 %v6679_v10, 0.0  ;;  %v9086_v10 = vmax.f32 %v6696_v43, 0.0  ;;  %v9095_v43 = vmax.f32 %v6733_v16, 0.0 }
 0x191   : > { %9076 = vst [vmem:[#allocation36_spill] sm:$0xff] %v6939_v35  ;;  %5568 = vmatprep.mubr.msk.f32.mxu0 %vm485_vm0, %v474_v20 }
 0x192   : > { %v6944_v23 = vpop.f32.mrf.mxu0 }
 0x194   : > { %v6947_v33 = vpop.f32.mrf.mxu0  ;;  %5569 = vmatmul.mubr.msk.f32.gmra.mxu0 %vm485_vm0, %v475_v36  ;;  %v9083_v36 = vmax.f32 %v6676_v63, 0.0 }
 0x195   : > { %9077 = vst [vmem:[#allocation37_spill] sm:$0xff] %v6947_v33  ;;  %5571 = vmatprep.mubr.msk.f32.mxu0 %vm485_vm0, %v476_v30  ;;  %v9082_v33 = vmax.f32 %v6672_v46, 0.0  ;;  %v9091_v46 = vmax.f32 %v6716_v34, 0.0 }
 0x196   : > { %v6952_v22 = vpop.f32.mrf.mxu0 }
 0x197   : > { %9078 = vst [vmem:[#allocation38_spill] sm:$0xff] %v6952_v22 }
 0x198   : > { %v6954_v0 = vpop.f32.mrf.mxu0  ;;  %5572 = vmatmul.mubr.msk.f32.gmra.mxu0 %vm485_vm0, %v477_v1 }
 0x199   : > { %9079 = vst [vmem:[#allocation39_spill] sm:$0xff] %v6954_v0  ;;  %3263 = vmatprep.mubr.f32.mxu0 %v9080_v19  ;;  %v9085_v0 = vmax.f32 %v6690_v39, 0.0 }
 0x19a   : > { %v6959_v20 = vpop.f32.mrf.mxu0 }
 0x19b   : > { %9081 = vst [vmem:[#allocation40_spill] sm:$0xff] %v6959_v20 }
 0x19c   : > { %v6961_v35 = vpop.f32.mrf.mxu0  ;;  %3264 = vmatmul.mubr.f32.vlgmr.msra.gmra.mxu0 %v9082_v33  ;;  %v9090_v33 = vmax.f32 %v6712_v49, 0.0 }
 0x19d   : > { %3268 = vmatprep.mubr.f32.mxu0 %v9083_v36 }
 0x19e   : > { %v6967_v30 = vpop.f32.mrf.mxu0 }
 0x1a0   : > { %v6969_v22 = vpop.f32.mrf.mxu0  ;;  %3269 = vmatmul.mubr.f32.gmra.mxu0 %v9085_v0 }
 0x1a1   : > { %9084 = vst [vmem:[#allocation41_spill] sm:$0xff] %v6969_v22  ;;  %3273 = vmatprep.mubr.f32.mxu0 %v9086_v10  ;;  %v9096_v10 = vmax.f32 %v6756_v57, 0.0  ;;  %v9104_v57 = vmax.f32 %v6774_v12, 0.0  ;;  %v9109_v12 = vmax.f32 %v6837_v4, 0.0 }
 0x1a2   : > { %v6975_v1 = vpop.f32.mrf.mxu0 }
 0x1a3   : > { %9087 = vst [vmem:[#allocation42_spill] sm:$0xff] %v6975_v1 }
 0x1a4   : > { %v6977_v19 = vpop.f32.mrf.mxu0  ;;  %v6979_v20 = vpop.f32.mrf.mxu1  ;;  %3274 = vmatmul.mubr.f32.gmra.mxu0 %v9090_v33 }
 0x1a5   : > { %9088 = vst [vmem:[#allocation43_spill] sm:$0xff] %v6977_v19  ;;  %9089 = vst [vmem:[#allocation44_spill] sm:$0xff] %v6979_v20  ;;  %3278 = vmatprep.mubr.f32.mxu0 %v9091_v46  ;;  %v9100_v46 = vmax.f32 %v6753_v31, 0.0  ;;  %v9107_v31 = vmax.f32 %v6793_v47, 0.0  ;;  %v9111_v47 = vmax.f32 %v6834_v24, 0.0 }
 0x1a6   : > { %v6985_v63 = vpop.f32.mrf.mxu0  ;;  %v2532_v36 = vpop.f32.mrf.mxu1 }
 0x1a7   : > { %9092 = vst [vmem:[#allocation45_spill] sm:$0xff] %v6985_v63 }
 0x1a8   : > { %v6987_v39 = vpop.f32.mrf.mxu0  ;;  %v6989_v0 = vpop.f32.mrf.mxu1  ;;  %3279 = vmatmul.mubr.f32.gmra.mxu0 %v9095_v43 }
 0x1a9   : > { %9093 = vst [vmem:[#allocation46_spill] sm:$0xff] %v6987_v39  ;;  %9094 = vst [vmem:[#allocation47_spill] sm:$0xff] %v6989_v0  ;;  %3283 = vmatprep.mubr.f32.mxu0 %v9096_v10 }
 0x1aa   : > { %v6995_v19 = vpop.f32.mrf.mxu0  ;;  %v2537_v49 = vpop.f32.mrf.mxu1 }
 0x1ab   : > { %9097 = vst [vmem:[#allocation48_spill] sm:$0xff] %v6995_v19 }
 0x1ac   : > { %v6997_v33 = vpop.f32.mrf.mxu0  ;;  %v6999_v34 = vpop.f32.mrf.mxu1  ;;  %3284 = vmatmul.mubr.f32.gmra.mxu0 %v6769_v53 }
 0x1ad   : > { %9098 = vst [vmem:[#allocation49_spill] sm:$0xff] %v6997_v33  ;;  %9099 = vst [vmem:[#allocation50_spill] sm:$0xff] %v6999_v34  ;;  %3288 = vmatprep.mubr.f32.mxu0 %v9100_v46 }
 0x1ae   : > { %v7004_v36 = vpop.f32.mrf.mxu0  ;;  %v2542_v39 = vpop.f32.mrf.mxu1 }
 0x1af   : > { %9101 = vst [vmem:[#allocation51_spill] sm:$0xff] %v7004_v36 }
 0x1b0   : > { %v7006_v16 = vpop.f32.mrf.mxu0  ;;  %v7008_v43 = vpop.f32.mrf.mxu1  ;;  %3289 = vmatmul.mubr.f32.gmra.mxu0 %v6788_v8 }
 0x1b1   : > { %9102 = vst [vmem:[#allocation52_spill] sm:$0xff] %v7006_v16  ;;  %9103 = vst [vmem:[#allocation53_spill] sm:$0xff] %v7008_v43  ;;  %3293 = vmatprep.mubr.f32.mxu0 %v9104_v57 }
 0x1b2   : > { %v7013_v10 = vpop.f32.mrf.mxu0  ;;  %v2547_v49 = vpop.f32.mrf.mxu1 }
 0x1b3   : > { %9105 = vst [vmem:[#allocation54_spill] sm:$0xff] %v7013_v10 }
 0x1b4   : > { %v5450_v19 = vpop.f32.mrf.mxu0  ;;  %v7015_v33 = vpop.f32.mrf.mxu1  ;;  %3294 = vmatmul.mubr.f32.gmra.mxu0 %v6810_v42 }
 0x1b5   : > { %9106 = vst [vmem:[#allocation55_spill] sm:$0xff] %v7015_v33  ;;  %3298 = vmatprep.mubr.f32.mxu0 %v9107_v31  ;;  %v1706_v24 = vadd.f32 %v6829_v51, %v5450_v19 }
 0x1b6   : > { %v1700_v39 = vpop.f32.mrf.mxu0  ;;  %v2552_v46 = vpop.f32.mrf.mxu1 }
 0x1b7   : > { %v1701_v31 = vadd.f32 %v6829_v51, %v1700_v39 }
 0x1b8   : > { %v5453_v16 = vpop.f32.mrf.mxu0  ;;  %v7020_v63 = vpop.f32.mrf.mxu1  ;;  %3299 = vmatmul.mubr.f32.gmra.mxu0 %v6824_v17 }
 0x1b9   : > { %9108 = vst [vmem:[#allocation56_spill] sm:$0xff] %v7020_v63  ;;  %3303 = vmatprep.mubr.f32.mxu0 %v9109_v12 }
 0x1ba   : > { %v1710_v57 = vpop.f32.mrf.mxu0  ;;  %v2557_v49 = vpop.f32.mrf.mxu1 }
 0x1bb   : > { %v1711_v19 = vadd.f32 %v6829_v51, %v1710_v57 }
 0x1bc   : > { %v5456_v10 = vpop.f32.mrf.mxu0  ;;  %v7025_v36 = vpop.f32.mrf.mxu1  ;;  %3304 = vmatmul.mubr.f32.gmra.mxu0 %v6846_v29 }
 0x1bd   : > { %9110 = vst [vmem:[#allocation57_spill] sm:$0xff] %v7025_v36  ;;  %3308 = vmatprep.mubr.f32.mxu0 %v9111_v47  ;;  %v1726_v63 = vadd.f32 %v6829_v51, %v5456_v10  ;;  %v9113_v36 = vmax.f32 %v6854_v11, 0.0  ;;  %v2231_v47 = vmax.f32 %v1701_v31, 0.0  ;;  %v2232_v11 = vmax.f32 %v1706_v24, 0.0 }
 0x1be   : > { %v1720_v46 = vpop.f32.mrf.mxu0  ;;  %v2562_v33 = vpop.f32.mrf.mxu1 }
 0x1bf   : > { %v1721_v43 = vadd.f32 %v6829_v51, %v1720_v46  ;;  %v2236_v0 = vmax.f32 %v1726_v63, 0.0 }
 0x1c0   : > { %v5459_v4 = vpop.f32.mrf.mxu0  ;;  %v7033_v12 = vpop.f32.mrf.mxu1  ;;  %3309 = vmatmul.mubr.f32.gmra.mxu0 %v6866_v58 }
 0x1c1   : > { %9112 = vst [vmem:[#allocation58_spill] sm:$0xff] %v7033_v12  ;;  %v2235_v49 = vmax.f32 %v1721_v43, 0.0  ;;  %3313 = vmatprep.mubr.f32.mxu0 %v9113_v36  ;;  %v9115_v43 = vmax.f32 %v6874_v37, 0.0  ;;  %v1736_v63 = vadd.f32 %v6829_v51, %v5459_v4  ;;  %v2233_v37 = vmax.f32 %v1711_v19, 0.0 }
 0x1c2   : > { %v1730_v34 = vpop.f32.mrf.mxu0  ;;  %v2567_v39 = vpop.f32.mrf.mxu1 }
 0x1c3   : > { %v1731_v33 = vadd.f32 %v6829_v51, %v1730_v34  ;;  %2648 = vmatprep.mubr.f32.mxu1 %v2235_v49  ;;  %v2238_v20 = vmax.f32 %v1736_v63, 0.0 }
 0x1c4   : > { %v5462_v10 = vpop.f32.mrf.mxu0  ;;  %v7040_v46 = vpop.f32.mrf.mxu1  ;;  %2649 = vmatmul.mubr.f32.gmra.mxu1 %v2231_v47  ;;  %3314 = vmatmul.mubr.f32.gmra.mxu0 %v6887_v7 }
 0x1c5   : > { %9114 = vst [vmem:[#allocation59_spill] sm:$0xff] %v7040_v46  ;;  %2653 = vmatprep.mubr.f32.mxu1 %v2236_v0  ;;  %3318 = vmatprep.mubr.f32.mxu0 %v9115_v43  ;;  %v2237_v39 = vmax.f32 %v1731_v33, 0.0  ;;  %v1716_v46 = vadd.f32 %v6829_v51, %v5453_v16 }
 0x1c6   : > { %v1740_v36 = vpop.f32.mrf.mxu0  ;;  %v2572_v31 = vpop.f32.mrf.mxu1 }
 0x1c7   : > { %v2234_v4 = vmax.f32 %v1716_v46, 0.0  ;;  %v1741_v33 = vadd.f32 %v6829_v51, %v1740_v36 }
 0x1c8   : > { %v5465_v34 = vpop.f32.mrf.mxu0  ;;  %v7047_v12 = vpop.f32.mrf.mxu1  ;;  %2654 = vmatmul.mubr.f32.gmra.mxu1 %v2232_v11  ;;  %3319 = vmatmul.mubr.f32.gmra.mxu0 %v6901_v26 }
 0x1c9   : > { %9116 = vst [vmem:[#allocation60_spill] sm:$0xff] %v7047_v12  ;;  %2658 = vmatprep.mubr.f32.mxu1 %v2237_v39  ;;  %3323 = vmatprep.mubr.f32.mxu0 %v2235_v49 }
 0x1ca   : > { %v1750_v43 = vpop.f32.mrf.mxu0  ;;  %v2577_v24 = vpop.f32.mrf.mxu1 }
 0x1cb   : > { %v7059_v24 = vmax.f32 %v1741_v33, 0.0 }
 0x1cc   : > { %v5468_v57 = vpop.f32.mrf.mxu0  ;;  %v7051_v22 = vpop.f32.mrf.mxu1  ;;  %2659 = vmatmul.mubr.f32.gmra.mxu1 %v2233_v37  ;;  %3324 = vmatmul.mubr.f32.gmra.mxu0 %v2231_v47  ;;  %v1746_v47 = vadd.f32 %v6829_v51, %v5462_v10 }
 0x1cd   : > { %9117 = vst [vmem:[#allocation61_spill] sm:$0xff] %v7051_v22  ;;  %2663 = vmatprep.mubr.f32.mxu1 %v2238_v20  ;;  %3328 = vmatprep.mubr.f32.mxu0 %v2236_v0  ;;  %v1766_v49 = vadd.f32 %v6829_v51, %v5468_v57 }
 0x1ce   : > { %v1760_v31 = vpop.f32.mrf.mxu0  ;;  %v2582_v12 = vpop.f32.mrf.mxu1 }
 0x1cf   : > { %v1761_v16 = vadd.f32 %v6829_v51, %v1760_v31  ;;  %v2244_v36 = vmax.f32 %v1766_v49, 0.0  ;;  %v7063_v31 = vmax.f32 %v1746_v47, 0.0  ;;  %v1756_v49 = vadd.f32 %v6829_v51, %v5465_v34 }
 0x1d0   : > { %v5471_v19 = vpop.f32.mrf.mxu0  ;;  %v7056_v1 = vpop.f32.mrf.mxu1  ;;  %2664 = vmatmul.mubr.f32.gmra.mxu1 %v2234_v4  ;;  %3329 = vmatmul.mubr.f32.gmra.mxu0 %v2232_v11  ;;  %v1751_v11 = vadd.f32 %v6829_v51, %v1750_v43 }
 0x1d1   : > { %9118 = vst [vmem:[#allocation62_spill] sm:$0xff] %v7056_v1  ;;  %v2243_v63 = vmax.f32 %v1761_v16, 0.0  ;;  %3333 = vmatprep.mubr.f32.mxu0 %v2237_v39  ;;  %v1776_v10 = vadd.f32 %v6829_v51, %v5471_v19  ;;  %v7073_v43 = vmax.f32 %v1756_v49, 0.0 }
 0x1d2   : > { %v1770_v0 = vpop.f32.mrf.mxu0  ;;  %v2587_v46 = vpop.f32.mrf.mxu1 }
 0x1d3   : > { %v1771_v12 = vadd.f32 %v6829_v51, %v1770_v0  ;;  %2668 = vmatprep.mubr.f32.mxu1 %v2243_v63  ;;  %v7069_v0 = vmax.f32 %v1751_v11, 0.0 }
 0x1d4   : > { %v5474_v57 = vpop.f32.mrf.mxu0  ;;  %2669 = vmatmul.mubr.f32.gmra.mxu1 %v7059_v24  ;;  %3334 = vmatmul.mubr.f32.gmra.mxu0 %v2233_v37 }
 0x1d5   : > { %2673 = vmatprep.mubr.f32.mxu1 %v2244_v36  ;;  %3338 = vmatprep.mubr.f32.mxu0 %v2238_v20  ;;  %v2245_v33 = vmax.f32 %v1771_v12, 0.0  ;;  %v2246_v20 = vmax.f32 %v1776_v10, 0.0  ;;  %v1786_v11 = vadd.f32 %v6829_v51, %v5474_v57 }
 0x1d6   : > { %v1780_v39 = vpop.f32.mrf.mxu0 }
 0x1d7   : > { %v1781_v19 = vadd.f32 %v6829_v51, %v1780_v39 }
 0x1d8   : > { %v5477_v16 = vpop.f32.mrf.mxu0  ;;  %2674 = vmatmul.mubr.f32.gmra.mxu1 %v7063_v31  ;;  %3339 = vmatmul.mubr.f32.gmra.mxu0 %v2234_v4 }
 0x1d9   : > { %2678 = vmatprep.mubr.f32.mxu1 %v2245_v33  ;;  %3343 = vmatprep.mubr.f32.mxu0 %v2243_v63  ;;  %v7081_v10 = vmax.f32 %v1781_v19, 0.0 }
 0x1da   : > { %v1790_v37 = vpop.f32.mrf.mxu0 }
 0x1db   : > { %v1791_v57 = vadd.f32 %v6829_v51, %v1790_v37  ;;  %v1281_v37 = vadd.f32 %v6829_v51, %v6429_v21 }
 0x1dc   : > { %v5480_v47 = vpop.f32.mrf.mxu0  ;;  %2679 = vmatmul.mubr.f32.gmra.mxu1 %v7069_v0  ;;  %3344 = vmatmul.mubr.f32.gmra.mxu0 %v7059_v24 }
 0x1dd   : > { %2683 = vmatprep.mubr.f32.mxu1 %v2246_v20  ;;  %3348 = vmatprep.mubr.f32.mxu0 %v2244_v36  ;;  %v1806_v63 = vadd.f32 %v6829_v51, %v5480_v47 }
 0x1de   : > { %v1800_v4 = vpop.f32.mrf.mxu0 }
 0x1df   : > { %v1801_v34 = vadd.f32 %v6829_v51, %v1800_v4  ;;  %v2252_v49 = vmax.f32 %v1806_v63, 0.0  ;;  %v7088_v4 = vmax.f32 %v1786_v11, 0.0 }
 0x1e0   : > { %v5483_v46 = vpop.f32.mrf.mxu0  ;;  %2684 = vmatmul.mubr.f32.gmra.mxu1 %v7073_v43  ;;  %3349 = vmatmul.mubr.f32.gmra.mxu0 %v7063_v31 }
 0x1e1   : > { %v2251_v12 = vmax.f32 %v1801_v34, 0.0  ;;  %3353 = vmatprep.mubr.f32.mxu0 %v2245_v33  ;;  %v1816_v19 = vadd.f32 %v6829_v51, %v5483_v46  ;;  %v1796_v34 = vadd.f32 %v6829_v51, %v5477_v16  ;;  %v1286_v16 = vadd.f32 %v6829_v51, %v6418_v14 }
 0x1e2   : > { %v1810_v36 = vpop.f32.mrf.mxu0 }
 0x1e3   : > { %v1811_v39 = vadd.f32 %v6829_v51, %v1810_v36  ;;  %2688 = vmatprep.mubr.f32.mxu1 %v2251_v12  ;;  %v7099_v36 = vmax.f32 %v1791_v57, 0.0  ;;  %v2254_v11 = vmax.f32 %v1816_v19, 0.0  ;;  %v7109_v46 = vmax.f32 %v1796_v34, 0.0 }
 0x1e4   : > { %v7084_v1 = vpop.f32.mrf.mxu0  ;;  %2689 = vmatmul.mubr.f32.gmra.mxu1 %v7081_v10  ;;  %3354 = vmatmul.mubr.f32.gmra.mxu0 %v7069_v0  ;;  %v2147_v57 = vmax.f32 %v1281_v37, 0.0  ;;  %v2148_v19 = vmax.f32 %v1286_v16, 0.0  ;;  %v1291_v34 = vadd.f32 %v6829_v51, %v6448_v27  ;;  %v9120_v37 = vmax.f32 %v6266_v60, 0.0  ;;  %v2392_v60 = vld [vmem:[%s8957_s2 + $0x268] sm:$0xff] }
 0x1e5   : > { %v2253_v47 = vmax.f32 %v1811_v39, 0.0  ;;  %2693 = vmatprep.mubr.f32.mxu1 %v2252_v49  ;;  %3358 = vmatprep.mubr.f32.mxu0 %v2246_v20  ;;  %v1296_v27 = vadd.f32 %v6829_v51, %v6440_v25  ;;  %v2391_v25 = vld [vmem:[%s8957_s2 + $0x260] sm:$0xff] }
 0x1e6   : > { %v7091_v33 = vpop.f32.mrf.mxu0  ;;  %v2149_v16 = vmax.f32 %v1291_v34, 0.0  ;;  %v9124_v34 = vmax.f32 %v6303_v18, 0.0 }
 0x1e8   : > { %v7094_v63 = vpop.f32.mrf.mxu0  ;;  %2694 = vmatmul.mubr.f32.gmra.mxu1 %v7088_v4  ;;  %3359 = vmatmul.mubr.f32.gmra.mxu0 %v7073_v43 }
 0x1e9   : > { %2698 = vmatprep.mubr.f32.mxu1 %v2253_v47  ;;  %3363 = vmatprep.mubr.f32.mxu0 %v2251_v12 }
 0x1ea   : > { %v7101_v20 = vpop.f32.mrf.mxu0 }
 0x1ec   : > { %v7105_v39 = vpop.f32.mrf.mxu0  ;;  %2699 = vmatmul.mubr.f32.gmra.mxu1 %v7099_v36  ;;  %3364 = vmatmul.mubr.f32.gmra.mxu0 %v7081_v10 }
 0x1ed   : > { %2703 = vmatprep.mubr.f32.mxu1 %v2254_v11  ;;  %3368 = vmatprep.mubr.f32.mxu0 %v2252_v49  ;;  %v2394_v49 = vld [vmem:[%s8957_s2 + $0x278] sm:$0xff] }
 0x1ee   : > { %v7111_v12 = vpop.f32.mrf.mxu0 }
 0x1f0   : > { %v7115_v22 = vpop.f32.mrf.mxu0  ;;  %2704 = vmatmul.mubr.f32.gmra.mxu1 %v7109_v46  ;;  %3369 = vmatmul.mubr.f32.gmra.mxu0 %v7088_v4 }
 0x1f1   : > { %2773 = vmatprep.mubr.f32.mxu1 %v2147_v57  ;;  %3373 = vmatprep.mubr.f32.mxu0 %v2253_v47  ;;  %v2393_v47 = vld [vmem:[%s8957_s2 + $0x270] sm:$0xff] }
 0x1f2   : > { %v7119_v21 = vpop.f32.mrf.mxu0 }
 0x1f4   : > { %v7126_v14 = vpop.f32.mrf.mxu0  ;;  %2774 = vmatmul.mubr.f32.vlgmr.msra.gmra.mxu1 %v9120_v37  ;;  %3374 = vmatmul.mubr.f32.gmra.mxu0 %v7099_v36 }
 0x1f5   : > { %9119 = vst [vmem:[#allocation63_spill] sm:$0xff] %v7126_v14  ;;  %2955 = vmatpush1.msra.mxu1 %v2394_v49  ;;  %2778 = vmatprep.mubr.f32.mxu1 %v2148_v19  ;;  %v9122_v14 = vmax.f32 %v6284_v6, 0.0  ;;  %v2150_v49 = vmax.f32 %v1296_v27, 0.0  ;;  %v7155_v19 = vadd.f32 %v6829_v51, %v6507_v54  ;;  %v2389_v54 = vld [vmem:[%s8957_s2 + $0x250] sm:$0xff]  ;;  %v7173_v27 = vadd.f32 %v6829_v51, %v6495_v50 }
 0x1f6   : > { %3378 = vmatprep.mubr.f32.mxu0 %v2254_v11  ;;  %v7134_v57 = vpop.f32.mrf.mxu0  ;;  %2956 = vmatprep.subr.mxu1 %v9057_v15 }
 0x1f7   : > { %2957 = vmatpush1.msra.mxu1 %v2393_v47  ;;  %v8989_v18 = vmax.f32 %v7155_v19, 0.0 }
 0x1f8   : > { %v7142_v37 = vpop.f32.mrf.mxu0  ;;  %2779 = vmatmul.mubr.f32.gmra.mxu1 %v9122_v14  ;;  %3379 = vmatmul.mubr.f32.gmra.mxu0 %v7109_v46  ;;  %v2390_v14 = vld [vmem:[%s8957_s2 + $0x258] sm:$0xff] }
 0x1f9   : > { %9121 = vst [vmem:[#allocation64_spill] sm:$0xff] %v7142_v37  ;;  %2783 = vmatprep.mubr.f32.mxu1 %v2149_v16  ;;  %2958 = vmatprep.subr.mxu1 %v9057_v15  ;;  %v7305_v37 = vadd.f32 %v6829_v51, %v6594_v52  ;;  %v1276_v52 = vadd.f32 %v6829_v51, %v6395_v2  ;;  %v2406_v2 = vld [vmem:[%s8957_s2 + $0x2d8] sm:$0xff] }
 0x1fa   : > { %v7148_v11 = vpop.f32.mrf.mxu0  ;;  %2959 = vmatpush1.msra.mxu1 %v2392_v60  ;;  %v9125_v60 = vmax.f32 %v6324_v28, 0.0  ;;  %v8990_v28 = vmax.f32 %v7173_v27, 0.0 }
 0x1fb   : > { %9123 = vst [vmem:[#allocation65_spill] sm:$0xff] %v7148_v11  ;;  %2960 = vmatprep.subr.mxu1 %v9057_v15 }
 0x1fc   : > { %v7158_v6 = vpop.f32.mrf.mxu0  ;;  %2784 = vmatmul.mubr.f32.gmra.mxu1 %v9124_v34  ;;  %v7195_v34 = vadd.f32 %v6829_v51, %v6527_v3  ;;  %v2385_v3 = vld [vmem:[%s8957_s2 + $0x230] sm:$0xff] }
 0x1fd   : > { %2788 = vmatprep.mubr.f32.mxu1 %v2150_v49  ;;  %2961 = vmatpush1.msra.mxu1 %v2391_v25  ;;  %v2388_v25 = vld [vmem:[%s8957_s2 + $0x248] sm:$0xff]  ;;  %v2387_v49 = vld [vmem:[%s8957_s2 + $0x240] sm:$0xff] }
 0x1fe   : > { %v7165_v47 = vpop.f32.mrf.mxu0  ;;  %2962 = vmatprep.subr.mxu1 %v9057_v15 }
 0x1ff   : > { %2963 = vmatpush1.msra.mxu1 %v2390_v14 }
 0x200   : > { %v7176_v16 = vpop.f32.mrf.mxu0  ;;  %2789 = vmatmul.mubr.f32.gmra.mxu1 %v9125_v60  ;;  %2964 = vmatprep.subr.mxu1 %v9057_v15  ;;  %v9127_v60 = vmax.f32 %v6343_v38, 0.0  ;;  %v7215_v38 = vadd.f32 %v6829_v51, %v6515_v62 }
 0x201   : > { %2793 = vmatprep.mubr.f32.mxu1 %v8989_v18  ;;  %2965 = vmatpush1.msra.mxu1 %v2389_v54  ;;  %v2386_v54 = vld [vmem:[%s8957_s2 + $0x238] sm:$0xff] }
 0x202   : > { %v7186_v50 = vpop.f32.mrf.mxu0  ;;  %2966 = vmatprep.subr.mxu1 %v9057_v15 }
 0x203   : > { %2967 = vmatpush1.msra.mxu1 %v2388_v25  ;;  %v8991_v25 = vmax.f32 %v7195_v34, 0.0 }
 0x204   : > { %v7197_v14 = vpop.f32.mrf.mxu0  ;;  %2794 = vmatmul.mubr.f32.gmra.mxu1 %v9127_v60  ;;  %2968 = vmatprep.subr.mxu1 %v9057_v15 }
 0x205   : > { %9126 = vst [vmem:[#allocation66_spill] sm:$0xff] %v7197_v14  ;;  %2798 = vmatprep.mubr.f32.mxu1 %v8990_v28  ;;  %2969 = vmatpush1.msra.mxu1 %v2387_v49  ;;  %v9130_v28 = vmax.f32 %v6362_v48, 0.0  ;;  %v2384_v49 = vld [vmem:[%s8957_s2 + $0x228] sm:$0xff]  ;;  %v8992_v48 = vmax.f32 %v7215_v38, 0.0 }
 0x206   : > { %v7207_v18 = vpop.f32.mrf.mxu0  ;;  %2970 = vmatprep.subr.mxu1 %v9057_v15 }
 0x207   : > { %9128 = vst [vmem:[#allocation67_spill] sm:$0xff] %v7207_v18  ;;  %2971 = vmatpush1.msra.mxu1 %v2386_v54  ;;  %v2383_v54 = vld [vmem:[%s8957_s2 + $0x220] sm:$0xff]  ;;  %v7283_v18 = vadd.f32 %v6829_v51, %v6600_v56  ;;  %v1271_v56 = vadd.f32 %v6829_v51, %v6410_v9  ;;  %v2408_v9 = vld [vmem:[%s8957_s2 + $0x2e8] sm:$0xff] }
 0x208   : > { %v7218_v60 = vpop.f32.mrf.mxu0  ;;  %2799 = vmatmul.mubr.f32.gmra.mxu1 %v9130_v28  ;;  %2972 = vmatprep.subr.mxu1 %v9057_v15  ;;  %v7237_v28 = vadd.f32 %v6829_v51, %v6583_v44  ;;  %v1261_v44 = vadd.f32 %v6829_v51, %v6386_v61  ;;  %v2380_v61 = vld [vmem:[%s8957_s2 + $0x208] sm:$0xff] }
 0x209   : > { %9129 = vst [vmem:[#allocation68_spill] sm:$0xff] %v7218_v60  ;;  %2803 = vmatprep.mubr.f32.mxu1 %v8991_v25  ;;  %2973 = vmatpush1.msra.mxu1 %v2385_v3  ;;  %v9132_v25 = vmax.f32 %v6384_v59, 0.0  ;;  %v2382_v3 = vld [vmem:[%s8957_s2 + $0x218] sm:$0xff]  ;;  %v2381_v59 = vld [vmem:[%s8957_s2 + $0x210] sm:$0xff] }
 0x20a   : > { %v7228_v62 = vpop.f32.mrf.mxu0  ;;  %2974 = vmatprep.subr.mxu1 %v9057_v15  ;;  %v2143_v14 = vmax.f32 %v1261_v44, 0.0 }
 0x20b   : > { %9131 = vst [vmem:[#allocation69_spill] sm:$0xff] %v7228_v62  ;;  %2975 = vmatpush1.msra.mxu1 %v2384_v49  ;;  %v8993_v49 = vmax.f32 %v7237_v28, 0.0 }
 0x20c   : > { %v7239_v60 = vpop.f32.mrf.mxu0  ;;  %2804 = vmatmul.mubr.f32.gmra.mxu1 %v9132_v25  ;;  %2976 = vmatprep.subr.mxu1 %v9057_v15  ;;  %v7259_v25 = vadd.f32 %v6829_v51, %v6574_v40  ;;  %v1266_v40 = vadd.f32 %v6829_v51, %v6372_v55  ;;  %v2410_v55 = vld [vmem:[%s8957_s2 + $0x2f8] sm:$0xff] }
 0x20d   : > { %2808 = vmatprep.mubr.f32.mxu1 %v8992_v48  ;;  %2977 = vmatpush1.msra.mxu1 %v2383_v54  ;;  %v9133_v54 = vmax.f32 %v6407_v5, 0.0  ;;  %v2379_v5 = vld [vmem:[%s8957_s2 + $0x200] sm:$0xff] }
 0x20e   : > { %v7251_v62 = vpop.f32.mrf.mxu0  ;;  %2978 = vmatprep.subr.mxu1 %v9057_v15  ;;  %v2144_v44 = vmax.f32 %v1266_v40, 0.0 }
 0x20f   : > { %2979 = vmatpush1.msra.mxu1 %v2382_v3 }
 0x210   : > { %v7262_v48 = vpop.f32.mrf.mxu0  ;;  %2809 = vmatmul.mubr.f32.gmra.mxu1 %v9133_v54  ;;  %2980 = vmatprep.subr.mxu1 %v9057_v15  ;;  %v8994_v54 = vmax.f32 %v7259_v25, 0.0 }
 0x211   : > { %2813 = vmatprep.mubr.f32.mxu1 %v8993_v49  ;;  %2981 = vmatpush1.msra.mxu1 %v2381_v59 }
 0x212   : > { %v7274_v3 = vpop.f32.mrf.mxu0  ;;  %2982 = vmatprep.subr.mxu1 %v9057_v15 }
 0x213   : > { %2983 = vmatpush1.msra.mxu1 %v2380_v61 }
 0x214   : > { %v7285_v59 = vpop.f32.mrf.mxu0  ;;  %v7287_v49 = vpop.f32.mrf.mxu1  ;;  %2814 = vmatmul.mubr.f32.gmra.mxu1 %v2143_v14  ;;  %2984 = vmatprep.subr.mxu1 %v9057_v15  ;;  %v2409_v14 = vld [vmem:[%s8957_s2 + $0x2f0] sm:$0xff] }
 0x215   : > { %9134 = vst [vmem:[#allocation70_spill] sm:$0xff] %v7285_v59  ;;  %2818 = vmatprep.mubr.f32.mxu1 %v8994_v54  ;;  %2985 = vmatpush1.msra.mxu1 %v2379_v5  ;;  %v8995_v54 = vmax.f32 %v7283_v18, 0.0 }
 0x216   : > { %v7297_v61 = vpop.f32.mrf.mxu0  ;;  %v2592_v59 = vpop.f32.mrf.mxu1  ;;  %2986 = vmatprep.subr.mxu1 %v9057_v15 }
 0x217   : > { %9135 = vst [vmem:[#allocation71_spill] sm:$0xff] %v7297_v61  ;;  %2987 = vmatpush2.msra.mxu1 %v2410_v55  ;;  %v2145_v59 = vmax.f32 %v1271_v56, 0.0  ;;  %v8996_v61 = vmax.f32 %v7305_v37, 0.0  ;;  %v2146_v56 = vmax.f32 %v1276_v52, 0.0  ;;  %v2404_v52 = vld [vmem:[%s8957_s2 + $0x2c8] sm:$0xff] }
 0x218   : > { %v7308_v40 = vpop.f32.mrf.mxu0  ;;  %v7310_v5 = vpop.f32.mrf.mxu1  ;;  %2819 = vmatmul.mubr.f32.gmra.mxu1 %v2144_v44  ;;  %2988 = vmatprep.subr.mxu1 %v9057_v15  ;;  %v2407_v44 = vld [vmem:[%s8957_s2 + $0x2e0] sm:$0xff] }
 0x219   : > { %9136 = vst [vmem:[#allocation72_spill] sm:$0xff] %v7308_v40  ;;  %9137 = vst [vmem:[#allocation73_spill] sm:$0xff] %v7310_v5  ;;  %2823 = vmatprep.mubr.f32.mxu1 %v8995_v54  ;;  %2989 = vmatpush2.msra.mxu1 %v2409_v14  ;;  %v1561_v5 = vadd.f32 %v6829_v51, %v6903_v32 }
 0x21a   : > { %v7320_v55 = vpop.f32.mrf.mxu0  ;;  %v2597_v40 = vpop.f32.mrf.mxu1  ;;  %2990 = vmatprep.subr.mxu1 %v9057_v15 }
 0x21b   : > { %9138 = vst [vmem:[#allocation74_spill] sm:$0xff] %v7320_v55  ;;  %2991 = vmatpush2.msra.mxu1 %v2408_v9  ;;  %v2405_v9 = vld [vmem:[%s8957_s2 + $0x2d0] sm:$0xff]  ;;  %v2203_v55 = vmax.f32 %v1561_v5, 0.0 }
 0x21c   : > { %v7329_v14 = vpop.f32.mrf.mxu0  ;;  %v7331_v54 = vpop.f32.mrf.mxu1  ;;  %2824 = vmatmul.mubr.f32.gmra.mxu1 %v2145_v59  ;;  %2992 = vmatprep.subr.mxu1 %v9057_v15  ;;  %v1566_v59 = vadd.f32 %v6829_v51, %v6893_v45  ;;  %v2403_v45 = vld [vmem:[%s8957_s2 + $0x2c0] sm:$0xff] }
 0x21d   : > { %9139 = vst [vmem:[#allocation75_spill] sm:$0xff] %v7329_v14  ;;  %9140 = vst [vmem:[#allocation76_spill] sm:$0xff] %v7331_v54  ;;  %2828 = vmatprep.mubr.f32.mxu1 %v8996_v61  ;;  %2993 = vmatpush2.msra.mxu1 %v2407_v44 }
 0x21e   : > { %v7339_v40 = vpop.f32.mrf.mxu0  ;;  %v2602_v32 = vpop.f32.mrf.mxu1  ;;  %2994 = vmatprep.subr.mxu1 %v9057_v15  ;;  %v2204_v5 = vmax.f32 %v1566_v59, 0.0  ;;  %v9146_v59 = vld [vmem:[#allocation30_spill] sm:$0xff] }
 0x21f   : > { %9141 = vst [vmem:[#allocation77_spill] sm:$0xff] %v7339_v40  ;;  %2995 = vmatpush2.msra.mxu1 %v2406_v2  ;;  %v1571_v2 = vadd.f32 %v6829_v51, %v6912_v13  ;;  %v2401_v13 = vld [vmem:[%s8957_s2 + $0x2b0] sm:$0xff] }
 0x220   : > { %v7347_v14 = vpop.f32.mrf.mxu0  ;;  %v7349_v54 = vpop.f32.mrf.mxu1  ;;  %2829 = vmatmul.mubr.f32.gmra.mxu1 %v2146_v56  ;;  %2996 = vmatprep.subr.mxu1 %v9057_v15 }
 0x221   : > { %9142 = vst [vmem:[#allocation78_spill] sm:$0xff] %v7347_v14  ;;  %9143 = vst [vmem:[#allocation79_spill] sm:$0xff] %v7349_v54  ;;  %2833 = vmatprep.mubr.f32.mxu1 %v2203_v55  ;;  %2997 = vmatpush2.msra.mxu1 %v2405_v9  ;;  %v2402_v55 = vld [vmem:[%s8957_s2 + $0x2b8] sm:$0xff] }
 0x222   : > { %v7355_v44 = vpop.f32.mrf.mxu0  ;;  %v2607_v32 = vpop.f32.mrf.mxu1  ;;  %2998 = vmatprep.subr.mxu1 %v9057_v15 }
 0x223   : > { %9144 = vst [vmem:[#allocation80_spill] sm:$0xff] %v7355_v44  ;;  %2999 = vmatpush2.msra.mxu1 %v2404_v52  ;;  %v1576_v52 = vadd.f32 %v6829_v51, %v9146_v59  ;;  %v7391_v59 = vadd.f32 %v6829_v51, %v6936_v41  ;;  %v2397_v41 = vld [vmem:[%s8957_s2 + $0x290] sm:$0xff] }
 0x224   : > { %v5534_v56 = vpop.f32.mrf.mxu0  ;;  %v7363_v61 = vpop.f32.mrf.mxu1  ;;  %2834 = vmatmul.mubr.f32.gmra.mxu1 %v6769_v53  ;;  %3000 = vmatprep.subr.mxu1 %v9057_v15  ;;  %v2205_v53 = vmax.f32 %v1571_v2, 0.0  ;;  %v2399_v2 = vld [vmem:[%s8957_s2 + $0x2a0] sm:$0xff] }
 0x225   : > { %9145 = vst [vmem:[#allocation81_spill] sm:$0xff] %v7363_v61  ;;  %2838 = vmatprep.mubr.f32.mxu1 %v2204_v5  ;;  %3001 = vmatpush2.msra.mxu1 %v2403_v45  ;;  %v2400_v45 = vld [vmem:[%s8957_s2 + $0x2a8] sm:$0xff] }
 0x226   : > { %v1980_v9 = vpop.f32.mrf.mxu0  ;;  %v2612_v32 = vpop.f32.mrf.mxu1  ;;  %3002 = vmatprep.subr.mxu1 %v9057_v15 }
 0x227   : > { %3003 = vmatpush2.msra.mxu1 %v2402_v55  ;;  %v2206_v55 = vmax.f32 %v1576_v52, 0.0 }
 0x228   : > { %v7376_v14 = vpop.f32.mrf.mxu0  ;;  %v7378_v44 = vpop.f32.mrf.mxu1  ;;  %2839 = vmatmul.mubr.f32.gmra.mxu1 %v6788_v8  ;;  %3004 = vmatprep.subr.mxu1 %v9057_v15 }
 0x229   : > { %9147 = vst [vmem:[#allocation30_spill] sm:$0xff] %v7378_v44  ;;  %2843 = vmatprep.mubr.f32.mxu1 %v2205_v53  ;;  %3005 = vmatpush2.msra.mxu1 %v2401_v13  ;;  %v2398_v53 = vld [vmem:[%s8957_s2 + $0x298] sm:$0xff]  ;;  %v1981_v13 = vadd.f32 %v6829_v51, %v1980_v9 }
 0x22a   : > { %v1990_v5 = vpop.f32.mrf.mxu0  ;;  %v2617_v32 = vpop.f32.mrf.mxu1  ;;  %3006 = vmatprep.subr.mxu1 %v9057_v15 }
 0x22b   : > { %3007 = vmatpush2.msra.mxu1 %v2400_v45  ;;  %v9149_v45 = vld [vmem:[#allocation35_spill] sm:$0xff] }
 0x22c   : > { %v5540_v8 = vpop.f32.mrf.mxu0  ;;  %v7393_v40 = vpop.f32.mrf.mxu1  ;;  %2844 = vmatmul.mubr.f32.gmra.mxu1 %v6810_v42  ;;  %3008 = vmatprep.subr.mxu1 %v9057_v15  ;;  %v7407_v42 = vadd.f32 %v6829_v51, %v9149_v45 }
 0x22d   : > { %9148 = vst [vmem:[#allocation82_spill] sm:$0xff] %v7393_v40  ;;  %2848 = vmatprep.mubr.f32.mxu1 %v2206_v55  ;;  %3009 = vmatpush2.msra.mxu1 %v2399_v2  ;;  %v9002_v40 = vmax.f32 %v7391_v59, 0.0  ;;  %v2006_v44 = vadd.f32 %v6829_v51, %v5540_v8  ;;  %v1986_v8 = vadd.f32 %v6829_v51, %v5534_v56 }
 0x22e   : > { %v2000_v52 = vpop.f32.mrf.mxu0  ;;  %v2622_v32 = vpop.f32.mrf.mxu1  ;;  %3010 = vmatprep.subr.mxu1 %v9057_v15 }
 0x22f   : > { %v2001_v2 = vadd.f32 %v6829_v51, %v2000_v52  ;;  %3011 = vmatpush2.msra.mxu1 %v2398_v53  ;;  %v2396_v32 = vld [vmem:[%s8957_s2 + $0x288] sm:$0xff]  ;;  %v2287_v52 = vmax.f32 %v1981_v13, 0.0  ;;  %v2292_v54 = vmax.f32 %v2006_v44, 0.0 }
 0x230   : > { %v5543_v9 = vpop.f32.mrf.mxu0  ;;  %v7412_v55 = vpop.f32.mrf.mxu1  ;;  %2849 = vmatmul.mubr.f32.gmra.mxu1 %v6824_v17  ;;  %3012 = vmatprep.subr.mxu1 %v9057_v15  ;;  %v2395_v17 = vld [vmem:[%s8957_s2 + $0x280] sm:$0xff] }
 0x231   : > { %9150 = vst [vmem:[#allocation35_spill] sm:$0xff] %v7412_v55  ;;  %v2291_v45 = vmax.f32 %v2001_v2, 0.0  ;;  %2853 = vmatprep.mubr.f32.mxu1 %v9002_v40  ;;  %3013 = vmatpush2.msra.mxu1 %v2397_v41  ;;  %v9001_v55 = vmax.f32 %v7407_v42, 0.0  ;;  %v7429_v2 = vadd.f32 %v6829_v51, %v6944_v23  ;;  %v2288_v23 = vmax.f32 %v1986_v8, 0.0 }
 0x232   : > { %v2010_v53 = vpop.f32.mrf.mxu0  ;;  %v2627_v61 = vpop.f32.mrf.mxu1  ;;  %3014 = vmatprep.subr.mxu1 %v9057_v15 }
 0x233   : > { %v2011_v41 = vadd.f32 %v6829_v51, %v2010_v53  ;;  %3015 = vmatpush2.msra.mxu1 %v2396_v32  ;;  %v7435_v61 = vld [vmem:[%s8957_s2 + $0x478] sm:$0xff]  ;;  %3383 = vmatprep.mubr.f32.mxu0 %v2291_v45  ;;  %v7446_v51 = vld [vmem:[%s8961_s6] ss:$0 sm:$0xff]  ;;  %v9152_v53 = vld [vmem:[#allocation36_spill] sm:$0xff] }
 0x234   : > { %v5546_v56 = vpop.f32.mrf.mxu0  ;;  %v7437_v13 = vpop.f32.mrf.mxu1  ;;  %2854 = vmatmul.mubr.f32.gmra.mxu1 %v6846_v29  ;;  %3016 = vmatprep.subr.mxu1 %v9057_v15  ;;  %v1991_v44 = vadd.f32 %v7446_v51, %v1990_v5  ;;  %v7452_v15 = vadd.f32 %v7446_v51, %v9152_v53  ;;  %v1996_v5 = vadd.f32 %v7446_v51, %v7376_v14  ;;  %v9155_v14 = vld [vmem:[#allocation25_spill] sm:$0xff] }
 0x235   : > { %9151 = vst [vmem:[#allocation83_spill] sm:$0xff] %v7437_v13  ;;  %2858 = vmatprep.mubr.f32.mxu1 %v9001_v55  ;;  %3017 = vmatpush2.msra.mxu1 %v2395_v17  ;;  %v9005_v55 = vmax.f32 %v7429_v2, 0.0  ;;  %v2016_v17 = vadd.f32 %v7446_v51, %v5543_v9  ;;  %v2293_v8 = vmax.f32 %v2011_v41, 0.0 }
 0x236   : > { %v2020_v32 = vpop.f32.mrf.mxu0  ;;  %v2632_v45 = vpop.f32.mrf.mxu1  ;;  %5574 = vmatprep.subr.mxu1 %v7435_v61  ;;  %3384 = vmatmul.mubr.f32.gmra.mxu0 %v2287_v52  ;;  %v2289_v52 = vmax.f32 %v1991_v44, 0.0  ;;  %v9007_v9 = vmax.f32 %v7452_v15, 0.0  ;;  %v7477_v44 = vadd.f32 %v7446_v51, %v9155_v14 }
 0x237   : > { %3388 = vmatprep.mubr.f32.mxu0 %v2292_v54  ;;  %v7468_v54 = vadd.f32 %v7446_v51, %v6967_v30  ;;  %v2294_v41 = vmax.f32 %v2016_v17, 0.0  ;;  %v7484_v17 = vadd.f32 %v7446_v51, %v6961_v35 }
 0x238   : > { %v7456_v40 = vpop.f32.mrf.mxu0  ;;  %v7458_v29 = vpop.f32.mrf.mxu1  ;;  %2859 = vmatmul.mubr.f32.gmra.mxu1 %v6866_v58  ;;  %9156 = vst [vmem:[#allocation25_spill] sm:$0xff] %v7477_v44 }
 0x239   : > { %9153 = vst [vmem:[#allocation36_spill] sm:$0xff] %v7458_v29  ;;  %2863 = vmatprep.mubr.f32.mxu1 %v9005_v55 }
 0x23a   : > { %v2030_v45 = vpop.f32.mrf.mxu0  ;;  %v2637_v53 = vpop.f32.mrf.mxu1  ;;  %3389 = vmatmul.mubr.f32.gmra.mxu0 %v2288_v23  ;;  %v2290_v23 = vmax.f32 %v1996_v5, 0.0  ;;  %v9010_v5 = vmax.f32 %v7477_v44, 0.0 }
 0x23b   : > { %3393 = vmatprep.mubr.f32.mxu0 %v2293_v8  ;;  %v7480_v53 = vadd.f32 %v7446_v51, %v2020_v32  ;;  %v9009_v8 = vmax.f32 %v7468_v54, 0.0 }
 0x23c   : > { %v5552_v29 = vpop.f32.mrf.mxu0  ;;  %v7470_v58 = vpop.f32.mrf.mxu1  ;;  %2864 = vmatmul.mubr.f32.gmra.mxu1 %v6887_v7 }
 0x23d   : > { %9154 = vst [vmem:[#allocation84_spill] sm:$0xff] %v7470_v58  ;;  %2868 = vmatprep.mubr.f32.mxu1 %v9007_v9  ;;  %9157 = vst [vmem:[#allocation85_spill] sm:$0xff] %v7480_v53  ;;  %v2046_v7 = vadd.f32 %v7446_v51, %v5552_v29  ;;  %v7500_v29 = vadd.f32 %v7446_v51, %v5546_v56 }
 0x23e   : > { %v2040_v30 = vpop.f32.mrf.mxu0  ;;  %v2642_v55 = vpop.f32.mrf.mxu1  ;;  %3394 = vmatmul.mubr.f32.gmra.mxu0 %v2289_v52  ;;  %v9013_v52 = vmax.f32 %v7480_v53, 0.0 }
 0x23f   : > { %v2041_v9 = vadd.f32 %v7446_v51, %v2040_v30  ;;  %3398 = vmatprep.mubr.f32.mxu0 %v2294_v41  ;;  %v9159_v55 = vld [vmem:[#allocation23_spill] sm:$0xff]  ;;  %9161 = vst [vmem:[#allocation87_spill] sm:$0xff] %v7500_v29 }
 0x240   : > { %v5555_v14 = vpop.f32.mrf.mxu0  ;;  %v7489_v58 = vpop.f32.mrf.mxu1  ;;  %2869 = vmatmul.mubr.f32.gmra.mxu1 %v6901_v26  ;;  %v7496_v35 = vadd.f32 %v7446_v51, %v9159_v55  ;;  %v9011_v26 = vmax.f32 %v7484_v17, 0.0 }
 0x241   : > { %9158 = vst [vmem:[#allocation86_spill] sm:$0xff] %v7489_v58  ;;  %v2299_v32 = vmax.f32 %v2041_v9, 0.0  ;;  %2873 = vmatprep.mubr.f32.mxu1 %v9009_v8  ;;  %v9162_v9 = vld [vmem:[#allocation42_spill] sm:$0xff]  ;;  %v2300_v8 = vmax.f32 %v2046_v7, 0.0  ;;  %v7520_v7 = vadd.f32 %v7446_v51, %v2030_v45  ;;  %v2056_v56 = vadd.f32 %v7446_v51, %v5555_v14 }
 0x242   : > { %9160 = vst [vmem:[#allocation23_spill] sm:$0xff] %v7496_v35  ;;  %v2050_v41 = vpop.f32.mrf.mxu0  ;;  %v2647_v30 = vpop.f32.mrf.mxu1  ;;  %3399 = vmatmul.mubr.f32.gmra.mxu0 %v2290_v23  ;;  %v7506_v58 = vadd.f32 %v7446_v51, %v9162_v9  ;;  %v9163_v23 = vld [vmem:[#allocation28_spill] sm:$0xff]  ;;  %v9166_v9 = vmax.f32 %v7496_v35, 0.0  ;;  %v1841_v45 = vadd.f32 %v7446_v51, %v7111_v12  ;;  %v7543_v14 = vadd.f32 %v7446_v51, %v7456_v40 }
 0x243   : > { %v2051_v55 = vadd.f32 %v7446_v51, %v2050_v41  ;;  %3403 = vmatprep.mubr.f32.mxu0 %v2299_v32  ;;  %v7516_v30 = vadd.f32 %v7446_v51, %v9163_v23  ;;  %9164 = vst [vmem:[#allocation42_spill] sm:$0xff] %v7520_v7  ;;  %v9165_v32 = vld [vmem:[#allocation41_spill] sm:$0xff]  ;;  %v2302_v35 = vmax.f32 %v2056_v56, 0.0 }
 0x244   : > { %v5558_v13 = vpop.f32.mrf.mxu0  ;;  %2874 = vmatmul.mubr.f32.gmra.mxu1 %v9010_v5  ;;  %v7526_v5 = vadd.f32 %v7446_v51, %v9165_v32 }
 0x245   : > { %2878 = vmatprep.mubr.f32.mxu1 %v9011_v26  ;;  %v9016_v26 = vmax.f32 %v7506_v58, 0.0  ;;  %v2301_v44 = vmax.f32 %v2051_v55, 0.0  ;;  %v9018_v53 = vmax.f32 %v7516_v30, 0.0 }
 0x246   : > { %v2060_v41 = vpop.f32.mrf.mxu0  ;;  %3404 = vmatmul.mubr.f32.gmra.mxu0 %v9013_v52  ;;  %v9167_v52 = vld [vmem:[#allocation26_spill] sm:$0xff]  ;;  %v9019_v12 = vmax.f32 %v7526_v5, 0.0 }
 0x247   : > { %3408 = vmatprep.mubr.f32.mxu0 %v2300_v8  ;;  %v7538_v32 = vadd.f32 %v7446_v51, %v9167_v52  ;;  %v2259_v52 = vmax.f32 %v1841_v45, 0.0  ;;  %v7556_v11 = vadd.f32 %v7446_v51, %v2060_v41  ;;  %v7567_v41 = vadd.f32 %v7446_v51, %v5558_v13 }
 0x248   : > { %v5561_v23 = vpop.f32.mrf.mxu0  ;;  %2879 = vmatmul.mubr.f32.gmra.mxu1 %v9166_v9  ;;  %v9168_v9 = vmax.f32 %v7500_v29, 0.0  ;;  %v9169_v29 = vmax.f32 %v7520_v7, 0.0  ;;  %v9171_v7 = vmax.f32 %v7543_v14, 0.0 }
 0x249   : > { %2883 = vmatprep.mubr.f32.mxu1 %v9016_v26  ;;  %v9021_v40 = vmax.f32 %v7538_v32, 0.0  ;;  %9170 = vst [vmem:[#allocation28_spill] sm:$0xff] %v7567_v41  ;;  %v9025_v8 = vmax.f32 %v7556_v11, 0.0  ;;  %v9024_v13 = vmax.f32 %v7567_v41, 0.0 }
 0x24a   : > { %v2070_v55 = vpop.f32.mrf.mxu0  ;;  %3409 = vmatmul.mubr.f32.gmra.mxu0 %v9168_v9 }
 0x24b   : > { %3413 = vmatprep.mubr.f32.mxu0 %v2301_v44  ;;  %v1846_v44 = vadd.f32 %v7446_v51, %v7105_v39 }
 0x24c   : > { %v5564_v26 = vpop.f32.mrf.mxu0  ;;  %2884 = vmatmul.mubr.f32.gmra.mxu1 %v9018_v53 }
 0x24d   : > { %2888 = vmatprep.mubr.f32.mxu1 %v9019_v12  ;;  %v2086_v56 = vadd.f32 %v7446_v51, %v5564_v26  ;;  %v2260_v39 = vmax.f32 %v1846_v44, 0.0  ;;  %v1851_v26 = vadd.f32 %v7446_v51, %v7119_v21  ;;  %v1856_v21 = vadd.f32 %v7446_v51, %v7115_v22 }
 0x24e   : > { %v2080_v9 = vpop.f32.mrf.mxu0  ;;  %3414 = vmatmul.mubr.f32.gmra.mxu0 %v9169_v29 }
 0x24f   : > { %v2081_v45 = vadd.f32 %v7446_v51, %v2080_v9  ;;  %3418 = vmatprep.mubr.f32.mxu0 %v2302_v35  ;;  %v2308_v35 = vmax.f32 %v2086_v56, 0.0 }
 0x250   : > { %v5567_v53 = vpop.f32.mrf.mxu0  ;;  %2889 = vmatmul.mubr.f32.gmra.mxu1 %v9021_v40 }
 0x251   : > { %v2307_v12 = vmax.f32 %v2081_v45, 0.0  ;;  %2893 = vmatprep.mubr.f32.mxu1 %v2259_v52  ;;  %v7580_v52 = vadd.f32 %v7446_v51, %v2070_v55  ;;  %v7594_v55 = vadd.f32 %v7446_v51, %v7165_v47 }
 0x252   : > { %v2090_v29 = vpop.f32.mrf.mxu0  ;;  %3419 = vmatmul.mubr.f32.gmra.mxu0 %v9171_v7  ;;  %v2261_v7 = vmax.f32 %v1851_v26, 0.0 }
 0x253   : > { %v2091_v9 = vadd.f32 %v7446_v51, %v2090_v29  ;;  %3423 = vmatprep.mubr.f32.mxu0 %v2307_v12  ;;  %9173 = vst [vmem:[#allocation26_spill] sm:$0xff] %v7580_v52  ;;  %v2096_v12 = vadd.f32 %v7446_v51, %v5567_v53  ;;  %v7597_v29 = vadd.f32 %v7446_v51, %v5561_v23  ;;  %v2262_v53 = vmax.f32 %v1856_v21, 0.0 }
 0x254   : > { %v7575_v40 = vpop.f32.mrf.mxu0  ;;  %2894 = vmatmul.mubr.f32.gmra.mxu1 %v7059_v24  ;;  %v9029_v47 = vmax.f32 %v7594_v55, 0.0 }
 0x255   : > { %9172 = vst [vmem:[#allocation41_spill] sm:$0xff] %v7575_v40  ;;  %2898 = vmatprep.mubr.f32.mxu1 %v2260_v39  ;;  %v2309_v44 = vmax.f32 %v2091_v9, 0.0  ;;  %9175 = vst [vmem:[#allocation89_spill] sm:$0xff] %v7597_v29  ;;  %v9023_v39 = vmax.f32 %v7580_v52, 0.0  ;;  %v2310_v26 = vmax.f32 %v2096_v12, 0.0  ;;  %v9022_v23 = vmax.f32 %v7597_v29, 0.0 }
 0x256   : > { %v7582_v45 = vpop.f32.mrf.mxu0  ;;  %3424 = vmatmul.mubr.f32.gmra.mxu0 %v9025_v8  ;;  %v7655_v8 = vadd.f32 %v7446_v51, %v7091_v33  ;;  %v7672_v33 = vadd.f32 %v7446_v51, %v7084_v1  ;;  %v7686_v1 = vadd.f32 %v7446_v51, %v7101_v20 }
 0x257   : > { %3428 = vmatprep.mubr.f32.mxu0 %v2308_v35 }
 0x258   : > { %v7589_v56 = vpop.f32.mrf.mxu0  ;;  %2899 = vmatmul.mubr.f32.gmra.mxu1 %v7063_v31  ;;  %v9035_v20 = vmax.f32 %v7686_v1, 0.0 }
 0x259   : > { %9174 = vst [vmem:[#allocation88_spill] sm:$0xff] %v7589_v56  ;;  %2903 = vmatprep.mubr.f32.mxu1 %v2261_v7  ;;  %v7613_v7 = vadd.f32 %v7446_v51, %v7158_v6 }
 0x25a   : > { %v7600_v22 = vpop.f32.mrf.mxu0  ;;  %3429 = vmatmul.mubr.f32.gmra.mxu0 %v9024_v13 }
 0x25b   : > { %9176 = vst [vmem:[#allocation90_spill] sm:$0xff] %v7600_v22  ;;  %3433 = vmatprep.mubr.f32.mxu0 %v2309_v44  ;;  %v9027_v44 = vmax.f32 %v7613_v7, 0.0 }
 0x25c   : > { %2904 = vmatmul.mubr.f32.gmra.mxu1 %v7069_v0  ;;  %v7605_v35 = vpop.f32.mrf.mxu0 }
 0x25d   : > { %9177 = vst [vmem:[#allocation91_spill] sm:$0xff] %v7605_v35  ;;  %2908 = vmatprep.mubr.f32.mxu1 %v2262_v53  ;;  %v7625_v53 = vadd.f32 %v7446_v51, %v7186_v50  ;;  %v7642_v50 = vadd.f32 %v7446_v51, %v7251_v62  ;;  %v9212_v35 = vld [vmem:[#allocation14_spill] sm:$0xff] }
 0x25e   : > { %v3267_v9 = vpop.f32.mrf.mxu0  ;;  %3434 = vmatmul.mubr.f32.gmra.mxu0 %v9023_v39 }
 0x25f   : > { %3438 = vmatprep.mubr.f32.mxu0 %v2310_v26  ;;  %v7634_v9 = vadd.f32 %v7446_v51, %v7176_v16  ;;  %v9030_v13 = vmax.f32 %v7642_v50, 0.0 }
 0x260   : > { %2909 = vmatmul.mubr.f32.gmra.mxu1 %v7073_v43  ;;  %v7616_v21 = vpop.f32.mrf.mxu0 }
 0x261   : > { %9178 = vst [vmem:[#allocation92_spill] sm:$0xff] %v7616_v21  ;;  %2913 = vmatprep.mubr.f32.mxu1 %v9029_v47 }
 0x262   : > { %v3272_v12 = vpop.f32.mrf.mxu0  ;;  %3439 = vmatmul.mubr.f32.gmra.mxu0 %v9022_v23 }
 0x263   : > { %v9026_v12 = vmax.f32 %v7625_v53, 0.0 }
 0x264   : > { %2914 = vmatmul.mubr.f32.gmra.mxu1 %v7081_v10  ;;  %v7628_v6 = vpop.f32.mrf.mxu0 }
 0x265   : > { %9179 = vst [vmem:[#allocation93_spill] sm:$0xff] %v7628_v6  ;;  %2918 = vmatprep.mubr.f32.mxu1 %v9027_v44  ;;  %v7666_v44 = vadd.f32 %v7446_v51, %v7274_v3 }
 0x266   : > { %v3277_v26 = vpop.f32.mrf.mxu0 }
 0x267   : > { %v9028_v26 = vmax.f32 %v7634_v9, 0.0  ;;  %v9034_v3 = vmax.f32 %v7666_v44, 0.0 }
 0x268   : > { %2919 = vmatmul.mubr.f32.gmra.mxu1 %v7088_v4  ;;  %v7638_v23 = vpop.f32.mrf.mxu0 }
 0x269   : > { %9180 = vst [vmem:[#allocation94_spill] sm:$0xff] %v7638_v23  ;;  %2923 = vmatprep.mubr.f32.mxu1 %v9026_v12  ;;  %v7659_v12 = vadd.f32 %v7446_v51, %v7239_v60 }
 0x26a   : > { %v3282_v39 = vpop.f32.mrf.mxu0 }
 0x26b   : > { %v9032_v60 = vmax.f32 %v7659_v12, 0.0 }
 0x26c   : > { %2924 = vmatmul.mubr.f32.gmra.mxu1 %v7099_v36  ;;  %v7648_v16 = vpop.f32.mrf.mxu0 }
 0x26d   : > { %9181 = vst [vmem:[#allocation95_spill] sm:$0xff] %v7648_v16  ;;  %2928 = vmatprep.mubr.f32.mxu1 %v9028_v26 }
 0x26e   : > { %v3287_v62 = vpop.f32.mrf.mxu0 }
 0x26f   : > { %v9031_v62 = vmax.f32 %v7655_v8, 0.0 }
 0x270   : > { %2929 = vmatmul.mubr.f32.gmra.mxu1 %v7109_v46  ;;  %v7662_v39 = vpop.f32.mrf.mxu0 }
 0x271   : > { %9182 = vst [vmem:[#allocation96_spill] sm:$0xff] %v7662_v39  ;;  %2933 = vmatprep.mubr.f32.mxu1 %v9030_v13  ;;  %v9033_v13 = vmax.f32 %v7672_v33, 0.0  ;;  %v9208_v39 = vld [vmem:[#allocation15_spill] sm:$0xff] }
 0x272   : > { %v3292_v26 = vpop.f32.mrf.mxu0 }
 0x273   : > { %v7690_v26 = vadd.f32 %v7446_v51, %v7262_v48 }
 0x274   : > { %2934 = vmatmul.mubr.f32.gmra.mxu1 %v9031_v62  ;;  %v7678_v47 = vpop.f32.mrf.mxu0 }
 0x275   : > { %9183 = vst [vmem:[#allocation97_spill] sm:$0xff] %v7678_v47  ;;  %2938 = vmatprep.mubr.f32.mxu1 %v9032_v60  ;;  %v7700_v60 = vadd.f32 %v7446_v51, %v7094_v63  ;;  %v9188_v47 = vmax.f32 %v7155_v19, 0.0  ;;  %v2456_v19 = vld [vmem:[%s8957_s2 + $0x468] sm:$0xff] }
 0x276   : > { %v3297_v23 = vpop.f32.mrf.mxu0 }
 0x277   : > { %v9036_v23 = vmax.f32 %v7690_v26, 0.0 }
 0x278   : > { %2939 = vmatmul.mubr.f32.gmra.mxu1 %v9033_v13  ;;  %v7694_v62 = vpop.f32.mrf.mxu0  ;;  %v9186_v13 = vld [vmem:[#allocation3_spill] sm:$0xff] }
 0x279   : > { %9184 = vst [vmem:[#allocation98_spill] sm:$0xff] %v7694_v62  ;;  %2943 = vmatprep.mubr.f32.mxu1 %v9034_v3  ;;  %v1301_v3 = vadd.f32 %v7446_v51, %v9186_v13  ;;  %v9037_v62 = vmax.f32 %v7700_v60, 0.0  ;;  %v2457_v13 = vld [vmem:[%s8957_s2 + $0x470] sm:$0xff] }
 0x27a   : > { %v3302_v6 = vpop.f32.mrf.mxu0 }
 0x27b   : > { %v2151_v21 = vmax.f32 %v1301_v3, 0.0 }
 0x27c   : > { %2944 = vmatmul.mubr.f32.gmra.mxu1 %v9035_v20  ;;  %v7706_v48 = vpop.f32.mrf.mxu0  ;;  %v9189_v20 = vld [vmem:[#allocation2_spill] sm:$0xff] }
 0x27d   : > { %9185 = vst [vmem:[#allocation99_spill] sm:$0xff] %v7706_v48  ;;  %2948 = vmatprep.mubr.f32.mxu1 %v9036_v23  ;;  %v1306_v48 = vadd.f32 %v7446_v51, %v9189_v20 }
 0x27e   : > { %v3307_v63 = vpop.f32.mrf.mxu0 }
 0x280   : > { %2949 = vmatmul.mubr.f32.gmra.mxu1 %v9037_v62  ;;  %v7715_v6 = vpop.f32.mrf.mxu0  ;;  %v9191_v62 = vmax.f32 %v7173_v27, 0.0 }
 0x281   : > { %9187 = vst [vmem:[#allocation3_spill] sm:$0xff] %v7715_v6  ;;  %3018 = vmatprep.mubr.f32.mxu1 %v9188_v47  ;;  %v2152_v47 = vmax.f32 %v1306_v48, 0.0  ;;  %v2454_v48 = vld [vmem:[%s8957_s2 + $0x458] sm:$0xff] }
 0x282   : > { %v3312_v16 = vpop.f32.mrf.mxu0 }
 0x283   : > { %v9192_v16 = vld [vmem:[#allocation5_spill] sm:$0xff] }
 0x284   : > { %v7724_v23 = vpop.f32.mrf.mxu1  ;;  %3019 = vmatmul.mubr.f32.vlgmr.msra.gmra.mxu1 %v2151_v21  ;;  %v7726_v63 = vpop.f32.mrf.mxu0  ;;  %v1311_v3 = vadd.f32 %v7446_v51, %v9192_v16  ;;  %v2455_v21 = vld [vmem:[%s8957_s2 + $0x460] sm:$0xff] }
 0x285   : > { %9190 = vst [vmem:[#allocation2_spill] sm:$0xff] %v7726_v63  ;;  %5575 = vmatpush3.msra.mxu1 %v7435_v61  ;;  %3023 = vmatprep.mubr.f32.mxu1 %v9191_v62  ;;  %v9194_v62 = vmax.f32 %v7195_v34, 0.0 }
 0x286   : > { %v2652_v20 = vpop.f32.mrf.mxu1  ;;  %v3317_v6 = vpop.f32.mrf.mxu0  ;;  %5576 = vmatprep.subr.mxu1 %v2457_v13  ;;  %v2153_v16 = vmax.f32 %v1311_v3, 0.0 }
 0x287   : > { %5577 = vmatpush3.msra.mxu1 %v2457_v13  ;;  %v9195_v6 = vld [vmem:[#allocation4_spill] sm:$0xff] }
 0x288   : > { %v7739_v61 = vpop.f32.mrf.mxu1  ;;  %3024 = vmatmul.mubr.f32.gmra.mxu1 %v2152_v47  ;;  %v7741_v27 = vpop.f32.mrf.mxu0  ;;  %5578 = vmatprep.subr.mxu1 %v2456_v19  ;;  %v1316_v13 = vadd.f32 %v7446_v51, %v9195_v6  ;;  %v2453_v47 = vld [vmem:[%s8957_s2 + $0x450] sm:$0xff] }
 0x289   : > { %9193 = vst [vmem:[#allocation5_spill] sm:$0xff] %v7741_v27  ;;  %3028 = vmatprep.mubr.f32.mxu1 %v9194_v62  ;;  %5579 = vmatpush3.msra.mxu1 %v2456_v19  ;;  %v9197_v19 = vmax.f32 %v7215_v38, 0.0 }
 0x28a   : > { %v2657_v20 = vpop.f32.mrf.mxu1  ;;  %v3322_v63 = vpop.f32.mrf.mxu0  ;;  %5580 = vmatprep.subr.mxu1 %v2455_v21  ;;  %v2154_v3 = vmax.f32 %v1316_v13, 0.0  ;;  %v2450_v13 = vld [vmem:[%s8957_s2 + $0x438] sm:$0xff] }
 0x28b   : > { %5581 = vmatpush3.msra.mxu1 %v2455_v21  ;;  %v2452_v63 = vld [vmem:[%s8957_s2 + $0x448] sm:$0xff] }
 0x28c   : > { %v7753_v27 = vpop.f32.mrf.mxu1  ;;  %3029 = vmatmul.mubr.f32.gmra.mxu1 %v2153_v16  ;;  %v7755_v34 = vpop.f32.mrf.mxu0  ;;  %5582 = vmatprep.subr.mxu1 %v2454_v48  ;;  %v9198_v21 = vld [vmem:[#allocation7_spill] sm:$0xff]  ;;  %v2451_v16 = vld [vmem:[%s8957_s2 + $0x440] sm:$0xff] }
 0x28d   : > { %9196 = vst [vmem:[#allocation4_spill] sm:$0xff] %v7755_v34  ;;  %3033 = vmatprep.mubr.f32.mxu1 %v9197_v19  ;;  %5583 = vmatpush3.msra.mxu1 %v2454_v48  ;;  %v1341_v62 = vadd.f32 %v7446_v51, %v9198_v21  ;;  %v9200_v48 = vmax.f32 %v7237_v28, 0.0  ;;  %v9201_v19 = vld [vmem:[#allocation6_spill] sm:$0xff] }
 0x28e   : > { %v2662_v6 = vpop.f32.mrf.mxu1  ;;  %v3327_v20 = vpop.f32.mrf.mxu0  ;;  %5584 = vmatprep.subr.mxu1 %v2453_v47 }
 0x28f   : > { %5585 = vmatpush3.msra.mxu1 %v2453_v47  ;;  %v1346_v47 = vadd.f32 %v7446_v51, %v9201_v19  ;;  %v2159_v21 = vmax.f32 %v1341_v62, 0.0  ;;  %v2448_v62 = vld [vmem:[%s8957_s2 + $0x428] sm:$0xff] }
 0x290   : > { %v7767_v34 = vpop.f32.mrf.mxu1  ;;  %3034 = vmatmul.mubr.f32.gmra.mxu1 %v2154_v3  ;;  %v7769_v38 = vpop.f32.mrf.mxu0  ;;  %5586 = vmatprep.subr.mxu1 %v2452_v63  ;;  %v2449_v3 = vld [vmem:[%s8957_s2 + $0x430] sm:$0xff] }
 0x291   : > { %9199 = vst [vmem:[#allocation7_spill] sm:$0xff] %v7769_v38  ;;  %3038 = vmatprep.mubr.f32.mxu1 %v9200_v48  ;;  %5587 = vmatpush3.msra.mxu1 %v2452_v63  ;;  %v9203_v63 = vmax.f32 %v7259_v25, 0.0  ;;  %v2160_v48 = vmax.f32 %v1346_v47, 0.0  ;;  %v2446_v47 = vld [vmem:[%s8957_s2 + $0x418] sm:$0xff] }
 0x292   : > { %v2667_v6 = vpop.f32.mrf.mxu1  ;;  %v3332_v20 = vpop.f32.mrf.mxu0  ;;  %5588 = vmatprep.subr.mxu1 %v2451_v16 }
 0x293   : > { %5589 = vmatpush3.msra.mxu1 %v2451_v16  ;;  %v9204_v16 = vld [vmem:[#allocation9_spill] sm:$0xff] }
 0x294   : > { %v7781_v38 = vpop.f32.mrf.mxu1  ;;  %3039 = vmatmul.mubr.f32.gmra.mxu1 %v2159_v21  ;;  %v7783_v28 = vpop.f32.mrf.mxu0  ;;  %5590 = vmatprep.subr.mxu1 %v2450_v13  ;;  %v1351_v19 = vadd.f32 %v7446_v51, %v9204_v16  ;;  %v2447_v21 = vld [vmem:[%s8957_s2 + $0x420] sm:$0xff] }
 0x295   : > { %9202 = vst [vmem:[#allocation6_spill] sm:$0xff] %v7783_v28  ;;  %3043 = vmatprep.mubr.f32.mxu1 %v9203_v63  ;;  %5591 = vmatpush3.msra.mxu1 %v2450_v13  ;;  %v9206_v13 = vmax.f32 %v7283_v18, 0.0  ;;  %v9207_v63 = vld [vmem:[#allocation8_spill] sm:$0xff] }
 0x296   : > { %v2672_v6 = vpop.f32.mrf.mxu1  ;;  %v3337_v20 = vpop.f32.mrf.mxu0  ;;  %5592 = vmatprep.subr.mxu1 %v2449_v3  ;;  %v2161_v16 = vmax.f32 %v1351_v19, 0.0  ;;  %v2445_v18 = vld [vmem:[%s8957_s2 + $0x410] sm:$0xff]  ;;  %v2444_v19 = vld [vmem:[%s8957_s2 + $0x408] sm:$0xff] }
 0x297   : > { %5593 = vmatpush3.msra.mxu1 %v2449_v3  ;;  %v1356_v3 = vadd.f32 %v7446_v51, %v9207_v63  ;;  %v9210_v63 = vmax.f32 %v7305_v37, 0.0  ;;  %v2443_v37 = vld [vmem:[%s8957_s2 + $0x400] sm:$0xff] }
 0x298   : > { %v7795_v28 = vpop.f32.mrf.mxu1  ;;  %3044 = vmatmul.mubr.f32.gmra.mxu1 %v2160_v48  ;;  %v7797_v25 = vpop.f32.mrf.mxu0  ;;  %5594 = vmatprep.subr.mxu1 %v2448_v62  ;;  %v1401_v48 = vadd.f32 %v7446_v51, %v9208_v39 }
 0x299   : > { %9205 = vst [vmem:[#allocation9_spill] sm:$0xff] %v7797_v25  ;;  %3048 = vmatprep.mubr.f32.mxu1 %v9206_v13  ;;  %5595 = vmatpush3.msra.mxu1 %v2448_v62  ;;  %v2162_v39 = vmax.f32 %v1356_v3, 0.0  ;;  %v9214_v3 = vld [vmem:[#allocation10_spill] sm:$0xff] }
 0x29a   : > { %v2677_v6 = vpop.f32.mrf.mxu1  ;;  %v3342_v20 = vpop.f32.mrf.mxu0  ;;  %5596 = vmatprep.subr.mxu1 %v2447_v21 }
 0x29b   : > { %5597 = vmatpush3.msra.mxu1 %v2447_v21  ;;  %v9211_v21 = vld [vmem:[#allocation11_spill] sm:$0xff] }
 0x29c   : > { %v7811_v62 = vpop.f32.mrf.mxu1  ;;  %3049 = vmatmul.mubr.f32.gmra.mxu1 %v2161_v16  ;;  %v7813_v13 = vpop.f32.mrf.mxu0  ;;  %5598 = vmatprep.subr.mxu1 %v2446_v47  ;;  %v1381_v6 = vadd.f32 %v7446_v51, %v9211_v21  ;;  %v1406_v16 = vadd.f32 %v7446_v51, %v9212_v35 }
 0x29d   : > { %9209 = vst [vmem:[#allocation8_spill] sm:$0xff] %v7813_v13  ;;  %3053 = vmatprep.mubr.f32.mxu1 %v9210_v63  ;;  %5599 = vmatpush3.msra.mxu1 %v2446_v47  ;;  %v2171_v13 = vmax.f32 %v1401_v48, 0.0 }
 0x29e   : > { %v2682_v20 = vpop.f32.mrf.mxu1  ;;  %v3347_v25 = vpop.f32.mrf.mxu0  ;;  %5600 = vmatprep.subr.mxu1 %v2445_v18  ;;  %v2167_v21 = vmax.f32 %v1381_v6, 0.0  ;;  %v2172_v48 = vmax.f32 %v1406_v16, 0.0 }
 0x29f   : > { %5601 = vmatpush3.msra.mxu1 %v2445_v18  ;;  %v1386_v25 = vadd.f32 %v7446_v51, %v9214_v3  ;;  %v9215_v18 = vld [vmem:[#allocation17_spill] sm:$0xff] }
 0x2a0   : > { %v7827_v47 = vpop.f32.mrf.mxu1  ;;  %3054 = vmatmul.mubr.f32.gmra.mxu1 %v2162_v39  ;;  %v7829_v63 = vpop.f32.mrf.mxu0  ;;  %5602 = vmatprep.subr.mxu1 %v2444_v19  ;;  %v1411_v29 = vadd.f32 %v7446_v51, %v9215_v18 }
 0x2a1   : > { %9213 = vst [vmem:[#allocation15_spill] sm:$0xff] %v7829_v63  ;;  %3058 = vmatprep.mubr.f32.mxu1 %v2171_v13  ;;  %5603 = vmatpush3.msra.mxu1 %v2444_v19  ;;  %v2168_v13 = vmax.f32 %v1386_v25, 0.0  ;;  %v9217_v19 = vld [vmem:[#allocation13_spill] sm:$0xff] }
 0x2a2   : > { %v2687_v20 = vpop.f32.mrf.mxu1  ;;  %v3352_v35 = vpop.f32.mrf.mxu0  ;;  %5604 = vmatprep.subr.mxu1 %v2443_v37  ;;  %v1391_v63 = vadd.f32 %v7446_v51, %v9217_v19  ;;  %v2173_v16 = vmax.f32 %v1411_v29, 0.0 }
 0x2a3   : > { %5605 = vmatpush3.msra.mxu1 %v2443_v37  ;;  %v9218_v20 = vld [vmem:[#allocation16_spill] sm:$0xff] }
 0x2a4   : > { %v7835_v56 = vpop.f32.mrf.mxu1  ;;  %3059 = vmatmul.mubr.f32.gmra.mxu1 %v2167_v21  ;;  %v7837_v39 = vpop.f32.mrf.mxu0  ;;  %v1416_v35 = vadd.f32 %v7446_v51, %v9218_v20  ;;  %v9220_v21 = vld [vmem:[#allocation12_spill] sm:$0xff] }
 0x2a5   : > { %9216 = vst [vmem:[#allocation11_spill] sm:$0xff] %v7837_v39  ;;  %3063 = vmatprep.mubr.f32.mxu1 %v2172_v48  ;;  %v1396_v18 = vadd.f32 %v7446_v51, %v9220_v21  ;;  %v2169_v48 = vmax.f32 %v1391_v63, 0.0 }
 0x2a6   : > { %v2692_v3 = vpop.f32.mrf.mxu1  ;;  %v3357_v6 = vpop.f32.mrf.mxu0  ;;  %v2174_v22 = vmax.f32 %v1416_v35, 0.0  ;;  %v9224_v35 = vmax.f32 %v7391_v59, 0.0 }
 0x2a7   : > { %v2170_v29 = vmax.f32 %v1396_v18, 0.0  ;;  %v9222_v6 = vld [vmem:[#allocation32_spill] sm:$0xff] }
 0x2a8   : > { %v7843_v52 = vpop.f32.mrf.mxu1  ;;  %3064 = vmatmul.mubr.f32.gmra.mxu1 %v2168_v13  ;;  %v7845_v37 = vpop.f32.mrf.mxu0  ;;  %v1581_v13 = vadd.f32 %v7446_v51, %v9222_v6 }
 0x2a9   : > { %9219 = vst [vmem:[#allocation14_spill] sm:$0xff] %v7845_v37  ;;  %3068 = vmatprep.mubr.f32.mxu1 %v2173_v16  ;;  %v7858_v16 = vld [vmem:[%s8961_s6 + $0x1] ss:$0 sm:$0xff] }
 0x2aa   : > { %v2697_v25 = vpop.f32.mrf.mxu1  ;;  %v3362_v39 = vpop.f32.mrf.mxu0  ;;  %v2207_v18 = vmax.f32 %v1581_v13, 0.0 }
 0x2ac   : > { %v7849_v19 = vpop.f32.mrf.mxu1  ;;  %3069 = vmatmul.mubr.f32.gmra.mxu1 %v2169_v48  ;;  %v7851_v3 = vpop.f32.mrf.mxu0 }
 0x2ad   : > { %9221 = vst [vmem:[#allocation10_spill] sm:$0xff] %v7851_v3  ;;  %3073 = vmatprep.mubr.f32.mxu1 %v2174_v22  ;;  %v9225_v22 = vld [vmem:[#allocation31_spill] sm:$0xff] }
 0x2ae   : > { %v2702_v20 = vpop.f32.mrf.mxu1  ;;  %v3367_v37 = vpop.f32.mrf.mxu0  ;;  %v1586_v21 = vadd.f32 %v7446_v51, %v9225_v22 }
 0x2af   : > { %v9226_v37 = vld [vmem:[#allocation44_spill] sm:$0xff] }
 0x2b0   : > { %v7860_v63 = vpop.f32.mrf.mxu1  ;;  %3074 = vmatmul.mubr.f32.gmra.mxu1 %v2170_v29  ;;  %v7862_v39 = vpop.f32.mrf.mxu0  ;;  %v2531_v6 = vadd.f32 %v7858_v16, %v9226_v37  ;;  %v9228_v29 = vmax.f32 %v7407_v42, 0.0  ;;  %v2208_v59 = vmax.f32 %v1586_v21, 0.0  ;;  %v9233_v42 = vld [vmem:[#allocation33_spill] sm:$0xff] }
 0x2b1   : > { %9223 = vst [vmem:[#allocation17_spill] sm:$0xff] %v7862_v39  ;;  %3078 = vmatprep.mubr.f32.mxu1 %v9224_v35  ;;  %v9229_v35 = vld [vmem:[#allocation34_spill] sm:$0xff]  ;;  %v1596_v21 = vadd.f32 %v7446_v51, %v9233_v42 }
 0x2b2   : > { %v2707_v48 = vpop.f32.mrf.mxu1  ;;  %v3372_v25 = vpop.f32.mrf.mxu0  ;;  %v1591_v39 = vadd.f32 %v7446_v51, %v9229_v35 }
 0x2b3   : > { %v9230_v48 = vld [vmem:[#allocation47_spill] sm:$0xff] }
 0x2b4   : > { %v2775_v20 = vpop.f32.mrf.mxu1  ;;  %3079 = vmatmul.mubr.f32.gmra.mxu1 %v2207_v18  ;;  %v7870_v3 = vpop.f32.mrf.mxu0  ;;  %v2536_v25 = vadd.f32 %v7858_v16, %v9230_v48 }
 0x2b5   : > { %9227 = vst [vmem:[#allocation13_spill] sm:$0xff] %v7870_v3  ;;  %v7872_v41 = vadd.f32 %v2775_v20, %v2531_v6  ;;  %3083 = vmatprep.mubr.f32.mxu1 %v9228_v29  ;;  %v9232_v6 = vmax.f32 %v7429_v2, 0.0  ;;  %v2209_v20 = vmax.f32 %v1591_v39, 0.0 }
 0x2b6   : > { %v2777_v22 = vpop.f32.mrf.mxu1  ;;  %v3377_v13 = vpop.f32.mrf.mxu0 }
 0x2b7   : > { %v9234_v22 = vld [vmem:[#allocation50_spill] sm:$0xff] }
 0x2b8   : > { %v2780_v40 = vpop.f32.mrf.mxu1  ;;  %3084 = vmatmul.mubr.f32.gmra.mxu1 %v2208_v59  ;;  %v7880_v37 = vpop.f32.mrf.mxu0  ;;  %v2541_v13 = vadd.f32 %v7858_v16, %v9234_v22  ;;  %v9235_v59 = vmax.f32 %v7452_v15, 0.0 }
 0x2b9   : > { %9231 = vst [vmem:[#allocation16_spill] sm:$0xff] %v7880_v37  ;;  %v7882_v18 = vadd.f32 %v2780_v40, %v2536_v25  ;;  %3088 = vmatprep.mubr.f32.mxu1 %v9232_v6  ;;  %v2210_v40 = vmax.f32 %v1596_v21, 0.0  ;;  %v9236_v25 = vld [vmem:[#allocation38_spill] sm:$0xff]  ;;  %v9237_v37 = vld [vmem:[#allocation53_spill] sm:$0xff]  ;;  %v9240_v21 = vld [vmem:[#allocation55_spill] sm:$0xff] }
 0x2ba   : > { %v2782_v29 = vpop.f32.mrf.mxu1  ;;  %v3382_v35 = vpop.f32.mrf.mxu0  ;;  %v1621_v2 = vadd.f32 %v7446_v51, %v9236_v25  ;;  %v2546_v39 = vadd.f32 %v7858_v16, %v9237_v37  ;;  %v9241_v37 = vmax.f32 %v7484_v17, 0.0 }
 0x2bb   : > { %v9238_v35 = vmax.f32 %v7468_v54, 0.0 }
 0x2bc   : > { %v2785_v3 = vpop.f32.mrf.mxu1  ;;  %3089 = vmatmul.mubr.f32.gmra.mxu1 %v2209_v20  ;;  %v2215_v15 = vmax.f32 %v1621_v2, 0.0 }
 0x2bd   : > { %v7890_v48 = vadd.f32 %v2785_v3, %v2541_v13  ;;  %3093 = vmatprep.mubr.f32.mxu1 %v9235_v59  ;;  %v9239_v3 = vld [vmem:[#allocation37_spill] sm:$0xff]  ;;  %v2551_v13 = vadd.f32 %v7858_v16, %v9240_v21 }
 0x2be   : > { %v2787_v6 = vpop.f32.mrf.mxu1  ;;  %v1626_v20 = vadd.f32 %v7446_v51, %v9239_v3 }
 0x2bf   : > { %v9242_v6 = vld [vmem:[#allocation40_spill] sm:$0xff] }
 0x2c0   : > { %v2790_v42 = vpop.f32.mrf.mxu1  ;;  %3094 = vmatmul.mubr.f32.gmra.mxu1 %v2210_v40  ;;  %v2216_v40 = vmax.f32 %v1626_v20, 0.0  ;;  %v1631_v54 = vadd.f32 %v7446_v51, %v9242_v6  ;;  %v9247_v20 = vld [vmem:[#allocation51_spill] sm:$0xff] }
 0x2c1   : > { %v7898_v29 = vadd.f32 %v2790_v42, %v2546_v39  ;;  %3098 = vmatprep.mubr.f32.mxu1 %v9238_v35  ;;  %v9243_v42 = vld [vmem:[#allocation56_spill] sm:$0xff] }
 0x2c2   : > { %v2792_v22 = vpop.f32.mrf.mxu1  ;;  %v2556_v35 = vadd.f32 %v7858_v16, %v9243_v42  ;;  %v2217_v17 = vmax.f32 %v1631_v54, 0.0  ;;  %v9252_v54 = vld [vmem:[#allocation49_spill] sm:$0xff] }
 0x2c3   : > { %v9245_v22 = vmax.f32 %v7506_v58, 0.0 }
 0x2c4   : > { %v2795_v59 = vpop.f32.mrf.mxu1  ;;  %3099 = vmatmul.mubr.f32.gmra.mxu1 %v2215_v15  ;;  %v9246_v15 = vld [vmem:[#allocation39_spill] sm:$0xff] }
 0x2c5   : > { %v7906_v25 = vadd.f32 %v2795_v59, %v2551_v13  ;;  %3103 = vmatprep.mubr.f32.mxu1 %v9241_v37  ;;  %v1636_v21 = vadd.f32 %v7446_v51, %v9246_v15  ;;  %v1681_v59 = vadd.f32 %v7446_v51, %v9247_v20  ;;  %v9248_v37 = vld [vmem:[#allocation57_spill] sm:$0xff]  ;;  %v1686_v15 = vadd.f32 %v7446_v51, %v9252_v54  ;;  %v9253_v20 = vld [vmem:[#allocation58_spill] sm:$0xff]  ;;  %v9257_v54 = vld [vmem:[#allocation59_spill] sm:$0xff] }
 0x2c6   : > { %v2797_v39 = vpop.f32.mrf.mxu1  ;;  %v2561_v6 = vadd.f32 %v7858_v16, %v9248_v37 }
 0x2c7   : > { %v2218_v58 = vmax.f32 %v1636_v21, 0.0 }
 0x2c8   : > { %v2800_v2 = vpop.f32.mrf.mxu1  ;;  %3104 = vmatmul.mubr.f32.gmra.mxu1 %v2216_v40  ;;  %v9250_v40 = vmax.f32 %v7526_v5, 0.0 }
 0x2c9   : > { %v7914_v3 = vadd.f32 %v2800_v2, %v2556_v35  ;;  %3108 = vmatprep.mubr.f32.mxu1 %v9245_v22  ;;  %v9251_v35 = vld [vmem:[#allocation45_spill] sm:$0xff] }
 0x2ca   : > { %v2802_v13 = vpop.f32.mrf.mxu1  ;;  %v1661_v2 = vadd.f32 %v7446_v51, %v9251_v35  ;;  %v2228_v35 = vmax.f32 %v1686_v15, 0.0 }
 0x2cb   : > { %9244 = vst [vmem:[#allocation12_spill] sm:$0xff] %v7914_v3  ;;  %v2227_v13 = vmax.f32 %v1681_v59, 0.0  ;;  %v2566_v3 = vadd.f32 %v7858_v16, %v9253_v20  ;;  %v2571_v20 = vadd.f32 %v7858_v16, %v9257_v54 }
 0x2cc   : > { %v2805_v39 = vpop.f32.mrf.mxu1  ;;  %3109 = vmatmul.mubr.f32.gmra.mxu1 %v2217_v17  ;;  %v2223_v21 = vmax.f32 %v1661_v2, 0.0  ;;  %v3740_v2 = vld [vmem:[%s8958_s3 + $0x78] sm:$0xff] }
 0x2cd   : > { %v7924_v42 = vadd.f32 %v2805_v39, %v2561_v6  ;;  %3113 = vmatprep.mubr.f32.mxu1 %v9250_v40  ;;  %v9255_v6 = vld [vmem:[#allocation43_spill] sm:$0xff]  ;;  %v3756_v40 = vld [vmem:[%s8958_s3 + $0xf8] sm:$0xff] }
 0x2ce   : > { %v2807_v22 = vpop.f32.mrf.mxu1  ;;  %v1666_v5 = vadd.f32 %v7446_v51, %v9255_v6  ;;  %5040 = vmatprep.subr.mxu0 %v3756_v40  ;;  %v9261_v40 = vld [vmem:[#allocation60_spill] sm:$0xff] }
 0x2cf   : > { %9249 = vst [vmem:[#allocation32_spill] sm:$0xff] %v7924_v42  ;;  %v9256_v22 = vld [vmem:[#allocation54_spill] sm:$0xff]  ;;  %5041 = vmatpush3.msra.mxu0 %v3740_v2 }
 0x2d0   : > { %v2810_v37 = vpop.f32.mrf.mxu1  ;;  %3114 = vmatmul.mubr.f32.gmra.mxu1 %v2218_v58  ;;  %v1691_v59 = vadd.f32 %v7446_v51, %v9256_v22 }
 0x2d1   : > { %v7934_v17 = vadd.f32 %v2810_v37, %v2566_v3  ;;  %3118 = vmatprep.mubr.f32.mxu1 %v2227_v13  ;;  %v2224_v13 = vmax.f32 %v1666_v5, 0.0  ;;  %v9259_v37 = vld [vmem:[#allocation48_spill] sm:$0xff] }
 0x2d2   : > { %v2812_v39 = vpop.f32.mrf.mxu1  ;;  %v1671_v15 = vadd.f32 %v7446_v51, %v9259_v37  ;;  %v2229_v54 = vmax.f32 %v1691_v59, 0.0 }
 0x2d3   : > { %9254 = vst [vmem:[#allocation31_spill] sm:$0xff] %v7934_v17  ;;  %v9260_v39 = vld [vmem:[#allocation52_spill] sm:$0xff] }
 0x2d4   : > { %v2815_v3 = vpop.f32.mrf.mxu1  ;;  %3119 = vmatmul.mubr.f32.gmra.mxu1 %v2223_v21  ;;  %v1696_v22 = vadd.f32 %v7446_v51, %v9260_v39  ;;  %v2576_v21 = vadd.f32 %v7858_v16, %v9261_v40  ;;  %v3739_v39 = vld [vmem:[%s8958_s3 + $0x70] sm:$0xff] }
 0x2d5   : > { %v7945_v58 = vadd.f32 %v2815_v3, %v2571_v20  ;;  %3123 = vmatprep.mubr.f32.mxu1 %v2228_v35  ;;  %v9262_v3 = vld [vmem:[#allocation46_spill] sm:$0xff] }
 0x2d6   : > { %v2817_v6 = vpop.f32.mrf.mxu1  ;;  %v1676_v5 = vadd.f32 %v7446_v51, %v9262_v3  ;;  %v2230_v37 = vmax.f32 %v1696_v22, 0.0  ;;  %v9264_v22 = vld [vmem:[#allocation62_spill] sm:$0xff] }
 0x2d7   : > { %9258 = vst [vmem:[#allocation44_spill] sm:$0xff] %v7945_v58  ;;  %v2225_v58 = vmax.f32 %v1671_v15, 0.0  ;;  %v9263_v6 = vld [vmem:[#allocation61_spill] sm:$0xff] }
 0x2d8   : > { %v2820_v20 = vpop.f32.mrf.mxu1  ;;  %3124 = vmatmul.mubr.f32.gmra.mxu1 %v2224_v13  ;;  %v2581_v2 = vadd.f32 %v7858_v16, %v9263_v6  ;;  %v3755_v13 = vld [vmem:[%s8958_s3 + $0xf0] sm:$0xff] }
 0x2d9   : > { %v7956_v35 = vadd.f32 %v2820_v20, %v2576_v21  ;;  %3128 = vmatprep.mubr.f32.mxu1 %v2229_v54  ;;  %v2226_v54 = vmax.f32 %v1676_v5, 0.0  ;;  %5042 = vmatprep.subr.mxu0 %v3755_v13  ;;  %v9265_v21 = vmax.f32 %v7594_v55, 0.0  ;;  %v9266_v20 = vld [vmem:[#allocation63_spill] sm:$0xff]  ;;  %v9267_v13 = vmax.f32 %v7613_v7, 0.0 }
 0x2da   : > { %v2822_v17 = vpop.f32.mrf.mxu1  ;;  %5043 = vmatpush3.msra.mxu0 %v3739_v39  ;;  %v1866_v3 = vadd.f32 %v7446_v51, %v9266_v20  ;;  %v3754_v55 = vld [vmem:[%s8958_s3 + $0xe8] sm:$0xff]  ;;  %v9271_v20 = vld [vmem:[#allocation64_spill] sm:$0xff] }
 0x2db   : > { %v1861_v17 = vadd.f32 %v7446_v51, %v7134_v57  ;;  %v2591_v57 = vadd.f32 %v7858_v16, %v7287_v49  ;;  %5044 = vmatprep.subr.mxu0 %v3754_v55  ;;  %v3738_v49 = vld [vmem:[%s8958_s3 + $0x68] sm:$0xff] }
 0x2dc   : > { %v2825_v42 = vpop.f32.mrf.mxu1  ;;  %3129 = vmatmul.mubr.f32.gmra.mxu1 %v2225_v58  ;;  %v2586_v58 = vadd.f32 %v7858_v16, %v9264_v22  ;;  %v2264_v39 = vmax.f32 %v1866_v3, 0.0  ;;  %v9269_v22 = vld [vmem:[#allocation73_spill] sm:$0xff]  ;;  %5045 = vmatpush3.msra.mxu0 %v3738_v49  ;;  %v1876_v3 = vadd.f32 %v7446_v51, %v9271_v20  ;;  %v9276_v20 = vmax.f32 %v7642_v50, 0.0  ;;  %v8033_v50 = vld [vmem:[%s8961_s6] ss:$0 sm:$0xff] }
 0x2dd   : > { %v7962_v59 = vadd.f32 %v2825_v42, %v2581_v2  ;;  %3133 = vmatprep.mubr.f32.mxu1 %v2230_v37  ;;  %v2263_v5 = vmax.f32 %v1861_v17, 0.0 }
 0x2de   : > { %v2827_v15 = vpop.f32.mrf.mxu1 }
 0x2e0   : > { %v2830_v42 = vpop.f32.mrf.mxu1  ;;  %3134 = vmatmul.mubr.f32.gmra.mxu1 %v2226_v54  ;;  %v9268_v54 = vld [vmem:[#allocation65_spill] sm:$0xff] }
 0x2e1   : > { %v7974_v40 = vadd.f32 %v2830_v42, %v2586_v58  ;;  %3138 = vmatprep.mubr.f32.mxu1 %v9265_v21  ;;  %v1871_v15 = vadd.f32 %v7446_v51, %v9268_v54  ;;  %v2596_v58 = vadd.f32 %v7858_v16, %v9269_v22  ;;  %v9270_v21 = vmax.f32 %v7625_v53, 0.0  ;;  %v3737_v22 = vld [vmem:[%s8958_s3 + $0x60] sm:$0xff] }
 0x2e2   : > { %v2832_v37 = vpop.f32.mrf.mxu1  ;;  %v9273_v54 = vmax.f32 %v7634_v9, 0.0 }
 0x2e4   : > { %v2835_v6 = vpop.f32.mrf.mxu1  ;;  %3139 = vmatmul.mubr.f32.gmra.mxu1 %v2263_v5  ;;  %v2265_v5 = vmax.f32 %v1871_v15, 0.0  ;;  %v3753_v15 = vld [vmem:[%s8958_s3 + $0xe0] sm:$0xff] }
 0x2e5   : > { %v7982_v2 = vadd.f32 %v2835_v6, %v2591_v57  ;;  %3143 = vmatprep.mubr.f32.mxu1 %v9267_v13  ;;  %v9272_v57 = vld [vmem:[#allocation76_spill] sm:$0xff]  ;;  %5046 = vmatprep.subr.mxu0 %v3753_v15  ;;  %v9280_v15 = vld [vmem:[#allocation69_spill] sm:$0xff] }
 0x2e6   : > { %v2837_v17 = vpop.f32.mrf.mxu1  ;;  %v2601_v6 = vadd.f32 %v7858_v16, %v9272_v57  ;;  %5047 = vmatpush3.msra.mxu0 %v3737_v22  ;;  %v3752_v22 = vld [vmem:[%s8958_s3 + $0xd8] sm:$0xff] }
 0x2e7   : > { %v9274_v17 = vld [vmem:[#allocation67_spill] sm:$0xff]  ;;  %5048 = vmatprep.subr.mxu0 %v3752_v22 }
 0x2e8   : > { %v2840_v7 = vpop.f32.mrf.mxu1  ;;  %3144 = vmatmul.mubr.f32.gmra.mxu1 %v2264_v39  ;;  %v2266_v39 = vmax.f32 %v1876_v3, 0.0  ;;  %v1901_v53 = vadd.f32 %v7446_v51, %v9274_v17  ;;  %v9277_v3 = vld [vmem:[#allocation66_spill] sm:$0xff] }
 0x2e9   : > { %v7996_v42 = vadd.f32 %v2840_v7, %v2596_v58  ;;  %3148 = vmatprep.mubr.f32.mxu1 %v9270_v21  ;;  %v9275_v58 = vld [vmem:[#allocation79_spill] sm:$0xff] }
 0x2ea   : > { %v2842_v37 = vpop.f32.mrf.mxu1  ;;  %v2606_v7 = vadd.f32 %v7858_v16, %v9275_v58  ;;  %v9281_v58 = vld [vmem:[#allocation30_spill] sm:$0xff] }
 0x2eb   : > { %v2271_v37 = vmax.f32 %v1901_v53, 0.0 }
 0x2ec   : > { %v2845_v13 = vpop.f32.mrf.mxu1  ;;  %3149 = vmatmul.mubr.f32.gmra.mxu1 %v2265_v5  ;;  %v1906_v5 = vadd.f32 %v7446_v51, %v9277_v3  ;;  %v1911_v51 = vadd.f32 %v8033_v50, %v9280_v15 }
 0x2ed   : > { %v8004_v55 = vadd.f32 %v2845_v13, %v2601_v6  ;;  %3153 = vmatprep.mubr.f32.mxu1 %v9273_v54  ;;  %v9278_v6 = vld [vmem:[#allocation81_spill] sm:$0xff] }
 0x2ee   : > { %v2847_v49 = vpop.f32.mrf.mxu1  ;;  %v2611_v13 = vadd.f32 %v7858_v16, %v9278_v6 }
 0x2ef   : > { %v2272_v49 = vmax.f32 %v1906_v5, 0.0  ;;  %v9283_v5 = vmax.f32 %v7666_v44, 0.0  ;;  %v9287_v44 = vmax.f32 %v7690_v26, 0.0  ;;  %v3751_v26 = vld [vmem:[%s8958_s3 + $0xd0] sm:$0xff] }
 0x2f0   : > { %v2850_v21 = vpop.f32.mrf.mxu1  ;;  %3154 = vmatmul.mubr.f32.gmra.mxu1 %v2266_v39  ;;  %v9279_v39 = vmax.f32 %v7659_v12, 0.0 }
 0x2f1   : > { %v8018_v9 = vadd.f32 %v2850_v21, %v2606_v7  ;;  %3158 = vmatprep.mubr.f32.mxu1 %v9276_v20  ;;  %v2616_v7 = vadd.f32 %v7858_v16, %v9281_v58  ;;  %v9282_v21 = vld [vmem:[#allocation77_spill] sm:$0xff] }
 0x2f2   : > { %v2852_v57 = vpop.f32.mrf.mxu1  ;;  %v1961_v20 = vadd.f32 %v8033_v50, %v9282_v21 }
 0x2f3   : > { %v9284_v57 = vld [vmem:[#allocation68_spill] sm:$0xff] }
 0x2f4   : > { %v2855_v54 = vpop.f32.mrf.mxu1  ;;  %3159 = vmatmul.mubr.f32.gmra.mxu1 %v2271_v37  ;;  %v3736_v37 = vld [vmem:[%s8958_s3 + $0x58] sm:$0xff]  ;;  %v1916_v6 = vadd.f32 %v8033_v50, %v9284_v57 }
 0x2f5   : > { %v8026_v17 = vadd.f32 %v2855_v54, %v2611_v13  ;;  %3163 = vmatprep.mubr.f32.mxu1 %v9279_v39  ;;  %v2273_v13 = vmax.f32 %v1911_v51, 0.0  ;;  %5049 = vmatpush3.msra.mxu0 %v3736_v37  ;;  %v9285_v39 = vld [vmem:[#allocation82_spill] sm:$0xff]  ;;  %v9290_v37 = vld [vmem:[#allocation35_spill] sm:$0xff] }
 0x2f6   : > { %v2857_v53 = vpop.f32.mrf.mxu1  ;;  %v2274_v58 = vmax.f32 %v1916_v6, 0.0  ;;  %v2626_v57 = vadd.f32 %v7858_v16, %v9290_v37  ;;  %v3735_v6 = vld [vmem:[%s8958_s3 + $0x50] sm:$0xff]  ;;  %5050 = vmatprep.subr.mxu0 %v3751_v26 }
 0x2f7   : > { %v2283_v53 = vmax.f32 %v1961_v20, 0.0  ;;  %5051 = vmatpush3.msra.mxu0 %v3735_v6  ;;  %v9297_v26 = vld [vmem:[#allocation36_spill] sm:$0xff] }
 0x2f8   : > { %v2860_v12 = vpop.f32.mrf.mxu1  ;;  %3164 = vmatmul.mubr.f32.gmra.mxu1 %v2272_v49  ;;  %v2621_v49 = vadd.f32 %v7858_v16, %v9285_v39 }
 0x2f9   : > { %v8044_v3 = vadd.f32 %v2860_v12, %v2616_v7  ;;  %3168 = vmatprep.mubr.f32.mxu1 %v9283_v5  ;;  %v9288_v7 = vld [vmem:[#allocation71_spill] sm:$0xff] }
 0x2fa   : > { %v2862_v54 = vpop.f32.mrf.mxu1  ;;  %v1941_v12 = vadd.f32 %v8033_v50, %v9288_v7  ;;  %v9289_v5 = vld [vmem:[#allocation75_spill] sm:$0xff] }
 0x2fb   : > { %v1966_v51 = vadd.f32 %v8033_v50, %v9289_v5 }
 0x2fc   : > { %v2865_v15 = vpop.f32.mrf.mxu1  ;;  %3169 = vmatmul.mubr.f32.gmra.mxu1 %v2273_v13  ;;  %v9291_v13 = vld [vmem:[#allocation80_spill] sm:$0xff] }
 0x2fd   : > { %v8055_v22 = vadd.f32 %v2865_v15, %v2621_v49  ;;  %3173 = vmatprep.mubr.f32.mxu1 %v9287_v44  ;;  %v1971_v20 = vadd.f32 %v8033_v50, %v9291_v13  ;;  %v9293_v49 = vld [vmem:[#allocation70_spill] sm:$0xff]  ;;  %v2279_v44 = vmax.f32 %v1941_v12, 0.0 }
 0x2fe   : > { %v2867_v21 = vpop.f32.mrf.mxu1  ;;  %v1946_v15 = vadd.f32 %v8033_v50, %v9293_v49  ;;  %v9295_v13 = vld [vmem:[#allocation74_spill] sm:$0xff] }
 0x2ff   : > { %9286 = vst [vmem:[#allocation34_spill] sm:$0xff] %v8055_v22  ;;  %v9294_v21 = vld [vmem:[#allocation83_spill] sm:$0xff]  ;;  %v2285_v37 = vmax.f32 %v1971_v20, 0.0  ;;  %v9296_v49 = vld [vmem:[#allocation78_spill] sm:$0xff] }
 0x300   : > { %v2870_v54 = vpop.f32.mrf.mxu1  ;;  %3174 = vmatmul.mubr.f32.gmra.mxu1 %v2274_v58  ;;  %v2284_v58 = vmax.f32 %v1966_v51, 0.0  ;;  %v2631_v5 = vadd.f32 %v7858_v16, %v9294_v21  ;;  %v1976_v12 = vadd.f32 %v8033_v50, %v9296_v49  ;;  %v2636_v51 = vadd.f32 %v7858_v16, %v9297_v26  ;;  %v3750_v20 = vld [vmem:[%s8958_s3 + $0xc8] sm:$0xff] }
 0x301   : > { %v8067_v39 = vadd.f32 %v2870_v54, %v2626_v57  ;;  %3178 = vmatprep.mubr.f32.mxu1 %v2283_v53  ;;  %v2280_v54 = vmax.f32 %v1946_v15, 0.0  ;;  %v9298_v15 = vld [vmem:[#allocation72_spill] sm:$0xff]  ;;  %5052 = vmatprep.subr.mxu0 %v3750_v20  ;;  %v3734_v21 = vld [vmem:[%s8958_s3 + $0x48] sm:$0xff] }
 0x302   : > { %v2872_v7 = vpop.f32.mrf.mxu1  ;;  %5053 = vmatpush3.msra.mxu0 %v3734_v21 }
 0x303   : > { %9292 = vst [vmem:[#allocation47_spill] sm:$0xff] %v8067_v39  ;;  %v1951_v39 = vadd.f32 %v8033_v50, %v9295_v13 }
 0x304   : > { %v2875_v53 = vpop.f32.mrf.mxu1  ;;  %3179 = vmatmul.mubr.f32.gmra.mxu1 %v2279_v44  ;;  %v1956_v44 = vadd.f32 %v8033_v50, %v9298_v15  ;;  %v9301_v15 = vld [vmem:[#allocation18_spill] sm:$0xff] }
 0x305   : > { %v8079_v57 = vadd.f32 %v2875_v53, %v2631_v5  ;;  %3183 = vmatprep.mubr.f32.mxu1 %v2284_v58  ;;  %v2281_v58 = vmax.f32 %v1951_v39, 0.0  ;;  %v2286_v5 = vmax.f32 %v1976_v12, 0.0  ;;  %v9299_v53 = vld [vmem:[#allocation84_spill] sm:$0xff] }
 0x306   : > { %v2877_v22 = vpop.f32.mrf.mxu1  ;;  %v2282_v49 = vmax.f32 %v1956_v44, 0.0  ;;  %v2651_v44 = vadd.f32 %v7858_v16, %v7724_v23 }
 0x308   : > { %v2880_v7 = vpop.f32.mrf.mxu1  ;;  %3184 = vmatmul.mubr.f32.gmra.mxu1 %v2280_v54  ;;  %v2641_v54 = vadd.f32 %v7858_v16, %v9299_v53 }
 0x309   : > { %v8087_v6 = vadd.f32 %v2880_v7, %v2636_v51  ;;  %3188 = vmatprep.mubr.f32.mxu1 %v2285_v37  ;;  %v9300_v51 = vld [vmem:[#allocation86_spill] sm:$0xff] }
 0x30a   : > { %v2882_v22 = vpop.f32.mrf.mxu1  ;;  %v2646_v39 = vadd.f32 %v7858_v16, %v9300_v51  ;;  %v9304_v51 = vld [vmem:[#allocation21_spill] sm:$0xff] }
 0x30b   : > { %v3749_v22 = vld [vmem:[%s8958_s3 + $0xc0] sm:$0xff] }
 0x30c   : > { %v2885_v37 = vpop.f32.mrf.mxu1  ;;  %3189 = vmatmul.mubr.f32.gmra.mxu1 %v2281_v58  ;;  %v3733_v58 = vld [vmem:[%s8958_s3 + $0x40] sm:$0xff]  ;;  %5054 = vmatprep.subr.mxu0 %v3749_v22 }
 0x30d   : > { %v8099_v13 = vadd.f32 %v2885_v37, %v2641_v54  ;;  %3193 = vmatprep.mubr.f32.mxu1 %v2286_v5  ;;  %v9302_v5 = vld [vmem:[#allocation19_spill] sm:$0xff]  ;;  %5055 = vmatpush3.msra.mxu0 %v3733_v58  ;;  %v9303_v54 = vld [vmem:[#allocation20_spill] sm:$0xff] }
 0x30e   : > { %v2887_v26 = vpop.f32.mrf.mxu1  ;;  %v9306_v58 = vld [vmem:[#allocation24_spill] sm:$0xff] }
 0x310   : > { %v2890_v7 = vpop.f32.mrf.mxu1  ;;  %3194 = vmatmul.mubr.f32.gmra.mxu1 %v2282_v49  ;;  %v2656_v49 = vadd.f32 %v7858_v16, %v7739_v61 }
 0x311   : > { %v8103_v20 = vadd.f32 %v2890_v7, %v2646_v39  ;;  %5606 = vmatprep.mubr.f32.mxu1 %v9301_v15  ;;  %v9305_v7 = vld [vmem:[#allocation22_spill] sm:$0xff]  ;;  %v3748_v15 = vld [vmem:[%s8958_s3 + $0xb8] sm:$0xff] }
 0x312   : > { %v2892_v12 = vpop.f32.mrf.mxu1  ;;  %5056 = vmatprep.subr.mxu0 %v3748_v15 }
 0x313   : > { %v2661_v12 = vadd.f32 %v7858_v16, %v7753_v27 }
 0x314   : > { %v2895_v21 = vpop.f32.mrf.mxu1  ;;  %5607 = vmatmul.mubr.f32.vlgmr.msra.gmra.mxu1 %v9302_v5 }
 0x315   : > { %v8115_v53 = vadd.f32 %v2895_v21, %v2651_v44  ;;  %5609 = vmatprep.mubr.f32.mxu1 %v9303_v54  ;;  %v9307_v44 = vld [vmem:[#allocation27_spill] sm:$0xff]  ;;  %v3732_v21 = vld [vmem:[%s8958_s3 + $0x38] sm:$0xff]  ;;  %v2666_v54 = vadd.f32 %v7858_v16, %v7767_v34  ;;  %v9313_v34 = vmax.f32 %v7516_v30, 0.0  ;;  %v9314_v30 = vmax.f32 %v7538_v32, 0.0 }
 0x316   : > { %v2897_v37 = vpop.f32.mrf.mxu1  ;;  %5057 = vmatpush3.msra.mxu0 %v3732_v21  ;;  %v3731_v21 = vld [vmem:[%s8958_s3 + $0x30] sm:$0xff]  ;;  %v3746_v32 = vld [vmem:[%s8958_s3 + $0xa8] sm:$0xff] }
 0x318   : > { %v2900_v26 = vpop.f32.mrf.mxu1  ;;  %5610 = vmatmul.mubr.f32.gmra.mxu1 %v9304_v51 }
 0x319   : > { %v8121_v39 = vadd.f32 %v2900_v26, %v2656_v49  ;;  %5612 = vmatprep.mubr.f32.mxu1 %v9305_v7  ;;  %v9308_v49 = vld [vmem:[#allocation29_spill] sm:$0xff] }
 0x31a   : > { %v2902_v23 = vpop.f32.mrf.mxu1  ;;  %v9309_v26 = vld [vmem:[#allocation25_spill] sm:$0xff] }
 0x31b   : > { %v9310_v51 = vmax.f32 %v9309_v26, 0.0  ;;  %v2671_v23 = vadd.f32 %v7858_v16, %v7781_v38  ;;  %v8157_v38 = vpop.f32.mrf.mxu0 }
 0x31c   : > { %v2905_v22 = vpop.f32.mrf.mxu1  ;;  %5613 = vmatmul.mubr.f32.gmra.mxu1 %v9306_v58 }
 0x31d   : > { %v8130_v61 = vadd.f32 %v2905_v22, %v2661_v12  ;;  %5615 = vmatprep.mubr.f32.mxu1 %v9307_v44  ;;  %v9311_v12 = vld [vmem:[#allocation23_spill] sm:$0xff]  ;;  %v3747_v44 = vld [vmem:[%s8958_s3 + $0xb0] sm:$0xff] }
 0x31e   : > { %v2907_v5 = vpop.f32.mrf.mxu1  ;;  %v9312_v22 = vmax.f32 %v9311_v12, 0.0  ;;  %5058 = vmatprep.subr.mxu0 %v3747_v44 }
 0x31f   : > { %5059 = vmatpush3.msra.mxu0 %v3731_v21  ;;  %v3788_v21 = vld [vmem:[%s8958_s3 + $0x1f8] sm:$0xff] }
 0x320   : > { %v2910_v37 = vpop.f32.mrf.mxu1  ;;  %5616 = vmatmul.mubr.f32.gmra.mxu1 %v9308_v49  ;;  %v3387_v49 = vpop.f32.mrf.mxu0  ;;  %5060 = vmatprep.subr.mxu0 %v3746_v32 }
 0x321   : > { %v8139_v27 = vadd.f32 %v2910_v37, %v2666_v54  ;;  %5618 = vmatprep.mubr.f32.mxu1 %v9310_v51  ;;  %v2676_v54 = vadd.f32 %v7858_v16, %v7795_v28  ;;  %5084 = vmatprep.subr.mxu1 %v3788_v21  ;;  %v3787_v49 = vld [vmem:[%s8958_s3 + $0x1f0] sm:$0xff] }
 0x322   : > { %v2912_v7 = vpop.f32.mrf.mxu1 }
 0x323   : > { %v8166_v7 = vpop.f32.mrf.mxu0 }
 0x324   : > { %v2915_v15 = vpop.f32.mrf.mxu1  ;;  %5619 = vmatmul.mubr.f32.gmra.mxu1 %v9312_v22 }
 0x325   : > { %v8147_v58 = vadd.f32 %v2915_v15, %v2671_v23  ;;  %5621 = vmatprep.mubr.f32.mxu1 %v9313_v34  ;;  %v2681_v23 = vadd.f32 %v7858_v16, %v7811_v62  ;;  %v3392_v28 = vpop.f32.mrf.mxu0  ;;  %v2686_v34 = vadd.f32 %v7858_v16, %v7827_v47  ;;  %v3772_v47 = vld [vmem:[%s8958_s3 + $0x178] sm:$0xff] }
 0x326   : > { %v2917_v5 = vpop.f32.mrf.mxu1  ;;  %5085 = vmatpush3.msra.mxu1 %v3772_v47 }
 0x327   : > { %5086 = vmatprep.subr.mxu1 %v3787_v49  ;;  %v3785_v49 = vld [vmem:[%s8958_s3 + $0x1e0] sm:$0xff] }
 0x328   : > { %v2920_v37 = vpop.f32.mrf.mxu1  ;;  %5622 = vmatmul.mubr.f32.gmra.mxu1 %v9314_v30 }
 0x329   : > { %v8163_v26 = vadd.f32 %v2920_v37, %v2676_v54  ;;  %5624 = vmatprep.mubr.f32.mxu1 %v7059_v24  ;;  %v8177_v24 = vpop.f32.mrf.mxu0 }
 0x32a   : > { %v2922_v51 = vpop.f32.mrf.mxu1 }
 0x32c   : > { %v2925_v15 = vpop.f32.mrf.mxu1  ;;  %5625 = vmatmul.mubr.f32.gmra.mxu1 %v7063_v31  ;;  %v3730_v31 = vld [vmem:[%s8958_s3 + $0x28] sm:$0xff] }
 0x32d   : > { %v8171_v12 = vadd.f32 %v2925_v15, %v2681_v23  ;;  %5627 = vmatprep.mubr.f32.mxu1 %v7069_v0  ;;  %5061 = vmatpush3.msra.mxu0 %v3730_v31  ;;  %v3397_v0 = vpop.f32.mrf.mxu0  ;;  %v3771_v15 = vld [vmem:[%s8958_s3 + $0x170] sm:$0xff] }
 0x32e   : > { %v2927_v22 = vpop.f32.mrf.mxu1  ;;  %5087 = vmatpush3.msra.mxu1 %v3771_v15  ;;  %v3770_v0 = vld [vmem:[%s8958_s3 + $0x168] sm:$0xff] }
 0x32f   : > { %v8194_v54 = vpop.f32.mrf.mxu0 }
 0x330   : > { %v2930_v62 = vpop.f32.mrf.mxu1  ;;  %5628 = vmatmul.mubr.f32.gmra.mxu1 %v7073_v43  ;;  %v2691_v43 = vadd.f32 %v7858_v16, %v7835_v56  ;;  %v2696_v56 = vadd.f32 %v7858_v16, %v7843_v52  ;;  %v9315_v52 = vmax.f32 %v7655_v8, 0.0  ;;  %v9316_v8 = vmax.f32 %v7672_v33, 0.0  ;;  %v3744_v33 = vld [vmem:[%s8958_s3 + $0x98] sm:$0xff] }
 0x331   : > { %v8185_v44 = vadd.f32 %v2930_v62, %v2686_v34  ;;  %5630 = vmatprep.mubr.f32.mxu1 %v7081_v10  ;;  %v3402_v10 = vpop.f32.mrf.mxu0  ;;  %v3786_v34 = vld [vmem:[%s8958_s3 + $0x1e8] sm:$0xff] }
 0x332   : > { %v2932_v5 = vpop.f32.mrf.mxu1  ;;  %5088 = vmatprep.subr.mxu1 %v3786_v34 }
 0x333   : > { %v8205_v23 = vpop.f32.mrf.mxu0  ;;  %5089 = vmatpush3.msra.mxu1 %v3770_v0 }
 0x334   : > { %v2935_v37 = vpop.f32.mrf.mxu1  ;;  %5631 = vmatmul.mubr.f32.gmra.mxu1 %v7088_v4  ;;  %v3745_v4 = vld [vmem:[%s8958_s3 + $0xa0] sm:$0xff]  ;;  %5090 = vmatprep.subr.mxu1 %v3785_v49 }
 0x335   : > { %v8199_v30 = vadd.f32 %v2935_v37, %v2691_v43  ;;  %5633 = vmatprep.mubr.f32.mxu1 %v7099_v36  ;;  %v3729_v36 = vld [vmem:[%s8958_s3 + $0x20] sm:$0xff]  ;;  %5062 = vmatprep.subr.mxu0 %v3745_v4  ;;  %v3407_v32 = vpop.f32.mrf.mxu0  ;;  %v9317_v43 = vmax.f32 %v7686_v1, 0.0 }
 0x336   : > { %v2937_v51 = vpop.f32.mrf.mxu1  ;;  %5063 = vmatpush3.msra.mxu0 %v3729_v36  ;;  %v3769_v1 = vld [vmem:[%s8958_s3 + $0x160] sm:$0xff]  ;;  %v3728_v36 = vld [vmem:[%s8958_s3 + $0x18] sm:$0xff] }
 0x337   : > { %v8226_v62 = vpop.f32.mrf.mxu0  ;;  %5064 = vmatprep.subr.mxu0 %v3744_v33  ;;  %5091 = vmatpush3.msra.mxu1 %v3769_v1  ;;  %v9325_v33 = vmax.f32 %v7543_v14, 0.0  ;;  %v3767_v14 = vld [vmem:[%s8958_s3 + $0x150] sm:$0xff] }
 0x338   : > { %v2940_v28 = vpop.f32.mrf.mxu1  ;;  %5634 = vmatmul.mubr.f32.gmra.mxu1 %v7109_v46  ;;  %v2701_v46 = vadd.f32 %v7858_v16, %v7849_v19  ;;  %v2706_v19 = vadd.f32 %v7858_v16, %v7860_v63  ;;  %v9319_v16 = vld [vmem:[#allocation85_spill] sm:$0xff]  ;;  %5065 = vmatpush3.msra.mxu0 %v3728_v36 }
 0x339   : > { %v8219_v22 = vadd.f32 %v2940_v28, %v2696_v56  ;;  %5636 = vmatprep.mubr.f32.mxu1 %v9315_v52  ;;  %v3412_v47 = vpop.f32.mrf.mxu0  ;;  %v9318_v56 = vmax.f32 %v7700_v60, 0.0  ;;  %v9320_v63 = vmax.f32 %v9319_v16, 0.0  ;;  %v3784_v60 = vld [vmem:[%s8958_s3 + $0x1d8] sm:$0xff]  ;;  %v3727_v16 = vld [vmem:[%s8958_s3 + $0x10] sm:$0xff] }
 0x33a   : > { %v2942_v31 = vpop.f32.mrf.mxu1  ;;  %v3768_v52 = vld [vmem:[%s8958_s3 + $0x158] sm:$0xff]  ;;  %5092 = vmatprep.subr.mxu1 %v3784_v60  ;;  %v9329_v60 = vld [vmem:[#allocation28_spill] sm:$0xff] }
 0x33b   : > { %v8239_v10 = vpop.f32.mrf.mxu0  ;;  %v9321_v31 = vld [vmem:[#allocation87_spill] sm:$0xff]  ;;  %5093 = vmatpush3.msra.mxu1 %v3768_v52  ;;  %v9330_v52 = vmax.f32 %v9329_v60, 0.0 }
 0x33c   : > { %v2945_v21 = vpop.f32.mrf.mxu1  ;;  %5637 = vmatmul.mubr.f32.gmra.mxu1 %v9316_v8  ;;  %v9323_v8 = vld [vmem:[#allocation42_spill] sm:$0xff] }
 0x33d   : > { %v8235_v5 = vadd.f32 %v2945_v21, %v2701_v46  ;;  %5639 = vmatprep.mubr.f32.mxu1 %v9317_v43  ;;  %v3417_v4 = vpop.f32.mrf.mxu0  ;;  %v9322_v46 = vmax.f32 %v9321_v31, 0.0  ;;  %v9324_v47 = vmax.f32 %v9323_v8, 0.0 }
 0x33e   : > { %v2947_v37 = vpop.f32.mrf.mxu1  ;;  %v3743_v4 = vld [vmem:[%s8958_s3 + $0x90] sm:$0xff] }
 0x33f   : > { %v8261_v32 = vpop.f32.mrf.mxu0  ;;  %5066 = vmatprep.subr.mxu0 %v3743_v4 }
 0x340   : > { %v2950_v51 = vpop.f32.mrf.mxu1  ;;  %5640 = vmatmul.mubr.f32.gmra.mxu1 %v9318_v56  ;;  %v9326_v56 = vmax.f32 %v7556_v11, 0.0  ;;  %5067 = vmatpush3.msra.mxu0 %v3727_v16  ;;  %v3782_v11 = vld [vmem:[%s8958_s3 + $0x1c8] sm:$0xff] }
 0x341   : > { %v8254_v15 = vadd.f32 %v2950_v51, %v2706_v19  ;;  %5642 = vmatprep.mubr.f32.mxu1 %v9320_v63  ;;  %v3422_v0 = vpop.f32.mrf.mxu0  ;;  %v3783_v19 = vld [vmem:[%s8958_s3 + $0x1d0] sm:$0xff] }
 0x342   : > { %v2952_v28 = vpop.f32.mrf.mxu1  ;;  %5094 = vmatprep.subr.mxu1 %v3783_v19  ;;  %v3766_v19 = vld [vmem:[%s8958_s3 + $0x148] sm:$0xff] }
 0x343   : > { %v8276_v37 = vpop.f32.mrf.mxu0  ;;  %5095 = vmatpush3.msra.mxu1 %v3767_v14  ;;  %v9336_v14 = vld [vmem:[#allocation89_spill] sm:$0xff] }
 0x344   : > { %v3020_v34 = vpop.f32.mrf.mxu1  ;;  %5643 = vmatmul.mubr.f32.gmra.mxu1 %v9322_v46  ;;  %5096 = vmatprep.subr.mxu1 %v3782_v11  ;;  %v9331_v46 = vld [vmem:[#allocation90_spill] sm:$0xff]  ;;  %v9337_v16 = vmax.f32 %v9336_v14, 0.0 }
 0x345   : > { %v8272_v21 = vadd.f32 %v3020_v34, %v7872_v41  ;;  %5645 = vmatprep.mubr.f32.mxu1 %v9324_v47  ;;  %v3427_v1 = vpop.f32.mrf.mxu0  ;;  %v2101_v41 = vadd.f32 %v8033_v50, %v7582_v45  ;;  %v2111_v0 = vadd.f32 %v8033_v50, %v9331_v46  ;;  %v9332_v47 = vld [vmem:[#allocation26_spill] sm:$0xff]  ;;  %5097 = vmatpush3.msra.mxu1 %v3766_v19 }
 0x346   : > { %v3022_v43 = vpop.f32.mrf.mxu1 }
 0x347   : > { %v8299_v45 = vpop.f32.mrf.mxu0  ;;  %v2311_v31 = vmax.f32 %v2101_v41, 0.0  ;;  %v9333_v43 = vmax.f32 %v9332_v47, 0.0  ;;  %v3780_v47 = vld [vmem:[%s8958_s3 + $0x1b8] sm:$0xff] }
 0x348   : > { %v3025_v49 = vpop.f32.mrf.mxu1  ;;  %5646 = vmatmul.mubr.f32.gmra.mxu1 %v9325_v33  ;;  %9327 = vst [vmem:[#allocation33_spill] sm:$0xff] %v8299_v45 }
 0x349   : > { %v8286_v51 = vadd.f32 %v3025_v49, %v7882_v18  ;;  %5648 = vmatprep.mubr.f32.mxu1 %v9326_v56  ;;  %v9328_v18 = vld [vmem:[#allocation41_spill] sm:$0xff]  ;;  %v3432_v34 = vpop.f32.mrf.mxu0  ;;  %v9335_v56 = vld [vmem:[#allocation88_spill] sm:$0xff] }
 0x34a   : > { %v3027_v63 = vpop.f32.mrf.mxu1  ;;  %v2106_v36 = vadd.f32 %v8033_v50, %v9328_v18  ;;  %v2116_v41 = vadd.f32 %v8033_v50, %v9335_v56  ;;  %v3781_v18 = vld [vmem:[%s8958_s3 + $0x1c0] sm:$0xff] }
 0x34b   : > { %v8318_v33 = vpop.f32.mrf.mxu0  ;;  %v2313_v63 = vmax.f32 %v2111_v0, 0.0  ;;  %v3765_v50 = vld [vmem:[%s8958_s3 + $0x140] sm:$0xff]  ;;  %5098 = vmatprep.subr.mxu1 %v3781_v18 }
 0x34c   : > { %v3030_v28 = vpop.f32.mrf.mxu1  ;;  %5649 = vmatmul.mubr.f32.gmra.mxu1 %v9330_v52  ;;  %9334 = vst [vmem:[#allocation50_spill] sm:$0xff] %v8318_v33  ;;  %v2312_v1 = vmax.f32 %v2106_v36, 0.0  ;;  %v3742_v36 = vld [vmem:[%s8958_s3 + $0x88] sm:$0xff]  ;;  %v2314_v52 = vmax.f32 %v2116_v41, 0.0 }
 0x34d   : > { %v8311_v8 = vadd.f32 %v3030_v28, %v7890_v48  ;;  %5651 = vmatprep.mubr.f32.mxu1 %v9333_v43  ;;  %v3437_v48 = vpop.f32.mrf.mxu0  ;;  %5068 = vmatprep.subr.mxu0 %v3742_v36  ;;  %v3764_v43 = vld [vmem:[%s8958_s3 + $0x138] sm:$0xff]  ;;  %v3778_v36 = vld [vmem:[%s8958_s3 + $0x1a8] sm:$0xff] }
 0x34e   : > { %v3032_v49 = vpop.f32.mrf.mxu1  ;;  %5099 = vmatpush3.msra.mxu1 %v3765_v50  ;;  %v3763_v48 = vld [vmem:[%s8958_s3 + $0x130] sm:$0xff] }
 0x34f   : > { %v8336_v60 = vpop.f32.mrf.mxu0  ;;  %5100 = vmatprep.subr.mxu1 %v3780_v47  ;;  %v9339_v49 = vld [vmem:[#allocation12_spill] sm:$0xff] }
 0x350   : > { %v3035_v4 = vpop.f32.mrf.mxu1  ;;  %5652 = vmatmul.mubr.f32.gmra.mxu1 %v9337_v16  ;;  %9338 = vst [vmem:[#allocation38_spill] sm:$0xff] %v8336_v60  ;;  %v3741_v16 = vld [vmem:[%s8958_s3 + $0x80] sm:$0xff]  ;;  %v9342_v47 = vld [vmem:[#allocation44_spill] sm:$0xff] }
 0x351   : > { %v8325_v11 = vadd.f32 %v3035_v4, %v7898_v29  ;;  %5654 = vmatprep.mubr.f32.mxu1 %v2311_v31  ;;  %v3726_v29 = vld [vmem:[%s8958_s3 + $0x8] sm:$0xff]  ;;  %v3442_v31 = vpop.f32.mrf.mxu0  ;;  %5101 = vmatpush3.msra.mxu1 %v3764_v43  ;;  %v9340_v4 = vld [vmem:[#allocation32_spill] sm:$0xff] }
 0x352   : > { %v3037_v28 = vpop.f32.mrf.mxu1  ;;  %5069 = vmatpush3.msra.mxu0 %v3726_v29  ;;  %v3820_v31 = vld [vmem:[%s8958_s3 + $0x2f8] sm:$0xff] }
 0x353   : > { %5070 = vmatprep.subr.mxu0 %v3741_v16  ;;  %v9341_v28 = vld [vmem:[#allocation31_spill] sm:$0xff]  ;;  %v3760_v16 = vld [vmem:[%s8958_s3 + $0x118] sm:$0xff] }
 0x354   : > { %v3040_v34 = vpop.f32.mrf.mxu1  ;;  %5655 = vmatmul.mubr.f32.gmra.mxu1 %v2312_v1 }
 0x355   : > { %v8342_v46 = vadd.f32 %v3040_v34, %v7906_v25  ;;  %5657 = vmatprep.mubr.f32.mxu1 %v2313_v63  ;;  %v3779_v25 = vld [vmem:[%s8958_s3 + $0x1b0] sm:$0xff]  ;;  %v3725_v63 = vld [vmem:[%s8958_s3] sm:$0xff] }
 0x356   : > { %v3042_v0 = vpop.f32.mrf.mxu1  ;;  %5102 = vmatprep.subr.mxu1 %v3779_v25  ;;  %5071 = vmatpush3.msra.mxu0 %v3725_v63 }
 0x357   : > { %5103 = vmatpush3.msra.mxu1 %v3763_v48  ;;  %5128 = vmatprep.subr.mxu0 %v3820_v31 }
 0x358   : > { %v3045_v19 = vpop.f32.mrf.mxu1  ;;  %5658 = vmatmul.mubr.f32.gmra.mxu1 %v2314_v52  ;;  %5104 = vmatprep.subr.mxu1 %v3778_v36  ;;  %v3762_v52 = vld [vmem:[%s8958_s3 + $0x128] sm:$0xff] }
 0x359   : > { %v8351_v1 = vadd.f32 %v3045_v19, %v9339_v49  ;;  %5105 = vmatpush3.msra.mxu1 %v3762_v52  ;;  %v3777_v19 = vld [vmem:[%s8958_s3 + $0x1a0] sm:$0xff]  ;;  %v3774_v52 = vld [vmem:[%s8958_s3 + $0x188] sm:$0xff] }
 0x35a   : > { %v3047_v56 = vpop.f32.mrf.mxu1  ;;  %v3761_v49 = vld [vmem:[%s8958_s3 + $0x120] sm:$0xff]  ;;  %5106 = vmatprep.subr.mxu1 %v3777_v19 }
 0x35b   : > { %5107 = vmatpush3.msra.mxu1 %v3761_v49 }
 0x35c   : > { %v3050_v41 = vpop.f32.mrf.mxu1 }
 0x35d   : > { %v8357_v14 = vadd.f32 %v3050_v41, %v9340_v4  ;;  %v3776_v4 = vld [vmem:[%s8958_s3 + $0x198] sm:$0xff] }
 0x35e   : > { %v3052_v18 = vpop.f32.mrf.mxu1  ;;  %5108 = vmatprep.subr.mxu1 %v3776_v4 }
 0x35f   : > { %5109 = vmatpush3.msra.mxu1 %v3760_v16 }
 0x360   : > { %v3055_v50 = vpop.f32.mrf.mxu1 }
 0x361   : > { %v8372_v29 = vadd.f32 %v3055_v50, %v9341_v28  ;;  %v3759_v50 = vld [vmem:[%s8958_s3 + $0x110] sm:$0xff] }
 0x362   : > { %v3057_v34 = vpop.f32.mrf.mxu1 }
 0x364   : > { %v3060_v0 = vpop.f32.mrf.mxu1 }
 0x365   : > { %v8381_v43 = vadd.f32 %v3060_v0, %v9342_v47  ;;  %v3773_v0 = vld [vmem:[%s8958_s3 + $0x180] sm:$0xff] }
 0x366   : > { %v3062_v56 = vpop.f32.mrf.mxu1  ;;  %v3757_v47 = vld [vmem:[%s8958_s3 + $0x100] sm:$0xff] }
 0x368   : > { %v3065_v25 = vpop.f32.mrf.mxu1 }
 0x369   : > { %v8390_v41 = vadd.f32 %v3065_v25, %v7956_v35  ;;  %v3775_v35 = vld [vmem:[%s8958_s3 + $0x190] sm:$0xff] }
 0x36a   : > { %v3067_v48 = vpop.f32.mrf.mxu1  ;;  %5110 = vmatprep.subr.mxu1 %v3775_v35 }
 0x36b   : > { %5111 = vmatpush3.msra.mxu1 %v3759_v50 }
 0x36c   : > { %v3070_v63 = vpop.f32.mrf.mxu1  ;;  %5112 = vmatprep.subr.mxu1 %v3774_v52 }
 0x36d   : > { %v8399_v18 = vadd.f32 %v3070_v63, %v7962_v59  ;;  %v3758_v59 = vld [vmem:[%s8958_s3 + $0x108] sm:$0xff] }
 0x36e   : > { %v3072_v36 = vpop.f32.mrf.mxu1  ;;  %5113 = vmatpush3.msra.mxu1 %v3758_v59 }
 0x36f   : > { %5114 = vmatprep.subr.mxu1 %v3773_v0 }
 0x370   : > { %v3075_v28 = vpop.f32.mrf.mxu1  ;;  %5115 = vmatpush3.msra.mxu1 %v3757_v47 }
 0x371   : > { %v8411_v34 = vadd.f32 %v3075_v28, %v7974_v40  ;;  %v3852_v40 = vld [vmem:[%s8958_s3 + $0x3f8] sm:$0xff] }
 0x372   : > { %v3077_v31 = vpop.f32.mrf.mxu1  ;;  %5172 = vmatprep.subr.mxu1 %v3852_v40 }
 0x374   : > { %v3080_v19 = vpop.f32.mrf.mxu1 }
 0x375   : > { %v8426_v49 = vadd.f32 %v3080_v19, %v7982_v2  ;;  %v9343_v19 = vld [vmem:[#allocation34_spill] sm:$0xff] }
 0x376   : > { %v3082_v56 = vpop.f32.mrf.mxu1 }
 0x378   : > { %v3085_v25 = vpop.f32.mrf.mxu1 }
 0x379   : > { %v8429_v4 = vadd.f32 %v3085_v25, %v7996_v42  ;;  %v9344_v25 = vld [vmem:[#allocation47_spill] sm:$0xff] }
 0x37a   : > { %v3087_v16 = vpop.f32.mrf.mxu1 }
 0x37c   : > { %v3090_v48 = vpop.f32.mrf.mxu1 }
 0x37d   : > { %v8432_v63 = vadd.f32 %v3090_v48, %v8004_v55 }
 0x37e   : > { %v3092_v35 = vpop.f32.mrf.mxu1 }
 0x380   : > { %v3095_v36 = vpop.f32.mrf.mxu1 }
 0x381   : > { %v8435_v50 = vadd.f32 %v3095_v36, %v8018_v9 }
 0x382   : > { %v3097_v28 = vpop.f32.mrf.mxu1 }
 0x384   : > { %v3100_v52 = vpop.f32.mrf.mxu1 }
 0x385   : > { %v8438_v2 = vadd.f32 %v3100_v52, %v8026_v17 }
 0x386   : > { %v3102_v59 = vpop.f32.mrf.mxu1 }
 0x388   : > { %v3105_v31 = vpop.f32.mrf.mxu1 }
 0x389   : > { %v8441_v42 = vadd.f32 %v3105_v31, %v8044_v3 }
 0x38a   : > { %v3107_v0 = vpop.f32.mrf.mxu1 }
 0x38c   : > { %v3110_v47 = vpop.f32.mrf.mxu1 }
 0x38d   : > { %v8444_v55 = vadd.f32 %v3110_v47, %v9343_v19 }
 0x38e   : > { %v3112_v40 = vpop.f32.mrf.mxu1 }
 0x390   : > { %v3115_v56 = vpop.f32.mrf.mxu1 }
 0x391   : > { %v8447_v9 = vadd.f32 %v3115_v56, %v9344_v25 }
 0x392   : > { %v3117_v16 = vpop.f32.mrf.mxu1 }
 0x394   : > { %v3120_v48 = vpop.f32.mrf.mxu1 }
 0x395   : > { %v8450_v17 = vadd.f32 %v3120_v48, %v8079_v57 }
 0x396   : > { %v3122_v35 = vpop.f32.mrf.mxu1 }
 0x398   : > { %v3125_v36 = vpop.f32.mrf.mxu1 }
 0x399   : > { %v8453_v3 = vadd.f32 %v3125_v36, %v8087_v6 }
 0x39a   : > { %v3127_v28 = vpop.f32.mrf.mxu1 }
 0x39c   : > { %v3130_v52 = vpop.f32.mrf.mxu1 }
 0x39d   : > { %v8456_v59 = vadd.f32 %v3130_v52, %v8099_v13 }
 0x39e   : > { %v3132_v31 = vpop.f32.mrf.mxu1 }
 0x3a0   : > { %v3135_v0 = vpop.f32.mrf.mxu1 }
 0x3a1   : > { %v8459_v47 = vadd.f32 %v3135_v0, %v8103_v20 }
 0x3a2   : > { %v3137_v19 = vpop.f32.mrf.mxu1 }
 0x3a4   : > { %v3140_v40 = vpop.f32.mrf.mxu1 }
 0x3a5   : > { %v8462_v57 = vadd.f32 %v3140_v40, %v8115_v53 }
 0x3a6   : > { %v3142_v56 = vpop.f32.mrf.mxu1 }
 0x3a8   : > { %v3145_v25 = vpop.f32.mrf.mxu1 }
 0x3a9   : > { %v8465_v6 = vadd.f32 %v3145_v25, %v8121_v39 }
 0x3aa   : > { %v3147_v16 = vpop.f32.mrf.mxu1 }
 0x3ac   : > { %v3150_v48 = vpop.f32.mrf.mxu1 }
 0x3ad   : > { %v8468_v13 = vadd.f32 %v3150_v48, %v8130_v61 }
 0x3ae   : > { %v3152_v35 = vpop.f32.mrf.mxu1 }
 0x3b0   : > { %v3155_v36 = vpop.f32.mrf.mxu1 }
 0x3b1   : > { %v8471_v20 = vadd.f32 %v3155_v36, %v8139_v27 }
 0x3b2   : > { %v3157_v28 = vpop.f32.mrf.mxu1 }
 0x3b4   : > { %v3160_v52 = vpop.f32.mrf.mxu1 }
 0x3b5   : > { %v8474_v53 = vadd.f32 %v3160_v52, %v8147_v58 }
 0x3b6   : > { %v3162_v31 = vpop.f32.mrf.mxu1 }
 0x3b8   : > { %v3165_v0 = vpop.f32.mrf.mxu1 }
 0x3b9   : > { %v8477_v39 = vadd.f32 %v3165_v0, %v8163_v26 }
 0x3ba   : > { %v3167_v19 = vpop.f32.mrf.mxu1 }
 0x3bc   : > { %v3170_v40 = vpop.f32.mrf.mxu1 }
 0x3bd   : > { %v8480_v61 = vadd.f32 %v3170_v40, %v8171_v12 }
 0x3be   : > { %v3172_v56 = vpop.f32.mrf.mxu1 }
 0x3c0   : > { %v3175_v25 = vpop.f32.mrf.mxu1 }
 0x3c1   : > { %v8483_v27 = vadd.f32 %v3175_v25, %v8185_v44 }
 0x3c2   : > { %v3177_v16 = vpop.f32.mrf.mxu1 }
 0x3c3   : > { %v9348_v16 = vld [vmem:[#allocation91_spill] sm:$0xff] }
 0x3c4   : > { %v3180_v48 = vpop.f32.mrf.mxu1 }
 0x3c5   : > { %v8486_v58 = vadd.f32 %v3180_v48, %v8199_v30  ;;  %v3266_v48 = vadd.f32 %v9348_v16, %v8272_v21 }
 0x3c6   : > { %v3182_v35 = vpop.f32.mrf.mxu1 }
 0x3c7   : > { %v9349_v35 = vld [vmem:[#allocation96_spill] sm:$0xff] }
 0x3c8   : > { %v3185_v36 = vpop.f32.mrf.mxu1 }
 0x3c9   : > { %v8489_v26 = vadd.f32 %v3185_v36, %v8219_v22  ;;  %v3291_v36 = vadd.f32 %v9349_v35, %v8351_v1  ;;  %v3804_v1 = vld [vmem:[%s8958_s3 + $0x278] sm:$0xff] }
 0x3ca   : > { %v3187_v28 = vpop.f32.mrf.mxu1 }
 0x3cb   : > { %9345 = vst [vmem:[#allocation53_spill] sm:$0xff] %v8489_v26 }
 0x3cc   : > { %v3190_v52 = vpop.f32.mrf.mxu1 }
 0x3cd   : > { %v8492_v12 = vadd.f32 %v3190_v52, %v8235_v5  ;;  %v9350_v5 = vld [vmem:[#allocation95_spill] sm:$0xff] }
 0x3ce   : > { %v3192_v31 = vpop.f32.mrf.mxu1  ;;  %v3286_v28 = vadd.f32 %v9350_v5, %v8342_v46 }
 0x3cf   : > { %9346 = vst [vmem:[#allocation37_spill] sm:$0xff] %v8492_v12  ;;  %v9352_v12 = vld [vmem:[#allocation97_spill] sm:$0xff] }
 0x3d0   : > { %v3195_v0 = vpop.f32.mrf.mxu1  ;;  %v3296_v45 = vadd.f32 %v9352_v12, %v8357_v14  ;;  %v3803_v14 = vld [vmem:[%s8958_s3 + $0x270] sm:$0xff]  ;;  %v9354_v12 = vld [vmem:[#allocation98_spill] sm:$0xff] }
 0x3d1   : > { %v8495_v44 = vadd.f32 %v3195_v0, %v8254_v15  ;;  %v9351_v0 = vld [vmem:[#allocation92_spill] sm:$0xff] }
 0x3d2   : > { %v3197_v19 = vpop.f32.mrf.mxu1 }
 0x3d3   : > { %9347 = vst [vmem:[#allocation55_spill] sm:$0xff] %v8495_v44  ;;  %v3271_v19 = vadd.f32 %v9351_v0, %v8286_v51  ;;  %v9353_v51 = vld [vmem:[#allocation93_spill] sm:$0xff] }
 0x3d4   : > { %v5608_v40 = vpop.f32.mrf.mxu1 }
 0x3d5   : > { %v3516_v21 = vadd.f32 %v5608_v40, %v3271_v19  ;;  %v3301_v40 = vadd.f32 %v9354_v12, %v8372_v29  ;;  %v3817_v29 = vld [vmem:[%s8958_s3 + $0x2e0] sm:$0xff]  ;;  %v3814_v12 = vld [vmem:[%s8958_s3 + $0x2c8] sm:$0xff] }
 0x3d6   : > { %v3510_v56 = vpop.f32.mrf.mxu1 }
 0x3d7   : > { %v3511_v52 = vadd.f32 %v3510_v56, %v3266_v48  ;;  %v3819_v48 = vld [vmem:[%s8958_s3 + $0x2f0] sm:$0xff] }
 0x3d8   : > { %v5611_v30 = vpop.f32.mrf.mxu1 }
 0x3d9   : > { %v3689_v16 = vmax.f32 %v3511_v52, 0.0 }
 0x3da   : > { %v3520_v25 = vpop.f32.mrf.mxu1 }
 0x3dc   : > { %v5614_v22 = vpop.f32.mrf.mxu1 }
 0x3dd   : > { %v3536_v60 = vadd.f32 %v5614_v22, %v3291_v36  ;;  %v3276_v22 = vadd.f32 %v9353_v51, %v8311_v8 }
 0x3de   : > { %v3530_v31 = vpop.f32.mrf.mxu1 }
 0x3df   : > { %v3531_v15 = vadd.f32 %v3530_v31, %v3286_v28  ;;  %v3694_v46 = vmax.f32 %v3536_v60, 0.0  ;;  %v3521_v60 = vadd.f32 %v3520_v25, %v3276_v22  ;;  %v9355_v28 = vld [vmem:[#allocation94_spill] sm:$0xff]  ;;  %v9358_v22 = vld [vmem:[#allocation4_spill] sm:$0xff] }
 0x3e0   : > { %v5617_v44 = vpop.f32.mrf.mxu1  ;;  %v3281_v52 = vadd.f32 %v9355_v28, %v8325_v11  ;;  %v3801_v25 = vld [vmem:[%s8958_s3 + $0x260] sm:$0xff]  ;;  %v3800_v11 = vld [vmem:[%s8958_s3 + $0x258] sm:$0xff] }
 0x3e1   : > { %v3693_v33 = vmax.f32 %v3531_v15, 0.0  ;;  %v3546_v36 = vadd.f32 %v5617_v44, %v3301_v40  ;;  %v3816_v44 = vld [vmem:[%s8958_s3 + $0x2d8] sm:$0xff]  ;;  %v3691_v0 = vmax.f32 %v3521_v60, 0.0 }
 0x3e2   : > { %v3540_v26 = vpop.f32.mrf.mxu1  ;;  %v3526_v15 = vadd.f32 %v5611_v30, %v3281_v52  ;;  %v3799_v30 = vld [vmem:[%s8958_s3 + $0x250] sm:$0xff]  ;;  %v3812_v28 = vld [vmem:[%s8958_s3 + $0x2b8] sm:$0xff] }
 0x3e3   : > { %v3541_v56 = vadd.f32 %v3540_v26, %v3296_v45  ;;  %3938 = vmatprep.mubr.f32.mxu0 %v3693_v33  ;;  %v3818_v45 = vld [vmem:[%s8958_s3 + $0x2e8] sm:$0xff]  ;;  %v3690_v33 = vmax.f32 %v3516_v21, 0.0  ;;  %v3696_v21 = vmax.f32 %v3546_v36, 0.0 }
 0x3e4   : > { %v8515_v35 = vpop.f32.mrf.mxu1  ;;  %3939 = vmatmul.mubr.f32.vlgmr.msra.gmra.mxu0 %v3689_v16  ;;  %v3802_v26 = vld [vmem:[%s8958_s3 + $0x268] sm:$0xff]  ;;  %v3815_v16 = vld [vmem:[%s8958_s3 + $0x2d0] sm:$0xff] }
 0x3e5   : > { %5129 = vmatpush3.msra.mxu0 %v3804_v1  ;;  %3943 = vmatprep.mubr.f32.mxu0 %v3694_v46  ;;  %v3695_v5 = vmax.f32 %v3541_v56, 0.0  ;;  %v9356_v1 = vld [vmem:[#allocation99_spill] sm:$0xff] }
 0x3e6   : > { %5130 = vmatprep.subr.mxu0 %v3819_v48  ;;  %v3550_v8 = vpop.f32.mrf.mxu1  ;;  %v3306_v46 = vadd.f32 %v9356_v1, %v8381_v43  ;;  %v9357_v48 = vld [vmem:[#allocation7_spill] sm:$0xff]  ;;  %v3692_v43 = vmax.f32 %v3526_v15, 0.0 }
 0x3e7   : > { %5131 = vmatpush3.msra.mxu0 %v3803_v14  ;;  %v3331_v51 = vadd.f32 %v9357_v48, %v8429_v4  ;;  %v3326_v14 = vadd.f32 %v9358_v22, %v8426_v49  ;;  %v3813_v4 = vld [vmem:[%s8958_s3 + $0x2c0] sm:$0xff]  ;;  %v9359_v36 = vld [vmem:[#allocation3_spill] sm:$0xff] }
 0x3e8   : > { %5132 = vmatprep.subr.mxu0 %v3818_v45  ;;  %v8533_v31 = vpop.f32.mrf.mxu1  ;;  %3944 = vmatmul.mubr.f32.gmra.mxu0 %v3690_v33  ;;  %v3551_v40 = vadd.f32 %v3550_v8, %v3306_v46  ;;  %v3798_v33 = vld [vmem:[%s8958_s3 + $0x248] sm:$0xff]  ;;  %v3797_v8 = vld [vmem:[%s8958_s3 + $0x240] sm:$0xff]  ;;  %v3851_v46 = vld [vmem:[%s8958_s3 + $0x3f0] sm:$0xff] }
 0x3e9   : > { %5133 = vmatpush3.msra.mxu0 %v3802_v26  ;;  %3948 = vmatprep.mubr.f32.mxu0 %v3695_v5  ;;  %v3311_v5 = vadd.f32 %v9359_v36, %v8390_v41  ;;  %v3811_v41 = vld [vmem:[%s8958_s3 + $0x2b0] sm:$0xff]  ;;  %v9361_v48 = vld [vmem:[#allocation2_spill] sm:$0xff] }
 0x3ea   : > { %5134 = vmatprep.subr.mxu0 %v3817_v29  ;;  %v8541_v19 = vpop.f32.mrf.mxu1  ;;  %v3697_v52 = vmax.f32 %v3551_v40, 0.0 }
 0x3eb   : > { %5135 = vmatpush3.msra.mxu0 %v3801_v25  ;;  %v9360_v25 = vld [vmem:[#allocation6_spill] sm:$0xff] }
 0x3ec   : > { %5136 = vmatprep.subr.mxu0 %v3816_v44  ;;  %v5626_v56 = vpop.f32.mrf.mxu1  ;;  %3949 = vmatmul.mubr.f32.gmra.mxu0 %v3691_v0  ;;  %v3336_v44 = vadd.f32 %v9360_v25, %v8432_v63  ;;  %v3796_v0 = vld [vmem:[%s8958_s3 + $0x238] sm:$0xff] }
 0x3ed   : > { %5137 = vmatpush3.msra.mxu0 %v3800_v11  ;;  %3953 = vmatprep.mubr.f32.mxu0 %v3696_v21  ;;  %v3576_v60 = vadd.f32 %v5626_v56, %v3331_v51  ;;  %v3556_v11 = vadd.f32 %v8515_v35, %v3311_v5  ;;  %v3795_v35 = vld [vmem:[%s8958_s3 + $0x230] sm:$0xff]  ;;  %v3810_v56 = vld [vmem:[%s8958_s3 + $0x2a8] sm:$0xff]  ;;  %v3316_v51 = vadd.f32 %v9361_v48, %v8399_v18  ;;  %v3808_v5 = vld [vmem:[%s8958_s3 + $0x298] sm:$0xff] }
 0x3ee   : > { %5138 = vmatprep.subr.mxu0 %v3815_v16  ;;  %v3570_v45 = vpop.f32.mrf.mxu1  ;;  %v3836_v16 = vld [vmem:[%s8958_s3 + $0x378] sm:$0xff] }
 0x3ef   : > { %v3571_v26 = vadd.f32 %v3570_v45, %v3326_v14  ;;  %5139 = vmatpush3.msra.mxu0 %v3799_v30  ;;  %v3702_v21 = vmax.f32 %v3576_v60, 0.0  ;;  %v3835_v30 = vld [vmem:[%s8958_s3 + $0x370] sm:$0xff]  ;;  %v3794_v14 = vld [vmem:[%s8958_s3 + $0x228] sm:$0xff] }
 0x3f0   : > { %5140 = vmatprep.subr.mxu0 %v3814_v12  ;;  %v5629_v49 = vpop.f32.mrf.mxu1  ;;  %3954 = vmatmul.mubr.f32.gmra.mxu0 %v3692_v43  ;;  %v3698_v12 = vmax.f32 %v3556_v11, 0.0  ;;  %v9362_v43 = vld [vmem:[#allocation9_spill] sm:$0xff]  ;;  %v3850_v45 = vld [vmem:[%s8958_s3 + $0x3e8] sm:$0xff] }
 0x3f1   : > { %v3701_v29 = vmax.f32 %v3571_v26, 0.0  ;;  %5141 = vmatpush3.msra.mxu0 %v3798_v33  ;;  %v3341_v40 = vadd.f32 %v9362_v43, %v8435_v50  ;;  %v3561_v33 = vadd.f32 %v8541_v19, %v3316_v51  ;;  %v3809_v26 = vld [vmem:[%s8958_s3 + $0x2a0] sm:$0xff]  ;;  %v3834_v50 = vld [vmem:[%s8958_s3 + $0x368] sm:$0xff]  ;;  %v9366_v43 = vld [vmem:[#allocation17_spill] sm:$0xff] }
 0x3f2   : > { %5142 = vmatprep.subr.mxu0 %v3813_v4  ;;  %v3580_v15 = vpop.f32.mrf.mxu1  ;;  %v3793_v19 = vld [vmem:[%s8958_s3 + $0x220] sm:$0xff] }
 0x3f3   : > { %5143 = vmatpush3.msra.mxu0 %v3797_v8  ;;  %4023 = vmatprep.mubr.f32.mxu1 %v3701_v29  ;;  %v3581_v1 = vadd.f32 %v3580_v15, %v3336_v44  ;;  %v3586_v4 = vadd.f32 %v5629_v49, %v3341_v40  ;;  %v3849_v8 = vld [vmem:[%s8958_s3 + $0x3e0] sm:$0xff]  ;;  %v9363_v29 = vld [vmem:[#allocation5_spill] sm:$0xff]  ;;  %v3699_v25 = vmax.f32 %v3561_v33, 0.0  ;;  %v3371_v40 = vadd.f32 %v9366_v43, %v8453_v3 }
 0x3f4   : > { %5144 = vmatprep.subr.mxu0 %v3812_v28  ;;  %v8587_v63 = vpop.f32.mrf.mxu1  ;;  %4024 = vmatmul.mubr.f32.vlgmr.msra.gmra.mxu1 %v3697_v52  ;;  %v3833_v49 = vld [vmem:[%s8958_s3 + $0x360] sm:$0xff]  ;;  %v3321_v28 = vadd.f32 %v9363_v29, %v8411_v34  ;;  %v3792_v52 = vld [vmem:[%s8958_s3 + $0x218] sm:$0xff]  ;;  %v3807_v34 = vld [vmem:[%s8958_s3 + $0x290] sm:$0xff] }
 0x3f5   : > { %5145 = vmatpush3.msra.mxu0 %v3796_v0  ;;  %4028 = vmatprep.mubr.f32.mxu1 %v3702_v21  ;;  %v3703_v18 = vmax.f32 %v3581_v1, 0.0  ;;  %v3848_v15 = vld [vmem:[%s8958_s3 + $0x3d8] sm:$0xff]  ;;  %v3704_v11 = vmax.f32 %v3586_v4, 0.0  ;;  %v3789_v3 = vld [vmem:[%s8958_s3 + $0x200] sm:$0xff] }
 0x3f6   : > { %5146 = vmatprep.subr.mxu0 %v3811_v41  ;;  %5173 = vmatpush3.msra.mxu1 %v3836_v16  ;;  %v3590_v22 = vpop.f32.mrf.mxu1  ;;  %v3566_v0 = vadd.f32 %v8533_v31, %v3321_v28  ;;  %v3832_v21 = vld [vmem:[%s8958_s3 + $0x358] sm:$0xff]  ;;  %v9364_v41 = vld [vmem:[#allocation10_spill] sm:$0xff]  ;;  %v3791_v31 = vld [vmem:[%s8958_s3 + $0x210] sm:$0xff] }
 0x3f7   : > { %5147 = vmatpush3.msra.mxu0 %v3795_v35  ;;  %5174 = vmatprep.subr.mxu1 %v3851_v46  ;;  %v3366_v16 = vadd.f32 %v9364_v41, %v8450_v17  ;;  %v3847_v35 = vld [vmem:[%s8958_s3 + $0x3d0] sm:$0xff]  ;;  %v3844_v28 = vld [vmem:[%s8958_s3 + $0x3b8] sm:$0xff] }
 0x3f8   : > { %5148 = vmatprep.subr.mxu0 %v3810_v56  ;;  %5175 = vmatpush3.msra.mxu1 %v3835_v30  ;;  %v8612_v60 = vpop.f32.mrf.mxu1  ;;  %v3806_v56 = vld [vmem:[%s8958_s3 + $0x288] sm:$0xff]  ;;  %v3831_v17 = vld [vmem:[%s8958_s3 + $0x350] sm:$0xff] }
 0x3f9   : > { %4029 = vmatmul.mubr.f32.gmra.mxu1 %v3698_v12  ;;  %5149 = vmatpush3.msra.mxu0 %v3794_v14  ;;  %v9365_v30 = vld [vmem:[#allocation8_spill] sm:$0xff]  ;;  %v3790_v14 = vld [vmem:[%s8958_s3 + $0x208] sm:$0xff]  ;;  %v3700_v12 = vmax.f32 %v3566_v0, 0.0 }
 0x3fa   : > { %5176 = vmatprep.subr.mxu1 %v3850_v45  ;;  %4033 = vmatprep.mubr.f32.mxu1 %v3703_v18  ;;  %v8626_v36 = vpop.f32.mrf.mxu1  ;;  %v3346_v48 = vadd.f32 %v9365_v30, %v8438_v2  ;;  %v3846_v45 = vld [vmem:[%s8958_s3 + $0x3c8] sm:$0xff]  ;;  %v3805_v2 = vld [vmem:[%s8958_s3 + $0x280] sm:$0xff] }
 0x3fb   : > { %5150 = vmatprep.subr.mxu0 %v3809_v26  ;;  %5177 = vmatpush3.msra.mxu1 %v3834_v50  ;;  %v3830_v26 = vld [vmem:[%s8958_s3 + $0x348] sm:$0xff] }
 0x3fc   : > { %5151 = vmatpush3.msra.mxu0 %v3793_v19  ;;  %5178 = vmatprep.subr.mxu1 %v3849_v8  ;;  %v5638_v44 = vpop.f32.mrf.mxu1  ;;  %v3591_v33 = vadd.f32 %v3590_v22, %v3346_v48  ;;  %v3845_v19 = vld [vmem:[%s8958_s3 + $0x3c0] sm:$0xff]  ;;  %v3868_v8 = vld [vmem:[%s8958_s3 + $0x478] sm:$0xff] }
 0x3fd   : > { %5152 = vmatprep.subr.mxu0 %v3808_v5  ;;  %5179 = vmatpush3.msra.mxu1 %v3833_v49  ;;  %v3616_v4 = vadd.f32 %v5638_v44, %v3371_v40  ;;  %v3829_v22 = vld [vmem:[%s8958_s3 + $0x340] sm:$0xff]  ;;  %v9367_v49 = vld [vmem:[#allocation15_spill] sm:$0xff] }
 0x3fe   : > { %4034 = vmatmul.mubr.f32.gmra.mxu1 %v3699_v25  ;;  %5153 = vmatpush3.msra.mxu0 %v3792_v52  ;;  %v3610_v1 = vpop.f32.mrf.mxu1  ;;  %v3351_v29 = vadd.f32 %v9367_v49, %v8441_v42  ;;  %v3705_v52 = vmax.f32 %v3591_v33, 0.0  ;;  %v9368_v25 = vld [vmem:[#allocation13_spill] sm:$0xff]  ;;  %v9371_v33 = vld [vmem:[#allocation14_spill] sm:$0xff]  ;;  %v3862_v49 = vld [vmem:[%s8958_s3 + $0x448] sm:$0xff] }
 0x3ff   : > { %5180 = vmatprep.subr.mxu1 %v3848_v15  ;;  %4038 = vmatprep.mubr.f32.mxu1 %v3704_v11  ;;  %v3611_v46 = vadd.f32 %v3610_v1, %v3366_v16  ;;  %v3376_v44 = vadd.f32 %v9368_v25, %v8456_v59  ;;  %v3710_v11 = vmax.f32 %v3616_v4, 0.0  ;;  %v3828_v42 = vld [vmem:[%s8958_s3 + $0x338] sm:$0xff]  ;;  %v3843_v59 = vld [vmem:[%s8958_s3 + $0x3b0] sm:$0xff]  ;;  %v3866_v16 = vld [vmem:[%s8958_s3 + $0x468] sm:$0xff]  ;;  %v3411_v25 = vadd.f32 %v8226_v62, %v8477_v39 }
 0x400   : > { %5154 = vmatprep.subr.mxu0 %v3807_v34  ;;  %5181 = vmatpush3.msra.mxu1 %v3832_v21  ;;  %v8665_v51 = vpop.f32.mrf.mxu1  ;;  %v3596_v0 = vadd.f32 %v8587_v63, %v3351_v29  ;;  %v3867_v34 = vld [vmem:[%s8958_s3 + $0x470] sm:$0xff]  ;;  %v9369_v1 = vld [vmem:[#allocation11_spill] sm:$0xff]  ;;  %v3386_v29 = vadd.f32 %v8157_v38, %v8462_v57  ;;  %v3837_v62 = vld [vmem:[%s8958_s3 + $0x380] sm:$0xff] }
 0x401   : > { %5155 = vmatpush3.msra.mxu0 %v3791_v31  ;;  %5182 = vmatprep.subr.mxu1 %v3847_v35  ;;  %v3709_v18 = vmax.f32 %v3611_v46, 0.0  ;;  %v3827_v63 = vld [vmem:[%s8958_s3 + $0x330] sm:$0xff]  ;;  %v3356_v31 = vadd.f32 %v9369_v1, %v8444_v55  ;;  %v3842_v35 = vld [vmem:[%s8958_s3 + $0x3a8] sm:$0xff] }
 0x402   : > { %5156 = vmatprep.subr.mxu0 %v3806_v56  ;;  %5183 = vmatpush3.msra.mxu1 %v3831_v17  ;;  %v3620_v50 = vpop.f32.mrf.mxu1  ;;  %v3706_v56 = vmax.f32 %v3596_v0, 0.0  ;;  %v9370_v17 = vld [vmem:[#allocation16_spill] sm:$0xff]  ;;  %v3826_v55 = vld [vmem:[%s8958_s3 + $0x328] sm:$0xff] }
 0x403   : > { %4039 = vmatmul.mubr.f32.gmra.mxu1 %v3700_v12  ;;  %5157 = vmatpush3.msra.mxu0 %v3790_v14  ;;  %v3621_v21 = vadd.f32 %v3620_v50, %v3376_v44  ;;  %v3381_v30 = vadd.f32 %v9370_v17, %v8459_v47  ;;  %v3601_v48 = vadd.f32 %v8626_v36, %v3356_v31  ;;  %v3865_v12 = vld [vmem:[%s8958_s3 + $0x460] sm:$0xff]  ;;  %v3822_v38 = vld [vmem:[%s8958_s3 + $0x308] sm:$0xff] }
 0x404   : > { %5184 = vmatprep.subr.mxu1 %v3846_v45  ;;  %5158 = vmatprep.subr.mxu0 %v3805_v2  ;;  %v8693_v5 = vpop.f32.mrf.mxu1  ;;  %v3841_v47 = vld [vmem:[%s8958_s3 + $0x3a0] sm:$0xff]  ;;  %v3864_v45 = vld [vmem:[%s8958_s3 + $0x458] sm:$0xff]  ;;  %v3426_v44 = vadd.f32 %v8276_v37, %v8486_v58 }
 0x405   : > { %5185 = vmatpush3.msra.mxu1 %v3830_v26  ;;  %5159 = vmatpush3.msra.mxu0 %v3789_v3  ;;  %v3711_v14 = vmax.f32 %v3621_v21, 0.0  ;;  %v3626_v40 = vadd.f32 %v8665_v51, %v3381_v30  ;;  %v3825_v36 = vld [vmem:[%s8958_s3 + $0x320] sm:$0xff]  ;;  %v3361_v51 = vadd.f32 %v9371_v33, %v8447_v9  ;;  %v3707_v26 = vmax.f32 %v3601_v48, 0.0  ;;  %v3824_v9 = vld [vmem:[%s8958_s3 + $0x318] sm:$0xff] }
 0x406   : > { %5186 = vmatprep.subr.mxu1 %v3845_v19  ;;  %4108 = vmatprep.mubr.f32.mxu0 %v3709_v18  ;;  %v8702_v15 = vpop.f32.mrf.mxu1  ;;  %v3840_v18 = vld [vmem:[%s8958_s3 + $0x398] sm:$0xff]  ;;  %v3406_v3 = vadd.f32 %v8205_v23, %v8474_v53  ;;  %v3857_v17 = vld [vmem:[%s8958_s3 + $0x420] sm:$0xff]  ;;  %v3401_v48 = vadd.f32 %v8194_v54, %v8471_v20 }
 0x407   : > { %5187 = vmatpush3.msra.mxu1 %v3829_v22  ;;  %5660 = vmatprep.subr.mxu0 %v3868_v8  ;;  %v3606_v4 = vadd.f32 %v8612_v60, %v3361_v51  ;;  %v3712_v19 = vmax.f32 %v3626_v40, 0.0  ;;  %v3863_v22 = vld [vmem:[%s8958_s3 + $0x450] sm:$0xff]  ;;  %v3631_v57 = vadd.f32 %v8702_v15, %v3386_v29  ;;  %v3860_v21 = vld [vmem:[%s8958_s3 + $0x438] sm:$0xff]  ;;  %v3853_v51 = vld [vmem:[%s8958_s3 + $0x400] sm:$0xff] }
 0x408   : > { %4109 = vmatmul.mubr.f32.vlgmr.msra.gmra.mxu0 %v3705_v52  ;;  %5188 = vmatprep.subr.mxu1 %v3844_v28  ;;  %v8714_v41 = vpop.f32.mrf.mxu1  ;;  %v3823_v60 = vld [vmem:[%s8958_s3 + $0x310] sm:$0xff]  ;;  %v3838_v28 = vld [vmem:[%s8958_s3 + $0x388] sm:$0xff]  ;;  %v9374_v40 = vld [vmem:[#allocation37_spill] sm:$0xff] }
 0x409   : > { %5661 = vmatpush3.msra.mxu0 %v3868_v8  ;;  %4113 = vmatprep.mubr.f32.mxu0 %v3710_v11  ;;  %v3839_v8 = vld [vmem:[%s8958_s3 + $0x390] sm:$0xff]  ;;  %v3708_v0 = vmax.f32 %v3606_v4, 0.0  ;;  %v3861_v11 = vld [vmem:[%s8958_s3 + $0x440] sm:$0xff]  ;;  %v4312_v29 = vld [vmem:[%s8959_s4 + $0x48] sm:$0xff] }
 0x40a   : > { %5189 = vmatpush3.msra.mxu1 %v3828_v42  ;;  %5662 = vmatprep.subr.mxu0 %v3867_v34  ;;  %v8727_v46 = vpop.f32.mrf.mxu1  ;;  %v3821_v42 = vld [vmem:[%s8958_s3 + $0x300] sm:$0xff] }
 0x40b   : > { %5190 = vmatprep.subr.mxu1 %v3843_v59  ;;  %5663 = vmatpush3.msra.mxu0 %v3867_v34  ;;  %v3391_v34 = vadd.f32 %v8166_v7, %v8465_v6  ;;  %v3416_v59 = vadd.f32 %v8239_v10, %v8480_v61  ;;  %v3859_v7 = vld [vmem:[%s8958_s3 + $0x430] sm:$0xff]  ;;  %v3858_v10 = vld [vmem:[%s8958_s3 + $0x428] sm:$0xff]  ;;  %v3421_v61 = vadd.f32 %v8261_v32, %v8483_v27  ;;  %v3856_v32 = vld [vmem:[%s8958_s3 + $0x418] sm:$0xff] }
 0x40c   : > { %5191 = vmatpush3.msra.mxu1 %v3827_v63  ;;  %5664 = vmatprep.subr.mxu0 %v3866_v16  ;;  %v5650_v43 = vpop.f32.mrf.mxu1  ;;  %v3646_v27 = vadd.f32 %v8714_v41, %v3401_v48  ;;  %v3854_v41 = vld [vmem:[%s8958_s3 + $0x408] sm:$0xff] }
 0x40d   : > { %4114 = vmatmul.mubr.f32.gmra.mxu0 %v3706_v56  ;;  %5192 = vmatprep.subr.mxu1 %v3842_v35  ;;  %v3656_v39 = vadd.f32 %v5650_v43, %v3411_v25  ;;  %v3636_v63 = vadd.f32 %v8693_v5, %v3391_v34  ;;  %v3396_v35 = vadd.f32 %v8177_v24, %v8468_v13  ;;  %v4309_v25 = vld [vmem:[%s8959_s4 + $0x30] sm:$0xff] }
 0x40e   : > { %5665 = vmatpush3.msra.mxu0 %v3866_v16  ;;  %4118 = vmatprep.mubr.f32.mxu0 %v3711_v14  ;;  %v3650_v2 = vpop.f32.mrf.mxu1  ;;  %v3713_v16 = vmax.f32 %v3631_v57, 0.0  ;;  %v3855_v14 = vld [vmem:[%s8958_s3 + $0x410] sm:$0xff] }
 0x40f   : > { %5193 = vmatpush3.msra.mxu1 %v3826_v55  ;;  %5666 = vmatprep.subr.mxu0 %v3865_v12  ;;  %v3651_v53 = vadd.f32 %v3650_v2, %v3406_v3  ;;  %v3718_v1 = vmax.f32 %v3656_v39, 0.0  ;;  %v3714_v5 = vmax.f32 %v3636_v63, 0.0  ;;  %v3641_v56 = vadd.f32 %v8727_v46, %v3396_v35  ;;  %v9372_v55 = vld [vmem:[#allocation53_spill] sm:$0xff]  ;;  %v4305_v57 = vld [vmem:[%s8959_s4 + $0x10] sm:$0xff] }
 0x410   : > { %5194 = vmatprep.subr.mxu1 %v3841_v47  ;;  %5667 = vmatpush3.msra.mxu0 %v3865_v12  ;;  %v8753_v50 = vpop.f32.mrf.mxu1  ;;  %v9373_v12 = vld [vmem:[#allocation33_spill] sm:$0xff]  ;;  %v9375_v47 = vld [vmem:[#allocation50_spill] sm:$0xff]  ;;  %v3716_v2 = vmax.f32 %v3646_v27, 0.0  ;;  %v4427_v39 = vld [vmem:[%s8960_s5 + $0x70] sm:$0xff] }
 0x411   : > { %5195 = vmatpush3.msra.mxu1 %v3825_v36  ;;  %5668 = vmatprep.subr.mxu0 %v3864_v45  ;;  %v3717_v58 = vmax.f32 %v3651_v53, 0.0  ;;  %v3666_v24 = vadd.f32 %v8753_v50, %v3421_v61  ;;  %v3715_v46 = vmax.f32 %v3641_v56, 0.0  ;;  %v3431_v43 = vadd.f32 %v9373_v12, %v9372_v55  ;;  %v4315_v53 = vld [vmem:[%s8959_s4 + $0x60] sm:$0xff]  ;;  %v4423_v34 = vld [vmem:[%s8960_s5 + $0x50] sm:$0xff] }
 0x412   : > { %4119 = vmatmul.mubr.f32.gmra.mxu0 %v3707_v26  ;;  %5196 = vmatprep.subr.mxu1 %v3840_v18  ;;  %v3660_v23 = vpop.f32.mrf.mxu1  ;;  %v3436_v36 = vadd.f32 %v9375_v47, %v9374_v40  ;;  %v9376_v18 = vld [vmem:[#allocation55_spill] sm:$0xff]  ;;  %v9377_v26 = vld [vmem:[#allocation38_spill] sm:$0xff] }
 0x413   : > { %5669 = vmatpush3.msra.mxu0 %v3864_v45  ;;  %4123 = vmatprep.mubr.f32.mxu0 %v3712_v19  ;;  %v3661_v31 = vadd.f32 %v3660_v23, %v3416_v59  ;;  %v3720_v54 = vmax.f32 %v3666_v24, 0.0  ;;  %v3441_v50 = vadd.f32 %v9377_v26, %v9376_v18  ;;  %v4316_v23 = vld [vmem:[%s8959_s4 + $0x68] sm:$0xff] }
 0x414   : > { %5197 = vmatpush3.msra.mxu1 %v3824_v9  ;;  %5670 = vmatprep.subr.mxu0 %v3863_v22  ;;  %v8778_v52 = vpop.f32.mrf.mxu1 }
 0x415   : > { %5198 = vmatprep.subr.mxu1 %v3839_v8  ;;  %5671 = vmatpush3.msra.mxu0 %v3863_v22  ;;  %v3719_v13 = vmax.f32 %v3661_v31, 0.0  ;;  %v3676_v45 = vadd.f32 %v8778_v52, %v3431_v43  ;;  %v4318_v22 = vld [vmem:[%s8959_s4 + $0x78] sm:$0xff]  ;;  %v4317_v8 = vld [vmem:[%s8959_s4 + $0x70] sm:$0xff] }
 0x416   : > { %5199 = vmatpush3.msra.mxu1 %v3823_v60  ;;  %5672 = vmatprep.subr.mxu0 %v3862_v49  ;;  %v3670_v37 = vpop.f32.mrf.mxu1  ;;  %v4314_v60 = vld [vmem:[%s8959_s4 + $0x58] sm:$0xff] }
 0x417   : > { %4124 = vmatmul.mubr.f32.gmra.mxu0 %v3708_v0  ;;  %5200 = vmatprep.subr.mxu1 %v3838_v28  ;;  %v3671_v15 = vadd.f32 %v3670_v37, %v3426_v44  ;;  %v3722_v3 = vmax.f32 %v3676_v45, 0.0  ;;  %v4311_v28 = vld [vmem:[%s8959_s4 + $0x40] sm:$0xff]  ;;  %v4310_v52 = vld [vmem:[%s8959_s4 + $0x38] sm:$0xff]  ;;  %v4308_v44 = vld [vmem:[%s8959_s4 + $0x28] sm:$0xff] }
 0x418   : > { %5673 = vmatpush3.msra.mxu0 %v3862_v49  ;;  %5201 = vmatpush3.msra.mxu1 %v3822_v38  ;;  %v5659_v30 = vpop.f32.mrf.mxu1  ;;  %v4313_v49 = vld [vmem:[%s8959_s4 + $0x50] sm:$0xff]  ;;  %v4307_v0 = vld [vmem:[%s8959_s4 + $0x20] sm:$0xff]  ;;  %v4306_v38 = vld [vmem:[%s8959_s4 + $0x18] sm:$0xff] }
 0x419   : > { %5674 = vmatprep.subr.mxu0 %v3861_v11  ;;  %5202 = vmatprep.subr.mxu1 %v3837_v62  ;;  %v3721_v6 = vmax.f32 %v3671_v15, 0.0  ;;  %v3686_v4 = vadd.f32 %v5659_v30, %v3441_v50  ;;  %v4303_v62 = vld [vmem:[%s8959_s4] sm:$0xff]  ;;  %v4428_v37 = vld [vmem:[%s8960_s5 + $0x78] sm:$0xff] }
 0x41a   : > { %5675 = vmatpush3.msra.mxu0 %v3861_v11  ;;  %5203 = vmatpush3.msra.mxu1 %v3821_v42  ;;  %v3680_v20 = vpop.f32.mrf.mxu1  ;;  %v4304_v11 = vld [vmem:[%s8959_s4 + $0x8] sm:$0xff]  ;;  %v4425_v42 = vld [vmem:[%s8960_s5 + $0x60] sm:$0xff]  ;;  %v4424_v15 = vld [vmem:[%s8960_s5 + $0x58] sm:$0xff] }
 0x41b   : > { %4193 = vmatprep.mubr.f32.mxu1 %v3717_v58  ;;  %5676 = vmatprep.subr.mxu0 %v3860_v21  ;;  %v3681_v33 = vadd.f32 %v3680_v20, %v3436_v36  ;;  %v3724_v9 = vmax.f32 %v3686_v4, 0.0  ;;  %v4426_v58 = vld [vmem:[%s8960_s5 + $0x68] sm:$0xff]  ;;  %v4785_v36 = vld [vmem:[%s8961_s6 + $0x2] ss:$0 sm:$0xff] }
 0x41c   : > { %4194 = vmatmul.mubr.f32.vlgmr.msra.gmra.mxu1 %v3713_v16  ;;  %5677 = vmatpush3.msra.mxu0 %v3860_v21 }
 0x41d   : > { %4198 = vmatprep.mubr.f32.mxu1 %v3718_v1  ;;  %5678 = vmatprep.subr.mxu0 %v3859_v7  ;;  %v3723_v19 = vmax.f32 %v3681_v33, 0.0 }
 0x41e   : > { %5679 = vmatpush3.msra.mxu0 %v3859_v7  ;;  %5692 = vmatprep.mubr.f32.mxu0 %v3721_v6 }
 0x41f   : > { %5680 = vmatprep.subr.mxu0 %v3858_v10  ;;  %5698 = vmatprep.subr.mxu1 %v4318_v22 }
 0x420   : > { %4199 = vmatmul.mubr.f32.gmra.mxu1 %v3714_v5  ;;  %5681 = vmatpush3.msra.mxu0 %v3858_v10 }
 0x421   : > { %4203 = vmatprep.mubr.f32.mxu1 %v3719_v13  ;;  %5682 = vmatprep.subr.mxu0 %v3857_v17 }
 0x422   : > { %5683 = vmatpush3.msra.mxu0 %v3857_v17  ;;  %5699 = vmatpush3.msra.mxu1 %v4318_v22 }
 0x423   : > { %5684 = vmatprep.subr.mxu0 %v3856_v32  ;;  %5700 = vmatprep.subr.mxu1 %v4317_v8 }
 0x424   : > { %4204 = vmatmul.mubr.f32.gmra.mxu1 %v3715_v46  ;;  %5685 = vmatpush3.msra.mxu0 %v3856_v32 }
 0x425   : > { %4208 = vmatprep.mubr.f32.mxu1 %v3720_v54  ;;  %5686 = vmatprep.subr.mxu0 %v3855_v14 }
 0x426   : > { %5687 = vmatpush3.msra.mxu0 %v3855_v14  ;;  %5701 = vmatpush3.msra.mxu1 %v4317_v8 }
 0x427   : > { %5688 = vmatprep.subr.mxu0 %v3854_v41  ;;  %5702 = vmatprep.subr.mxu1 %v4316_v23 }
 0x428   : > { %4209 = vmatmul.mubr.f32.gmra.mxu1 %v3716_v2  ;;  %5689 = vmatpush3.msra.mxu0 %v3854_v41 }
 0x429   : > { %5690 = vmatprep.subr.mxu0 %v3853_v51  ;;  %5703 = vmatpush3.msra.mxu1 %v4316_v23 }
 0x42a   : > { %5691 = vmatpush3.msra.mxu0 %v3853_v51  ;;  %5704 = vmatprep.subr.mxu1 %v4315_v53 }
 0x42b   : > { %5693 = vmatmul.mubr.f32.vlgmr.msra.gmra.mxu0 %v3722_v3  ;;  %5705 = vmatpush3.msra.mxu1 %v4315_v53 }
 0x42c   : > { %5695 = vmatprep.mubr.f32.mxu0 %v3723_v19  ;;  %5706 = vmatprep.subr.mxu1 %v4314_v60 }
 0x42d   : > { %5707 = vmatpush3.msra.mxu1 %v4314_v60  ;;  %5736 = vmatprep.subr.mxu0 %v4428_v37 }
 0x42e   : > { %5708 = vmatprep.subr.mxu1 %v4313_v49  ;;  %5737 = vmatpush3.msra.mxu0 %v4428_v37 }
 0x42f   : > { %5696 = vmatmul.mubr.f32.gmra.mxu0 %v3724_v9  ;;  %5709 = vmatpush3.msra.mxu1 %v4313_v49 }
 0x430   : > { %5710 = vmatprep.subr.mxu1 %v4312_v29  ;;  %5738 = vmatprep.subr.mxu0 %v4427_v39 }
 0x431   : > { %5711 = vmatpush3.msra.mxu1 %v4312_v29  ;;  %5739 = vmatpush3.msra.mxu0 %v4427_v39 }
 0x432   : > { %5712 = vmatprep.subr.mxu1 %v4311_v28  ;;  %5740 = vmatprep.subr.mxu0 %v4426_v58 }
 0x433   : > { %5713 = vmatpush3.msra.mxu1 %v4311_v28  ;;  %5741 = vmatpush3.msra.mxu0 %v4426_v58 }
 0x434   : > { %5714 = vmatprep.subr.mxu1 %v4310_v52  ;;  %5742 = vmatprep.subr.mxu0 %v4425_v42 }
 0x435   : > { %5715 = vmatpush3.msra.mxu1 %v4310_v52  ;;  %5743 = vmatpush3.msra.mxu0 %v4425_v42 }
 0x436   : > { %5716 = vmatprep.subr.mxu1 %v4309_v25  ;;  %5744 = vmatprep.subr.mxu0 %v4424_v15 }
 0x437   : > { %5717 = vmatpush3.msra.mxu1 %v4309_v25  ;;  %5745 = vmatpush3.msra.mxu0 %v4424_v15 }
 0x438   : > { %5718 = vmatprep.subr.mxu1 %v4308_v44  ;;  %5746 = vmatprep.subr.mxu0 %v4423_v34 }
 0x439   : > { %5719 = vmatpush3.msra.mxu1 %v4308_v44  ;;  %5747 = vmatpush3.msra.mxu0 %v4423_v34 }
 0x43a   : > { %5720 = vmatprep.subr.mxu1 %v4307_v0 }
 0x43b   : > { %5721 = vmatpush3.msra.mxu1 %v4307_v0 }
 0x43c   : > { %5722 = vmatprep.subr.mxu1 %v4306_v38 }
 0x43d   : > { %5723 = vmatpush3.msra.mxu1 %v4306_v38 }
 0x43e   : > { %5724 = vmatprep.subr.mxu1 %v4305_v57 }
 0x43f   : > { %5725 = vmatpush3.msra.mxu1 %v4305_v57 }
 0x440   : > { %5726 = vmatprep.subr.mxu1 %v4304_v11 }
 0x441   : > { %5727 = vmatpush3.msra.mxu1 %v4304_v11 }
 0x442   : > { %5728 = vmatprep.subr.mxu1 %v4303_v62 }
 0x443   : > { %5729 = vmatpush3.msra.mxu1 %v4303_v62 }
 0x4a4   : > { %v5072_v21 = vpop.f32.mrf.mxu0 }
 0x4a6   : > { %v5073_v59 = vpop.f32.mrf.mxu0 }
 0x4a7   : > { %v5074_v40 = vadd.f32 %v5073_v59, %v5072_v21 }
 0x4a8   : > { %v5075_v63 = vpop.f32.mrf.mxu0 }
 0x4a9   : > { %v3941_v3 = vadd.f32 %v5074_v40, %v4785_v36 }
 0x4aa   : > { %v5076_v16 = vpop.f32.mrf.mxu0 }
 0x4ab   : > { %v5077_v20 = vadd.f32 %v5076_v16, %v5075_v63 }
 0x4ac   : > { %v5078_v7 = vpop.f32.mrf.mxu0 }
 0x4ad   : > { %v3946_v18 = vadd.f32 %v5077_v20, %v4785_v36 }
 0x4ae   : > { %v5079_v6 = vpop.f32.mrf.mxu0 }
 0x4af   : > { %v5080_v4 = vadd.f32 %v5079_v6, %v5078_v7 }
 0x4b0   : > { %v5081_v31 = vpop.f32.mrf.mxu0 }
 0x4b1   : > { %v3951_v44 = vadd.f32 %v5080_v4, %v4785_v36 }
 0x4b2   : > { %v5082_v10 = vpop.f32.mrf.mxu0 }
 0x4b3   : > { %v5083_v41 = vadd.f32 %v5082_v10, %v5081_v31 }
 0x4b4   : > { %v5116_v1 = vpop.f32.mrf.mxu1 }
 0x4b5   : > { %v3956_v22 = vadd.f32 %v5083_v41, %v4785_v36 }
 0x4b6   : > { %v5117_v35 = vpop.f32.mrf.mxu1 }
 0x4b7   : > { %v5118_v2 = vadd.f32 %v5117_v35, %v5116_v1 }
 0x4b9   : > { %v5119_v61 = vpop.f32.mrf.mxu1  ;;  %v4026_v60 = vadd.f32 %v5118_v2, %v3941_v3 }
 0x4bb   : > { %v5120_v56 = vpop.f32.mrf.mxu1 }
 0x4bc   : > { %v5121_v45 = vadd.f32 %v5120_v56, %v5119_v61 }
 0x4be   : > { %v5122_v24 = vpop.f32.mrf.mxu1  ;;  %v4031_v8 = vadd.f32 %v5121_v45, %v3946_v18 }
 0x4c0   : > { %v5123_v30 = vpop.f32.mrf.mxu1 }
 0x4c1   : > { %v5124_v49 = vadd.f32 %v5123_v30, %v5122_v24  ;;  %v4421_v24 = vld [vmem:[%s8960_s5 + $0x40] sm:$0xff]  ;;  %v4419_v30 = vld [vmem:[%s8960_s5 + $0x30] sm:$0xff] }
 0x4c3   : > { %v5125_v32 = vpop.f32.mrf.mxu1  ;;  %v4036_v58 = vadd.f32 %v5124_v49, %v3951_v44 }
 0x4c5   : > { %v5126_v46 = vpop.f32.mrf.mxu1 }
 0x4c6   : > { %v5127_v26 = vadd.f32 %v5126_v46, %v5125_v32  ;;  %v4417_v32 = vld [vmem:[%s8960_s5 + $0x20] sm:$0xff]  ;;  %v4415_v46 = vld [vmem:[%s8960_s5 + $0x10] sm:$0xff] }
 0x4c8   : > { %v5160_v5 = vpop.f32.mrf.mxu0  ;;  %v4041_v52 = vadd.f32 %v5127_v26, %v3956_v22 }
 0x4ca   : > { %v5161_v17 = vpop.f32.mrf.mxu0 }
 0x4cb   : > { %v5162_v19 = vadd.f32 %v5161_v17, %v5160_v5  ;;  %v4422_v17 = vld [vmem:[%s8960_s5 + $0x48] sm:$0xff] }
 0x4cc   : > { %5748 = vmatprep.subr.mxu0 %v4422_v17 }
 0x4cd   : > { %v5163_v13 = vpop.f32.mrf.mxu0  ;;  %v4111_v0 = vadd.f32 %v5162_v19, %v4026_v60  ;;  %5749 = vmatpush3.msra.mxu0 %v4422_v17 }
 0x4ce   : > { %5750 = vmatprep.subr.mxu0 %v4421_v24 }
 0x4cf   : > { %v5164_v48 = vpop.f32.mrf.mxu0  ;;  %5751 = vmatpush3.msra.mxu0 %v4421_v24 }
 0x4d0   : > { %v5165_v50 = vadd.f32 %v5164_v48, %v5163_v13  ;;  %v4420_v13 = vld [vmem:[%s8960_s5 + $0x38] sm:$0xff]  ;;  %v4418_v48 = vld [vmem:[%s8960_s5 + $0x28] sm:$0xff] }
 0x4d1   : > { %5752 = vmatprep.subr.mxu0 %v4420_v13 }
 0x4d2   : > { %v5166_v27 = vpop.f32.mrf.mxu0  ;;  %v4116_v25 = vadd.f32 %v5165_v50, %v4031_v8  ;;  %5753 = vmatpush3.msra.mxu0 %v4420_v13  ;;  %v4787_v50 = vld [vmem:[%s8961_s6 + $0x4] ss:$0 sm:$0xff] }
 0x4d3   : > { %5754 = vmatprep.subr.mxu0 %v4419_v30 }
 0x4d4   : > { %v5167_v14 = vpop.f32.mrf.mxu0  ;;  %5755 = vmatpush3.msra.mxu0 %v4419_v30 }
 0x4d5   : > { %v5168_v38 = vadd.f32 %v5167_v14, %v5166_v27  ;;  %5756 = vmatprep.subr.mxu0 %v4418_v48  ;;  %v4416_v27 = vld [vmem:[%s8960_s5 + $0x18] sm:$0xff]  ;;  %v4414_v14 = vld [vmem:[%s8960_s5 + $0x8] sm:$0xff] }
 0x4d6   : > { %5757 = vmatpush3.msra.mxu0 %v4418_v48 }
 0x4d7   : > { %v5169_v43 = vpop.f32.mrf.mxu0  ;;  %v4121_v63 = vadd.f32 %v5168_v38, %v4036_v58  ;;  %5758 = vmatprep.subr.mxu0 %v4417_v32 }
 0x4d8   : > { %5759 = vmatpush3.msra.mxu0 %v4417_v32 }
 0x4d9   : > { %v5170_v33 = vpop.f32.mrf.mxu0  ;;  %5760 = vmatprep.subr.mxu0 %v4416_v27 }
 0x4da   : > { %v5171_v23 = vadd.f32 %v5170_v33, %v5169_v43  ;;  %5761 = vmatpush3.msra.mxu0 %v4416_v27 }
 0x4db   : > { %5762 = vmatprep.subr.mxu0 %v4415_v46 }
 0x4dc   : > { %v5204_v55 = vpop.f32.mrf.mxu1  ;;  %v4126_v11 = vadd.f32 %v5171_v23, %v4041_v52  ;;  %5763 = vmatpush3.msra.mxu0 %v4415_v46 }
 0x4dd   : > { %5764 = vmatprep.subr.mxu0 %v4414_v14 }
 0x4de   : > { %v5205_v12 = vpop.f32.mrf.mxu1  ;;  %5765 = vmatpush3.msra.mxu0 %v4414_v14 }
 0x4df   : > { %v5206_v29 = vadd.f32 %v5205_v12, %v5204_v55  ;;  %v4413_v55 = vld [vmem:[%s8960_s5] sm:$0xff] }
 0x4e0   : > { %v5207_v54 = vpop.f32.mrf.mxu1  ;;  %5766 = vmatprep.subr.mxu0 %v4413_v55  ;;  %v4786_v12 = vld [vmem:[%s8961_s6 + $0x3] ss:$0 sm:$0xff] }
 0x4e1   : > { %v4196_v15 = vadd.f32 %v5206_v29, %v4111_v0  ;;  %5767 = vmatpush3.msra.mxu0 %v4413_v55 }
 0x4e2   : > { %v5208_v47 = vpop.f32.mrf.mxu1 }
 0x4e3   : > { %v5209_v53 = vadd.f32 %v5208_v47, %v5207_v54 }
 0x4e4   : > { %v5210_v51 = vpop.f32.mrf.mxu1 }
 0x4e5   : > { %v4201_v37 = vadd.f32 %v5209_v53, %v4116_v25 }
 0x4e6   : > { %v5211_v9 = vpop.f32.mrf.mxu1 }
 0x4e7   : > { %v5212_v42 = vadd.f32 %v5211_v9, %v5210_v51 }
 0x4e8   : > { %v5213_v28 = vpop.f32.mrf.mxu1 }
 0x4e9   : > { %v4206_v1 = vadd.f32 %v5212_v42, %v4121_v63 }
 0x4ea   : > { %v5214_v57 = vpop.f32.mrf.mxu1 }
 0x4eb   : > { %v5215_v62 = vadd.f32 %v5214_v57, %v5213_v28  ;;  %v5694_v39 = vpop.f32.mrf.mxu0 }
 0x4ec   : > { %v4286_v34 = vadd.f32 %v5694_v39, %v4201_v37 }
 0x4ed   : > { %v4280_v21 = vpop.f32.mrf.mxu0  ;;  %v4211_v59 = vadd.f32 %v5215_v62, %v4126_v11 }
 0x4ee   : > { %v4281_v16 = vadd.f32 %v4280_v21, %v4196_v15  ;;  %v4300_v31 = vmax.f32 %v4286_v34, 0.0 }
 0x4ef   : > { %v5697_v7 = vpop.f32.mrf.mxu0 }
 0x4f0   : > { %v4299_v6 = vmax.f32 %v4281_v16, 0.0  ;;  %v4296_v35 = vadd.f32 %v5697_v7, %v4211_v59 }
 0x4f1   : > { %v4290_v10 = vpop.f32.mrf.mxu0 }
 0x4f2   : > { %v4291_v61 = vadd.f32 %v4290_v10, %v4206_v1  ;;  %5730 = vmatprep.mubr.f32.mxu1 %v4299_v6  ;;  %v4302_v56 = vmax.f32 %v4296_v35, 0.0 }
 0x4f3   : > { %5731 = vmatmul.mubr.f32.vlgmr.msra.gmra.mxu1 %v4300_v31 }
 0x4f4   : > { %v4301_v5 = vmax.f32 %v4291_v61, 0.0 }
 0x4f6   : > { %5733 = vmatprep.mubr.f32.mxu1 %v4301_v5 }
 0x4f7   : > { %5734 = vmatmul.mubr.f32.gmra.mxu1 %v4302_v56 }
 0x5b3   : > { %v5732_v43 = vpop.f32.mrf.mxu1 }
 0x5b4   : > { %v4396_v54 = vadd.f32 %v5732_v43, %v4786_v12 }
 0x5b5   : > { %v4390_v20 = vpop.f32.mrf.mxu1 }
 0x5b6   : > { %v4391_v40 = vadd.f32 %v4786_v12, %v4390_v20 }
 0x5b7   : > { %v5735_v47 = vpop.f32.mrf.mxu1 }
 0x5b8   : > { %5783 = vtanh.f32 %v4391_v40  ;;  %v4406_v36 = vadd.f32 %v5735_v47, %v4786_v12 }
 0x5b9   : > { %5785 = vtanh.f32 %v4396_v54  ;;  %v4400_v41 = vpop.f32.mrf.mxu1 }
 0x5ba   : > { %v4401_v45 = vadd.f32 %v4786_v12, %v4400_v41 }
 0x5bc   : > { %5787 = vtanh.f32 %v4401_v45 }
 0x5bd   : > { %5789 = vtanh.f32 %v4406_v36 }
 0x5c5   : > { %v5784_v2 = vpop.eup %5783 }
 0x5c6   : > { %v5786_v33 = vpop.eup %5785  ;;  %5768 = vmatprep.mubr.f32.mxu0 %v5784_v2 }
 0x5c7   : > { %5769 = vmatmul.mubr.f32.vlgmr.msra.gmra.mxu0 %v5786_v33 }
 0x5c9   : > { %v5788_v51 = vpop.eup %5787 }
 0x5ca   : > { %v5790_v18 = vpop.eup %5789  ;;  %5771 = vmatprep.mubr.f32.mxu0 %v5788_v51 }
 0x5cb   : > { %5772 = vmatmul.mubr.f32.gmra.mxu0 %v5790_v18 }
 0x687   : > { %v5770_v26 = vpop.f32.mrf.mxu0 }
 0x688   : > { %v4506_v19 = vadd.f32 %v5770_v26, %v4787_v50 }
 0x689   : > { %v4500_v3 = vpop.f32.mrf.mxu0 }
 0x68a   : > { %v4501_v4 = vadd.f32 %v4787_v50, %v4500_v3  ;;  %4520 = vst [vmem:[%s280_s8 + $0x8] sm:$0xff] %v4506_v19 }
 0x68b   : > { %v5773_v9 = vpop.f32.mrf.mxu0 }
 0x68c   : > { %4519 = vst [vmem:[%s280_s8] sm:$0xff] %v4501_v4  ;;  %v4516_v23 = vadd.f32 %v5773_v9, %v4787_v50 }
 0x68d   : > { %v4510_v22 = vpop.f32.mrf.mxu0 }
 0x68e   : > { %v4511_v8 = vadd.f32 %v4787_v50, %v4510_v22  ;;  %4522 = vst [vmem:[%s280_s8 + $0x18] sm:$0xff] %v4516_v23 }
 0x690   : > { %4521 = vst [vmem:[%s280_s8 + $0x10] sm:$0xff] %v4511_v8 }
 0x691 PF: > { %s17_s24 = sadd.s32 1, %s5800_s24  }
 0x692   : > { %p14_p5 = scmp.ge.s32.totalorder %s17_s24, 4  }
 0x694   :  { %16 = sbr.rel (!%p14_p5) target bundleno = 1 (0x1), region = 78 }

</bundles_post_ra>
